<compile_context>
chip_gen: v7x
topology: tpu7x:2x2x1
jax: 0.10.0
libtpu: 0.0.40
codegen_flags: <defaults>
</compile_context>

<pallas_src>
import jax
import jax.numpy as jnp
import numpy as np
from jax import lax
from jax.experimental import pallas as pl
from jax.experimental.pallas import tpu as pltpu


# --------------------------- model hyperparameters ---------------------------

IN_CHANNELS = 3
C1, C2 = 16, 32            # mini cfg [16, "M", 32, "M"]
HIDDEN = 128               # stands in for 4096
NUM_CLASSES = 10           # stands in for 1000
DPAD = 128                 # classifier output padded to a full lane tile
K1P = 128                  # im2col contraction pad for conv1 (9*3  = 27  -> 128)
K2P = 256                  # im2col contraction pad for conv2 (9*16 = 144 -> 256)


# ------------------------------ kernel helpers -------------------------------

def _zero_halo(pad_ref):
    """Zero only the 1-pixel border of (N, H+2, W+2, C); interior untouched."""
    n, hp, wp, c = pad_ref.shape
    h, w = hp - 2, wp - 2
    zrow = jnp.zeros((n, 1, wp, c), jnp.float32)
    pad_ref[:, 0:1, :, :] = zrow
    pad_ref[:, hp - 1:hp, :, :] = zrow
    zcol = jnp.zeros((n, h, 1, c), jnp.float32)
    pad_ref[:, 1:h + 1, 0:1, :] = zcol
    pad_ref[:, 1:h + 1, wp - 1:wp, :] = zcol


def _conv3x3_relu(pad_ref, col_ref, w_ref, b_ref):
    """3x3 SAME conv + bias + ReLU as ONE im2col matmul.

    pad_ref: (N, H+2, W+2, Cin) f32, halo zeroed, interior filled.
    col_ref: (N*H*W, K_pad)     f32 im2col scratch, K_pad >= 9*Cin.
    w_ref:   (K_pad, Cout)      bf16 (rows >= 9*Cin are zero).
    b_ref:   (1, Cout)          f32.
    returns  (N*H*W, Cout)      f32.
    """
    n, hp, wp, cin = pad_ref.shape
    h, w = hp - 2, wp - 2
    k, kp = 9 * cin, col_ref.shape[-1]
    # Padded weight rows are zero, but uninitialised VMEM may hold NaN/Inf
    # (NaN * 0 != 0), so zero the unused im2col lanes once (tail only).
    if kp > k:
        col_ref[:, k:] = jnp.zeros((n * h * w, kp - k), jnp.float32)
    # 9 shifted taps stored at lane offsets t*Cin -> one MXU pass.
    for t in range(9):
        ky, kx = t // 3, t % 3
        patch = pad_ref[:, ky:ky + h, kx:kx + w, :]
        col_ref[:, t * cin:(t + 1) * cin] = patch.reshape(n * h * w, cin)
    acc = jnp.dot(col_ref[...].astype(jnp.bfloat16), w_ref[...],
                  preferred_element_type=jnp.float32)
    return jnp.maximum(acc + b_ref[...], 0.0)


# ------------------------------- fused kernel --------------------------------

def _vgg_kernel(x_ref, w1c_ref, b1c_ref, w2c_ref, b2c_ref,
                wf1_ref, bf1_ref, wf2_ref, bf2_ref, wf3_ref, bf3_ref,
                o_ref,
                pad1_ref, col1_ref, wsplit1_ref,
                pad2_ref, col2_ref, ybuf2_ref, wide2_ref, flat_ref):
    n, h1, w1, _ = x_ref.shape
    h2, w2 = h1 // 2, w1 // 2          # after first 2x2 pool
    hf, wf = h2 // 2, w2 // 2          # after second 2x2 pool
    c1 = w1c_ref.shape[-1]
    c2 = w2c_ref.shape[-1]

    # ---- stage 1: conv3x3(SAME) + ReLU ------------------------------------
    _zero_halo(pad1_ref)
    pad1_ref[:, 1:h1 + 1, 1:w1 + 1, :] = x_ref[...]
    y1 = _conv3x3_relu(pad1_ref, col1_ref, w1c_ref, b1c_ref)   # (N*H1*W1, C1)

    # ---- stage 1: 2x2/2 maxpool, result lands in pad2's interior ----------
    # W-pool: expose the x-parity as its own axis via one scratch store and
    # max the halves; the H-pool is a pure value op (groups of W1//2
    # sublanes), so there is no second round-trip.
    wsplit1_ref[...] = y1.reshape(n * h1 * w2, 2, c1)
    wm1 = jnp.maximum(wsplit1_ref[:, 0, :], wsplit1_ref[:, 1, :])
    t1 = wm1.reshape(n * h2, 2, w2, c1)
    pooled1 = jnp.maximum(t1[:, 0], t1[:, 1])                  # (N*H2, W2, C1)

    _zero_halo(pad2_ref)
    pad2_ref[:, 1:h2 + 1, 1:w2 + 1, :] = pooled1.reshape(n, h2, w2, c1)

    # ---- stage 2: conv3x3(SAME) + ReLU ------------------------------------
    y2 = _conv3x3_relu(pad2_ref, col2_ref, w2c_ref, b2c_ref)   # (N*H2*W2, C2)

    # ---- stage 2: 2x2/2 maxpool fused with the NHWC flatten ----------------
    # The pooled result is assembled directly into a lane-dense (N, HF*WF*C2)
    # buffer (128-lane slabs), so no relayout "flatten" is needed before the
    # classifier; wf1's rows were permuted on the host to match this order.
    ybuf2_ref[...] = y2.reshape(n * h2, w2, c2)
    for xo in range(wf):                           # W-pool -> lane offsets
        wcol = jnp.maximum(ybuf2_ref[:, 2 * xo, :], ybuf2_ref[:, 2 * xo + 1, :])
        wide2_ref[:, :, xo * c2:(xo + 1) * c2] = wcol.reshape(n, h2, c2)
    slab = wf * c2                                 # 128 lanes per row slab
    for yo in range(hf):                           # H-pool -> flat slabs
        flat_ref[:, yo * slab:(yo + 1) * slab] = jnp.maximum(
            wide2_ref[:, 2 * yo, :], wide2_ref[:, 2 * yo + 1, :])

    # ---- classifier: Linear+ReLU, Linear+ReLU, Linear ----------------------
    h = jnp.dot(flat_ref[...].astype(jnp.bfloat16), wf1_ref[...],
                preferred_element_type=jnp.float32) + bf1_ref[...]
    h = jnp.maximum(h, 0.0)
    # TODO(synk): Dropout(p=0.5) -> identity (eval mode).
    h = jnp.dot(h.astype(jnp.bfloat16), wf2_ref[...],
                preferred_element_type=jnp.float32) + bf2_ref[...]
    h = jnp.maximum(h, 0.0)
    # Dropout(p=0.5) -> identity (eval mode).
    o_ref[...] = jnp.dot(h.astype(jnp.bfloat16), wf3_ref[...],
                         preferred_element_type=jnp.float32) + bf3_ref[...]


# --------------------------------- wrapper -----------------------------------

def vgg_pallas(x_nhwc, p):
    n, h1, w1, cin = x_nhwc.shape
    h2, w2 = h1 // 2, w1 // 2
    hf, wf = h2 // 2, w2 // 2
    c1 = p["w1c"].shape[-1]
    c2 = p["w2c"].shape[-1]
    scratch = [
        pltpu.VMEM((n, h1 + 2, w1 + 2, cin), jnp.float32),           # pad1
        pltpu.VMEM((n * h1 * w1, p["w1c"].shape[0]), jnp.float32),   # im2col1
        pltpu.VMEM((n * h1 * w2, 2, c1), jnp.float32),               # wsplit1
        pltpu.VMEM((n, h2 + 2, w2 + 2, c1), jnp.float32),            # pad2
        pltpu.VMEM((n * h2 * w2, p["w2c"].shape[0]), jnp.float32),   # im2col2
        pltpu.VMEM((n * h2, w2, c2), jnp.float32),                   # ybuf2
        pltpu.VMEM((n, h2, wf * c2), jnp.float32),                   # wide2
        pltpu.VMEM((n, hf * wf * c2), jnp.float32),                  # flat
    ]
    out = pl.pallas_call(
        _vgg_kernel,
        out_shape=jax.ShapeDtypeStruct((n, DPAD), jnp.float32),
        scratch_shapes=scratch,
        # NOTE: no grid -> single block; for larger N add a batch grid with
        # dimension_semantics=("parallel",) (v7x megacore) and set
        # vmem_limit_bytes with double-buffer headroom.
    )(x_nhwc, p["w1c"], p["b1c"], p["w2c"], p["b2c"],
      p["wf1"], p["bf1"], p["wf2"], p["bf2"], p["wf3"], p["bf3"])
    return out[:, :NUM_CLASSES]


@jax.jit
def vgg_forward(prepped, x_nchw):
    # NCHW (PyTorch convention) -> NHWC for the kernel.  TODO(synk): an
    # NHWC-native caller could skip this single tiny XLA transpose; folding it
    # into the kernel needs a lane-dim-changing relayout of the input.
    x = jnp.transpose(x_nchw, (0, 2, 3, 1))
    return vgg_pallas(x, prepped)


# --------------------------- parameters & host prep ---------------------------

def _xavier_uniform(key, shape, fan_in, fan_out):
    bound = float(np.sqrt(6.0 / (fan_in + fan_out)))
    return jax.random.uniform(key, shape, jnp.float32, -bound, bound)


def init_params(key, spatial):
    feats, cls = [], []
    c_in, s = IN_CHANNELS, spatial
    for v in (C1, C2):                                # [16, "M", 32, "M"]
        key, k = jax.random.split(key)
        w = _xavier_uniform(k, (3, 3, c_in, v), fan_in=c_in * 9, fan_out=v * 9)
        feats.append((w, jnp.zeros((v,), jnp.float32)))   # constant_(bias, 0)
        c_in, s = v, s // 2
    flat = c_in * s * s
    for din, dout in [(flat, HIDDEN), (HIDDEN, HIDDEN), (HIDDEN, NUM_CLASSES)]:
        key, k = jax.random.split(key)
        cls.append((_xavier_uniform(k, (din, dout), fan_in=din, fan_out=dout),
                    jnp.zeros((dout,), jnp.float32)))
    return {"features": feats, "classifier": cls}


def prepare_params(params):
    """Host-side, once: im2col-flatten + lane-pad conv weights, permute wf1's
    rows from NCHW- to NHWC-flatten order, pad the class dim to a full lane
    tile, cast matmul operands to bf16 (f32 accumulation in-kernel)."""
    (w1, b1), (w2, b2) = params["features"]
    (wf1, bf1), (wf2, bf2), (wf3, bf3) = params["classifier"]
    cin, c1 = w1.shape[2], w1.shape[3]
    c2 = w2.shape[3]
    k1, k2 = 9 * cin, 9 * c1
    w1c = jnp.pad(w1.reshape(k1, c1), ((0, K1P - k1), (0, 0)))
    w2c = jnp.pad(w2.reshape(k2, c2), ((0, K2P - k2), (0, 0)))
    # wf1's rows are indexed by the NCHW flatten (c, y, x); the kernel's flat
    # buffer is NHWC (y, x, c) -> permute the rows once on the host.
    hw = wf1.shape[0] // c2
    side = int(round(np.sqrt(hw)))
    perm = np.arange(c2 * side * side).reshape(c2, side, side)
    perm = perm.transpose(1, 2, 0).reshape(-1)
    wf1p = wf1[perm, :]
    wf3p = jnp.pad(wf3, ((0, 0), (0, DPAD - wf3.shape[1])))
    bf3p = jnp.pad(bf3, (0, DPAD - bf3.shape[0]))
    f32 = jnp.float32
    return {
        "w1c": w1c.astype(jnp.bfloat16), "b1c": b1.reshape(1, -1).astype(f32),
        "w2c": w2c.astype(jnp.bfloat16), "b2c": b2.reshape(1, -1).astype(f32),
        "wf1": wf1p.astype(jnp.bfloat16), "bf1": bf1.reshape(1, -1).astype(f32),
        "wf2": wf2.astype(jnp.bfloat16), "bf2": bf2.reshape(1, -1).astype(f32),
        "wf3": wf3p.astype(jnp.bfloat16), "bf3": bf3p.reshape(1, -1).astype(f32),
    }


# ------------------------------- pure-JAX ref ---------------------------------

def reference_forward(params, x_nchw):
    x = x_nchw
    for w, b in params["features"]:                            # (3,3,Cin,Cout)
        w_oihw = jnp.transpose(w, (3, 2, 0, 1))
        x = lax.conv_general_dilated(
            x, w_oihw, (1, 1), ((1, 1), (1, 1)),
            dimension_numbers=("NCHW", "OIHW", "NCHW"))
        x = jnp.maximum(x + b.reshape(1, -1, 1, 1), 0.0)
        x = lax.reduce_window(x, -jnp.inf, lax.max,
                              (1, 1, 2, 2), (1, 1, 2, 2), "VALID")
    x = x.reshape(x.shape[0], -1)                              # NCHW flatten
    (w1, b1), (w2, b2), (w3, b3) = params["classifier"]
    x = jnp.maximum(x @ w1 + b1, 0.0)
    x = jnp.maximum(x @ w2 + b2, 0.0)
    return x @ w3 + b3


# ----------------------------------- main -------------------------------------

if __name__ == "__main__":
    key = jax.random.PRNGKey(0)
    key, kx = jax.random.split(key)

    N, S = 2, 16                                               # NCHW input
    x = jax.random.normal(kx, (N, IN_CHANNELS, S, S), jnp.float32)

    params = init_params(key, spatial=S)
    prepped = prepare_params(params)

    out = jax.block_until_ready(vgg_forward(prepped, x))
    assert out.shape == (N, NUM_CLASSES), out.shape

    ref = jax.block_until_ready(reference_forward(params, x))
    # bf16 MXU operands (f32 accumulation) vs. the all-f32 reference.
    np.testing.assert_allclose(np.asarray(out), np.asarray(ref),
                               rtol=5e-2, atol=5e-2)

    print("KERNEL_OK")
</pallas_src>

<mosaic_0001>
module attributes {stable_mosaic.version = 11 : i64} {
  func.func @_vgg_kernel(%arg0: memref<2x16x16x3xf32, #tpu.memory_space<vmem>>, %arg1: memref<128x16xbf16, #tpu.memory_space<vmem>>, %arg2: memref<1x16xf32, #tpu.memory_space<vmem>>, %arg3: memref<256x32xbf16, #tpu.memory_space<vmem>>, %arg4: memref<1x32xf32, #tpu.memory_space<vmem>>, %arg5: memref<512x128xbf16, #tpu.memory_space<vmem>>, %arg6: memref<1x128xf32, #tpu.memory_space<vmem>>, %arg7: memref<128x128xbf16, #tpu.memory_space<vmem>>, %arg8: memref<1x128xf32, #tpu.memory_space<vmem>>, %arg9: memref<128x128xbf16, #tpu.memory_space<vmem>>, %arg10: memref<1x128xf32, #tpu.memory_space<vmem>>, %arg11: memref<2x128xf32, #tpu.memory_space<vmem>>, %arg12: memref<2x18x18x3xf32, #tpu.memory_space<vmem>>, %arg13: memref<512x128xf32, #tpu.memory_space<vmem>>, %arg14: memref<256x2x16xf32, #tpu.memory_space<vmem>>, %arg15: memref<2x10x10x16xf32, #tpu.memory_space<vmem>>, %arg16: memref<128x256xf32, #tpu.memory_space<vmem>>, %arg17: memref<16x8x32xf32, #tpu.memory_space<vmem>>, %arg18: memref<2x8x128xf32, #tpu.memory_space<vmem>>, %arg19: memref<2x512xf32, #tpu.memory_space<vmem>>) attributes {dimension_semantics = [], scalar_prefetch = 0 : i64, scratch_operands = 8 : i64, tpu.core_type = #tpu.core_type<tc>} {
    %cst = arith.constant 0.000000e+00 : f32
    %0 = vector.broadcast %cst : f32 to vector<2x1x18x3xf32>
    %c0 = arith.constant 0 : index
    %c0_0 = arith.constant 0 : index
    %c0_1 = arith.constant 0 : index
    %c0_2 = arith.constant 0 : index
    %1 = vector.load %arg12[%c0, %c0_0, %c0_1, %c0_2] : memref<2x18x18x3xf32, #tpu.memory_space<vmem>>, vector<2x1x18x3xf32>
    tpu.vector_store %arg12[%c0, %c0_0, %c0_1, %c0_2], %0 {strides = array<i32>} : memref<2x18x18x3xf32, #tpu.memory_space<vmem>>, vector<2x1x18x3xf32>,
    %c0_3 = arith.constant 0 : index
    %c17 = arith.constant 17 : index
    %c0_4 = arith.constant 0 : index
    %c0_5 = arith.constant 0 : index
    %2 = vector.load %arg12[%c0_3, %c17, %c0_4, %c0_5] : memref<2x18x18x3xf32, #tpu.memory_space<vmem>>, vector<2x1x18x3xf32>
    tpu.vector_store %arg12[%c0_3, %c17, %c0_4, %c0_5], %0 {strides = array<i32>} : memref<2x18x18x3xf32, #tpu.memory_space<vmem>>, vector<2x1x18x3xf32>,
    %cst_6 = arith.constant 0.000000e+00 : f32
    %3 = vector.broadcast %cst_6 : f32 to vector<2x16x1x3xf32>
    %c0_7 = arith.constant 0 : index
    %c1 = arith.constant 1 : index
    %c0_8 = arith.constant 0 : index
    %c0_9 = arith.constant 0 : index
    %4 = vector.load %arg12[%c0_7, %c1, %c0_8, %c0_9] : memref<2x18x18x3xf32, #tpu.memory_space<vmem>>, vector<2x16x1x3xf32>
    tpu.vector_store %arg12[%c0_7, %c1, %c0_8, %c0_9], %3 {strides = array<i32>} : memref<2x18x18x3xf32, #tpu.memory_space<vmem>>, vector<2x16x1x3xf32>,
    %c0_10 = arith.constant 0 : index
    %c1_11 = arith.constant 1 : index
    %c17_12 = arith.constant 17 : index
    %c0_13 = arith.constant 0 : index
    %5 = vector.load %arg12[%c0_10, %c1_11, %c17_12, %c0_13] : memref<2x18x18x3xf32, #tpu.memory_space<vmem>>, vector<2x16x1x3xf32>
    tpu.vector_store %arg12[%c0_10, %c1_11, %c17_12, %c0_13], %3 {strides = array<i32>} : memref<2x18x18x3xf32, #tpu.memory_space<vmem>>, vector<2x16x1x3xf32>,
    %c0_14 = arith.constant 0 : index
    %c0_15 = arith.constant 0 : index
    %c0_16 = arith.constant 0 : index
    %c0_17 = arith.constant 0 : index
    %6 = vector.load %arg0[%c0_14, %c0_15, %c0_16, %c0_17] : memref<2x16x16x3xf32, #tpu.memory_space<vmem>>, vector<2x16x16x3xf32>
    %c0_18 = arith.constant 0 : index
    %c1_19 = arith.constant 1 : index
    %c1_20 = arith.constant 1 : index
    %c0_21 = arith.constant 0 : index
    %7 = vector.load %arg12[%c0_18, %c1_19, %c1_20, %c0_21] : memref<2x18x18x3xf32, #tpu.memory_space<vmem>>, vector<2x16x16x3xf32>
    tpu.vector_store %arg12[%c0_18, %c1_19, %c1_20, %c0_21], %6 {strides = array<i32>} : memref<2x18x18x3xf32, #tpu.memory_space<vmem>>, vector<2x16x16x3xf32>,
    %cst_22 = arith.constant 0.000000e+00 : f32
    %8 = vector.broadcast %cst_22 : f32 to vector<512x101xf32>
    %c0_23 = arith.constant 0 : index
    %c27 = arith.constant 27 : index
    %9 = vector.load %arg13[%c0_23, %c27] : memref<512x128xf32, #tpu.memory_space<vmem>>, vector<512x101xf32>
    tpu.vector_store %arg13[%c0_23, %c27], %8 {strides = array<i32>} : memref<512x128xf32, #tpu.memory_space<vmem>>, vector<512x101xf32>,
    %c0_24 = arith.constant 0 : index
    %c0_25 = arith.constant 0 : index
    %c0_26 = arith.constant 0 : index
    %c0_27 = arith.constant 0 : index
    %10 = vector.load %arg12[%c0_24, %c0_25, %c0_26, %c0_27] : memref<2x18x18x3xf32, #tpu.memory_space<vmem>>, vector<2x16x16x3xf32>
    %11 = vector.shape_cast %10 : vector<2x16x16x3xf32> to vector<512x3xf32>
    %c0_28 = arith.constant 0 : index
    %c0_29 = arith.constant 0 : index
    %12 = vector.load %arg13[%c0_28, %c0_29] : memref<512x128xf32, #tpu.memory_space<vmem>>, vector<512x3xf32>
    tpu.vector_store %arg13[%c0_28, %c0_29], %11 {strides = array<i32>} : memref<512x128xf32, #tpu.memory_space<vmem>>, vector<512x3xf32>,
    %c0_30 = arith.constant 0 : index
    %c0_31 = arith.constant 0 : index
    %c1_32 = arith.constant 1 : index
    %c0_33 = arith.constant 0 : index
    %13 = vector.load %arg12[%c0_30, %c0_31, %c1_32, %c0_33] : memref<2x18x18x3xf32, #tpu.memory_space<vmem>>, vector<2x16x16x3xf32>
    %14 = vector.shape_cast %13 : vector<2x16x16x3xf32> to vector<512x3xf32>
    %c0_34 = arith.constant 0 : index
    %c3 = arith.constant 3 : index
    %15 = vector.load %arg13[%c0_34, %c3] : memref<512x128xf32, #tpu.memory_space<vmem>>, vector<512x3xf32>
    tpu.vector_store %arg13[%c0_34, %c3], %14 {strides = array<i32>} : memref<512x128xf32, #tpu.memory_space<vmem>>, vector<512x3xf32>,
    %c0_35 = arith.constant 0 : index
    %c0_36 = arith.constant 0 : index
    %c2 = arith.constant 2 : index
    %c0_37 = arith.constant 0 : index
    %16 = vector.load %arg12[%c0_35, %c0_36, %c2, %c0_37] : memref<2x18x18x3xf32, #tpu.memory_space<vmem>>, vector<2x16x16x3xf32>
    %17 = vector.shape_cast %16 : vector<2x16x16x3xf32> to vector<512x3xf32>
    %c0_38 = arith.constant 0 : index
    %c6 = arith.constant 6 : index
    %18 = vector.load %arg13[%c0_38, %c6] : memref<512x128xf32, #tpu.memory_space<vmem>>, vector<512x3xf32>
    tpu.vector_store %arg13[%c0_38, %c6], %17 {strides = array<i32>} : memref<512x128xf32, #tpu.memory_space<vmem>>, vector<512x3xf32>,
    %c0_39 = arith.constant 0 : index
    %c1_40 = arith.constant 1 : index
    %c0_41 = arith.constant 0 : index
    %c0_42 = arith.constant 0 : index
    %19 = vector.load %arg12[%c0_39, %c1_40, %c0_41, %c0_42] : memref<2x18x18x3xf32, #tpu.memory_space<vmem>>, vector<2x16x16x3xf32>
    %20 = vector.shape_cast %19 : vector<2x16x16x3xf32> to vector<512x3xf32>
    %c0_43 = arith.constant 0 : index
    %c9 = arith.constant 9 : index
    %21 = vector.load %arg13[%c0_43, %c9] : memref<512x128xf32, #tpu.memory_space<vmem>>, vector<512x3xf32>
    tpu.vector_store %arg13[%c0_43, %c9], %20 {strides = array<i32>} : memref<512x128xf32, #tpu.memory_space<vmem>>, vector<512x3xf32>,
    %c0_44 = arith.constant 0 : index
    %c1_45 = arith.constant 1 : index
    %c1_46 = arith.constant 1 : index
    %c0_47 = arith.constant 0 : index
    %22 = vector.load %arg12[%c0_44, %c1_45, %c1_46, %c0_47] : memref<2x18x18x3xf32, #tpu.memory_space<vmem>>, vector<2x16x16x3xf32>
    %23 = vector.shape_cast %22 : vector<2x16x16x3xf32> to vector<512x3xf32>
    %c0_48 = arith.constant 0 : index
    %c12 = arith.constant 12 : index
    %24 = vector.load %arg13[%c0_48, %c12] : memref<512x128xf32, #tpu.memory_space<vmem>>, vector<512x3xf32>
    tpu.vector_store %arg13[%c0_48, %c12], %23 {strides = array<i32>} : memref<512x128xf32, #tpu.memory_space<vmem>>, vector<512x3xf32>,
    %c0_49 = arith.constant 0 : index
    %c1_50 = arith.constant 1 : index
    %c2_51 = arith.constant 2 : index
    %c0_52 = arith.constant 0 : index
    %25 = vector.load %arg12[%c0_49, %c1_50, %c2_51, %c0_52] : memref<2x18x18x3xf32, #tpu.memory_space<vmem>>, vector<2x16x16x3xf32>
    %26 = vector.shape_cast %25 : vector<2x16x16x3xf32> to vector<512x3xf32>
    %c0_53 = arith.constant 0 : index
    %c15 = arith.constant 15 : index
    %27 = vector.load %arg13[%c0_53, %c15] : memref<512x128xf32, #tpu.memory_space<vmem>>, vector<512x3xf32>
    tpu.vector_store %arg13[%c0_53, %c15], %26 {strides = array<i32>} : memref<512x128xf32, #tpu.memory_space<vmem>>, vector<512x3xf32>,
    %c0_54 = arith.constant 0 : index
    %c2_55 = arith.constant 2 : index
    %c0_56 = arith.constant 0 : index
    %c0_57 = arith.constant 0 : index
    %28 = vector.load %arg12[%c0_54, %c2_55, %c0_56, %c0_57] : memref<2x18x18x3xf32, #tpu.memory_space<vmem>>, vector<2x16x16x3xf32>
    %29 = vector.shape_cast %28 : vector<2x16x16x3xf32> to vector<512x3xf32>
    %c0_58 = arith.constant 0 : index
    %c18 = arith.constant 18 : index
    %30 = vector.load %arg13[%c0_58, %c18] : memref<512x128xf32, #tpu.memory_space<vmem>>, vector<512x3xf32>
    tpu.vector_store %arg13[%c0_58, %c18], %29 {strides = array<i32>} : memref<512x128xf32, #tpu.memory_space<vmem>>, vector<512x3xf32>,
    %c0_59 = arith.constant 0 : index
    %c2_60 = arith.constant 2 : index
    %c1_61 = arith.constant 1 : index
    %c0_62 = arith.constant 0 : index
    %31 = vector.load %arg12[%c0_59, %c2_60, %c1_61, %c0_62] : memref<2x18x18x3xf32, #tpu.memory_space<vmem>>, vector<2x16x16x3xf32>
    %32 = vector.shape_cast %31 : vector<2x16x16x3xf32> to vector<512x3xf32>
    %c0_63 = arith.constant 0 : index
    %c21 = arith.constant 21 : index
    %33 = vector.load %arg13[%c0_63, %c21] : memref<512x128xf32, #tpu.memory_space<vmem>>, vector<512x3xf32>
    tpu.vector_store %arg13[%c0_63, %c21], %32 {strides = array<i32>} : memref<512x128xf32, #tpu.memory_space<vmem>>, vector<512x3xf32>,
    %c0_64 = arith.constant 0 : index
    %c2_65 = arith.constant 2 : index
    %c2_66 = arith.constant 2 : index
    %c0_67 = arith.constant 0 : index
    %34 = vector.load %arg12[%c0_64, %c2_65, %c2_66, %c0_67] : memref<2x18x18x3xf32, #tpu.memory_space<vmem>>, vector<2x16x16x3xf32>
    %35 = vector.shape_cast %34 : vector<2x16x16x3xf32> to vector<512x3xf32>
    %c0_68 = arith.constant 0 : index
    %c24 = arith.constant 24 : index
    %36 = vector.load %arg13[%c0_68, %c24] : memref<512x128xf32, #tpu.memory_space<vmem>>, vector<512x3xf32>
    tpu.vector_store %arg13[%c0_68, %c24], %35 {strides = array<i32>} : memref<512x128xf32, #tpu.memory_space<vmem>>, vector<512x3xf32>,
    %c0_69 = arith.constant 0 : index
    %c0_70 = arith.constant 0 : index
    %37 = vector.load %arg13[%c0_69, %c0_70] : memref<512x128xf32, #tpu.memory_space<vmem>>, vector<512x128xf32>
    %38 = arith.truncf %37 : vector<512x128xf32> to vector<512x128xbf16>
    %c0_71 = arith.constant 0 : index
    %c0_72 = arith.constant 0 : index
    %39 = vector.load %arg1[%c0_71, %c0_72] : memref<128x16xbf16, #tpu.memory_space<vmem>>, vector<128x16xbf16>
    %cst_73 = arith.constant dense<0.000000e+00> : vector<512x16xf32>
    %40 = tpu.matmul %38, %39, %cst_73 {dimension_numbers = #tpu.dot_dimension_numbers<[1], [0], [0], [1], [0, 0, 1, 1], [], []>} : vector<512x128xbf16>, vector<128x16xbf16>, vector<512x16xf32> -> vector<512x16xf32>
    %c0_74 = arith.constant 0 : index
    %c0_75 = arith.constant 0 : index
    %41 = vector.load %arg2[%c0_74, %c0_75] : memref<1x16xf32, #tpu.memory_space<vmem>>, vector<1x16xf32>
    %42 = vector.broadcast %41 : vector<1x16xf32> to vector<512x16xf32>
    %43 = arith.addf %40, %42 : vector<512x16xf32>
    %cst_76 = arith.constant 0.000000e+00 : f32
    %44 = vector.broadcast %cst_76 : f32 to vector<512x16xf32>
    %45 = arith.maximumf %43, %44 : vector<512x16xf32>
    %46 = vector.shape_cast %45 : vector<512x16xf32> to vector<256x2x16xf32>
    %c0_77 = arith.constant 0 : index
    %c0_78 = arith.constant 0 : index
    %c0_79 = arith.constant 0 : index
    %47 = vector.load %arg14[%c0_77, %c0_78, %c0_79] : memref<256x2x16xf32, #tpu.memory_space<vmem>>, vector<256x2x16xf32>
    tpu.vector_store %arg14[%c0_77, %c0_78, %c0_79], %46 {strides = array<i32>} : memref<256x2x16xf32, #tpu.memory_space<vmem>>, vector<256x2x16xf32>,
    %c0_80 = arith.constant 0 : index
    %c0_81 = arith.constant 0 : index
    %c0_82 = arith.constant 0 : index
    %48 = vector.load %arg14[%c0_80, %c0_81, %c0_82] : memref<256x2x16xf32, #tpu.memory_space<vmem>>, vector<256x1x16xf32>
    %49 = vector.shape_cast %48 : vector<256x1x16xf32> to vector<256x16xf32>
    %c0_83 = arith.constant 0 : index
    %c1_84 = arith.constant 1 : index
    %c0_85 = arith.constant 0 : index
    %50 = vector.load %arg14[%c0_83, %c1_84, %c0_85] : memref<256x2x16xf32, #tpu.memory_space<vmem>>, vector<256x1x16xf32>
    %51 = vector.shape_cast %50 : vector<256x1x16xf32> to vector<256x16xf32>
    %52 = arith.maximumf %49, %51 : vector<256x16xf32>
    %53 = vector.shape_cast %52 : vector<256x16xf32> to vector<16x2x8x16xf32>
    %54 = vector.extract_strided_slice %53 {offsets = [0, 0, 0, 0], sizes = [16, 1, 8, 16], strides = [1, 1, 1, 1]} : vector<16x2x8x16xf32> to vector<16x1x8x16xf32>
    %55 = vector.shape_cast %54 : vector<16x1x8x16xf32> to vector<16x8x16xf32>
    %56 = vector.extract_strided_slice %53 {offsets = [0, 1, 0, 0], sizes = [16, 1, 8, 16], strides = [1, 1, 1, 1]} : vector<16x2x8x16xf32> to vector<16x1x8x16xf32>
    %57 = vector.shape_cast %56 : vector<16x1x8x16xf32> to vector<16x8x16xf32>
    %58 = arith.maximumf %55, %57 : vector<16x8x16xf32>
    %cst_86 = arith.constant 0.000000e+00 : f32
    %59 = vector.broadcast %cst_86 : f32 to vector<2x1x10x16xf32>
    %c0_87 = arith.constant 0 : index
    %c0_88 = arith.constant 0 : index
    %c0_89 = arith.constant 0 : index
    %c0_90 = arith.constant 0 : index
    %60 = vector.load %arg15[%c0_87, %c0_88, %c0_89, %c0_90] : memref<2x10x10x16xf32, #tpu.memory_space<vmem>>, vector<2x1x10x16xf32>
    tpu.vector_store %arg15[%c0_87, %c0_88, %c0_89, %c0_90], %59 {strides = array<i32>} : memref<2x10x10x16xf32, #tpu.memory_space<vmem>>, vector<2x1x10x16xf32>,
    %c0_91 = arith.constant 0 : index
    %c9_92 = arith.constant 9 : index
    %c0_93 = arith.constant 0 : index
    %c0_94 = arith.constant 0 : index
    %61 = vector.load %arg15[%c0_91, %c9_92, %c0_93, %c0_94] : memref<2x10x10x16xf32, #tpu.memory_space<vmem>>, vector<2x1x10x16xf32>
    tpu.vector_store %arg15[%c0_91, %c9_92, %c0_93, %c0_94], %59 {strides = array<i32>} : memref<2x10x10x16xf32, #tpu.memory_space<vmem>>, vector<2x1x10x16xf32>,
    %cst_95 = arith.constant 0.000000e+00 : f32
    %62 = vector.broadcast %cst_95 : f32 to vector<2x8x1x16xf32>
    %c0_96 = arith.constant 0 : index
    %c1_97 = arith.constant 1 : index
    %c0_98 = arith.constant 0 : index
    %c0_99 = arith.constant 0 : index
    %63 = vector.load %arg15[%c0_96, %c1_97, %c0_98, %c0_99] : memref<2x10x10x16xf32, #tpu.memory_space<vmem>>, vector<2x8x1x16xf32>
    tpu.vector_store %arg15[%c0_96, %c1_97, %c0_98, %c0_99], %62 {strides = array<i32>} : memref<2x10x10x16xf32, #tpu.memory_space<vmem>>, vector<2x8x1x16xf32>,
    %c0_100 = arith.constant 0 : index
    %c1_101 = arith.constant 1 : index
    %c9_102 = arith.constant 9 : index
    %c0_103 = arith.constant 0 : index
    %64 = vector.load %arg15[%c0_100, %c1_101, %c9_102, %c0_103] : memref<2x10x10x16xf32, #tpu.memory_space<vmem>>, vector<2x8x1x16xf32>
    tpu.vector_store %arg15[%c0_100, %c1_101, %c9_102, %c0_103], %62 {strides = array<i32>} : memref<2x10x10x16xf32, #tpu.memory_space<vmem>>, vector<2x8x1x16xf32>,
    %65 = vector.shape_cast %58 : vector<16x8x16xf32> to vector<2x8x8x16xf32>
    %c0_104 = arith.constant 0 : index
    %c1_105 = arith.constant 1 : index
    %c1_106 = arith.constant 1 : index
    %c0_107 = arith.constant 0 : index
    %66 = vector.load %arg15[%c0_104, %c1_105, %c1_106, %c0_107] : memref<2x10x10x16xf32, #tpu.memory_space<vmem>>, vector<2x8x8x16xf32>
    tpu.vector_store %arg15[%c0_104, %c1_105, %c1_106, %c0_107], %65 {strides = array<i32>} : memref<2x10x10x16xf32, #tpu.memory_space<vmem>>, vector<2x8x8x16xf32>,
    %cst_108 = arith.constant 0.000000e+00 : f32
    %67 = vector.broadcast %cst_108 : f32 to vector<128x112xf32>
    %c0_109 = arith.constant 0 : index
    %c144 = arith.constant 144 : index
    %68 = vector.load %arg16[%c0_109, %c144] : memref<128x256xf32, #tpu.memory_space<vmem>>, vector<128x112xf32>
    tpu.vector_store %arg16[%c0_109, %c144], %67 {strides = array<i32>} : memref<128x256xf32, #tpu.memory_space<vmem>>, vector<128x112xf32>,
    %c0_110 = arith.constant 0 : index
    %c0_111 = arith.constant 0 : index
    %c0_112 = arith.constant 0 : index
    %c0_113 = arith.constant 0 : index
    %69 = vector.load %arg15[%c0_110, %c0_111, %c0_112, %c0_113] : memref<2x10x10x16xf32, #tpu.memory_space<vmem>>, vector<2x8x8x16xf32>
    %70 = vector.shape_cast %69 : vector<2x8x8x16xf32> to vector<128x16xf32>
    %c0_114 = arith.constant 0 : index
    %c0_115 = arith.constant 0 : index
    %71 = vector.load %arg16[%c0_114, %c0_115] : memref<128x256xf32, #tpu.memory_space<vmem>>, vector<128x16xf32>
    tpu.vector_store %arg16[%c0_114, %c0_115], %70 {strides = array<i32>} : memref<128x256xf32, #tpu.memory_space<vmem>>, vector<128x16xf32>,
    %c0_116 = arith.constant 0 : index
    %c0_117 = arith.constant 0 : index
    %c1_118 = arith.constant 1 : index
    %c0_119 = arith.constant 0 : index
    %72 = vector.load %arg15[%c0_116, %c0_117, %c1_118, %c0_119] : memref<2x10x10x16xf32, #tpu.memory_space<vmem>>, vector<2x8x8x16xf32>
    %73 = vector.shape_cast %72 : vector<2x8x8x16xf32> to vector<128x16xf32>
    %c0_120 = arith.constant 0 : index
    %c16 = arith.constant 16 : index
    %74 = vector.load %arg16[%c0_120, %c16] : memref<128x256xf32, #tpu.memory_space<vmem>>, vector<128x16xf32>
    tpu.vector_store %arg16[%c0_120, %c16], %73 {strides = array<i32>} : memref<128x256xf32, #tpu.memory_space<vmem>>, vector<128x16xf32>,
    %c0_121 = arith.constant 0 : index
    %c0_122 = arith.constant 0 : index
    %c2_123 = arith.constant 2 : index
    %c0_124 = arith.constant 0 : index
    %75 = vector.load %arg15[%c0_121, %c0_122, %c2_123, %c0_124] : memref<2x10x10x16xf32, #tpu.memory_space<vmem>>, vector<2x8x8x16xf32>
    %76 = vector.shape_cast %75 : vector<2x8x8x16xf32> to vector<128x16xf32>
    %c0_125 = arith.constant 0 : index
    %c32 = arith.constant 32 : index
    %77 = vector.load %arg16[%c0_125, %c32] : memref<128x256xf32, #tpu.memory_space<vmem>>, vector<128x16xf32>
    tpu.vector_store %arg16[%c0_125, %c32], %76 {strides = array<i32>} : memref<128x256xf32, #tpu.memory_space<vmem>>, vector<128x16xf32>,
    %c0_126 = arith.constant 0 : index
    %c1_127 = arith.constant 1 : index
    %c0_128 = arith.constant 0 : index
    %c0_129 = arith.constant 0 : index
    %78 = vector.load %arg15[%c0_126, %c1_127, %c0_128, %c0_129] : memref<2x10x10x16xf32, #tpu.memory_space<vmem>>, vector<2x8x8x16xf32>
    %79 = vector.shape_cast %78 : vector<2x8x8x16xf32> to vector<128x16xf32>
    %c0_130 = arith.constant 0 : index
    %c48 = arith.constant 48 : index
    %80 = vector.load %arg16[%c0_130, %c48] : memref<128x256xf32, #tpu.memory_space<vmem>>, vector<128x16xf32>
    tpu.vector_store %arg16[%c0_130, %c48], %79 {strides = array<i32>} : memref<128x256xf32, #tpu.memory_space<vmem>>, vector<128x16xf32>,
    %c0_131 = arith.constant 0 : index
    %c1_132 = arith.constant 1 : index
    %c1_133 = arith.constant 1 : index
    %c0_134 = arith.constant 0 : index
    %81 = vector.load %arg15[%c0_131, %c1_132, %c1_133, %c0_134] : memref<2x10x10x16xf32, #tpu.memory_space<vmem>>, vector<2x8x8x16xf32>
    %82 = vector.shape_cast %81 : vector<2x8x8x16xf32> to vector<128x16xf32>
    %c0_135 = arith.constant 0 : index
    %c64 = arith.constant 64 : index
    %83 = vector.load %arg16[%c0_135, %c64] : memref<128x256xf32, #tpu.memory_space<vmem>>, vector<128x16xf32>
    tpu.vector_store %arg16[%c0_135, %c64], %82 {strides = array<i32>} : memref<128x256xf32, #tpu.memory_space<vmem>>, vector<128x16xf32>,
    %c0_136 = arith.constant 0 : index
    %c1_137 = arith.constant 1 : index
    %c2_138 = arith.constant 2 : index
    %c0_139 = arith.constant 0 : index
    %84 = vector.load %arg15[%c0_136, %c1_137, %c2_138, %c0_139] : memref<2x10x10x16xf32, #tpu.memory_space<vmem>>, vector<2x8x8x16xf32>
    %85 = vector.shape_cast %84 : vector<2x8x8x16xf32> to vector<128x16xf32>
    %c0_140 = arith.constant 0 : index
    %c80 = arith.constant 80 : index
    %86 = vector.load %arg16[%c0_140, %c80] : memref<128x256xf32, #tpu.memory_space<vmem>>, vector<128x16xf32>
    tpu.vector_store %arg16[%c0_140, %c80], %85 {strides = array<i32>} : memref<128x256xf32, #tpu.memory_space<vmem>>, vector<128x16xf32>,
    %c0_141 = arith.constant 0 : index
    %c2_142 = arith.constant 2 : index
    %c0_143 = arith.constant 0 : index
    %c0_144 = arith.constant 0 : index
    %87 = vector.load %arg15[%c0_141, %c2_142, %c0_143, %c0_144] : memref<2x10x10x16xf32, #tpu.memory_space<vmem>>, vector<2x8x8x16xf32>
    %88 = vector.shape_cast %87 : vector<2x8x8x16xf32> to vector<128x16xf32>
    %c0_145 = arith.constant 0 : index
    %c96 = arith.constant 96 : index
    %89 = vector.load %arg16[%c0_145, %c96] : memref<128x256xf32, #tpu.memory_space<vmem>>, vector<128x16xf32>
    tpu.vector_store %arg16[%c0_145, %c96], %88 {strides = array<i32>} : memref<128x256xf32, #tpu.memory_space<vmem>>, vector<128x16xf32>,
    %c0_146 = arith.constant 0 : index
    %c2_147 = arith.constant 2 : index
    %c1_148 = arith.constant 1 : index
    %c0_149 = arith.constant 0 : index
    %90 = vector.load %arg15[%c0_146, %c2_147, %c1_148, %c0_149] : memref<2x10x10x16xf32, #tpu.memory_space<vmem>>, vector<2x8x8x16xf32>
    %91 = vector.shape_cast %90 : vector<2x8x8x16xf32> to vector<128x16xf32>
    %c0_150 = arith.constant 0 : index
    %c112 = arith.constant 112 : index
    %92 = vector.load %arg16[%c0_150, %c112] : memref<128x256xf32, #tpu.memory_space<vmem>>, vector<128x16xf32>
    tpu.vector_store %arg16[%c0_150, %c112], %91 {strides = array<i32>} : memref<128x256xf32, #tpu.memory_space<vmem>>, vector<128x16xf32>,
    %c0_151 = arith.constant 0 : index
    %c2_152 = arith.constant 2 : index
    %c2_153 = arith.constant 2 : index
    %c0_154 = arith.constant 0 : index
    %93 = vector.load %arg15[%c0_151, %c2_152, %c2_153, %c0_154] : memref<2x10x10x16xf32, #tpu.memory_space<vmem>>, vector<2x8x8x16xf32>
    %94 = vector.shape_cast %93 : vector<2x8x8x16xf32> to vector<128x16xf32>
    %c0_155 = arith.constant 0 : index
    %c128 = arith.constant 128 : index
    %95 = vector.load %arg16[%c0_155, %c128] : memref<128x256xf32, #tpu.memory_space<vmem>>, vector<128x16xf32>
    tpu.vector_store %arg16[%c0_155, %c128], %94 {strides = array<i32>} : memref<128x256xf32, #tpu.memory_space<vmem>>, vector<128x16xf32>,
    %c0_156 = arith.constant 0 : index
    %c0_157 = arith.constant 0 : index
    %96 = vector.load %arg16[%c0_156, %c0_157] : memref<128x256xf32, #tpu.memory_space<vmem>>, vector<128x256xf32>
    %97 = arith.truncf %96 : vector<128x256xf32> to vector<128x256xbf16>
    %c0_158 = arith.constant 0 : index
    %c0_159 = arith.constant 0 : index
    %98 = vector.load %arg3[%c0_158, %c0_159] : memref<256x32xbf16, #tpu.memory_space<vmem>>, vector<256x32xbf16>
    %cst_160 = arith.constant dense<0.000000e+00> : vector<128x32xf32>
    %99 = tpu.matmul %97, %98, %cst_160 {dimension_numbers = #tpu.dot_dimension_numbers<[1], [0], [0], [1], [0, 0, 1, 1], [], []>} : vector<128x256xbf16>, vector<256x32xbf16>, vector<128x32xf32> -> vector<128x32xf32>
    %c0_161 = arith.constant 0 : index
    %c0_162 = arith.constant 0 : index
    %100 = vector.load %arg4[%c0_161, %c0_162] : memref<1x32xf32, #tpu.memory_space<vmem>>, vector<1x32xf32>
    %101 = vector.broadcast %100 : vector<1x32xf32> to vector<128x32xf32>
    %102 = arith.addf %99, %101 : vector<128x32xf32>
    %cst_163 = arith.constant 0.000000e+00 : f32
    %103 = vector.broadcast %cst_163 : f32 to vector<128x32xf32>
    %104 = arith.maximumf %102, %103 : vector<128x32xf32>
    %105 = vector.shape_cast %104 : vector<128x32xf32> to vector<16x8x32xf32>
    %c0_164 = arith.constant 0 : index
    %c0_165 = arith.constant 0 : index
    %c0_166 = arith.constant 0 : index
    %106 = vector.load %arg17[%c0_164, %c0_165, %c0_166] : memref<16x8x32xf32, #tpu.memory_space<vmem>>, vector<16x8x32xf32>
    tpu.vector_store %arg17[%c0_164, %c0_165, %c0_166], %105 {strides = array<i32>} : memref<16x8x32xf32, #tpu.memory_space<vmem>>, vector<16x8x32xf32>,
    %c0_167 = arith.constant 0 : index
    %c0_168 = arith.constant 0 : index
    %c0_169 = arith.constant 0 : index
    %107 = vector.load %arg17[%c0_167, %c0_168, %c0_169] : memref<16x8x32xf32, #tpu.memory_space<vmem>>, vector<16x1x32xf32>
    %108 = vector.shape_cast %107 : vector<16x1x32xf32> to vector<16x32xf32>
    %c0_170 = arith.constant 0 : index
    %c1_171 = arith.constant 1 : index
    %c0_172 = arith.constant 0 : index
    %109 = vector.load %arg17[%c0_170, %c1_171, %c0_172] : memref<16x8x32xf32, #tpu.memory_space<vmem>>, vector<16x1x32xf32>
    %110 = vector.shape_cast %109 : vector<16x1x32xf32> to vector<16x32xf32>
    %111 = arith.maximumf %108, %110 : vector<16x32xf32>
    %112 = vector.shape_cast %111 : vector<16x32xf32> to vector<2x8x32xf32>
    %c0_173 = arith.constant 0 : index
    %c0_174 = arith.constant 0 : index
    %c0_175 = arith.constant 0 : index
    %113 = vector.load %arg18[%c0_173, %c0_174, %c0_175] : memref<2x8x128xf32, #tpu.memory_space<vmem>>, vector<2x8x32xf32>
    tpu.vector_store %arg18[%c0_173, %c0_174, %c0_175], %112 {strides = array<i32>} : memref<2x8x128xf32, #tpu.memory_space<vmem>>, vector<2x8x32xf32>,
    %c0_176 = arith.constant 0 : index
    %c2_177 = arith.constant 2 : index
    %c0_178 = arith.constant 0 : index
    %114 = vector.load %arg17[%c0_176, %c2_177, %c0_178] : memref<16x8x32xf32, #tpu.memory_space<vmem>>, vector<16x1x32xf32>
    %115 = vector.shape_cast %114 : vector<16x1x32xf32> to vector<16x32xf32>
    %c0_179 = arith.constant 0 : index
    %c3_180 = arith.constant 3 : index
    %c0_181 = arith.constant 0 : index
    %116 = vector.load %arg17[%c0_179, %c3_180, %c0_181] : memref<16x8x32xf32, #tpu.memory_space<vmem>>, vector<16x1x32xf32>
    %117 = vector.shape_cast %116 : vector<16x1x32xf32> to vector<16x32xf32>
    %118 = arith.maximumf %115, %117 : vector<16x32xf32>
    %119 = vector.shape_cast %118 : vector<16x32xf32> to vector<2x8x32xf32>
    %c0_182 = arith.constant 0 : index
    %c0_183 = arith.constant 0 : index
    %c32_184 = arith.constant 32 : index
    %120 = vector.load %arg18[%c0_182, %c0_183, %c32_184] : memref<2x8x128xf32, #tpu.memory_space<vmem>>, vector<2x8x32xf32>
    tpu.vector_store %arg18[%c0_182, %c0_183, %c32_184], %119 {strides = array<i32>} : memref<2x8x128xf32, #tpu.memory_space<vmem>>, vector<2x8x32xf32>,
    %c0_185 = arith.constant 0 : index
    %c4 = arith.constant 4 : index
    %c0_186 = arith.constant 0 : index
    %121 = vector.load %arg17[%c0_185, %c4, %c0_186] : memref<16x8x32xf32, #tpu.memory_space<vmem>>, vector<16x1x32xf32>
    %122 = vector.shape_cast %121 : vector<16x1x32xf32> to vector<16x32xf32>
    %c0_187 = arith.constant 0 : index
    %c5 = arith.constant 5 : index
    %c0_188 = arith.constant 0 : index
    %123 = vector.load %arg17[%c0_187, %c5, %c0_188] : memref<16x8x32xf32, #tpu.memory_space<vmem>>, vector<16x1x32xf32>
    %124 = vector.shape_cast %123 : vector<16x1x32xf32> to vector<16x32xf32>
    %125 = arith.maximumf %122, %124 : vector<16x32xf32>
    %126 = vector.shape_cast %125 : vector<16x32xf32> to vector<2x8x32xf32>
    %c0_189 = arith.constant 0 : index
    %c0_190 = arith.constant 0 : index
    %c64_191 = arith.constant 64 : index
    %127 = vector.load %arg18[%c0_189, %c0_190, %c64_191] : memref<2x8x128xf32, #tpu.memory_space<vmem>>, vector<2x8x32xf32>
    tpu.vector_store %arg18[%c0_189, %c0_190, %c64_191], %126 {strides = array<i32>} : memref<2x8x128xf32, #tpu.memory_space<vmem>>, vector<2x8x32xf32>,
    %c0_192 = arith.constant 0 : index
    %c6_193 = arith.constant 6 : index
    %c0_194 = arith.constant 0 : index
    %128 = vector.load %arg17[%c0_192, %c6_193, %c0_194] : memref<16x8x32xf32, #tpu.memory_space<vmem>>, vector<16x1x32xf32>
    %129 = vector.shape_cast %128 : vector<16x1x32xf32> to vector<16x32xf32>
    %c0_195 = arith.constant 0 : index
    %c7 = arith.constant 7 : index
    %c0_196 = arith.constant 0 : index
    %130 = vector.load %arg17[%c0_195, %c7, %c0_196] : memref<16x8x32xf32, #tpu.memory_space<vmem>>, vector<16x1x32xf32>
    %131 = vector.shape_cast %130 : vector<16x1x32xf32> to vector<16x32xf32>
    %132 = arith.maximumf %129, %131 : vector<16x32xf32>
    %133 = vector.shape_cast %132 : vector<16x32xf32> to vector<2x8x32xf32>
    %c0_197 = arith.constant 0 : index
    %c0_198 = arith.constant 0 : index
    %c96_199 = arith.constant 96 : index
    %134 = vector.load %arg18[%c0_197, %c0_198, %c96_199] : memref<2x8x128xf32, #tpu.memory_space<vmem>>, vector<2x8x32xf32>
    tpu.vector_store %arg18[%c0_197, %c0_198, %c96_199], %133 {strides = array<i32>} : memref<2x8x128xf32, #tpu.memory_space<vmem>>, vector<2x8x32xf32>,
    %c0_200 = arith.constant 0 : index
    %c0_201 = arith.constant 0 : index
    %c0_202 = arith.constant 0 : index
    %135 = vector.load %arg18[%c0_200, %c0_201, %c0_202] : memref<2x8x128xf32, #tpu.memory_space<vmem>>, vector<2x1x128xf32>
    %136 = vector.shape_cast %135 : vector<2x1x128xf32> to vector<2x128xf32>
    %c0_203 = arith.constant 0 : index
    %c1_204 = arith.constant 1 : index
    %c0_205 = arith.constant 0 : index
    %137 = vector.load %arg18[%c0_203, %c1_204, %c0_205] : memref<2x8x128xf32, #tpu.memory_space<vmem>>, vector<2x1x128xf32>
    %138 = vector.shape_cast %137 : vector<2x1x128xf32> to vector<2x128xf32>
    %139 = arith.maximumf %136, %138 : vector<2x128xf32>
    %c0_206 = arith.constant 0 : index
    %c0_207 = arith.constant 0 : index
    %140 = vector.load %arg19[%c0_206, %c0_207] : memref<2x512xf32, #tpu.memory_space<vmem>>, vector<2x128xf32>
    tpu.vector_store %arg19[%c0_206, %c0_207], %139 {strides = array<i32>} : memref<2x512xf32, #tpu.memory_space<vmem>>, vector<2x128xf32>,
    %c0_208 = arith.constant 0 : index
    %c2_209 = arith.constant 2 : index
    %c0_210 = arith.constant 0 : index
    %141 = vector.load %arg18[%c0_208, %c2_209, %c0_210] : memref<2x8x128xf32, #tpu.memory_space<vmem>>, vector<2x1x128xf32>
    %142 = vector.shape_cast %141 : vector<2x1x128xf32> to vector<2x128xf32>
    %c0_211 = arith.constant 0 : index
    %c3_212 = arith.constant 3 : index
    %c0_213 = arith.constant 0 : index
    %143 = vector.load %arg18[%c0_211, %c3_212, %c0_213] : memref<2x8x128xf32, #tpu.memory_space<vmem>>, vector<2x1x128xf32>
    %144 = vector.shape_cast %143 : vector<2x1x128xf32> to vector<2x128xf32>
    %145 = arith.maximumf %142, %144 : vector<2x128xf32>
    %c0_214 = arith.constant 0 : index
    %c128_215 = arith.constant 128 : index
    %146 = vector.load %arg19[%c0_214, %c128_215] : memref<2x512xf32, #tpu.memory_space<vmem>>, vector<2x128xf32>
    tpu.vector_store %arg19[%c0_214, %c128_215], %145 {strides = array<i32>} : memref<2x512xf32, #tpu.memory_space<vmem>>, vector<2x128xf32>,
    %c0_216 = arith.constant 0 : index
    %c4_217 = arith.constant 4 : index
    %c0_218 = arith.constant 0 : index
    %147 = vector.load %arg18[%c0_216, %c4_217, %c0_218] : memref<2x8x128xf32, #tpu.memory_space<vmem>>, vector<2x1x128xf32>
    %148 = vector.shape_cast %147 : vector<2x1x128xf32> to vector<2x128xf32>
    %c0_219 = arith.constant 0 : index
    %c5_220 = arith.constant 5 : index
    %c0_221 = arith.constant 0 : index
    %149 = vector.load %arg18[%c0_219, %c5_220, %c0_221] : memref<2x8x128xf32, #tpu.memory_space<vmem>>, vector<2x1x128xf32>
    %150 = vector.shape_cast %149 : vector<2x1x128xf32> to vector<2x128xf32>
    %151 = arith.maximumf %148, %150 : vector<2x128xf32>
    %c0_222 = arith.constant 0 : index
    %c256 = arith.constant 256 : index
    %152 = vector.load %arg19[%c0_222, %c256] : memref<2x512xf32, #tpu.memory_space<vmem>>, vector<2x128xf32>
    tpu.vector_store %arg19[%c0_222, %c256], %151 {strides = array<i32>} : memref<2x512xf32, #tpu.memory_space<vmem>>, vector<2x128xf32>,
    %c0_223 = arith.constant 0 : index
    %c6_224 = arith.constant 6 : index
    %c0_225 = arith.constant 0 : index
    %153 = vector.load %arg18[%c0_223, %c6_224, %c0_225] : memref<2x8x128xf32, #tpu.memory_space<vmem>>, vector<2x1x128xf32>
    %154 = vector.shape_cast %153 : vector<2x1x128xf32> to vector<2x128xf32>
    %c0_226 = arith.constant 0 : index
    %c7_227 = arith.constant 7 : index
    %c0_228 = arith.constant 0 : index
    %155 = vector.load %arg18[%c0_226, %c7_227, %c0_228] : memref<2x8x128xf32, #tpu.memory_space<vmem>>, vector<2x1x128xf32>
    %156 = vector.shape_cast %155 : vector<2x1x128xf32> to vector<2x128xf32>
    %157 = arith.maximumf %154, %156 : vector<2x128xf32>
    %c0_229 = arith.constant 0 : index
    %c384 = arith.constant 384 : index
    %158 = vector.load %arg19[%c0_229, %c384] : memref<2x512xf32, #tpu.memory_space<vmem>>, vector<2x128xf32>
    tpu.vector_store %arg19[%c0_229, %c384], %157 {strides = array<i32>} : memref<2x512xf32, #tpu.memory_space<vmem>>, vector<2x128xf32>,
    %c0_230 = arith.constant 0 : index
    %c0_231 = arith.constant 0 : index
    %159 = vector.load %arg19[%c0_230, %c0_231] : memref<2x512xf32, #tpu.memory_space<vmem>>, vector<2x512xf32>
    %160 = arith.truncf %159 : vector<2x512xf32> to vector<2x512xbf16>
    %c0_232 = arith.constant 0 : index
    %c0_233 = arith.constant 0 : index
    %161 = vector.load %arg5[%c0_232, %c0_233] : memref<512x128xbf16, #tpu.memory_space<vmem>>, vector<512x128xbf16>
    %cst_234 = arith.constant dense<0.000000e+00> : vector<2x128xf32>
    %162 = tpu.matmul %160, %161, %cst_234 {dimension_numbers = #tpu.dot_dimension_numbers<[1], [0], [0], [1], [0, 0, 1, 1], [], []>} : vector<2x512xbf16>, vector<512x128xbf16>, vector<2x128xf32> -> vector<2x128xf32>
    %c0_235 = arith.constant 0 : index
    %c0_236 = arith.constant 0 : index
    %163 = vector.load %arg6[%c0_235, %c0_236] : memref<1x128xf32, #tpu.memory_space<vmem>>, vector<1x128xf32>
    %164 = vector.broadcast %163 : vector<1x128xf32> to vector<2x128xf32>
    %165 = arith.addf %162, %164 : vector<2x128xf32>
    %cst_237 = arith.constant 0.000000e+00 : f32
    %166 = vector.broadcast %cst_237 : f32 to vector<2x128xf32>
    %167 = arith.maximumf %165, %166 : vector<2x128xf32>
    %168 = arith.truncf %167 : vector<2x128xf32> to vector<2x128xbf16>
    %c0_238 = arith.constant 0 : index
    %c0_239 = arith.constant 0 : index
    %169 = vector.load %arg7[%c0_238, %c0_239] : memref<128x128xbf16, #tpu.memory_space<vmem>>, vector<128x128xbf16>
    %cst_240 = arith.constant dense<0.000000e+00> : vector<2x128xf32>
    %170 = tpu.matmul %168, %169, %cst_240 {dimension_numbers = #tpu.dot_dimension_numbers<[1], [0], [0], [1], [0, 0, 1, 1], [], []>} : vector<2x128xbf16>, vector<128x128xbf16>, vector<2x128xf32> -> vector<2x128xf32>
    %c0_241 = arith.constant 0 : index
    %c0_242 = arith.constant 0 : index
    %171 = vector.load %arg8[%c0_241, %c0_242] : memref<1x128xf32, #tpu.memory_space<vmem>>, vector<1x128xf32>
    %172 = vector.broadcast %171 : vector<1x128xf32> to vector<2x128xf32>
    %173 = arith.addf %170, %172 : vector<2x128xf32>
    %cst_243 = arith.constant 0.000000e+00 : f32
    %174 = vector.broadcast %cst_243 : f32 to vector<2x128xf32>
    %175 = arith.maximumf %173, %174 : vector<2x128xf32>
    %176 = arith.truncf %175 : vector<2x128xf32> to vector<2x128xbf16>
    %c0_244 = arith.constant 0 : index
    %c0_245 = arith.constant 0 : index
    %177 = vector.load %arg9[%c0_244, %c0_245] : memref<128x128xbf16, #tpu.memory_space<vmem>>, vector<128x128xbf16>
    %cst_246 = arith.constant dense<0.000000e+00> : vector<2x128xf32>
    %178 = tpu.matmul %176, %177, %cst_246 {dimension_numbers = #tpu.dot_dimension_numbers<[1], [0], [0], [1], [0, 0, 1, 1], [], []>} : vector<2x128xbf16>, vector<128x128xbf16>, vector<2x128xf32> -> vector<2x128xf32>
    %c0_247 = arith.constant 0 : index
    %c0_248 = arith.constant 0 : index
    %179 = vector.load %arg10[%c0_247, %c0_248] : memref<1x128xf32, #tpu.memory_space<vmem>>, vector<1x128xf32>
    %180 = vector.broadcast %179 : vector<1x128xf32> to vector<2x128xf32>
    %181 = arith.addf %178, %180 : vector<2x128xf32>
    %c0_249 = arith.constant 0 : index
    %c0_250 = arith.constant 0 : index
    %182 = vector.load %arg11[%c0_249, %c0_250] : memref<2x128xf32, #tpu.memory_space<vmem>>, vector<2x128xf32>
    tpu.vector_store %arg11[%c0_249, %c0_250], %181 {strides = array<i32>} : memref<2x128xf32, #tpu.memory_space<vmem>>, vector<2x128xf32>,
    return
  }
}

</mosaic_0001>

<bundles_post_ra>
// kernel: vgg_forward.1
= control target key start
LH: loop header
LB: loop body
LE: loop exit
PB: predicated region body
PF: predicated region fallthrough
CT: control target
= control target key end

     0   :  { %vm40_vm0 = vcmask 23552   ;;  %vm43_vm1 = vcmask 17408   ;;  %v9733_v2 = vmov 0.0   ;;  %vm56_vm2 = vcmask 16384   ;;  %s9734_s18 = smov 3   ;;  %s9735_s19 = smov 6   ;;  %s13758_s0 = inlined_call_operand.vmem [shape: f32[2,16,16,3], index: 0, kind: input, shape index: {}]   ;;  %s13759_s1 = inlined_call_operand.vmem [shape: bf16[128,16], index: 1, kind: input, shape index: {}]   ;;  %s13760_s2 = inlined_call_operand.vmem [shape: f32[1,16], index: 2, kind: input, shape index: {}]   ;;  %s13761_s3 = inlined_call_operand.vmem [shape: bf16[256,32], index: 3, kind: input, shape index: {}]   ;;  %s13762_s4 = inlined_call_operand.vmem [shape: f32[1,32], index: 4, kind: input, shape index: {}]   ;;  %s13763_s5 = inlined_call_operand.vmem [shape: bf16[512,128], index: 5, kind: input, shape index: {}]   ;;  %s13764_s6 = inlined_call_operand.vmem [shape: f32[1,128], index: 6, kind: input, shape index: {}]   ;;  %s13765_s7 = inlined_call_operand.vmem [shape: bf16[128,128], index: 7, kind: input, shape index: {}]   ;;  %s13766_s8 = inlined_call_operand.vmem [shape: f32[1,128], index: 8, kind: input, shape index: {}]   ;;  %s13767_s9 = inlined_call_operand.vmem [shape: bf16[128,128], index: 9, kind: input, shape index: {}]   ;;  %s13768_s10 = inlined_call_operand.vmem [shape: f32[1,128], index: 10, kind: input, shape index: {}]   ;;  %s13769_s11 = inlined_call_operand.hbm [shape: f32[2,128], index: 11, kind: output, shape index: {}]  }
   0x1   :  { %v121_v0 = vld [vmem:[%s13758_s0] sm:$0xff]  ;;  %v122_v1 = vld [vmem:[%s13758_s0 + $0x8] sm:$0xff]  ;;  %41 = vst.msk [vmem:[#allocation2] sm:$0xff] %vm40_vm0, %v9733_v2  ;;  %42 = vst.msk [vmem:[#allocation2 + $0x8] sm:$0xff] %vm40_vm0, %v9733_v2  ;;  %vm249_vm3 = vcmask 1047768   ;;  %s9736_s24 = smov 9  }
   0x2   :  { %185 = vst.msk [vmem:[#allocation2 + $0x19] sm:$0xff] %vm40_vm0, %v121_v0  ;;  %45 = vst.msk [vmem:[#allocation2 + $0x1b0] sm:$0xff] %vm40_vm0, %v9733_v2  ;;  %v9843_v3 = vld [vmem:[%s13758_s0 + $0x10] sm:$0xff]  ;;  %v9848_v4 = vld [vmem:[%s13758_s0 + $0x18] sm:$0xff]  ;;  %s9737_s25 = smov 12   ;;  %s9738_s30 = smov 15  }
   0x3   :  { %46 = vst.msk [vmem:[#allocation2 + $0x1b8] sm:$0xff] %vm40_vm0, %v9733_v2  ;;  %49 = vst.msk [vmem:[#allocation2 + $0x198] sm:$0xff] %vm40_vm0, %v9733_v2  ;;  %v9853_v5 = vld [vmem:[%s13758_s0 + $0x20] sm:$0xff]  ;;  %v126_v6 = vld [vmem:[%s13758_s0 + $0x28] sm:$0xff]  ;;  %s9739_s22 = smov 18   ;;  %s9740_s29 = smov 21  }
   0x4   :  { %50 = vst.msk [vmem:[#allocation2 + $0x1a0] sm:$0xff] %vm40_vm0, %v9733_v2  ;;  %52 = vst.msk [vmem:[#allocation2 + $0x348] sm:$0xff] %vm40_vm0, %v9733_v2  ;;  %v127_v7 = vld [vmem:[%s13758_s0 + $0x30] sm:$0xff]  ;;  %v128_v8 = vld [vmem:[%s13758_s0 + $0x38] sm:$0xff]  ;;  %s9741_s16 = smov 24  }
   0x5   :  { %53 = vst.msk [vmem:[#allocation2 + $0x350] sm:$0xff] %vm40_vm0, %v9733_v2  ;;  %186 = vst.msk [vmem:[#allocation2 + $0x21] sm:$0xff] %vm40_vm0, %v122_v1  ;;  %v10004_v9 = vld [vmem:[%s13758_s0 + $0x40] sm:$0xff]  ;;  %v10009_v10 = vld [vmem:[%s13758_s0 + $0x48] sm:$0xff] }
   0x6   :  { %44 = vst.msk [vmem:[#allocation2 + $0x10] sm:$0x3] %vm43_vm1, %v9733_v2  ;;  %47 = vst.msk [vmem:[#allocation2 + $0x1c0] sm:$0x3] %vm43_vm1, %v9733_v2  ;;  %v131_v31 = vld [vmem:[%s13758_s0 + $0x50] sm:$0xff]  ;;  %v132_v32 = vld [vmem:[%s13758_s0 + $0x58] sm:$0xff] }
   0x7   :  { %51 = vst.msk [vmem:[#allocation2 + $0x1a8] sm:$0x3] %vm43_vm1, %v9733_v2  ;;  %54 = vst.msk [vmem:[#allocation2 + $0x358] sm:$0x3] %vm43_vm1, %v9733_v2  ;;  %v9629_v37 = vld [vmem:[%s13759_s1] sm:$0xff]   ;;  %v9630_v39 = vld [vmem:[%s13759_s1 + $0x8] sm:$0xff]  }
   0x8   :  { %89 = vst.msk [vmem:[#allocation2 + $0x29] sm:$0x1] %vm56_vm2, %v9733_v2  ;;  %57 = vst.msk [vmem:[#allocation2 + $0x18] sm:$0x1] %vm56_vm2, %v9733_v2  ;;  %v442_v12 = vld [vmem:[#allocation2 + $0x1] sm:$0xff]  ;;  %9490 = vmatprep.subr.bf16.mxu0 %v9629_v37  ;;  %v9631_v41 = vld [vmem:[%s13759_s1 + $0x10] sm:$0xff]  }
   0x9   :  { %58 = vst.msk [vmem:[#allocation2 + $0x30] sm:$0x1] %vm56_vm2, %v9733_v2  ;;  %59 = vst.msk [vmem:[#allocation2 + $0x48] sm:$0x1] %vm56_vm2, %v9733_v2  ;;  %v444_v11 = vld [vmem:[#allocation2 + $0x19] sm:$0xff]  ;;  %570 = vrot.lane.b32.xlu0 %v442_v12, %s9734_s18  ;;  %v827_v22 = vld [vmem:[#allocation2 + $0x2] sm:$0xff]  ;;  %9491 = vmatpush3.bf16.msra.mxu0 %v9629_v37 }
   0xa   :  { %60 = vst.msk [vmem:[#allocation2 + $0x60] sm:$0x1] %vm56_vm2, %v9733_v2  ;;  %61 = vst.msk [vmem:[#allocation2 + $0x78] sm:$0x1] %vm56_vm2, %v9733_v2  ;;  %574 = vrot.lane.b32.xlu1 %v444_v11, %s9734_s18  ;;  %v314_v29 = vld [vmem:[#allocation2] sm:$0xff]  ;;  %v315_v30 = vld [vmem:[#allocation2 + $0x8] sm:$0xff]  ;;  %9492 = vmatprep.subr.bf16.mxu0 %v9630_v39 }
   0xb   :  { %62 = vst.msk [vmem:[#allocation2 + $0x90] sm:$0x1] %vm56_vm2, %v9733_v2  ;;  %63 = vst.msk [vmem:[#allocation2 + $0xa8] sm:$0x1] %vm56_vm2, %v9733_v2  ;;  %v133_v42 = vld [vmem:[%s13758_s0 + $0x60] sm:$0xff]  ;;  %v134_v43 = vld [vmem:[%s13758_s0 + $0x68] sm:$0xff] }
   0xc   :  { %64 = vst.msk [vmem:[#allocation2 + $0xc0] sm:$0x1] %vm56_vm2, %v9733_v2  ;;  %65 = vst.msk [vmem:[#allocation2 + $0xd8] sm:$0x1] %vm56_vm2, %v9733_v2  ;;  %v445_v13 = vld [vmem:[#allocation2 + $0x21] sm:$0xff]  ;;  %v9632_v44 = vld [vmem:[%s13759_s1 + $0x18] sm:$0xff]  }
   0xd   :  { %66 = vst.msk [vmem:[#allocation2 + $0xf0] sm:$0x1] %vm56_vm2, %v9733_v2  ;;  %67 = vst.msk [vmem:[#allocation2 + $0x108] sm:$0x1] %vm56_vm2, %v9733_v2  ;;  %v443_v14 = vld [vmem:[#allocation2 + $0x9] sm:$0xff]  ;;  %v1213_v15 = vld [vmem:[#allocation2 + $0x20] sm:$0xff]  ;;  %9493 = vmatpush3.bf16.msra.mxu0 %v9630_v39 }
   0xe   :  { %68 = vst.msk [vmem:[#allocation2 + $0x120] sm:$0x1] %vm56_vm2, %v9733_v2  ;;  %69 = vst.msk [vmem:[#allocation2 + $0x138] sm:$0x1] %vm56_vm2, %v9733_v2  ;;  %576 = vrot.lane.b32.xlu1 %v445_v13, %s9734_s18  ;;  %572 = vrot.lane.b32.xlu0 %v443_v14, %s9734_s18  ;;  %v828_v21 = vld [vmem:[#allocation2 + $0xa] sm:$0xff]  ;;  %v829_v28 = vld [vmem:[#allocation2 + $0x1a] sm:$0xff] }
   0xf   :  { %70 = vst.msk [vmem:[#allocation2 + $0x150] sm:$0x1] %vm56_vm2, %v9733_v2  ;;  %71 = vst.msk [vmem:[#allocation2 + $0x168] sm:$0x1] %vm56_vm2, %v9733_v2  ;;  %v1212_v16 = vld [vmem:[#allocation2 + $0x18] sm:$0xff]  ;;  %v830_v27 = vld [vmem:[#allocation2 + $0x22] sm:$0xff]  ;;  %9494 = vmatprep.subr.bf16.mxu0 %v9631_v41 }
  0x10   :  { %72 = vst.msk [vmem:[#allocation2 + $0x180] sm:$0x1] %vm56_vm2, %v9733_v2  ;;  %73 = vst.msk [vmem:[#allocation2 + $0x1c8] sm:$0x1] %vm56_vm2, %v9733_v2  ;;  %v9633_v45 = vld [vmem:[%s13759_s1 + $0x20] sm:$0xff]   ;;  %v9634_v49 = vld [vmem:[%s13759_s1 + $0x28] sm:$0xff]  }
  0x11   :  { %74 = vst.msk [vmem:[#allocation2 + $0x1e0] sm:$0x1] %vm56_vm2, %v9733_v2  ;;  %75 = vst.msk [vmem:[#allocation2 + $0x1f8] sm:$0x1] %vm56_vm2, %v9733_v2  ;;  %9495 = vmatpush3.bf16.msra.mxu0 %v9631_v41  ;;  %v9635_v51 = vld [vmem:[%s13759_s1 + $0x30] sm:$0xff]   ;;  %v9636_v52 = vld [vmem:[%s13759_s1 + $0x38] sm:$0xff]  }
  0x12   :  { %76 = vst.msk [vmem:[#allocation2 + $0x210] sm:$0x1] %vm56_vm2, %v9733_v2  ;;  %77 = vst.msk [vmem:[#allocation2 + $0x228] sm:$0x1] %vm56_vm2, %v9733_v2  ;;  %957 = vrot.lane.b32.xlu1 %v828_v21, %s9735_s19  ;;  %955 = vrot.lane.b32.xlu0 %v827_v22, %s9735_s19 }
  0x13   :  { %78 = vst.msk [vmem:[#allocation2 + $0x240] sm:$0x1] %vm56_vm2, %v9733_v2  ;;  %79 = vst.msk [vmem:[#allocation2 + $0x258] sm:$0x1] %vm56_vm2, %v9733_v2  ;;  %9496 = vmatprep.subr.bf16.mxu0 %v9632_v44 }
  0x14   :  { %80 = vst.msk [vmem:[#allocation2 + $0x270] sm:$0x1] %vm56_vm2, %v9733_v2  ;;  %81 = vst.msk [vmem:[#allocation2 + $0x288] sm:$0x1] %vm56_vm2, %v9733_v2 }
  0x15   :  { %82 = vst.msk [vmem:[#allocation2 + $0x2a0] sm:$0x1] %vm56_vm2, %v9733_v2  ;;  %83 = vst.msk [vmem:[#allocation2 + $0x2b8] sm:$0x1] %vm56_vm2, %v9733_v2  ;;  %9497 = vmatpush3.bf16.msra.mxu0 %v9632_v44 }
  0x16   :  { %84 = vst.msk [vmem:[#allocation2 + $0x2d0] sm:$0x1] %vm56_vm2, %v9733_v2  ;;  %85 = vst.msk [vmem:[#allocation2 + $0x2e8] sm:$0x1] %vm56_vm2, %v9733_v2  ;;  %961 = vrot.lane.b32.xlu1 %v830_v27, %s9735_s19  ;;  %959 = vrot.lane.b32.xlu0 %v829_v28, %s9735_s19 }
  0x17   :  { %86 = vst.msk [vmem:[#allocation2 + $0x300] sm:$0x1] %vm56_vm2, %v9733_v2  ;;  %87 = vst.msk [vmem:[#allocation2 + $0x318] sm:$0x1] %vm56_vm2, %v9733_v2  ;;  %9498 = vmatprep.subr.bf16.mxu0 %v9633_v45 }
  0x18   :  { %88 = vst.msk [vmem:[#allocation2 + $0x330] sm:$0x1] %vm56_vm2, %v9733_v2  ;;  %90 = vst.msk [vmem:[#allocation2 + $0x41] sm:$0x1] %vm56_vm2, %v9733_v2 }
  0x19   :  { %91 = vst.msk [vmem:[#allocation2 + $0x59] sm:$0x1] %vm56_vm2, %v9733_v2  ;;  %92 = vst.msk [vmem:[#allocation2 + $0x71] sm:$0x1] %vm56_vm2, %v9733_v2  ;;  %9499 = vmatpush3.bf16.msra.mxu0 %v9633_v45 }
  0x1a   :  { %93 = vst.msk [vmem:[#allocation2 + $0x89] sm:$0x1] %vm56_vm2, %v9733_v2  ;;  %94 = vst.msk [vmem:[#allocation2 + $0xa1] sm:$0x1] %vm56_vm2, %v9733_v2  ;;  %1342 = vrot.lane.b32.xlu1 %v1213_v15, %s9736_s24  ;;  %1340 = vrot.lane.b32.xlu0 %v1212_v16, %s9736_s24 }
  0x1b   :  { %95 = vst.msk [vmem:[#allocation2 + $0xb9] sm:$0x1] %vm56_vm2, %v9733_v2  ;;  %96 = vst.msk [vmem:[#allocation2 + $0xd1] sm:$0x1] %vm56_vm2, %v9733_v2  ;;  %9500 = vmatprep.subr.bf16.mxu0 %v9634_v49 }
  0x1c   :  { %97 = vst.msk [vmem:[#allocation2 + $0xe9] sm:$0x1] %vm56_vm2, %v9733_v2  ;;  %98 = vst.msk [vmem:[#allocation2 + $0x101] sm:$0x1] %vm56_vm2, %v9733_v2 }
  0x1d   :  { %99 = vst.msk [vmem:[#allocation2 + $0x119] sm:$0x1] %vm56_vm2, %v9733_v2  ;;  %100 = vst.msk [vmem:[#allocation2 + $0x131] sm:$0x1] %vm56_vm2, %v9733_v2  ;;  %9501 = vmatpush3.bf16.msra.mxu0 %v9634_v49 }
  0x1e   :  { %101 = vst.msk [vmem:[#allocation2 + $0x149] sm:$0x1] %vm56_vm2, %v9733_v2  ;;  %102 = vst.msk [vmem:[#allocation2 + $0x161] sm:$0x1] %vm56_vm2, %v9733_v2  ;;  %9502 = vmatprep.subr.bf16.mxu0 %v9635_v51 }
  0x1f   :  { %103 = vst.msk [vmem:[#allocation2 + $0x179] sm:$0x1] %vm56_vm2, %v9733_v2  ;;  %104 = vst.msk [vmem:[#allocation2 + $0x191] sm:$0x1] %vm56_vm2, %v9733_v2 }
  0x20   :  { %105 = vst.msk [vmem:[#allocation2 + $0x1d9] sm:$0x1] %vm56_vm2, %v9733_v2  ;;  %106 = vst.msk [vmem:[#allocation2 + $0x1f1] sm:$0x1] %vm56_vm2, %v9733_v2 }
  0x21   :  { %107 = vst.msk [vmem:[#allocation2 + $0x209] sm:$0x1] %vm56_vm2, %v9733_v2  ;;  %108 = vst.msk [vmem:[#allocation2 + $0x221] sm:$0x1] %vm56_vm2, %v9733_v2  ;;  %9503 = vmatpush3.bf16.msra.mxu0 %v9635_v51 }
  0x22   :  { %109 = vst.msk [vmem:[#allocation2 + $0x239] sm:$0x1] %vm56_vm2, %v9733_v2  ;;  %110 = vst.msk [vmem:[#allocation2 + $0x251] sm:$0x1] %vm56_vm2, %v9733_v2  ;;  %9504 = vmatprep.subr.bf16.mxu0 %v9636_v52 }
  0x23   :  { %111 = vst.msk [vmem:[#allocation2 + $0x269] sm:$0x1] %vm56_vm2, %v9733_v2  ;;  %112 = vst.msk [vmem:[#allocation2 + $0x281] sm:$0x1] %vm56_vm2, %v9733_v2 }
  0x24   :  { %113 = vst.msk [vmem:[#allocation2 + $0x299] sm:$0x1] %vm56_vm2, %v9733_v2  ;;  %114 = vst.msk [vmem:[#allocation2 + $0x2b1] sm:$0x1] %vm56_vm2, %v9733_v2 }
  0x25   :  { %115 = vst.msk [vmem:[#allocation2 + $0x2c9] sm:$0x1] %vm56_vm2, %v9733_v2  ;;  %116 = vst.msk [vmem:[#allocation2 + $0x2e1] sm:$0x1] %vm56_vm2, %v9733_v2  ;;  %9505 = vmatpush3.bf16.msra.mxu0 %v9636_v52 }
  0x26   :  { %117 = vst.msk [vmem:[#allocation2 + $0x2f9] sm:$0x1] %vm56_vm2, %v9733_v2  ;;  %118 = vst.msk [vmem:[#allocation2 + $0x311] sm:$0x1] %vm56_vm2, %v9733_v2  ;;  %9570 = vmatprep.subr.bf16.mxu0 %v9733_v2 }
  0x27   :  { %119 = vst.msk [vmem:[#allocation2 + $0x329] sm:$0x1] %vm56_vm2, %v9733_v2  ;;  %120 = vst.msk [vmem:[#allocation2 + $0x341] sm:$0x1] %vm56_vm2, %v9733_v2 }
  0x28   :  { %187 = vst.msk [vmem:[#allocation2 + $0x31] sm:$0xff] %vm40_vm0, %v9843_v3  ;;  %188 = vst.msk [vmem:[#allocation2 + $0x39] sm:$0xff] %vm40_vm0, %v9848_v4 }
  0x29   :  { %189 = vst.msk [vmem:[#allocation2 + $0x49] sm:$0xff] %vm40_vm0, %v9853_v5  ;;  %190 = vst.msk [vmem:[#allocation2 + $0x51] sm:$0xff] %vm40_vm0, %v126_v6 }
  0x2a   :  { %191 = vst.msk [vmem:[#allocation2 + $0x61] sm:$0xff] %vm40_vm0, %v127_v7  ;;  %192 = vst.msk [vmem:[#allocation2 + $0x69] sm:$0xff] %vm40_vm0, %v128_v8 }
  0x2b   :  { %252 = vst.msk [vmem:[#allocation3 + $0x10] sm:$0xff] %vm249_vm3, %v9733_v2  ;;  %250 = vst.msk [vmem:[#allocation3] sm:$0xff] %vm249_vm3, %v9733_v2 }
  0x2c   :  { %251 = vst.msk [vmem:[#allocation3 + $0x8] sm:$0xff] %vm249_vm3, %v9733_v2  ;;  %253 = vst.msk [vmem:[#allocation3 + $0x18] sm:$0xff] %vm249_vm3, %v9733_v2 }
  0x2d   :  { %254 = vst.msk [vmem:[#allocation3 + $0x20] sm:$0xff] %vm249_vm3, %v9733_v2  ;;  %255 = vst.msk [vmem:[#allocation3 + $0x28] sm:$0xff] %vm249_vm3, %v9733_v2 }
  0x2e   :  { %256 = vst.msk [vmem:[#allocation3 + $0x30] sm:$0xff] %vm249_vm3, %v9733_v2  ;;  %257 = vst.msk [vmem:[#allocation3 + $0x38] sm:$0xff] %vm249_vm3, %v9733_v2 }
  0x2f   :  { %258 = vst.msk [vmem:[#allocation3 + $0x40] sm:$0xff] %vm249_vm3, %v9733_v2  ;;  %259 = vst.msk [vmem:[#allocation3 + $0x48] sm:$0xff] %vm249_vm3, %v9733_v2  ;;  %v10145_v17 = vld [vmem:[#allocation2 + $0x38] sm:$0xff]  ;;  %v10147_v18 = vld [vmem:[#allocation2 + $0x30] sm:$0xff] }
  0x30   :  { %260 = vst.msk [vmem:[#allocation3 + $0x50] sm:$0xff] %vm249_vm3, %v9733_v2  ;;  %261 = vst.msk [vmem:[#allocation3 + $0x58] sm:$0xff] %vm249_vm3, %v9733_v2  ;;  %v10157_v19 = vld [vmem:[#allocation2 + $0x50] sm:$0xff]  ;;  %v10159_v20 = vld [vmem:[#allocation2 + $0x48] sm:$0xff]  ;;  %1346 = vrot.lane.b32.xlu1 %v10145_v17, %s9736_s24  ;;  %1344 = vrot.lane.b32.xlu0 %v10147_v18, %s9736_s24 }
  0x31   :  { %262 = vst.msk [vmem:[#allocation3 + $0x60] sm:$0xff] %vm249_vm3, %v9733_v2  ;;  %263 = vst.msk [vmem:[#allocation3 + $0x68] sm:$0xff] %vm249_vm3, %v9733_v2  ;;  %v10165_v23 = vld [vmem:[#allocation2 + $0x68] sm:$0xff]  ;;  %v10167_v24 = vld [vmem:[#allocation2 + $0x60] sm:$0xff] }
  0x32   :  { %264 = vst.msk [vmem:[#allocation3 + $0x70] sm:$0xff] %vm249_vm3, %v9733_v2  ;;  %265 = vst.msk [vmem:[#allocation3 + $0x78] sm:$0xff] %vm249_vm3, %v9733_v2  ;;  %v1600_v35 = vld [vmem:[#allocation2 + $0x39] sm:$0xff]  ;;  %v1599_v36 = vld [vmem:[#allocation2 + $0x31] sm:$0xff] }
  0x33   :  { %266 = vst.msk [vmem:[#allocation3 + $0x80] sm:$0xff] %vm249_vm3, %v9733_v2  ;;  %267 = vst.msk [vmem:[#allocation3 + $0x88] sm:$0xff] %vm249_vm3, %v9733_v2  ;;  %v1985_v38 = vld [vmem:[#allocation2 + $0x3a] sm:$0xff]  ;;  %v1984_v40 = vld [vmem:[#allocation2 + $0x32] sm:$0xff] }
  0x34   :  { %268 = vst.msk [vmem:[#allocation3 + $0x90] sm:$0xff] %vm249_vm3, %v9733_v2  ;;  %269 = vst.msk [vmem:[#allocation3 + $0x98] sm:$0xff] %vm249_vm3, %v9733_v2  ;;  %1727 = vrot.lane.b32.xlu1 %v445_v13, %s9737_s25  ;;  %1725 = vrot.lane.b32.xlu0 %v444_v11, %s9737_s25  ;;  %v2756_v48 = vld [vmem:[#allocation2 + $0x51] sm:$0xff]  ;;  %v2755_v50 = vld [vmem:[#allocation2 + $0x49] sm:$0xff] }
  0x35   :  { %270 = vst.msk [vmem:[#allocation3 + $0xa0] sm:$0xff] %vm249_vm3, %v9733_v2  ;;  %271 = vst.msk [vmem:[#allocation3 + $0xa8] sm:$0xff] %vm249_vm3, %v9733_v2  ;;  %v3141_v53 = vld [vmem:[#allocation2 + $0x52] sm:$0xff]  ;;  %v3140_v54 = vld [vmem:[#allocation2 + $0x4a] sm:$0xff] }
  0x36   :  { %272 = vst.msk [vmem:[#allocation3 + $0xb0] sm:$0xff] %vm249_vm3, %v9733_v2  ;;  %273 = vst.msk [vmem:[#allocation3 + $0xb8] sm:$0xff] %vm249_vm3, %v9733_v2 }
  0x37   :  { %274 = vst.msk [vmem:[#allocation3 + $0xc0] sm:$0xff] %vm249_vm3, %v9733_v2  ;;  %275 = vst.msk [vmem:[#allocation3 + $0xc8] sm:$0xff] %vm249_vm3, %v9733_v2 }
  0x38   :  { %276 = vst.msk [vmem:[#allocation3 + $0xd0] sm:$0xff] %vm249_vm3, %v9733_v2  ;;  %277 = vst.msk [vmem:[#allocation3 + $0xd8] sm:$0xff] %vm249_vm3, %v9733_v2  ;;  %1731 = vrot.lane.b32.xlu1 %v1600_v35, %s9737_s25  ;;  %1729 = vrot.lane.b32.xlu0 %v1599_v36, %s9737_s25 }
  0x39   :  { %278 = vst.msk [vmem:[#allocation3 + $0xe0] sm:$0xff] %vm249_vm3, %v9733_v2  ;;  %279 = vst.msk [vmem:[#allocation3 + $0xe8] sm:$0xff] %vm249_vm3, %v9733_v2 }
  0x3a   :  { %280 = vst.msk [vmem:[#allocation3 + $0xf0] sm:$0xff] %vm249_vm3, %v9733_v2  ;;  %281 = vst.msk [vmem:[#allocation3 + $0xf8] sm:$0xff] %vm249_vm3, %v9733_v2 }
  0x3b   :  { %282 = vst.msk [vmem:[#allocation3 + $0x100] sm:$0xff] %vm249_vm3, %v9733_v2  ;;  %283 = vst.msk [vmem:[#allocation3 + $0x108] sm:$0xff] %vm249_vm3, %v9733_v2 }
  0x3c   :  { %284 = vst.msk [vmem:[#allocation3 + $0x110] sm:$0xff] %vm249_vm3, %v9733_v2  ;;  %285 = vst.msk [vmem:[#allocation3 + $0x118] sm:$0xff] %vm249_vm3, %v9733_v2  ;;  %2112 = vrot.lane.b32.xlu1 %v830_v27, %s9738_s30  ;;  %2110 = vrot.lane.b32.xlu0 %v829_v28, %s9738_s30 }
  0x3d   :  { %286 = vst.msk [vmem:[#allocation3 + $0x120] sm:$0xff] %vm249_vm3, %v9733_v2  ;;  %287 = vst.msk [vmem:[#allocation3 + $0x128] sm:$0xff] %vm249_vm3, %v9733_v2 }
  0x3e   :  { %288 = vst.msk [vmem:[#allocation3 + $0x130] sm:$0xff] %vm249_vm3, %v9733_v2  ;;  %289 = vst.msk [vmem:[#allocation3 + $0x138] sm:$0xff] %vm249_vm3, %v9733_v2 }
  0x3f   :  { %290 = vst.msk [vmem:[#allocation3 + $0x140] sm:$0xff] %vm249_vm3, %v9733_v2  ;;  %291 = vst.msk [vmem:[#allocation3 + $0x148] sm:$0xff] %vm249_vm3, %v9733_v2 }
  0x40   :  { %292 = vst.msk [vmem:[#allocation3 + $0x150] sm:$0xff] %vm249_vm3, %v9733_v2  ;;  %293 = vst.msk [vmem:[#allocation3 + $0x158] sm:$0xff] %vm249_vm3, %v9733_v2  ;;  %2116 = vrot.lane.b32.xlu1 %v1985_v38, %s9738_s30  ;;  %2114 = vrot.lane.b32.xlu0 %v1984_v40, %s9738_s30 }
  0x41   :  { %294 = vst.msk [vmem:[#allocation3 + $0x160] sm:$0xff] %vm249_vm3, %v9733_v2  ;;  %295 = vst.msk [vmem:[#allocation3 + $0x168] sm:$0xff] %vm249_vm3, %v9733_v2 }
  0x42   :  { %296 = vst.msk [vmem:[#allocation3 + $0x170] sm:$0xff] %vm249_vm3, %v9733_v2  ;;  %297 = vst.msk [vmem:[#allocation3 + $0x178] sm:$0xff] %vm249_vm3, %v9733_v2 }
  0x43   :  { %298 = vst.msk [vmem:[#allocation3 + $0x180] sm:$0xff] %vm249_vm3, %v9733_v2  ;;  %299 = vst.msk [vmem:[#allocation3 + $0x188] sm:$0xff] %vm249_vm3, %v9733_v2 }
  0x44   :  { %300 = vst.msk [vmem:[#allocation3 + $0x190] sm:$0xff] %vm249_vm3, %v9733_v2  ;;  %301 = vst.msk [vmem:[#allocation3 + $0x198] sm:$0xff] %vm249_vm3, %v9733_v2  ;;  %2498 = vrot.lane.b32.xlu1 %v10145_v17, %s9739_s22  ;;  %2496 = vrot.lane.b32.xlu0 %v10147_v18, %s9739_s22 }
  0x45   :  { %302 = vst.msk [vmem:[#allocation3 + $0x1a0] sm:$0xff] %vm249_vm3, %v9733_v2  ;;  %303 = vst.msk [vmem:[#allocation3 + $0x1a8] sm:$0xff] %vm249_vm3, %v9733_v2 }
  0x46   :  { %304 = vst.msk [vmem:[#allocation3 + $0x1b0] sm:$0xff] %vm249_vm3, %v9733_v2  ;;  %305 = vst.msk [vmem:[#allocation3 + $0x1b8] sm:$0xff] %vm249_vm3, %v9733_v2 }
  0x47   :  { %306 = vst.msk [vmem:[#allocation3 + $0x1c0] sm:$0xff] %vm249_vm3, %v9733_v2  ;;  %307 = vst.msk [vmem:[#allocation3 + $0x1c8] sm:$0xff] %vm249_vm3, %v9733_v2 }
  0x48   :  { %308 = vst.msk [vmem:[#allocation3 + $0x1d0] sm:$0xff] %vm249_vm3, %v9733_v2  ;;  %309 = vst.msk [vmem:[#allocation3 + $0x1d8] sm:$0xff] %vm249_vm3, %v9733_v2  ;;  %2502 = vrot.lane.b32.xlu1 %v10157_v19, %s9739_s22  ;;  %2500 = vrot.lane.b32.xlu0 %v10159_v20, %s9739_s22 }
  0x49   :  { %310 = vst.msk [vmem:[#allocation3 + $0x1e0] sm:$0xff] %vm249_vm3, %v9733_v2  ;;  %311 = vst.msk [vmem:[#allocation3 + $0x1e8] sm:$0xff] %vm249_vm3, %v9733_v2 }
  0x4a   :  { %312 = vst.msk [vmem:[#allocation3 + $0x1f0] sm:$0xff] %vm249_vm3, %v9733_v2  ;;  %313 = vst.msk [vmem:[#allocation3 + $0x1f8] sm:$0xff] %vm249_vm3, %v9733_v2 }
  0x4b   :  { %193 = vst.msk [vmem:[#allocation2 + $0x79] sm:$0xff] %vm40_vm0, %v10004_v9  ;;  %194 = vst.msk [vmem:[#allocation2 + $0x81] sm:$0xff] %vm40_vm0, %v10009_v10 }
  0x4c   :  { %381 = vst.msk [vmem:[#allocation3 + $0x18] sm:$0xff] %vm40_vm0, %v1213_v15  ;;  %380 = vst.msk [vmem:[#allocation3 + $0x10] sm:$0xff] %vm40_vm0, %v1212_v16  ;;  %2883 = vrot.lane.b32.xlu1 %v1600_v35, %s9740_s29  ;;  %2881 = vrot.lane.b32.xlu0 %v1599_v36, %s9740_s29 }
  0x4d   :  { %383 = vst.msk [vmem:[#allocation3 + $0x28] sm:$0xff] %vm40_vm0, %v10145_v17  ;;  %382 = vst.msk [vmem:[#allocation3 + $0x20] sm:$0xff] %vm40_vm0, %v10147_v18 }
  0x4e   :  { %385 = vst.msk [vmem:[#allocation3 + $0x38] sm:$0xff] %vm40_vm0, %v10157_v19  ;;  %384 = vst.msk [vmem:[#allocation3 + $0x30] sm:$0xff] %vm40_vm0, %v10159_v20 }
  0x4f   :  { %387 = vst.msk [vmem:[#allocation3 + $0x48] sm:$0xff] %vm40_vm0, %v10165_v23  ;;  %386 = vst.msk [vmem:[#allocation3 + $0x40] sm:$0xff] %vm40_vm0, %v10167_v24 }
  0x50   :  { %378 = vst.msk [vmem:[#allocation3] sm:$0xff] %vm40_vm0, %v314_v29  ;;  %379 = vst.msk [vmem:[#allocation3 + $0x8] sm:$0xff] %vm40_vm0, %v315_v30  ;;  %2887 = vrot.lane.b32.xlu1 %v2756_v48, %s9740_s29  ;;  %2885 = vrot.lane.b32.xlu0 %v2755_v50, %s9740_s29 }
  0x51   :  { %195 = vst.msk [vmem:[#allocation2 + $0x91] sm:$0xff] %vm40_vm0, %v131_v31  ;;  %196 = vst.msk [vmem:[#allocation2 + $0x99] sm:$0xff] %vm40_vm0, %v132_v32 }
  0x52   :  { %v10175_v25 = vld [vmem:[#allocation2 + $0x80] sm:$0xff]  ;;  %v10177_v26 = vld [vmem:[#allocation2 + $0x78] sm:$0xff]  ;;  %197 = vst.msk [vmem:[#allocation2 + $0xa9] sm:$0xff] %vm40_vm0, %v133_v42  ;;  %198 = vst.msk [vmem:[#allocation2 + $0xb1] sm:$0xff] %vm40_vm0, %v134_v43 }
  0x53   :  { %389 = vst.msk [vmem:[#allocation3 + $0x58] sm:$0xff] %vm40_vm0, %v10175_v25  ;;  %388 = vst.msk [vmem:[#allocation3 + $0x50] sm:$0xff] %vm40_vm0, %v10177_v26 }
  0x54   :  { %3268 = vrot.lane.b32.xlu1 %v1985_v38, %s9741_s16  ;;  %3266 = vrot.lane.b32.xlu0 %v1984_v40, %s9741_s16 }
  0x58   :  { %v10197_v33 = vld [vmem:[#allocation2 + $0x98] sm:$0xff]  ;;  %v10199_v34 = vld [vmem:[#allocation2 + $0x90] sm:$0xff]  ;;  %580 = vrot.lane.b32.xlu1 %v1600_v35, %s9734_s18  ;;  %578 = vrot.lane.b32.xlu0 %v1599_v36, %s9734_s18 }
  0x59   :  { %391 = vst.msk [vmem:[#allocation3 + $0x68] sm:$0xff] %vm40_vm0, %v10197_v33  ;;  %390 = vst.msk [vmem:[#allocation3 + $0x60] sm:$0xff] %vm40_vm0, %v10199_v34  ;;  %v10248_v46 = vld [vmem:[#allocation2 + $0xb0] sm:$0xff]  ;;  %v10250_v47 = vld [vmem:[#allocation2 + $0xa8] sm:$0xff] }
  0x5a   :  { %393 = vst.msk [vmem:[#allocation3 + $0x78] sm:$0xff] %vm40_vm0, %v10248_v46  ;;  %392 = vst.msk [vmem:[#allocation3 + $0x70] sm:$0xff] %vm40_vm0, %v10250_v47 }
  0x5c   :  { %3272 = vrot.lane.b32.xlu1 %v3141_v53, %s9741_s16  ;;  %3270 = vrot.lane.b32.xlu0 %v3140_v54, %s9741_s16 }
  0x5d   :  { %16 = vsyncpa [#allocation11], 0  ;;  %v135_v55 = vld [vmem:[%s13758_s0 + $0x70] sm:$0xff]  ;;  %v136_v56 = vld [vmem:[%s13758_s0 + $0x78] sm:$0xff]  ;;  %vm762_vm4 = vcmask 48152   ;;  %vm13778_vm5 = vcmask 72752  }
  0x5e   :  { %199 = vst.msk [vmem:[#allocation2 + $0xc1] sm:$0xff] %vm40_vm0, %v135_v55  ;;  %200 = vst.msk [vmem:[#allocation2 + $0xc9] sm:$0xff] %vm40_vm0, %v136_v56  ;;  %v1604_v59 = vld [vmem:[#allocation2 + $0x69] sm:$0xff]  ;;  %v1603_v60 = vld [vmem:[#allocation2 + $0x61] sm:$0xff]  ;;  %vm13777_vm6 = vcmask 97352   ;;  %vm13775_vm7 = vcmask 121952  }
  0x5f   :  { %v1989_v61 = vld [vmem:[#allocation2 + $0x6a] sm:$0xff]  ;;  %v1988_v62 = vld [vmem:[#allocation2 + $0x62] sm:$0xff]  ;;  %v10342_v5 = vld [vmem:[#allocation2 + $0x79] sm:$0xff]  ;;  %vm13776_vm8 = vcmask 146552   ;;  %vm13772_vm9 = vcmask 171152   ;;  %vm13773_vm10 = vcmask 195752  }
  0x60   :  { %584 = vrot.lane.b32.xlu1 %v2756_v48, %s9734_s18  ;;  %582 = vrot.lane.b32.xlu0 %v2755_v50, %s9734_s18  ;;  %v137_v63 = vld [vmem:[%s13758_s0 + $0x80] sm:$0xff]  ;;  %v138_v0 = vld [vmem:[%s13758_s0 + $0x88] sm:$0xff]  ;;  %v10420_v35 = vld [vmem:[#allocation2 + $0x91] sm:$0xff]  ;;  %vm3458_vm11 = vcmask 220352   ;;  %vm13774_vm12 = vcmask 123904   ;;  %vm13779_vm13 = vcmask 130048  }
  0x61   :  { %201 = vst.msk [vmem:[#allocation2 + $0xd9] sm:$0xff] %vm40_vm0, %v137_v63  ;;  %202 = vst.msk [vmem:[#allocation2 + $0xe1] sm:$0xff] %vm40_vm0, %v138_v0  ;;  %v10340_v4 = vld [vmem:[#allocation2 + $0x81] sm:$0xff]  ;;  %v139_v22 = vld [vmem:[%s13758_s0 + $0x90] sm:$0xff]  ;;  %vm6615_vm14 = vcmask 122880   ;;  %vm7039_vm15 = vcmask 1047680  }
  0x62   :  { %v10358_v12 = vld [vmem:[#allocation2 + $0x82] sm:$0xff]  ;;  %v10360_v13 = vld [vmem:[#allocation2 + $0x7a] sm:$0xff]  ;;  %203 = vst.msk [vmem:[#allocation2 + $0xf1] sm:$0xff] %vm40_vm0, %v139_v22  ;;  %v10436_v41 = vld [vmem:[#allocation2 + $0x92] sm:$0xff]  ;;  %vm13771_vm1 = vcmask 1041409   ;;  %vm13770_vm2 = vcmask 1042434  }
  0x63   :  { %v10418_v32 = vld [vmem:[#allocation2 + $0x99] sm:$0xff]  ;;  %v142_v45 = vld [vmem:[%s13758_s0 + $0xa8] sm:$0xff]  ;;  %6606 = vst.msk [vmem:[#allocation5 + $0x8] sm:$0x3] %vm13774_vm12, %v9733_v2  ;;  %6608 = vst.msk [vmem:[#allocation5 + $0xa8] sm:$0x3] %vm13774_vm12, %v9733_v2 }
  0x64   :  { %965 = vrot.lane.b32.xlu1 %v1985_v38, %s9735_s19  ;;  %963 = vrot.lane.b32.xlu0 %v1984_v40, %s9735_s19  ;;  %v10434_v40 = vld [vmem:[#allocation2 + $0x9a] sm:$0xff]  ;;  %206 = vst.msk [vmem:[#allocation2 + $0x111] sm:$0xff] %vm40_vm0, %v142_v45  ;;  %v10480_v55 = vld [vmem:[#allocation2 + $0xa9] sm:$0xff]  ;;  %vm6783_vm3 = vcmask 1043459   ;;  %s9744_s14 = smov 32   ;;  %s9747_s26 = smov 80  }
  0x65   :  { %v10294_v57 = vld [vmem:[#allocation2 + $0xc8] sm:$0xff]  ;;  %v10296_v58 = vld [vmem:[#allocation2 + $0xc0] sm:$0xff]  ;;  %6611 = vst.msk [vmem:[#allocation5 + $0x98] sm:$0x3] %vm13774_vm12, %v9733_v2  ;;  %6613 = vst.msk [vmem:[#allocation5 + $0x138] sm:$0x3] %vm13774_vm12, %v9733_v2 }
  0x66   :  { %395 = vst.msk [vmem:[#allocation3 + $0x88] sm:$0xff] %vm40_vm0, %v10294_v57  ;;  %394 = vst.msk [vmem:[#allocation3 + $0x80] sm:$0xff] %vm40_vm0, %v10296_v58  ;;  %v141_v44 = vld [vmem:[%s13758_s0 + $0xa0] sm:$0xff]  ;;  %s9748_s12 = smov 96   ;;  %s9751_s17 = smov [#allocation10]  }
  0x67   :  { %205 = vst.msk [vmem:[#allocation2 + $0x109] sm:$0xff] %vm40_vm0, %v141_v44  ;;  %s9239_s20 = sshll.u32 %s9751_s17, 4  ;;  %s9240_s20 = int_to_ptr.vmem [resolvable:$true] %s9239_s20 }
  0x68   :  { %969 = vrot.lane.b32.xlu1 %v3141_v53, %s9735_s19  ;;  %967 = vrot.lane.b32.xlu0 %v3140_v54, %s9735_s19  ;;  %v10326_v1 = vld [vmem:[#allocation2 + $0xd8] sm:$0xff]  ;;  %v10332_v3 = vld [vmem:[#allocation2 + $0xe0] sm:$0xff]  ;;  %6605 = vst.msk [vmem:[#allocation5] sm:$0xff] %vm13779_vm13, %v9733_v2  ;;  %6607 = vst.msk [vmem:[#allocation5 + $0xa0] sm:$0xff] %vm13779_vm13, %v9733_v2  ;;  %p9714_p1 = scmp.lt.s32.totalorder %s9240_s20, %s9240_s20 }
  0x69   :  { %396 = vst.msk [vmem:[#allocation3 + $0x90] sm:$0xff] %vm40_vm0, %v10326_v1  ;;  %397 = vst.msk [vmem:[#allocation3 + $0x98] sm:$0xff] %vm40_vm0, %v10332_v3  ;;  %v10402_v31 = vld [vmem:[#allocation2 + $0xf0] sm:$0xff] }
  0x6a   :  { %398 = vst.msk [vmem:[#allocation3 + $0xa0] sm:$0xff] %vm40_vm0, %v10402_v31 }
  0x6b   :  { %6610 = vst.msk [vmem:[#allocation5 + $0x90] sm:$0xff] %vm13779_vm13, %v9733_v2  ;;  %6612 = vst.msk [vmem:[#allocation5 + $0x130] sm:$0xff] %vm13779_vm13, %v9733_v2 }
  0x6c   :  { %1350 = vrot.lane.b32.xlu1 %v10157_v19, %s9736_s24  ;;  %1348 = vrot.lane.b32.xlu0 %v10159_v20, %s9736_s24  ;;  %6633 = vst.msk [vmem:[#allocation5 + $0x29] sm:$0x1] %vm6615_vm14, %v9733_v2  ;;  %6634 = vst.msk [vmem:[#allocation5 + $0x39] sm:$0x1] %vm6615_vm14, %v9733_v2 }
  0x6d   :  { %6616 = vst.msk [vmem:[#allocation5 + $0x10] sm:$0x1] %vm6615_vm14, %v9733_v2  ;;  %6617 = vst.msk [vmem:[#allocation5 + $0x20] sm:$0x1] %vm6615_vm14, %v9733_v2 }
  0x6e   :  { %v10460_v52 = vld [vmem:[#allocation2 + $0x108] sm:$0xff]  ;;  %6618 = vst.msk [vmem:[#allocation5 + $0x30] sm:$0x1] %vm6615_vm14, %v9733_v2  ;;  %6619 = vst.msk [vmem:[#allocation5 + $0x40] sm:$0x1] %vm6615_vm14, %v9733_v2 }
  0x6f   :  { %400 = vst.msk [vmem:[#allocation3 + $0xb0] sm:$0xff] %vm40_vm0, %v10460_v52 }
  0x70   :  { %1354 = vrot.lane.b32.xlu1 %v10165_v23, %s9736_s24  ;;  %1352 = vrot.lane.b32.xlu0 %v10167_v24, %s9736_s24  ;;  %6620 = vst.msk [vmem:[#allocation5 + $0x50] sm:$0x1] %vm6615_vm14, %v9733_v2  ;;  %6621 = vst.msk [vmem:[#allocation5 + $0x60] sm:$0x1] %vm6615_vm14, %v9733_v2 }
  0x71   :  { %6622 = vst.msk [vmem:[#allocation5 + $0x70] sm:$0x1] %vm6615_vm14, %v9733_v2  ;;  %6623 = vst.msk [vmem:[#allocation5 + $0x80] sm:$0x1] %vm6615_vm14, %v9733_v2 }
  0x72   :  { %6624 = vst.msk [vmem:[#allocation5 + $0xb0] sm:$0x1] %vm6615_vm14, %v9733_v2  ;;  %6625 = vst.msk [vmem:[#allocation5 + $0xc0] sm:$0x1] %vm6615_vm14, %v9733_v2 }
  0x73   :  { %6626 = vst.msk [vmem:[#allocation5 + $0xd0] sm:$0x1] %vm6615_vm14, %v9733_v2  ;;  %6627 = vst.msk [vmem:[#allocation5 + $0xe0] sm:$0x1] %vm6615_vm14, %v9733_v2 }
  0x74   :  { %1735 = vrot.lane.b32.xlu1 %v2756_v48, %s9737_s25  ;;  %1733 = vrot.lane.b32.xlu0 %v2755_v50, %s9737_s25  ;;  %6628 = vst.msk [vmem:[#allocation5 + $0xf0] sm:$0x1] %vm6615_vm14, %v9733_v2  ;;  %6629 = vst.msk [vmem:[#allocation5 + $0x100] sm:$0x1] %vm6615_vm14, %v9733_v2 }
  0x75   :  { %6630 = vst.msk [vmem:[#allocation5 + $0x110] sm:$0x1] %vm6615_vm14, %v9733_v2  ;;  %6631 = vst.msk [vmem:[#allocation5 + $0x120] sm:$0x1] %vm6615_vm14, %v9733_v2 }
  0x76   :  { %6632 = vst.msk [vmem:[#allocation5 + $0x19] sm:$0x1] %vm6615_vm14, %v9733_v2  ;;  %6635 = vst.msk [vmem:[#allocation5 + $0x49] sm:$0x1] %vm6615_vm14, %v9733_v2 }
  0x77   :  { %6636 = vst.msk [vmem:[#allocation5 + $0x59] sm:$0x1] %vm6615_vm14, %v9733_v2  ;;  %6637 = vst.msk [vmem:[#allocation5 + $0x69] sm:$0x1] %vm6615_vm14, %v9733_v2 }
  0x78   :  { %1739 = vrot.lane.b32.xlu1 %v1604_v59, %s9737_s25  ;;  %1737 = vrot.lane.b32.xlu0 %v1603_v60, %s9737_s25  ;;  %6638 = vst.msk [vmem:[#allocation5 + $0x79] sm:$0x1] %vm6615_vm14, %v9733_v2  ;;  %6639 = vst.msk [vmem:[#allocation5 + $0x89] sm:$0x1] %vm6615_vm14, %v9733_v2 }
  0x79   :  { %6640 = vst.msk [vmem:[#allocation5 + $0xb9] sm:$0x1] %vm6615_vm14, %v9733_v2  ;;  %6641 = vst.msk [vmem:[#allocation5 + $0xc9] sm:$0x1] %vm6615_vm14, %v9733_v2 }
  0x7a   :  { %6642 = vst.msk [vmem:[#allocation5 + $0xd9] sm:$0x1] %vm6615_vm14, %v9733_v2  ;;  %6643 = vst.msk [vmem:[#allocation5 + $0xe9] sm:$0x1] %vm6615_vm14, %v9733_v2 }
  0x7b   :  { %v571_v7 = vpop.permute.xlu0 %570  ;;  %6644 = vst.msk [vmem:[#allocation5 + $0xf9] sm:$0x1] %vm6615_vm14, %v9733_v2  ;;  %6645 = vst.msk [vmem:[#allocation5 + $0x109] sm:$0x1] %vm6615_vm14, %v9733_v2 }
  0x7c   :  { %2120 = vrot.lane.b32.xlu1 %v3141_v53, %s9738_s30  ;;  %2118 = vrot.lane.b32.xlu0 %v3140_v54, %s9738_s30  ;;  %v575_v6 = vpop.permute.xlu1 %574  ;;  %763 = vst.msk [vmem:[#allocation3] sm:$0xff] %vm762_vm4, %v571_v7  ;;  %v10466_v53 = vld [vmem:[#allocation2 + $0x110] sm:$0xff] }
  0x7d   :  { %765 = vst.msk [vmem:[#allocation3 + $0x10] sm:$0xff] %vm762_vm4, %v575_v6  ;;  %v10478_v54 = vld [vmem:[#allocation2 + $0xb1] sm:$0xff] }
  0x7e   :  { %401 = vst.msk [vmem:[#allocation3 + $0xb8] sm:$0xff] %vm40_vm0, %v10466_v53 }
  0x7f   :  { %6646 = vst.msk [vmem:[#allocation5 + $0x119] sm:$0x1] %vm6615_vm14, %v9733_v2  ;;  %6647 = vst.msk [vmem:[#allocation5 + $0x129] sm:$0x1] %vm6615_vm14, %v9733_v2  ;;  %vm6786_vm14 = vcmask 1044484  }
  0x80   :  { %2124 = vrot.lane.b32.xlu1 %v1989_v61, %s9738_s30  ;;  %2122 = vrot.lane.b32.xlu0 %v1988_v62, %s9738_s30  ;;  %v577_v8 = vpop.permute.xlu1 %576  ;;  %v573_v9 = vpop.permute.xlu0 %572  ;;  %7040 = vst.msk [vmem:[#allocation6 + $0x8] sm:$0xff] %vm7039_vm15, %v9733_v2  ;;  %7041 = vst.msk [vmem:[#allocation6 + $0x18] sm:$0xff] %vm7039_vm15, %v9733_v2 }
  0x81   :  { %766 = vst.msk [vmem:[#allocation3 + $0x18] sm:$0xff] %vm762_vm4, %v577_v8  ;;  %764 = vst.msk [vmem:[#allocation3 + $0x8] sm:$0xff] %vm762_vm4, %v573_v9  ;;  %v3149_v9 = vld [vmem:[#allocation2 + $0xb2] sm:$0xff] }
  0x82   :  { %7042 = vst.msk [vmem:[#allocation6 + $0x28] sm:$0xff] %vm7039_vm15, %v9733_v2  ;;  %7043 = vst.msk [vmem:[#allocation6 + $0x38] sm:$0xff] %vm7039_vm15, %v9733_v2 }
  0x83   :  { %7044 = vst.msk [vmem:[#allocation6 + $0x48] sm:$0xff] %vm7039_vm15, %v9733_v2  ;;  %7045 = vst.msk [vmem:[#allocation6 + $0x58] sm:$0xff] %vm7039_vm15, %v9733_v2 }
  0x84   :  { %2506 = vrot.lane.b32.xlu1 %v10165_v23, %s9739_s22  ;;  %2504 = vrot.lane.b32.xlu0 %v10167_v24, %s9739_s22  ;;  %v958_v10 = vpop.permute.xlu1 %957  ;;  %v956_v11 = vpop.permute.xlu0 %955  ;;  %v140_v23 = vld [vmem:[%s13758_s0 + $0x98] sm:$0xff]  ;;  %7046 = vst.msk [vmem:[#allocation6 + $0x68] sm:$0xff] %vm7039_vm15, %v9733_v2  ;;  %7047 = vst.msk [vmem:[#allocation6 + $0x78] sm:$0xff] %vm7039_vm15, %v9733_v2 }
  0x85   :  { %1149 = vst.msk [vmem:[#allocation3 + $0x8] sm:$0xff] %vm13778_vm5, %v958_v10  ;;  %1148 = vst.msk [vmem:[#allocation3] sm:$0xff] %vm13778_vm5, %v956_v11  ;;  %v3148_v10 = vld [vmem:[#allocation2 + $0xaa] sm:$0xff] }
  0x86   :  { %204 = vst.msk [vmem:[#allocation2 + $0xf9] sm:$0xff] %vm40_vm0, %v140_v23 }
  0x87   :  { %7048 = vst.msk [vmem:[#allocation6 + $0x88] sm:$0xff] %vm7039_vm15, %v9733_v2  ;;  %7049 = vst.msk [vmem:[#allocation6 + $0x98] sm:$0xff] %vm7039_vm15, %v9733_v2 }
  0x88   :  { %2510 = vrot.lane.b32.xlu1 %v10175_v25, %s9739_s22  ;;  %2508 = vrot.lane.b32.xlu0 %v10177_v26, %s9739_s22  ;;  %v962_v14 = vpop.permute.xlu1 %961  ;;  %v960_v15 = vpop.permute.xlu0 %959  ;;  %7050 = vst.msk [vmem:[#allocation6 + $0xa8] sm:$0xff] %vm7039_vm15, %v9733_v2  ;;  %7051 = vst.msk [vmem:[#allocation6 + $0xb8] sm:$0xff] %vm7039_vm15, %v9733_v2 }
  0x89   :  { %1151 = vst.msk [vmem:[#allocation3 + $0x18] sm:$0xff] %vm13778_vm5, %v962_v14  ;;  %1150 = vst.msk [vmem:[#allocation3 + $0x10] sm:$0xff] %vm13778_vm5, %v960_v15 }
  0x8a   :  { %7052 = vst.msk [vmem:[#allocation6 + $0xc8] sm:$0xff] %vm7039_vm15, %v9733_v2  ;;  %7053 = vst.msk [vmem:[#allocation6 + $0xd8] sm:$0xff] %vm7039_vm15, %v9733_v2 }
  0x8b   :  { %7054 = vst.msk [vmem:[#allocation6 + $0xe8] sm:$0xff] %vm7039_vm15, %v9733_v2  ;;  %7055 = vst.msk [vmem:[#allocation6 + $0xf8] sm:$0xff] %vm7039_vm15, %v9733_v2  ;;  %vm6789_vm15 = vcmask 1045509  }
  0x8c   :  { %2891 = vrot.lane.b32.xlu1 %v1604_v59, %s9740_s29  ;;  %2889 = vrot.lane.b32.xlu0 %v1603_v60, %s9740_s29  ;;  %v1343_v16 = vpop.permute.xlu1 %1342  ;;  %v1341_v17 = vpop.permute.xlu0 %1340 }
  0x8d   :  { %1534 = vst.msk [vmem:[#allocation3 + $0x8] sm:$0xff] %vm13777_vm6, %v1343_v16  ;;  %1533 = vst.msk [vmem:[#allocation3] sm:$0xff] %vm13777_vm6, %v1341_v17  ;;  %v10400_v30 = vld [vmem:[#allocation2 + $0xf8] sm:$0xff] }
  0x8e   :  { %399 = vst.msk [vmem:[#allocation3 + $0xa8] sm:$0xff] %vm40_vm0, %v10400_v30 }
  0x90   :  { %2895 = vrot.lane.b32.xlu1 %v10340_v4, %s9740_s29  ;;  %2893 = vrot.lane.b32.xlu0 %v10342_v5, %s9740_s29 }
  0x94   :  { %3276 = vrot.lane.b32.xlu1 %v1989_v61, %s9741_s16  ;;  %3274 = vrot.lane.b32.xlu0 %v1988_v62, %s9741_s16 }
  0x98   :  { %588 = vrot.lane.b32.xlu1 %v1604_v59, %s9734_s18  ;;  %586 = vrot.lane.b32.xlu0 %v1603_v60, %s9734_s18 }
  0x9c   :  { %3280 = vrot.lane.b32.xlu1 %v10358_v12, %s9741_s16  ;;  %3278 = vrot.lane.b32.xlu0 %v10360_v13, %s9741_s16 }
  0xa0   :  { %592 = vrot.lane.b32.xlu1 %v10340_v4, %s9734_s18  ;;  %590 = vrot.lane.b32.xlu0 %v10342_v5, %s9734_s18 }
  0xa2   :  { %v1347_v18 = vpop.permute.xlu1 %1346  ;;  %v1345_v19 = vpop.permute.xlu0 %1344 }
  0xa3   :  { %1536 = vst.msk [vmem:[#allocation3 + $0x18] sm:$0xff] %vm13777_vm6, %v1347_v18  ;;  %1535 = vst.msk [vmem:[#allocation3 + $0x10] sm:$0xff] %vm13777_vm6, %v1345_v19  ;;  %v143_v19 = vld [vmem:[%s13758_s0 + $0xb0] sm:$0xff] }
  0xa4   :  { %973 = vrot.lane.b32.xlu1 %v1989_v61, %s9735_s19  ;;  %971 = vrot.lane.b32.xlu0 %v1988_v62, %s9735_s19  ;;  %207 = vst.msk [vmem:[#allocation2 + $0x121] sm:$0xff] %vm40_vm0, %v143_v19  ;;  %v10682_v19 = vld [vmem:[#allocation2 + $0xf1] sm:$0xff] }
  0xa6   :  { %v1728_v20 = vpop.permute.xlu1 %1727  ;;  %v1726_v21 = vpop.permute.xlu0 %1725 }
  0xa7   :  { %1919 = vst.msk [vmem:[#allocation3 + $0x8] sm:$0xff] %vm13775_vm7, %v1728_v20  ;;  %1918 = vst.msk [vmem:[#allocation3] sm:$0xff] %vm13775_vm7, %v1726_v21  ;;  %v144_v20 = vld [vmem:[%s13758_s0 + $0xb8] sm:$0xff] }
  0xa8   :  { %977 = vrot.lane.b32.xlu1 %v10358_v12, %s9735_s19  ;;  %975 = vrot.lane.b32.xlu0 %v10360_v13, %s9735_s19  ;;  %208 = vst.msk [vmem:[#allocation2 + $0x129] sm:$0xff] %vm40_vm0, %v144_v20 }
  0xaa   :  { %v1732_v24 = vpop.permute.xlu1 %1731  ;;  %v1730_v27 = vpop.permute.xlu0 %1729 }
  0xab   :  { %1921 = vst.msk [vmem:[#allocation3 + $0x18] sm:$0xff] %vm13775_vm7, %v1732_v24  ;;  %1920 = vst.msk [vmem:[#allocation3 + $0x10] sm:$0xff] %vm13775_vm7, %v1730_v27 }
  0xac   :  { %1358 = vrot.lane.b32.xlu1 %v10175_v25, %s9736_s24  ;;  %1356 = vrot.lane.b32.xlu0 %v10177_v26, %s9736_s24 }
  0xae   :  { %v2113_v28 = vpop.permute.xlu1 %2112  ;;  %v2111_v29 = vpop.permute.xlu0 %2110 }
  0xaf   :  { %2304 = vst.msk [vmem:[#allocation3 + $0x8] sm:$0xff] %vm13776_vm8, %v2113_v28  ;;  %2303 = vst.msk [vmem:[#allocation3] sm:$0xff] %vm13776_vm8, %v2111_v29 }
  0xb0   :  { %1362 = vrot.lane.b32.xlu1 %v10197_v33, %s9736_s24  ;;  %1360 = vrot.lane.b32.xlu0 %v10199_v34, %s9736_s24 }
  0xb2   :  { %v2117_v25 = vpop.permute.xlu1 %2116  ;;  %v2115_v26 = vpop.permute.xlu0 %2114 }
  0xb3   :  { %2306 = vst.msk [vmem:[#allocation3 + $0x18] sm:$0xff] %vm13776_vm8, %v2117_v25  ;;  %2305 = vst.msk [vmem:[#allocation3 + $0x10] sm:$0xff] %vm13776_vm8, %v2115_v26 }
  0xb4   :  { %1743 = vrot.lane.b32.xlu1 %v10340_v4, %s9737_s25  ;;  %1741 = vrot.lane.b32.xlu0 %v10342_v5, %s9737_s25 }
  0xb6   :  { %v2499_v36 = vpop.permute.xlu1 %2498  ;;  %v2497_v37 = vpop.permute.xlu0 %2496 }
  0xb7   :  { %2690 = vst.msk [vmem:[#allocation3 + $0x8] sm:$0xff] %vm13772_vm9, %v2499_v36  ;;  %2689 = vst.msk [vmem:[#allocation3] sm:$0xff] %vm13772_vm9, %v2497_v37  ;;  %v10562_v36 = vld [vmem:[#allocation2 + $0xc2] sm:$0xff] }
  0xb8   :  { %1747 = vrot.lane.b32.xlu1 %v10418_v32, %s9737_s25  ;;  %1745 = vrot.lane.b32.xlu0 %v10420_v35, %s9737_s25 }
  0xba   :  { %v2503_v38 = vpop.permute.xlu1 %2502  ;;  %v2501_v39 = vpop.permute.xlu0 %2500 }
  0xbb   :  { %2692 = vst.msk [vmem:[#allocation3 + $0x18] sm:$0xff] %vm13772_vm9, %v2503_v38  ;;  %2691 = vst.msk [vmem:[#allocation3 + $0x10] sm:$0xff] %vm13772_vm9, %v2501_v39  ;;  %v145_v39 = vld [vmem:[%s13758_s0 + $0xc0] sm:$0xff] }
  0xbc   :  { %2128 = vrot.lane.b32.xlu1 %v10358_v12, %s9738_s30  ;;  %2126 = vrot.lane.b32.xlu0 %v10360_v13, %s9738_s30  ;;  %209 = vst.msk [vmem:[#allocation2 + $0x139] sm:$0xff] %vm40_vm0, %v145_v39 }
  0xbe   :  { %v2884_v42 = vpop.permute.xlu1 %2883  ;;  %v2882_v43 = vpop.permute.xlu0 %2881 }
  0xbf   :  { %3075 = vst.msk [vmem:[#allocation3 + $0x8] sm:$0xff] %vm13773_vm10, %v2884_v42  ;;  %3074 = vst.msk [vmem:[#allocation3] sm:$0xff] %vm13773_vm10, %v2882_v43 }
  0xc0   :  { %2132 = vrot.lane.b32.xlu1 %v10434_v40, %s9738_s30  ;;  %2130 = vrot.lane.b32.xlu0 %v10436_v41, %s9738_s30 }
  0xc2   :  { %v2888_v48 = vpop.permute.xlu1 %2887  ;;  %v2886_v49 = vpop.permute.xlu0 %2885 }
  0xc3   :  { %3077 = vst.msk [vmem:[#allocation3 + $0x18] sm:$0xff] %vm13773_vm10, %v2888_v48  ;;  %3076 = vst.msk [vmem:[#allocation3 + $0x10] sm:$0xff] %vm13773_vm10, %v2886_v49 }
  0xc4   :  { %2514 = vrot.lane.b32.xlu1 %v10197_v33, %s9739_s22  ;;  %2512 = vrot.lane.b32.xlu0 %v10199_v34, %s9739_s22 }
  0xc6   :  { %v3269_v50 = vpop.permute.xlu1 %3268  ;;  %v3267_v51 = vpop.permute.xlu0 %3266 }
  0xc7   :  { %3460 = vst.msk [vmem:[#allocation3 + $0x8] sm:$0xff] %vm3458_vm11, %v3269_v50  ;;  %3459 = vst.msk [vmem:[#allocation3] sm:$0xff] %vm3458_vm11, %v3267_v51 }
  0xc8   :  { %2518 = vrot.lane.b32.xlu1 %v10248_v46, %s9739_s22  ;;  %2516 = vrot.lane.b32.xlu0 %v10250_v47, %s9739_s22 }
  0xca   :  { %v581_v33 = vpop.permute.xlu1 %580  ;;  %v579_v34 = vpop.permute.xlu0 %578 }
  0xcb   :  { %768 = vst.msk [vmem:[#allocation3 + $0x28] sm:$0xff] %vm762_vm4, %v581_v33  ;;  %767 = vst.msk [vmem:[#allocation3 + $0x20] sm:$0xff] %vm762_vm4, %v579_v34 }
  0xcc   :  { %2899 = vrot.lane.b32.xlu1 %v10418_v32, %s9740_s29  ;;  %2897 = vrot.lane.b32.xlu0 %v10420_v35, %s9740_s29 }
  0xce   :  { %v3273_v56 = vpop.permute.xlu1 %3272  ;;  %v3271_v59 = vpop.permute.xlu0 %3270  ;;  %v3523_v60 = vld [vmem:[#allocation3] sm:$0xff]  ;;  %v3524_v61 = vld [vmem:[#allocation3 + $0x8] sm:$0xff] }
  0xcf   :  { %3462 = vst.msk [vmem:[#allocation3 + $0x18] sm:$0xff] %vm3458_vm11, %v3273_v56  ;;  %3461 = vst.msk [vmem:[#allocation3 + $0x10] sm:$0xff] %vm3458_vm11, %v3271_v59  ;;  %v3587_v62 = vpack.c.bf16 %v3524_v61, %v3523_v60 }
  0xd0   :  { %2903 = vrot.lane.b32.xlu1 %v10478_v54, %s9740_s29  ;;  %2901 = vrot.lane.b32.xlu0 %v10480_v55, %s9740_s29 }
  0xd1   :  { %9506 = vmatprep.mubr.bf16.mxu0 %v3587_v62 }
  0xd2   :  { %v585_v63 = vpop.permute.xlu1 %584  ;;  %v583_v0 = vpop.permute.xlu0 %582 }
  0xd3   :  { %770 = vst.msk [vmem:[#allocation3 + $0x38] sm:$0xff] %vm762_vm4, %v585_v63  ;;  %769 = vst.msk [vmem:[#allocation3 + $0x30] sm:$0xff] %vm762_vm4, %v583_v0  ;;  %v10618_v63 = vld [vmem:[#allocation2 + $0xe2] sm:$0xff]  ;;  %v10620_v0 = vld [vmem:[#allocation2 + $0xda] sm:$0xff] }
  0xd4   :  { %3284 = vrot.lane.b32.xlu1 %v10434_v40, %s9741_s16  ;;  %3282 = vrot.lane.b32.xlu0 %v10436_v41, %s9741_s16 }
  0xd6   :  { %v966_v4 = vpop.permute.xlu1 %965  ;;  %v964_v5 = vpop.permute.xlu0 %963  ;;  %v3525_v6 = vld [vmem:[#allocation3 + $0x10] sm:$0xff]  ;;  %v3526_v7 = vld [vmem:[#allocation3 + $0x18] sm:$0xff] }
  0xd7   :  { %1153 = vst.msk [vmem:[#allocation3 + $0x28] sm:$0xff] %vm13778_vm5, %v966_v4  ;;  %1152 = vst.msk [vmem:[#allocation3 + $0x20] sm:$0xff] %vm13778_vm5, %v964_v5  ;;  %v3588_v8 = vpack.c.bf16 %v3526_v7, %v3525_v6 }
  0xd8   :  { %596 = vrot.lane.b32.xlu1 %v10418_v32, %s9734_s18  ;;  %594 = vrot.lane.b32.xlu0 %v10420_v35, %s9734_s18  ;;  %v10560_v35 = vld [vmem:[#allocation2 + $0xca] sm:$0xff] }
  0xd9   :  { %9507 = vmatmul.mubr.bf16.vlgmr.msra.gmra.mrb[0].mxu0 %v3588_v8 }
  0xda   :  { %v970_v11 = vpop.permute.xlu1 %969  ;;  %v968_v12 = vpop.permute.xlu0 %967 }
  0xdb   :  { %1155 = vst.msk [vmem:[#allocation3 + $0x38] sm:$0xff] %vm13778_vm5, %v970_v11  ;;  %1154 = vst.msk [vmem:[#allocation3 + $0x30] sm:$0xff] %vm13778_vm5, %v968_v12 }
  0xdc   :  { %3288 = vrot.lane.b32.xlu1 %v3149_v9, %s9741_s16  ;;  %3286 = vrot.lane.b32.xlu0 %v3148_v10, %s9741_s16 }
  0xde   :  { %v1351_v13 = vpop.permute.xlu1 %1350  ;;  %v1349_v14 = vpop.permute.xlu0 %1348 }
  0xdf   :  { %1538 = vst.msk [vmem:[#allocation3 + $0x28] sm:$0xff] %vm13777_vm6, %v1351_v13  ;;  %1537 = vst.msk [vmem:[#allocation3 + $0x20] sm:$0xff] %vm13777_vm6, %v1349_v14 }
  0xe0   :  { %600 = vrot.lane.b32.xlu1 %v10478_v54, %s9734_s18  ;;  %598 = vrot.lane.b32.xlu0 %v10480_v55, %s9734_s18 }
  0xe2   :  { %v1355_v15 = vpop.permute.xlu1 %1354  ;;  %v1353_v16 = vpop.permute.xlu0 %1352 }
  0xe3   :  { %1540 = vst.msk [vmem:[#allocation3 + $0x38] sm:$0xff] %vm13777_vm6, %v1355_v15  ;;  %1539 = vst.msk [vmem:[#allocation3 + $0x30] sm:$0xff] %vm13777_vm6, %v1353_v16  ;;  %v147_v16 = vld [vmem:[%s13758_s0 + $0xd0] sm:$0xff] }
  0xe4   :  { %981 = vrot.lane.b32.xlu1 %v10434_v40, %s9735_s19  ;;  %979 = vrot.lane.b32.xlu0 %v10436_v41, %s9735_s19  ;;  %v146_v40 = vld [vmem:[%s13758_s0 + $0xc8] sm:$0xff]  ;;  %211 = vst.msk [vmem:[#allocation2 + $0x151] sm:$0xff] %vm40_vm0, %v147_v16 }
  0xe5   :  { %210 = vst.msk [vmem:[#allocation2 + $0x141] sm:$0xff] %vm40_vm0, %v146_v40  ;;  %v10886_v16 = vld [vmem:[#allocation2 + $0x122] sm:$0xff] }
  0xe6   :  { %v1736_v17 = vpop.permute.xlu1 %1735  ;;  %v1734_v18 = vpop.permute.xlu0 %1733 }
  0xe7   :  { %1923 = vst.msk [vmem:[#allocation3 + $0x28] sm:$0xff] %vm13775_vm7, %v1736_v17  ;;  %1922 = vst.msk [vmem:[#allocation3 + $0x20] sm:$0xff] %vm13775_vm7, %v1734_v18  ;;  %v148_v17 = vld [vmem:[%s13758_s0 + $0xd8] sm:$0xff] }
  0xe8   :  { %985 = vrot.lane.b32.xlu1 %v3149_v9, %s9735_s19  ;;  %983 = vrot.lane.b32.xlu0 %v3148_v10, %s9735_s19  ;;  %212 = vst.msk [vmem:[#allocation2 + $0x159] sm:$0xff] %vm40_vm0, %v148_v17  ;;  %v10680_v18 = vld [vmem:[#allocation2 + $0xf9] sm:$0xff] }
  0xea   :  { %v1740_v21 = vpop.permute.xlu1 %1739  ;;  %v1738_v22 = vpop.permute.xlu0 %1737 }
  0xeb   :  { %1925 = vst.msk [vmem:[#allocation3 + $0x38] sm:$0xff] %vm13775_vm7, %v1740_v21  ;;  %1924 = vst.msk [vmem:[#allocation3 + $0x30] sm:$0xff] %vm13775_vm7, %v1738_v22 }
  0xec   :  { %1366 = vrot.lane.b32.xlu1 %v10248_v46, %s9736_s24  ;;  %1364 = vrot.lane.b32.xlu0 %v10250_v47, %s9736_s24  ;;  %v10546_v46 = vld [vmem:[#allocation2 + $0xc9] sm:$0xff]  ;;  %v10548_v47 = vld [vmem:[#allocation2 + $0xc1] sm:$0xff] }
  0xee   :  { %v2121_v23 = vpop.permute.xlu1 %2120  ;;  %v2119_v24 = vpop.permute.xlu0 %2118 }
  0xef   :  { %2308 = vst.msk [vmem:[#allocation3 + $0x28] sm:$0xff] %vm13776_vm8, %v2121_v23  ;;  %2307 = vst.msk [vmem:[#allocation3 + $0x20] sm:$0xff] %vm13776_vm8, %v2119_v24  ;;  %v10696_v24 = vld [vmem:[#allocation2 + $0xfa] sm:$0xff] }
  0xf0   :  { %1370 = vrot.lane.b32.xlu1 %v10294_v57, %s9736_s24  ;;  %1368 = vrot.lane.b32.xlu0 %v10296_v58, %s9736_s24 }
  0xf2   :  { %v2125_v27 = vpop.permute.xlu1 %2124  ;;  %v2123_v28 = vpop.permute.xlu0 %2122 }
  0xf3   :  { %2310 = vst.msk [vmem:[#allocation3 + $0x38] sm:$0xff] %vm13776_vm8, %v2125_v27  ;;  %2309 = vst.msk [vmem:[#allocation3 + $0x30] sm:$0xff] %vm13776_vm8, %v2123_v28  ;;  %v10698_v27 = vld [vmem:[#allocation2 + $0xf2] sm:$0xff] }
  0xf4   :  { %1751 = vrot.lane.b32.xlu1 %v10478_v54, %s9737_s25  ;;  %1749 = vrot.lane.b32.xlu0 %v10480_v55, %s9737_s25 }
  0xf6   :  { %v2507_v29 = vpop.permute.xlu1 %2506  ;;  %v2505_v25 = vpop.permute.xlu0 %2504 }
  0xf7   :  { %2694 = vst.msk [vmem:[#allocation3 + $0x28] sm:$0xff] %vm13772_vm9, %v2507_v29  ;;  %2693 = vst.msk [vmem:[#allocation3 + $0x20] sm:$0xff] %vm13772_vm9, %v2505_v25 }
  0xf8   :  { %1755 = vrot.lane.b32.xlu1 %v10546_v46, %s9737_s25  ;;  %1753 = vrot.lane.b32.xlu0 %v10548_v47, %s9737_s25 }
  0xfa   :  { %v2511_v26 = vpop.permute.xlu1 %2510  ;;  %v2509_v32 = vpop.permute.xlu0 %2508 }
  0xfb   :  { %2696 = vst.msk [vmem:[#allocation3 + $0x38] sm:$0xff] %vm13772_vm9, %v2511_v26  ;;  %2695 = vst.msk [vmem:[#allocation3 + $0x30] sm:$0xff] %vm13772_vm9, %v2509_v32  ;;  %v149_v32 = vld [vmem:[%s13758_s0 + $0xe0] sm:$0xff] }
  0xfc   :  { %2136 = vrot.lane.b32.xlu1 %v3149_v9, %s9738_s30  ;;  %2134 = vrot.lane.b32.xlu0 %v3148_v10, %s9738_s30  ;;  %213 = vst.msk [vmem:[#allocation2 + $0x169] sm:$0xff] %vm40_vm0, %v149_v32  ;;  %v339_v32 = vld [vmem:[#allocation2 + $0x128] sm:$0xff] }
  0xfd   :  { %403 = vst.msk [vmem:[#allocation3 + $0xc8] sm:$0xff] %vm40_vm0, %v339_v32 }
  0xfe   :  { %v2892_v37 = vpop.permute.xlu1 %2891  ;;  %v2890_v38 = vpop.permute.xlu0 %2889 }
  0xff   :  { %3079 = vst.msk [vmem:[#allocation3 + $0x28] sm:$0xff] %vm13773_vm10, %v2892_v37  ;;  %3078 = vst.msk [vmem:[#allocation3 + $0x20] sm:$0xff] %vm13773_vm10, %v2890_v38  ;;  %v10734_v37 = vld [vmem:[#allocation2 + $0x109] sm:$0xff] }
 0x100   :  { %2140 = vrot.lane.b32.xlu1 %v10560_v35, %s9738_s30  ;;  %2138 = vrot.lane.b32.xlu0 %v10562_v36, %s9738_s30 }
 0x102   :  { %v2896_v41 = vpop.permute.xlu1 %2895  ;;  %v2894_v42 = vpop.permute.xlu0 %2893 }
 0x103   :  { %3081 = vst.msk [vmem:[#allocation3 + $0x38] sm:$0xff] %vm13773_vm10, %v2896_v41  ;;  %3080 = vst.msk [vmem:[#allocation3 + $0x30] sm:$0xff] %vm13773_vm10, %v2894_v42 }
 0x104   :  { %2522 = vrot.lane.b32.xlu1 %v10294_v57, %s9739_s22  ;;  %2520 = vrot.lane.b32.xlu0 %v10296_v58, %s9739_s22  ;;  %v10596_v57 = vld [vmem:[#allocation2 + $0xe1] sm:$0xff]  ;;  %v10598_v58 = vld [vmem:[#allocation2 + $0xd9] sm:$0xff] }
 0x106   :  { %v3277_v43 = vpop.permute.xlu1 %3276  ;;  %v3275_v44 = vpop.permute.xlu0 %3274 }
 0x107   :  { %3464 = vst.msk [vmem:[#allocation3 + $0x28] sm:$0xff] %vm3458_vm11, %v3277_v43  ;;  %3463 = vst.msk [vmem:[#allocation3 + $0x20] sm:$0xff] %vm3458_vm11, %v3275_v44 }
 0x108   :  { %2526 = vrot.lane.b32.xlu1 %v10332_v3, %s9739_s22  ;;  %2524 = vrot.lane.b32.xlu0 %v10326_v1, %s9739_s22 }
 0x10a   :  { %v589_v45 = vpop.permute.xlu1 %588  ;;  %v587_v48 = vpop.permute.xlu0 %586 }
 0x10b   :  { %772 = vst.msk [vmem:[#allocation3 + $0x48] sm:$0xff] %vm762_vm4, %v589_v45  ;;  %771 = vst.msk [vmem:[#allocation3 + $0x40] sm:$0xff] %vm762_vm4, %v587_v48 }
 0x10c   :  { %2907 = vrot.lane.b32.xlu1 %v10546_v46, %s9740_s29  ;;  %2905 = vrot.lane.b32.xlu0 %v10548_v47, %s9740_s29 }
 0x10e   :  { %v3281_v49 = vpop.permute.xlu1 %3280  ;;  %v3279_v50 = vpop.permute.xlu0 %3278  ;;  %v3527_v51 = vld [vmem:[#allocation3 + $0x20] sm:$0xff]  ;;  %v3528_v33 = vld [vmem:[#allocation3 + $0x28] sm:$0xff] }
 0x10f   :  { %3466 = vst.msk [vmem:[#allocation3 + $0x38] sm:$0xff] %vm3458_vm11, %v3281_v49  ;;  %3465 = vst.msk [vmem:[#allocation3 + $0x30] sm:$0xff] %vm3458_vm11, %v3279_v50  ;;  %v3589_v34 = vpack.c.bf16 %v3528_v33, %v3527_v51  ;;  %v3157_v50 = vld [vmem:[#allocation2 + $0x112] sm:$0xff]  ;;  %v3156_v51 = vld [vmem:[#allocation2 + $0x10a] sm:$0xff] }
 0x110   :  { %2911 = vrot.lane.b32.xlu1 %v10596_v57, %s9740_s29  ;;  %2909 = vrot.lane.b32.xlu0 %v10598_v58, %s9740_s29 }
 0x111   :  { %9510 = vmatprep.mubr.bf16.mxu0 %v3589_v34 }
 0x112   :  { %v593_v54 = vpop.permute.xlu1 %592  ;;  %v591_v55 = vpop.permute.xlu0 %590 }
 0x113   :  { %774 = vst.msk [vmem:[#allocation3 + $0x58] sm:$0xff] %vm762_vm4, %v593_v54  ;;  %773 = vst.msk [vmem:[#allocation3 + $0x50] sm:$0xff] %vm762_vm4, %v591_v55 }
 0x114   :  { %3292 = vrot.lane.b32.xlu1 %v10560_v35, %s9741_s16  ;;  %3290 = vrot.lane.b32.xlu0 %v10562_v36, %s9741_s16 }
 0x116   :  { %v974_v56 = vpop.permute.xlu1 %973  ;;  %v972_v59 = vpop.permute.xlu0 %971  ;;  %v3529_v60 = vld [vmem:[#allocation3 + $0x30] sm:$0xff]  ;;  %v3530_v61 = vld [vmem:[#allocation3 + $0x38] sm:$0xff] }
 0x117   :  { %1157 = vst.msk [vmem:[#allocation3 + $0x48] sm:$0xff] %vm13778_vm5, %v974_v56  ;;  %1156 = vst.msk [vmem:[#allocation3 + $0x40] sm:$0xff] %vm13778_vm5, %v972_v59  ;;  %v3590_v62 = vpack.c.bf16 %v3530_v61, %v3529_v60 }
 0x118   :  { %604 = vrot.lane.b32.xlu1 %v10546_v46, %s9734_s18  ;;  %602 = vrot.lane.b32.xlu0 %v10548_v47, %s9734_s18 }
 0x119   :  { %9511 = vmatmul.mubr.bf16.gmra.mrb[4].mxu0 %v3590_v62 }
 0x11a   :  { %v978_v4 = vpop.permute.xlu1 %977  ;;  %v976_v5 = vpop.permute.xlu0 %975 }
 0x11b   :  { %1159 = vst.msk [vmem:[#allocation3 + $0x58] sm:$0xff] %vm13778_vm5, %v978_v4  ;;  %1158 = vst.msk [vmem:[#allocation3 + $0x50] sm:$0xff] %vm13778_vm5, %v976_v5  ;;  %v1234_v4 = vld [vmem:[#allocation2 + $0x120] sm:$0xff] }
 0x11c   :  { %3296 = vrot.lane.b32.xlu1 %v10618_v63, %s9741_s16  ;;  %3294 = vrot.lane.b32.xlu0 %v10620_v0, %s9741_s16 }
 0x11e   :  { %v1359_v6 = vpop.permute.xlu1 %1358  ;;  %v1357_v7 = vpop.permute.xlu0 %1356 }
 0x11f   :  { %1542 = vst.msk [vmem:[#allocation3 + $0x48] sm:$0xff] %vm13777_vm6, %v1359_v6  ;;  %1541 = vst.msk [vmem:[#allocation3 + $0x40] sm:$0xff] %vm13777_vm6, %v1357_v7  ;;  %v151_v7 = vld [vmem:[%s13758_s0 + $0xf0] sm:$0xff] }
 0x120   :  { %608 = vrot.lane.b32.xlu1 %v10596_v57, %s9734_s18  ;;  %606 = vrot.lane.b32.xlu0 %v10598_v58, %s9734_s18  ;;  %215 = vst.msk [vmem:[#allocation2 + $0x181] sm:$0xff] %vm40_vm0, %v151_v7 }
 0x122   :  { %v1363_v8 = vpop.permute.xlu1 %1362  ;;  %v1361_v9 = vpop.permute.xlu0 %1360 }
 0x123   :  { %1544 = vst.msk [vmem:[#allocation3 + $0x58] sm:$0xff] %vm13777_vm6, %v1363_v8  ;;  %1543 = vst.msk [vmem:[#allocation3 + $0x50] sm:$0xff] %vm13777_vm6, %v1361_v9  ;;  %v152_v8 = vld [vmem:[%s13758_s0 + $0xf8] sm:$0xff]  ;;  %v10870_v9 = vld [vmem:[#allocation2 + $0x129] sm:$0xff] }
 0x124   :  { %989 = vrot.lane.b32.xlu1 %v10560_v35, %s9735_s19  ;;  %987 = vrot.lane.b32.xlu0 %v10562_v36, %s9735_s19  ;;  %v150_v35 = vld [vmem:[%s13758_s0 + $0xe8] sm:$0xff]  ;;  %v10732_v36 = vld [vmem:[#allocation2 + $0x111] sm:$0xff]  ;;  %216 = vst.msk [vmem:[#allocation2 + $0x189] sm:$0xff] %vm40_vm0, %v152_v8 }
 0x125   :  { %214 = vst.msk [vmem:[#allocation2 + $0x171] sm:$0xff] %vm40_vm0, %v150_v35  ;;  %v338_v35 = vld [vmem:[#allocation2 + $0x120] sm:$0xff]  ;;  %v11022_v8 = vld [vmem:[#allocation2 + $0x158] sm:$0xff] }
 0x126   :  { %v1744_v10 = vpop.permute.xlu1 %1743  ;;  %v1742_v11 = vpop.permute.xlu0 %1741  ;;  %402 = vst.msk [vmem:[#allocation3 + $0xc0] sm:$0xff] %vm40_vm0, %v338_v35 }
 0x127   :  { %1927 = vst.msk [vmem:[#allocation3 + $0x48] sm:$0xff] %vm13775_vm7, %v1744_v10  ;;  %1926 = vst.msk [vmem:[#allocation3 + $0x40] sm:$0xff] %vm13775_vm7, %v1742_v11  ;;  %v10872_v10 = vld [vmem:[#allocation2 + $0x121] sm:$0xff] }
 0x128   :  { %993 = vrot.lane.b32.xlu1 %v10618_v63, %s9735_s19  ;;  %991 = vrot.lane.b32.xlu0 %v10620_v0, %s9735_s19 }
 0x12a   :  { %v1748_v12 = vpop.permute.xlu1 %1747  ;;  %v1746_v13 = vpop.permute.xlu0 %1745 }
 0x12b   :  { %1929 = vst.msk [vmem:[#allocation3 + $0x58] sm:$0xff] %vm13775_vm7, %v1748_v12  ;;  %1928 = vst.msk [vmem:[#allocation3 + $0x50] sm:$0xff] %vm13775_vm7, %v1746_v13 }
 0x12c   :  { %1374 = vrot.lane.b32.xlu1 %v10332_v3, %s9736_s24  ;;  %1372 = vrot.lane.b32.xlu0 %v10326_v1, %s9736_s24 }
 0x12e   :  { %v2129_v14 = vpop.permute.xlu1 %2128  ;;  %v2127_v15 = vpop.permute.xlu0 %2126 }
 0x12f   :  { %2312 = vst.msk [vmem:[#allocation3 + $0x48] sm:$0xff] %vm13776_vm8, %v2129_v14  ;;  %2311 = vst.msk [vmem:[#allocation3 + $0x40] sm:$0xff] %vm13776_vm8, %v2127_v15  ;;  %v10884_v15 = vld [vmem:[#allocation2 + $0x12a] sm:$0xff] }
 0x130   :  { %1378 = vrot.lane.b32.xlu1 %v10400_v30, %s9736_s24  ;;  %1376 = vrot.lane.b32.xlu0 %v10402_v31, %s9736_s24 }
 0x132   :  { %v2133_v1 = vpop.permute.xlu1 %2132  ;;  %v2131_v3 = vpop.permute.xlu0 %2130 }
 0x133   :  { %2314 = vst.msk [vmem:[#allocation3 + $0x58] sm:$0xff] %vm13776_vm8, %v2133_v1  ;;  %2313 = vst.msk [vmem:[#allocation3 + $0x50] sm:$0xff] %vm13776_vm8, %v2131_v3 }
 0x134   :  { %1759 = vrot.lane.b32.xlu1 %v10596_v57, %s9737_s25  ;;  %1757 = vrot.lane.b32.xlu0 %v10598_v58, %s9737_s25 }
 0x136   :  { %v2515_v20 = vpop.permute.xlu1 %2514  ;;  %v2513_v21 = vpop.permute.xlu0 %2512 }
 0x137   :  { %2698 = vst.msk [vmem:[#allocation3 + $0x48] sm:$0xff] %vm13772_vm9, %v2515_v20  ;;  %2697 = vst.msk [vmem:[#allocation3 + $0x40] sm:$0xff] %vm13772_vm9, %v2513_v21  ;;  %v10900_v20 = vld [vmem:[#allocation2 + $0x138] sm:$0xff] }
 0x138   :  { %1763 = vrot.lane.b32.xlu1 %v10680_v18, %s9737_s25  ;;  %1761 = vrot.lane.b32.xlu0 %v10682_v19, %s9737_s25 }
 0x13a   :  { %v2519_v22 = vpop.permute.xlu1 %2518  ;;  %v2517_v23 = vpop.permute.xlu0 %2516 }
 0x13b   :  { %2700 = vst.msk [vmem:[#allocation3 + $0x58] sm:$0xff] %vm13772_vm9, %v2519_v22  ;;  %2699 = vst.msk [vmem:[#allocation3 + $0x50] sm:$0xff] %vm13772_vm9, %v2517_v23 }
 0x13c   :  { %2144 = vrot.lane.b32.xlu1 %v10618_v63, %s9738_s30  ;;  %2142 = vrot.lane.b32.xlu0 %v10620_v0, %s9738_s30  ;;  %v1235_v0 = vld [vmem:[#allocation2 + $0x128] sm:$0xff] }
 0x13e   :  { %v2900_v28 = vpop.permute.xlu1 %2899  ;;  %v2898_v46 = vpop.permute.xlu0 %2897 }
 0x13f   :  { %3083 = vst.msk [vmem:[#allocation3 + $0x48] sm:$0xff] %vm13773_vm10, %v2900_v28  ;;  %3082 = vst.msk [vmem:[#allocation3 + $0x40] sm:$0xff] %vm13773_vm10, %v2898_v46  ;;  %v10916_v28 = vld [vmem:[#allocation2 + $0x139] sm:$0xff] }
 0x140   :  { %2148 = vrot.lane.b32.xlu1 %v10696_v24, %s9738_s30  ;;  %2146 = vrot.lane.b32.xlu0 %v10698_v27, %s9738_s30 }
 0x142   :  { %v2904_v47 = vpop.permute.xlu1 %2903  ;;  %v2902_v29 = vpop.permute.xlu0 %2901 }
 0x143   :  { %3085 = vst.msk [vmem:[#allocation3 + $0x58] sm:$0xff] %vm13773_vm10, %v2904_v47  ;;  %3084 = vst.msk [vmem:[#allocation3 + $0x50] sm:$0xff] %vm13773_vm10, %v2902_v29 }
 0x144   :  { %2530 = vrot.lane.b32.xlu1 %v10400_v30, %s9739_s22  ;;  %2528 = vrot.lane.b32.xlu0 %v10402_v31, %s9739_s22 }
 0x146   :  { %v3285_v25 = vpop.permute.xlu1 %3284  ;;  %v3283_v26 = vpop.permute.xlu0 %3282 }
 0x147   :  { %3468 = vst.msk [vmem:[#allocation3 + $0x48] sm:$0xff] %vm3458_vm11, %v3285_v25  ;;  %3467 = vst.msk [vmem:[#allocation3 + $0x40] sm:$0xff] %vm3458_vm11, %v3283_v26 }
 0x148   :  { %2534 = vrot.lane.b32.xlu1 %v10466_v53, %s9739_s22  ;;  %2532 = vrot.lane.b32.xlu0 %v10460_v52, %s9739_s22 }
 0x14a   :  { %v597_v30 = vpop.permute.xlu1 %596  ;;  %v595_v31 = vpop.permute.xlu0 %594 }
 0x14b   :  { %776 = vst.msk [vmem:[#allocation3 + $0x68] sm:$0xff] %vm762_vm4, %v597_v30  ;;  %775 = vst.msk [vmem:[#allocation3 + $0x60] sm:$0xff] %vm762_vm4, %v595_v31  ;;  %v341_v30 = vld [vmem:[#allocation2 + $0x140] sm:$0xff] }
 0x14c   :  { %2915 = vrot.lane.b32.xlu1 %v10680_v18, %s9740_s29  ;;  %2913 = vrot.lane.b32.xlu0 %v10682_v19, %s9740_s29  ;;  %405 = vst.msk [vmem:[#allocation3 + $0xd8] sm:$0xff] %vm40_vm0, %v341_v30 }
 0x14e   :  { %v3289_v38 = vpop.permute.xlu1 %3288  ;;  %v3287_v39 = vpop.permute.xlu0 %3286  ;;  %v3531_v40 = vld [vmem:[#allocation3 + $0x40] sm:$0xff]  ;;  %v3532_v41 = vld [vmem:[#allocation3 + $0x48] sm:$0xff] }
 0x14f   :  { %3470 = vst.msk [vmem:[#allocation3 + $0x58] sm:$0xff] %vm3458_vm11, %v3289_v38  ;;  %3469 = vst.msk [vmem:[#allocation3 + $0x50] sm:$0xff] %vm3458_vm11, %v3287_v39  ;;  %v3591_v42 = vpack.c.bf16 %v3532_v41, %v3531_v40 }
 0x150   :  { %2919 = vrot.lane.b32.xlu1 %v10732_v36, %s9740_s29  ;;  %2917 = vrot.lane.b32.xlu0 %v10734_v37, %s9740_s29 }
 0x151   :  { %9514 = vmatprep.mubr.bf16.mxu0 %v3591_v42 }
 0x152   :  { %v601_v43 = vpop.permute.xlu1 %600  ;;  %v599_v44 = vpop.permute.xlu0 %598 }
 0x153   :  { %778 = vst.msk [vmem:[#allocation3 + $0x78] sm:$0xff] %vm762_vm4, %v601_v43  ;;  %777 = vst.msk [vmem:[#allocation3 + $0x70] sm:$0xff] %vm762_vm4, %v599_v44  ;;  %v10940_v43 = vld [vmem:[#allocation2 + $0x142] sm:$0xff]  ;;  %v10942_v44 = vld [vmem:[#allocation2 + $0x13a] sm:$0xff] }
 0x154   :  { %3300 = vrot.lane.b32.xlu1 %v10696_v24, %s9741_s16  ;;  %3298 = vrot.lane.b32.xlu0 %v10698_v27, %s9741_s16 }
 0x156   :  { %v982_v45 = vpop.permute.xlu1 %981  ;;  %v980_v48 = vpop.permute.xlu0 %979  ;;  %v3533_v57 = vld [vmem:[#allocation3 + $0x50] sm:$0xff]  ;;  %v3534_v58 = vld [vmem:[#allocation3 + $0x58] sm:$0xff] }
 0x157   :  { %1161 = vst.msk [vmem:[#allocation3 + $0x68] sm:$0xff] %vm13778_vm5, %v982_v45  ;;  %1160 = vst.msk [vmem:[#allocation3 + $0x60] sm:$0xff] %vm13778_vm5, %v980_v48  ;;  %v3592_v49 = vpack.c.bf16 %v3534_v58, %v3533_v57 }
 0x158   :  { %612 = vrot.lane.b32.xlu1 %v10680_v18, %s9734_s18  ;;  %610 = vrot.lane.b32.xlu0 %v10682_v19, %s9734_s18  ;;  %v10898_v19 = vld [vmem:[#allocation2 + $0x140] sm:$0xff] }
 0x159   :  { %9515 = vmatmul.mubr.bf16.gmra.mrb[8].mxu0 %v3592_v49  ;;  %v154_v49 = vld [vmem:[%s13758_s0 + $0x108] sm:$0xff] }
 0x15a   :  { %v986_v33 = vpop.permute.xlu1 %985  ;;  %v984_v34 = vpop.permute.xlu0 %983  ;;  %218 = vst.msk [vmem:[#allocation2 + $0x1d1] sm:$0xff] %vm40_vm0, %v154_v49 }
 0x15b   :  { %1163 = vst.msk [vmem:[#allocation3 + $0x78] sm:$0xff] %vm13778_vm5, %v986_v33  ;;  %1162 = vst.msk [vmem:[#allocation3 + $0x70] sm:$0xff] %vm13778_vm5, %v984_v34  ;;  %v9742_v34 = vmov 1983009808  }
 0x15c   :  { %3304 = vrot.lane.b32.xlu1 %v3157_v50, %s9741_s16  ;;  %3302 = vrot.lane.b32.xlu0 %v3156_v51, %s9741_s16 }
 0x15e   :  { %v1367_v54 = vpop.permute.xlu1 %1366  ;;  %v1365_v55 = vpop.permute.xlu0 %1364 }
 0x15f   :  { %1546 = vst.msk [vmem:[#allocation3 + $0x68] sm:$0xff] %vm13777_vm6, %v1367_v54  ;;  %1545 = vst.msk [vmem:[#allocation3 + $0x60] sm:$0xff] %vm13777_vm6, %v1365_v55  ;;  %v4109_v54 = vunpack.c.l.s4 %v9742_v34  ;;  %v4111_v55 = vlaneseq  ;;  %v11085_v34 = vld [vmem:[#allocation2 + $0x15a] sm:$0xff] }
 0x160   :  { %616 = vrot.lane.b32.xlu1 %v10732_v36, %s9734_s18  ;;  %614 = vrot.lane.b32.xlu0 %v10734_v37, %s9734_s18 }
 0x162   :  { %v1371_v56 = vpop.permute.xlu1 %1370  ;;  %v1369_v59 = vpop.permute.xlu0 %1368 }
 0x163   :  { %1548 = vst.msk [vmem:[#allocation3 + $0x78] sm:$0xff] %vm13777_vm6, %v1371_v56  ;;  %1547 = vst.msk [vmem:[#allocation3 + $0x70] sm:$0xff] %vm13777_vm6, %v1369_v59 }
 0x164   :  { %997 = vrot.lane.b32.xlu1 %v10696_v24, %s9735_s19  ;;  %995 = vrot.lane.b32.xlu0 %v10698_v27, %s9735_s19  ;;  %v10914_v27 = vld [vmem:[#allocation2 + $0x141] sm:$0xff] }
 0x166   :  { %v1752_v60 = vpop.permute.xlu1 %1751  ;;  %v1750_v61 = vpop.permute.xlu0 %1749 }
 0x167   :  { %1931 = vst.msk [vmem:[#allocation3 + $0x68] sm:$0xff] %vm13775_vm7, %v1752_v60  ;;  %1930 = vst.msk [vmem:[#allocation3 + $0x60] sm:$0xff] %vm13775_vm7, %v1750_v61  ;;  %v4110_v60 = vunpack.c.0.s8 %v4109_v54  ;;  %v4112_v61 = vshrl.u32 %v4111_v55, 7 }
 0x168   :  { %1001 = vrot.lane.b32.xlu1 %v3157_v50, %s9735_s19  ;;  %999 = vrot.lane.b32.xlu0 %v3156_v51, %s9735_s19 }
 0x16a   :  { %v1756_v62 = vpop.permute.xlu1 %1755  ;;  %v1754_v63 = vpop.permute.xlu0 %1753 }
 0x16b   :  { %1933 = vst.msk [vmem:[#allocation3 + $0x78] sm:$0xff] %vm13775_vm7, %v1756_v62  ;;  %1932 = vst.msk [vmem:[#allocation3 + $0x70] sm:$0xff] %vm13775_vm7, %v1754_v63 }
 0x16c   :  { %1382 = vrot.lane.b32.xlu1 %v10466_v53, %s9736_s24  ;;  %1380 = vrot.lane.b32.xlu0 %v10460_v52, %s9736_s24 }
 0x16e   :  { %v2137_v5 = vpop.permute.xlu1 %2136  ;;  %v2135_v6 = vpop.permute.xlu0 %2134 }
 0x16f   :  { %2316 = vst.msk [vmem:[#allocation3 + $0x68] sm:$0xff] %vm13776_vm8, %v2137_v5  ;;  %2315 = vst.msk [vmem:[#allocation3 + $0x60] sm:$0xff] %vm13776_vm8, %v2135_v6  ;;  %v11020_v6 = vsub.s32 %v4110_v60, %v4112_v61 }
 0x170   :  { %1386 = vrot.lane.b32.xlu1 %v1235_v0, %s9736_s24  ;;  %1384 = vrot.lane.b32.xlu0 %v1234_v4, %s9736_s24 }
 0x172   :  { %v2141_v52 = vpop.permute.xlu1 %2140  ;;  %v2139_v53 = vpop.permute.xlu0 %2138 }
 0x173   :  { %2318 = vst.msk [vmem:[#allocation3 + $0x78] sm:$0xff] %vm13776_vm8, %v2141_v52  ;;  %2317 = vst.msk [vmem:[#allocation3 + $0x70] sm:$0xff] %vm13776_vm8, %v2139_v53  ;;  %v11024_v52 = vld [vmem:[#allocation2 + $0x150] sm:$0xff] }
 0x174   :  { %1767 = vrot.lane.b32.xlu1 %v10732_v36, %s9737_s25  ;;  %1765 = vrot.lane.b32.xlu0 %v10734_v37, %s9737_s25  ;;  %v340_v37 = vld [vmem:[#allocation2 + $0x138] sm:$0xff] }
 0x175   :  { %404 = vst.msk [vmem:[#allocation3 + $0xd0] sm:$0xff] %vm40_vm0, %v340_v37 }
 0x176   :  { %v2523_v11 = vpop.permute.xlu1 %2522  ;;  %v2521_v12 = vpop.permute.xlu0 %2520 }
 0x177   :  { %2702 = vst.msk [vmem:[#allocation3 + $0x68] sm:$0xff] %vm13772_vm9, %v2523_v11  ;;  %2701 = vst.msk [vmem:[#allocation3 + $0x60] sm:$0xff] %vm13772_vm9, %v2521_v12  ;;  %v155_v11 = vld [vmem:[%s13758_s0 + $0x110] sm:$0xff]  ;;  %v156_v12 = vld [vmem:[%s13758_s0 + $0x118] sm:$0xff] }
 0x178   :  { %1771 = vrot.lane.b32.xlu1 %v10870_v9, %s9737_s25  ;;  %1769 = vrot.lane.b32.xlu0 %v10872_v10, %s9737_s25  ;;  %219 = vst.msk [vmem:[#allocation2 + $0x1e1] sm:$0xff] %vm40_vm0, %v155_v11  ;;  %220 = vst.msk [vmem:[#allocation2 + $0x1e9] sm:$0xff] %vm40_vm0, %v156_v12 }
 0x17a   :  { %v2527_v13 = vpop.permute.xlu1 %2526  ;;  %v2525_v14 = vpop.permute.xlu0 %2524 }
 0x17b   :  { %2704 = vst.msk [vmem:[#allocation3 + $0x78] sm:$0xff] %vm13772_vm9, %v2527_v13  ;;  %2703 = vst.msk [vmem:[#allocation3 + $0x70] sm:$0xff] %vm13772_vm9, %v2525_v14 }
 0x17c   :  { %2152 = vrot.lane.b32.xlu1 %v3157_v50, %s9738_s30  ;;  %2150 = vrot.lane.b32.xlu0 %v3156_v51, %s9738_s30  ;;  %v153_v50 = vld [vmem:[%s13758_s0 + $0x100] sm:$0xff] }
 0x17d   :  { %217 = vst.msk [vmem:[#allocation2 + $0x1c9] sm:$0xff] %vm40_vm0, %v153_v50 }
 0x17e   :  { %v2908_v17 = vpop.permute.xlu1 %2907  ;;  %v2906_v1 = vpop.permute.xlu0 %2905 }
 0x17f   :  { %3087 = vst.msk [vmem:[#allocation3 + $0x68] sm:$0xff] %vm13773_vm10, %v2908_v17  ;;  %3086 = vst.msk [vmem:[#allocation3 + $0x60] sm:$0xff] %vm13773_vm10, %v2906_v1 }
 0x180   :  { %2156 = vrot.lane.b32.xlu1 %v10884_v15, %s9738_s30  ;;  %2154 = vrot.lane.b32.xlu0 %v10886_v16, %s9738_s30 }
 0x182   :  { %v2912_v3 = vpop.permute.xlu1 %2911  ;;  %v2910_v18 = vpop.permute.xlu0 %2909 }
 0x183   :  { %3089 = vst.msk [vmem:[#allocation3 + $0x78] sm:$0xff] %vm13773_vm10, %v2912_v3  ;;  %3088 = vst.msk [vmem:[#allocation3 + $0x70] sm:$0xff] %vm13773_vm10, %v2910_v18 }
 0x184   :  { %2538 = vrot.lane.b32.xlu1 %v1235_v0, %s9739_s22  ;;  %2536 = vrot.lane.b32.xlu0 %v1234_v4, %s9739_s22  ;;  %v11011_v0 = vld [vmem:[%s13760_s2] ss:$0 sm:$0xff] }
 0x186   :  { %v3293_v21 = vpop.permute.xlu1 %3292  ;;  %v3291_v22 = vpop.permute.xlu0 %3290 }
 0x187   :  { %3472 = vst.msk [vmem:[#allocation3 + $0x68] sm:$0xff] %vm3458_vm11, %v3293_v21  ;;  %3471 = vst.msk [vmem:[#allocation3 + $0x60] sm:$0xff] %vm3458_vm11, %v3291_v22 }
 0x188   :  { %2542 = vrot.lane.b32.xlu1 %v10898_v19, %s9739_s22  ;;  %2540 = vrot.lane.b32.xlu0 %v10900_v20, %s9739_s22 }
 0x18a   :  { %v605_v23 = vpop.permute.xlu1 %604  ;;  %v603_v24 = vpop.permute.xlu0 %602 }
 0x18b   :  { %780 = vst.msk [vmem:[#allocation3 + $0x88] sm:$0xff] %vm762_vm4, %v605_v23  ;;  %779 = vst.msk [vmem:[#allocation3 + $0x80] sm:$0xff] %vm762_vm4, %v603_v24 }
 0x18c   :  { %2923 = vrot.lane.b32.xlu1 %v10870_v9, %s9740_s29  ;;  %2921 = vrot.lane.b32.xlu0 %v10872_v10, %s9740_s29 }
 0x18e   :  { %v3297_v46 = vpop.permute.xlu1 %3296  ;;  %v3295_v47 = vpop.permute.xlu0 %3294  ;;  %v3535_v29 = vld [vmem:[#allocation3 + $0x60] sm:$0xff]  ;;  %v3536_v25 = vld [vmem:[#allocation3 + $0x68] sm:$0xff] }
 0x18f   :  { %3474 = vst.msk [vmem:[#allocation3 + $0x78] sm:$0xff] %vm3458_vm11, %v3297_v46  ;;  %3473 = vst.msk [vmem:[#allocation3 + $0x70] sm:$0xff] %vm3458_vm11, %v3295_v47  ;;  %v3593_v26 = vpack.c.bf16 %v3536_v25, %v3535_v29 }
 0x190   :  { %2927 = vrot.lane.b32.xlu1 %v10914_v27, %s9740_s29  ;;  %2925 = vrot.lane.b32.xlu0 %v10916_v28, %s9740_s29 }
 0x191   :  { %9518 = vmatprep.mubr.bf16.mxu0 %v3593_v26 }
 0x192   :  { %v609_v31 = vpop.permute.xlu1 %608  ;;  %v607_v36 = vpop.permute.xlu0 %606 }
 0x193   :  { %782 = vst.msk [vmem:[#allocation3 + $0x98] sm:$0xff] %vm762_vm4, %v609_v31  ;;  %781 = vst.msk [vmem:[#allocation3 + $0x90] sm:$0xff] %vm762_vm4, %v607_v36  ;;  %v11059_v36 = vld [vmem:[#allocation2 + $0x159] sm:$0xff] }
 0x194   :  { %3308 = vrot.lane.b32.xlu1 %v10884_v15, %s9741_s16  ;;  %3306 = vrot.lane.b32.xlu0 %v10886_v16, %s9741_s16 }
 0x196   :  { %v990_v38 = vpop.permute.xlu1 %989  ;;  %v988_v39 = vpop.permute.xlu0 %987  ;;  %v3537_v40 = vld [vmem:[#allocation3 + $0x70] sm:$0xff]  ;;  %v3538_v41 = vld [vmem:[#allocation3 + $0x78] sm:$0xff] }
 0x197   :  { %1165 = vst.msk [vmem:[#allocation3 + $0x88] sm:$0xff] %vm13778_vm5, %v990_v38  ;;  %1164 = vst.msk [vmem:[#allocation3 + $0x80] sm:$0xff] %vm13778_vm5, %v988_v39  ;;  %v3594_v42 = vpack.c.bf16 %v3538_v41, %v3537_v40  ;;  %v11065_v41 = vld [vmem:[#allocation2 + $0x151] sm:$0xff] }
 0x198   :  { %620 = vrot.lane.b32.xlu1 %v10870_v9, %s9734_s18  ;;  %618 = vrot.lane.b32.xlu0 %v10872_v10, %s9734_s18 }
 0x199   :  { %9519 = vmatmul.mubr.bf16.gmra.mrb[12].mxu0 %v3594_v42 }
 0x19a   :  { %v994_v45 = vpop.permute.xlu1 %993  ;;  %v992_v48 = vpop.permute.xlu0 %991 }
 0x19b   :  { %1167 = vst.msk [vmem:[#allocation3 + $0x98] sm:$0xff] %vm13778_vm5, %v994_v45  ;;  %1166 = vst.msk [vmem:[#allocation3 + $0x90] sm:$0xff] %vm13778_vm5, %v992_v48 }
 0x19c   :  { %3312 = vrot.lane.b32.xlu1 %v10940_v43, %s9741_s16  ;;  %3310 = vrot.lane.b32.xlu0 %v10942_v44, %s9741_s16 }
 0x19e   :  { %v1375_v57 = vpop.permute.xlu1 %1374  ;;  %v1373_v58 = vpop.permute.xlu0 %1372 }
 0x19f   :  { %1550 = vst.msk [vmem:[#allocation3 + $0x88] sm:$0xff] %vm13777_vm6, %v1375_v57  ;;  %1549 = vst.msk [vmem:[#allocation3 + $0x80] sm:$0xff] %vm13777_vm6, %v1373_v58 }
 0x1a0   :  { %624 = vrot.lane.b32.xlu1 %v10914_v27, %s9734_s18  ;;  %622 = vrot.lane.b32.xlu0 %v10916_v28, %s9734_s18 }
 0x1a2   :  { %v1379_v51 = vpop.permute.xlu1 %1378  ;;  %v1377_v33 = vpop.permute.xlu0 %1376 }
 0x1a3   :  { %1552 = vst.msk [vmem:[#allocation3 + $0x98] sm:$0xff] %vm13777_vm6, %v1379_v51  ;;  %1551 = vst.msk [vmem:[#allocation3 + $0x90] sm:$0xff] %vm13777_vm6, %v1377_v33 }
 0x1a4   :  { %1005 = vrot.lane.b32.xlu1 %v10884_v15, %s9735_s19  ;;  %1003 = vrot.lane.b32.xlu0 %v10886_v16, %s9735_s19 }
 0x1a6   :  { %v1760_v56 = vpop.permute.xlu1 %1759  ;;  %v1758_v59 = vpop.permute.xlu0 %1757 }
 0x1a7   :  { %1935 = vst.msk [vmem:[#allocation3 + $0x88] sm:$0xff] %vm13775_vm7, %v1760_v56  ;;  %1934 = vst.msk [vmem:[#allocation3 + $0x80] sm:$0xff] %vm13775_vm7, %v1758_v59  ;;  %v11089_v59 = vld [vmem:[#allocation2 + $0x152] sm:$0xff] }
 0x1a8   :  { %1009 = vrot.lane.b32.xlu1 %v10940_v43, %s9735_s19  ;;  %1007 = vrot.lane.b32.xlu0 %v10942_v44, %s9735_s19 }
 0x1aa   :  { %v1764_v62 = vpop.permute.xlu1 %1763  ;;  %v1762_v63 = vpop.permute.xlu0 %1761 }
 0x1ab   :  { %1937 = vst.msk [vmem:[#allocation3 + $0x98] sm:$0xff] %vm13775_vm7, %v1764_v62  ;;  %1936 = vst.msk [vmem:[#allocation3 + $0x90] sm:$0xff] %vm13775_vm7, %v1762_v63 }
 0x1ac   :  { %1390 = vrot.lane.b32.xlu1 %v10898_v19, %s9736_s24  ;;  %1388 = vrot.lane.b32.xlu0 %v10900_v20, %s9736_s24  ;;  %v9508_v4 = vpop.f32.mrb[0].mxu0 }
 0x1ad   :  { %v3733_v5 = vadd.f32 %v9508_v4, %v11011_v0  ;;  %v3724_v7 = vpop.f32.mrb[1].mxu0 }
 0x1ae   :  { %v3725_v53 = vadd.f32 %v11011_v0, %v3724_v7  ;;  %v2145_v9 = vpop.permute.xlu1 %2144  ;;  %v2143_v10 = vpop.permute.xlu0 %2142 }
 0x1af   :  { %v3981_v13 = vmax.f32 %v3733_v5, 0.0  ;;  %2320 = vst.msk [vmem:[#allocation3 + $0x88] sm:$0xff] %vm13776_vm8, %v2145_v9  ;;  %2319 = vst.msk [vmem:[#allocation3 + $0x80] sm:$0xff] %vm13776_vm8, %v2143_v10  ;;  %v9509_v14 = vpop.f32.mrb[2].mxu0 }
 0x1b0   :  { %v3979_v15 = vmax.f32 %v3725_v53, 0.0  ;;  %v3736_v16 = vadd.f32 %v9509_v14, %v11011_v0  ;;  %v3727_v17 = vpop.f32.mrb[3].mxu0  ;;  %1394 = vrot.lane.b32.xlu1 %v11022_v8, %s9736_s24  ;;  %1392 = vrot.lane.b32.xlu0 %v11024_v52, %s9736_s24 }
 0x1b1   :  { %v4141_v1 = vcombine.high %v3981_v13, %v3981_v13  ;;  %v4148_v3 = vrot.slane %v3981_v13, %v11020_v6  ;;  %v3728_v18 = vadd.f32 %v11011_v0, %v3727_v17 }
 0x1b2   :  { %v4107_v19 = vcombine.high %v3979_v15, %v3979_v15  ;;  %v4114_v20 = vrot.slane %v3979_v15, %v11020_v6  ;;  %v3982_v21 = vmax.f32 %v3736_v16, 0.0  ;;  %v2149_v22 = vpop.permute.xlu1 %2148  ;;  %v2147_v23 = vpop.permute.xlu0 %2146 }
 0x1b3   :  { %v4155_v24 = vrot.slane %v4141_v1, %v11020_v6  ;;  %v4156_v46 = vcombine.high %v4148_v3, %v4148_v3  ;;  %5460 = vst.msk [vmem:[#allocation4 + $0x10] sm:$0x3] %vm13774_vm12, %v4148_v3  ;;  %v3980_v47 = vmax.f32 %v3728_v18, 0.0 }
 0x1b4   :  { %2322 = vst.msk [vmem:[#allocation3 + $0x98] sm:$0xff] %vm13776_vm8, %v2149_v22  ;;  %2321 = vst.msk [vmem:[#allocation3 + $0x90] sm:$0xff] %vm13776_vm8, %v2147_v23  ;;  %v4121_v29 = vrot.slane %v4107_v19, %v11020_v6  ;;  %v4122_v25 = vcombine.high %v4114_v20, %v4114_v20  ;;  %v4158_v26 = vcombine.high %v3982_v21, %v3982_v21  ;;  %1775 = vrot.lane.b32.xlu1 %v10914_v27, %s9737_s25 }
 0x1b5   :  { %5452 = vst.msk [vmem:[#allocation4] sm:$0x3] %vm13774_vm12, %v4114_v20  ;;  %v4165_v32 = vrot.slane %v3982_v21, %v11020_v6  ;;  %v4157_v35 = vcombine.high %v4155_v24, %v4155_v24  ;;  %5461 = vst.msk [vmem:[#allocation4 + $0x12] sm:$0x3] %vm13774_vm12, %v4156_v46  ;;  %v4124_v30 = vcombine.high %v3980_v47, %v3980_v47  ;;  %1773 = vrot.lane.b32.xlu0 %v10916_v28, %s9737_s25 }
 0x1b6   :  { %5462 = vst.msk [vmem:[#allocation4 + $0x14] sm:$0x3] %vm13774_vm12, %v4155_v24  ;;  %v4131_v31 = vrot.slane %v3980_v47, %v11020_v6  ;;  %v4123_v37 = vcombine.high %v4121_v29, %v4121_v29  ;;  %5453 = vst.msk [vmem:[#allocation4 + $0x2] sm:$0x3] %vm13774_vm12, %v4122_v25  ;;  %v4172_v27 = vrot.slane %v4158_v26, %v11020_v6  ;;  %v2531_v39 = vpop.permute.xlu1 %2530  ;;  %v2529_v40 = vpop.permute.xlu0 %2528 }
 0x1b7   :  { %5454 = vst.msk [vmem:[#allocation4 + $0x4] sm:$0x3] %vm13774_vm12, %v4121_v29  ;;  %v4173_v38 = vcombine.high %v4165_v32, %v4165_v32  ;;  %5464 = vst.msk [vmem:[#allocation4 + $0x18] sm:$0x3] %vm13774_vm12, %v4165_v32  ;;  %v4138_v28 = vrot.slane %v4124_v30, %v11020_v6 }
 0x1b8   :  { %5463 = vst.msk [vmem:[#allocation4 + $0x16] sm:$0x3] %vm13774_vm12, %v4157_v35  ;;  %v4139_v42 = vcombine.high %v4131_v31, %v4131_v31  ;;  %5456 = vst.msk [vmem:[#allocation4 + $0x8] sm:$0x3] %vm13774_vm12, %v4131_v31  ;;  %v4174_v45 = vcombine.high %v4172_v27, %v4172_v27  ;;  %1779 = vrot.lane.b32.xlu1 %v11059_v36, %s9737_s25 }
 0x1b9   :  { %2706 = vst.msk [vmem:[#allocation3 + $0x88] sm:$0xff] %vm13772_vm9, %v2531_v39  ;;  %2705 = vst.msk [vmem:[#allocation3 + $0x80] sm:$0xff] %vm13772_vm9, %v2529_v40  ;;  %v4140_v48 = vcombine.high %v4138_v28, %v4138_v28  ;;  %1777 = vrot.lane.b32.xlu0 %v11065_v41, %s9737_s25 }
 0x1ba   :  { %5455 = vst.msk [vmem:[#allocation4 + $0x6] sm:$0x3] %vm13774_vm12, %v4123_v37  ;;  %5465 = vst.msk [vmem:[#allocation4 + $0x1a] sm:$0x3] %vm13774_vm12, %v4173_v38  ;;  %v5716_v57 = vld [vmem:[#allocation4 + $0x10] sm:$0x1]  ;;  %v2535_v58 = vpop.permute.xlu1 %2534  ;;  %v2533_v49 = vpop.permute.xlu0 %2532 }
 0x1bb   :  { %5466 = vst.msk [vmem:[#allocation4 + $0x1c] sm:$0x3] %vm13774_vm12, %v4172_v27  ;;  %5457 = vst.msk [vmem:[#allocation4 + $0xa] sm:$0x3] %vm13774_vm12, %v4139_v42  ;;  %v5972_v50 = vld [vmem:[#allocation4 + $0x11] sm:$0x1] }
 0x1bc   :  { %5458 = vst.msk [vmem:[#allocation4 + $0xc] sm:$0x3] %vm13774_vm12, %v4138_v28  ;;  %5467 = vst.msk [vmem:[#allocation4 + $0x1e] sm:$0x3] %vm13774_vm12, %v4174_v45  ;;  %v5708_v51 = vld [vmem:[#allocation4] sm:$0x1]  ;;  %2160 = vrot.lane.b32.xlu1 %v10940_v43, %s9738_s30  ;;  %v6228_v11 = vmax.f32 %v5716_v57, %v5972_v50 }
 0x1bd   :  { %v5964_v33 = vld [vmem:[#allocation4 + $0x1] sm:$0x1]  ;;  %5459 = vst.msk [vmem:[#allocation4 + $0xe] sm:$0x3] %vm13774_vm12, %v4140_v48  ;;  %v5717_v54 = vld [vmem:[#allocation4 + $0x12] sm:$0x1]  ;;  %2158 = vrot.lane.b32.xlu0 %v10942_v44, %s9738_s30 }
 0x1be   :  { %2708 = vst.msk [vmem:[#allocation3 + $0x98] sm:$0xff] %vm13772_vm9, %v2535_v58  ;;  %2707 = vst.msk [vmem:[#allocation3 + $0x90] sm:$0xff] %vm13772_vm9, %v2533_v49  ;;  %v5718_v55 = vld [vmem:[#allocation4 + $0x14] sm:$0x1]  ;;  %v5973_v56 = vld [vmem:[#allocation4 + $0x13] sm:$0x1]  ;;  %v2916_v9 = vpop.permute.xlu1 %2915  ;;  %v2914_v10 = vpop.permute.xlu0 %2913  ;;  %v6220_v15 = vmax.f32 %v5708_v51, %v5964_v33 }
 0x1bf   :  { %v5974_v60 = vld [vmem:[#allocation4 + $0x15] sm:$0x1]  ;;  %v6229_v61 = vmax.f32 %v5717_v54, %v5973_v56  ;;  %v5709_v62 = vld [vmem:[#allocation4 + $0x2] sm:$0x1]  ;;  %v5710_v63 = vld [vmem:[#allocation4 + $0x4] sm:$0x1] }
 0x1c0   :  { %v5719_v4 = vld [vmem:[#allocation4 + $0x16] sm:$0x1]  ;;  %v5975_v5 = vld [vmem:[#allocation4 + $0x17] sm:$0x1]  ;;  %v6230_v7 = vmax.f32 %v5718_v55, %v5974_v60  ;;  %v5965_v53 = vld [vmem:[#allocation4 + $0x3] sm:$0x1]  ;;  %2164 = vrot.lane.b32.xlu1 %v11085_v34, %s9738_s30  ;;  %v6476_v32 = vmax.f32 %v6220_v15, %v6228_v11 }
 0x1c1   :  { %v6231_v12 = vmax.f32 %v5719_v4, %v5975_v5  ;;  %v5711_v13 = vld [vmem:[#allocation4 + $0x6] sm:$0x1]  ;;  %v5966_v43 = vld [vmem:[#allocation4 + $0x5] sm:$0x1]  ;;  %v5967_v14 = vld [vmem:[#allocation4 + $0x7] sm:$0x1]  ;;  %v6221_v16 = vmax.f32 %v5709_v62, %v5965_v53  ;;  %2162 = vrot.lane.b32.xlu0 %v11089_v59, %s9738_s30 }
 0x1c2   :  { %3091 = vst.msk [vmem:[#allocation3 + $0x88] sm:$0xff] %vm13773_vm10, %v2916_v9  ;;  %3090 = vst.msk [vmem:[#allocation3 + $0x80] sm:$0xff] %vm13773_vm10, %v2914_v10  ;;  %v6222_v17 = vmax.f32 %v5710_v63, %v5966_v43  ;;  %v6223_v44 = vmax.f32 %v5711_v13, %v5967_v14  ;;  %v5720_v1 = vld [vmem:[#allocation4 + $0x18] sm:$0x1]  ;;  %v5721_v3 = vld [vmem:[#allocation4 + $0x1a] sm:$0x1]  ;;  %v2920_v25 = vpop.permute.xlu1 %2919  ;;  %v2918_v26 = vpop.permute.xlu0 %2917 }
 0x1c3   :  { %v5722_v18 = vld [vmem:[#allocation4 + $0x1c] sm:$0x1]  ;;  %v6477_v19 = vmax.f32 %v6221_v16, %v6229_v61  ;;  %v5723_v20 = vld [vmem:[#allocation4 + $0x1e] sm:$0x1]  ;;  %v5976_v21 = vld [vmem:[#allocation4 + $0x19] sm:$0x1] }
 0x1c4   :  { %v5977_v22 = vld [vmem:[#allocation4 + $0x1b] sm:$0x1]  ;;  %v6478_v23 = vmax.f32 %v6222_v17, %v6230_v7  ;;  %v6479_v24 = vmax.f32 %v6223_v44, %v6231_v12  ;;  %v5978_v46 = vld [vmem:[#allocation4 + $0x1d] sm:$0x1]  ;;  %v5979_v47 = vld [vmem:[#allocation4 + $0x1f] sm:$0x1]  ;;  %v6232_v30 = vmax.f32 %v5720_v1, %v5976_v21  ;;  %2546 = vrot.lane.b32.xlu1 %v11022_v8, %s9739_s22 }
 0x1c5   :  { %v5712_v29 = vld [vmem:[#allocation4 + $0x8] sm:$0x1]  ;;  %v6776_v35 = vrot.slane %v6477_v19, 7  ;;  %v6233_v31 = vmax.f32 %v5721_v3, %v5977_v22  ;;  %v5713_v37 = vld [vmem:[#allocation4 + $0xa] sm:$0x1]  ;;  %3093 = vst.msk [vmem:[#allocation3 + $0x98] sm:$0xff] %vm13773_vm10, %v2920_v25  ;;  %v6234_v28 = vmax.f32 %v5722_v18, %v5978_v46  ;;  %v6235_v42 = vmax.f32 %v5723_v20, %v5979_v47  ;;  %2544 = vrot.lane.b32.xlu0 %v11024_v52, %s9739_s22 }
 0x1c6   :  { %v5714_v27 = vld [vmem:[#allocation4 + $0xc] sm:$0x1]  ;;  %3092 = vst.msk [vmem:[#allocation3 + $0x90] sm:$0xff] %vm13773_vm10, %v2918_v26  ;;  %v11101_v38 = vld [vmem:[#allocation2 + $0x170] sm:$0xff]  ;;  %v6779_v39 = vrot.slane %v6478_v23, 6  ;;  %v6782_v40 = vrot.slane %v6479_v24, 5  ;;  %v3301_v60 = vpop.permute.xlu1 %3300  ;;  %v3299_v61 = vpop.permute.xlu0 %3298 }
 0x1c7   :  { %v5715_v45 = vld [vmem:[#allocation4 + $0xe] sm:$0x1]  ;;  %v5968_v48 = vld [vmem:[#allocation4 + $0x9] sm:$0x1]  ;;  %v6778_v57 = vsel %vm13771_vm1, %v6776_v35, %v6476_v32  ;;  %v5969_v58 = vld [vmem:[#allocation4 + $0xb] sm:$0x1] }
 0x1c8   :  { %v5970_v49 = vld [vmem:[#allocation4 + $0xd] sm:$0x1]  ;;  %v5971_v50 = vld [vmem:[#allocation4 + $0xf] sm:$0x1]  ;;  %v6224_v51 = vmax.f32 %v5712_v29, %v5968_v48  ;;  %v6781_v33 = vsel %vm13770_vm2, %v6779_v39, %v6778_v57  ;;  %v6225_v54 = vmax.f32 %v5713_v37, %v5969_v58  ;;  %3476 = vst.msk [vmem:[#allocation3 + $0x88] sm:$0xff] %vm3458_vm11, %v3301_v60  ;;  %3475 = vst.msk [vmem:[#allocation3 + $0x80] sm:$0xff] %vm3458_vm11, %v3299_v61  ;;  %2550 = vrot.lane.b32.xlu1 %v11101_v38, %s9739_s22 }
 0x1c9   :  { %v6226_v55 = vmax.f32 %v5714_v27, %v5970_v49  ;;  %v6227_v56 = vmax.f32 %v5715_v45, %v5971_v50  ;;  %v11109_v62 = vld [vmem:[#allocation2 + $0x168] sm:$0xff]  ;;  %v157_v8 = vld [vmem:[%s13758_s0 + $0x120] sm:$0xff]  ;;  %v6784_v53 = vsel %vm6783_vm3, %v6782_v40, %v6781_v33  ;;  %vm13783_vm2 = vcmask 1046534   ;;  %v11134_v16 = vld [vmem:[#allocation2 + $0x171] sm:$0xff] }
 0x1ca   :  { %v6480_v63 = vmax.f32 %v6224_v51, %v6232_v30  ;;  %v158_v52 = vld [vmem:[%s13758_s0 + $0x128] sm:$0xff]  ;;  %v6481_v4 = vmax.f32 %v6225_v54, %v6233_v31  ;;  %221 = vst.msk [vmem:[#allocation2 + $0x1f9] sm:$0xff] %vm40_vm0, %v157_v8  ;;  %2548 = vrot.lane.b32.xlu0 %v11109_v62, %s9739_s22  ;;  %v613_v11 = vpop.permute.xlu1 %612  ;;  %v611_v12 = vpop.permute.xlu0 %610  ;;  %vm13780_vm1 = vcmask 1047559   ;;  %v343_v22 = vld [vmem:[#allocation2 + $0x158] sm:$0xff]  ;;  %v342_v23 = vld [vmem:[#allocation2 + $0x150] sm:$0xff] }
 0x1cb   :  { %v6482_v5 = vmax.f32 %v6226_v55, %v6234_v28  ;;  %222 = vst.msk [vmem:[#allocation2 + $0x201] sm:$0xff] %vm40_vm0, %v158_v52  ;;  %v6483_v7 = vmax.f32 %v6227_v56, %v6235_v42  ;;  %v11137_v3 = vld [vmem:[#allocation2 + $0x169] sm:$0xff]  ;;  %407 = vst.msk [vmem:[#allocation3 + $0xe8] sm:$0xff] %vm40_vm0, %v343_v22  ;;  %v11167_v37 = vld [vmem:[#allocation2 + $0x172] sm:$0xff] }
 0x1cc   :  { %v6785_v9 = vrot.slane %v6480_v63, 4  ;;  %v6788_v10 = vrot.slane %v6481_v4, 3  ;;  %784 = vst.msk [vmem:[#allocation3 + $0xa8] sm:$0xff] %vm762_vm4, %v613_v11  ;;  %783 = vst.msk [vmem:[#allocation3 + $0xa0] sm:$0xff] %vm762_vm4, %v611_v12  ;;  %2931 = vrot.lane.b32.xlu1 %v11059_v36, %s9740_s29  ;;  %v345_v47 = vld [vmem:[#allocation2 + $0x170] sm:$0xff]  ;;  %v344_v29 = vld [vmem:[#allocation2 + $0x168] sm:$0xff] }
 0x1cd   :  { %v6791_v13 = vrot.slane %v6482_v5, 2  ;;  %v6794_v15 = vrot.slane %v6483_v7, 1  ;;  %406 = vst.msk [vmem:[#allocation3 + $0xe0] sm:$0xff] %vm40_vm0, %v342_v23  ;;  %409 = vst.msk [vmem:[#allocation3 + $0xf8] sm:$0xff] %vm40_vm0, %v345_v47  ;;  %v11169_v40 = vld [vmem:[#allocation2 + $0x16a] sm:$0xff]  ;;  %v11205_v55 = vld [vmem:[#allocation2 + $0x180] sm:$0xff] }
 0x1ce   :  { %v6787_v43 = vsel %vm6786_vm14, %v6785_v9, %v6784_v53  ;;  %2929 = vrot.lane.b32.xlu0 %v11065_v41, %s9740_s29  ;;  %v3305_v44 = vpop.permute.xlu1 %3304  ;;  %v3303_v1 = vpop.permute.xlu0 %3302  ;;  %408 = vst.msk [vmem:[#allocation3 + $0xf0] sm:$0xff] %vm40_vm0, %v344_v29  ;;  %v11202_v50 = vld [vmem:[#allocation2 + $0x188] sm:$0xff]  ;;  %v159_v56 = vld [vmem:[%s13758_s0 + $0x130] sm:$0xff] }
 0x1cf   :  { %v6790_v14 = vsel %vm6789_vm15, %v6788_v10, %v6787_v43  ;;  %v3539_v18 = vld [vmem:[#allocation3 + $0x80] sm:$0xff]  ;;  %v3540_v19 = vld [vmem:[#allocation3 + $0x88] sm:$0xff]  ;;  %3478 = vst.msk [vmem:[#allocation3 + $0x98] sm:$0xff] %vm3458_vm11, %v3305_v44  ;;  %3477 = vst.msk [vmem:[#allocation3 + $0x90] sm:$0xff] %vm3458_vm11, %v3303_v1 }
 0x1d0   :  { %v6793_v17 = vsel %vm13783_vm2, %v6791_v13, %v6790_v14  ;;  %v3595_v21 = vpack.c.bf16 %v3540_v19, %v3539_v18  ;;  %2935 = vrot.lane.b32.xlu1 %v11134_v16, %s9740_s29  ;;  %223 = vst.msk [vmem:[#allocation2 + $0x211] sm:$0xff] %vm40_vm0, %v159_v56  ;;  %v11239_v19 = vld [vmem:[#allocation2 + $0x189] sm:$0xff] }
 0x1d1   :  { %v6796_v20 = vsel %vm13780_vm1, %v6794_v15, %v6793_v17 }
 0x1d2   :  { %7023 = vst.msk [vmem:[#allocation5 + $0x11] sm:$0xff] %vm13779_vm13, %v6796_v20  ;;  %2933 = vrot.lane.b32.xlu0 %v11137_v3, %s9740_s29  ;;  %9522 = vmatprep.mubr.bf16.mxu0 %v3595_v21  ;;  %v617_v24 = vpop.permute.xlu1 %616  ;;  %v615_v46 = vpop.permute.xlu0 %614 }
 0x1d3   :  { %786 = vst.msk [vmem:[#allocation3 + $0xb8] sm:$0xff] %vm762_vm4, %v617_v24  ;;  %785 = vst.msk [vmem:[#allocation3 + $0xb0] sm:$0xff] %vm762_vm4, %v615_v46  ;;  %v11245_v24 = vld [vmem:[#allocation2 + $0x181] sm:$0xff] }
 0x1d4   :  { %3316 = vrot.lane.b32.xlu1 %v11085_v34, %s9741_s16 }
 0x1d6   :  { %3314 = vrot.lane.b32.xlu0 %v11089_v59, %s9741_s16  ;;  %v998_v25 = vpop.permute.xlu1 %997  ;;  %v996_v26 = vpop.permute.xlu0 %995  ;;  %v3541_v32 = vld [vmem:[#allocation3 + $0x90] sm:$0xff]  ;;  %v3542_v35 = vld [vmem:[#allocation3 + $0x98] sm:$0xff] }
 0x1d7   :  { %1169 = vst.msk [vmem:[#allocation3 + $0xa8] sm:$0xff] %vm13778_vm5, %v998_v25  ;;  %1168 = vst.msk [vmem:[#allocation3 + $0xa0] sm:$0xff] %vm13778_vm5, %v996_v26  ;;  %v3596_v30 = vpack.c.bf16 %v3542_v35, %v3541_v32 }
 0x1d8   :  { %628 = vrot.lane.b32.xlu1 %v11059_v36, %s9734_s18 }
 0x1d9   :  { %v11159_v31 = vld [vmem:[#allocation5 + $0x10] sm:$0xff]  ;;  %9523 = vmatmul.mubr.bf16.gmra.mrb[16].mxu0 %v3596_v30 }
 0x1da   :  { %7073 = vst.msk [vmem:[#allocation6 + $0x10] sm:$0xff] %vm13779_vm13, %v11159_v31  ;;  %626 = vrot.lane.b32.xlu0 %v11065_v41, %s9734_s18  ;;  %v1002_v27 = vpop.permute.xlu1 %1001  ;;  %v1000_v39 = vpop.permute.xlu0 %999 }
 0x1db   :  { %1171 = vst.msk [vmem:[#allocation3 + $0xb8] sm:$0xff] %vm13778_vm5, %v1002_v27  ;;  %1170 = vst.msk [vmem:[#allocation3 + $0xb0] sm:$0xff] %vm13778_vm5, %v1000_v39  ;;  %v11265_v39 = vld [vmem:[#allocation2 + $0x18a] sm:$0xff] }
 0x1dc   :  { %3320 = vrot.lane.b32.xlu1 %v11167_v37, %s9741_s16 }
 0x1de   :  { %3318 = vrot.lane.b32.xlu0 %v11169_v40, %s9741_s16  ;;  %v1383_v36 = vpop.permute.xlu1 %1382  ;;  %v1381_v28 = vpop.permute.xlu0 %1380 }
 0x1df   :  { %1554 = vst.msk [vmem:[#allocation3 + $0xa8] sm:$0xff] %vm13777_vm6, %v1383_v36  ;;  %1553 = vst.msk [vmem:[#allocation3 + $0xa0] sm:$0xff] %vm13777_vm6, %v1381_v28 }
 0x1e0   :  { %632 = vrot.lane.b32.xlu1 %v11134_v16, %s9734_s18 }
 0x1e2   :  { %630 = vrot.lane.b32.xlu0 %v11137_v3, %s9734_s18  ;;  %v1387_v41 = vpop.permute.xlu1 %1386  ;;  %v1385_v42 = vpop.permute.xlu0 %1384 }
 0x1e3   :  { %1556 = vst.msk [vmem:[#allocation3 + $0xb8] sm:$0xff] %vm13777_vm6, %v1387_v41  ;;  %1555 = vst.msk [vmem:[#allocation3 + $0xb0] sm:$0xff] %vm13777_vm6, %v1385_v42  ;;  %v11269_v42 = vld [vmem:[#allocation2 + $0x182] sm:$0xff] }
 0x1e4   :  { %1013 = vrot.lane.b32.xlu1 %v11085_v34, %s9735_s19 }
 0x1e6   :  { %1011 = vrot.lane.b32.xlu0 %v11089_v59, %s9735_s19  ;;  %v1768_v45 = vpop.permute.xlu1 %1767  ;;  %v1766_v48 = vpop.permute.xlu0 %1765 }
 0x1e7   :  { %1939 = vst.msk [vmem:[#allocation3 + $0xa8] sm:$0xff] %vm13775_vm7, %v1768_v45  ;;  %1938 = vst.msk [vmem:[#allocation3 + $0xa0] sm:$0xff] %vm13775_vm7, %v1766_v48 }
 0x1e8   :  { %1017 = vrot.lane.b32.xlu1 %v11167_v37, %s9735_s19 }
 0x1ea   :  { %1015 = vrot.lane.b32.xlu0 %v11169_v40, %s9735_s19  ;;  %v1772_v57 = vpop.permute.xlu1 %1771  ;;  %v1770_v58 = vpop.permute.xlu0 %1769 }
 0x1eb   :  { %1941 = vst.msk [vmem:[#allocation3 + $0xb8] sm:$0xff] %vm13775_vm7, %v1772_v57  ;;  %1940 = vst.msk [vmem:[#allocation3 + $0xb0] sm:$0xff] %vm13775_vm7, %v1770_v58 }
 0x1ec   :  { %1398 = vrot.lane.b32.xlu1 %v11101_v38, %s9736_s24  ;;  %v9512_v34 = vpop.f32.mrb[4].mxu0  ;;  %v160_v38 = vld [vmem:[%s13758_s0 + $0x138] sm:$0xff] }
 0x1ed   :  { %v3749_v59 = vadd.f32 %v9512_v34, %v11011_v0  ;;  %v3740_v49 = vpop.f32.mrb[5].mxu0  ;;  %224 = vst.msk [vmem:[#allocation2 + $0x219] sm:$0xff] %vm40_vm0, %v160_v38 }
 0x1ee   :  { %1396 = vrot.lane.b32.xlu0 %v11109_v62, %s9736_s24  ;;  %v3741_v51 = vadd.f32 %v11011_v0, %v3740_v49  ;;  %v2153_v33 = vpop.permute.xlu1 %2152  ;;  %v2151_v54 = vpop.permute.xlu0 %2150 }
 0x1ef   :  { %v3985_v60 = vmax.f32 %v3749_v59, 0.0  ;;  %2324 = vst.msk [vmem:[#allocation3 + $0xa8] sm:$0xff] %vm13776_vm8, %v2153_v33  ;;  %2323 = vst.msk [vmem:[#allocation3 + $0xa0] sm:$0xff] %vm13776_vm8, %v2151_v54  ;;  %v9513_v61 = vpop.f32.mrb[6].mxu0 }
 0x1f0   :  { %v3983_v62 = vmax.f32 %v3741_v51, 0.0  ;;  %v3752_v63 = vadd.f32 %v9513_v61, %v11011_v0  ;;  %v3743_v8 = vpop.f32.mrb[7].mxu0  ;;  %1402 = vrot.lane.b32.xlu1 %v11202_v50, %s9736_s24 }
 0x1f1   :  { %v4209_v52 = vcombine.high %v3985_v60, %v3985_v60  ;;  %v4216_v4 = vrot.slane %v3985_v60, %v11020_v6  ;;  %v3744_v5 = vadd.f32 %v11011_v0, %v3743_v8 }
 0x1f2   :  { %1400 = vrot.lane.b32.xlu0 %v11205_v55, %s9736_s24  ;;  %v4175_v7 = vcombine.high %v3983_v62, %v3983_v62  ;;  %v4182_v53 = vrot.slane %v3983_v62, %v11020_v6  ;;  %v3986_v9 = vmax.f32 %v3752_v63, 0.0  ;;  %v2157_v10 = vpop.permute.xlu1 %2156  ;;  %v2155_v11 = vpop.permute.xlu0 %2154 }
 0x1f3   :  { %v4223_v12 = vrot.slane %v4209_v52, %v11020_v6  ;;  %v4224_v13 = vcombine.high %v4216_v4, %v4216_v4  ;;  %5476 = vst.msk [vmem:[#allocation4 + $0x30] sm:$0x3] %vm13774_vm12, %v4216_v4  ;;  %v3984_v43 = vmax.f32 %v3744_v5, 0.0 }
 0x1f4   :  { %2326 = vst.msk [vmem:[#allocation3 + $0xb8] sm:$0xff] %vm13776_vm8, %v2157_v10  ;;  %2325 = vst.msk [vmem:[#allocation3 + $0xb0] sm:$0xff] %vm13776_vm8, %v2155_v11  ;;  %v4189_v0 = vrot.slane %v4175_v7, %v11020_v6  ;;  %v4190_v14 = vcombine.high %v4182_v53, %v4182_v53  ;;  %v4226_v15 = vcombine.high %v3986_v9, %v3986_v9  ;;  %1783 = vrot.lane.b32.xlu1 %v11134_v16, %s9737_s25 }
 0x1f5   :  { %5468 = vst.msk [vmem:[#allocation4 + $0x20] sm:$0x3] %vm13774_vm12, %v4182_v53  ;;  %v4233_v17 = vrot.slane %v3986_v9, %v11020_v6  ;;  %v4225_v44 = vcombine.high %v4223_v12, %v4223_v12  ;;  %5477 = vst.msk [vmem:[#allocation4 + $0x32] sm:$0x3] %vm13774_vm12, %v4224_v13  ;;  %v4192_v1 = vcombine.high %v3984_v43, %v3984_v43 }
 0x1f6   :  { %5478 = vst.msk [vmem:[#allocation4 + $0x34] sm:$0x3] %vm13774_vm12, %v4223_v12  ;;  %v4199_v18 = vrot.slane %v3984_v43, %v11020_v6  ;;  %1781 = vrot.lane.b32.xlu0 %v11137_v3, %s9737_s25  ;;  %v4191_v20 = vcombine.high %v4189_v0, %v4189_v0  ;;  %5469 = vst.msk [vmem:[#allocation4 + $0x22] sm:$0x3] %vm13774_vm12, %v4190_v14  ;;  %v4240_v16 = vrot.slane %v4226_v15, %v11020_v6  ;;  %v2539_v22 = vpop.permute.xlu1 %2538  ;;  %v2537_v23 = vpop.permute.xlu0 %2536 }
 0x1f7   :  { %5470 = vst.msk [vmem:[#allocation4 + $0x24] sm:$0x3] %vm13774_vm12, %v4189_v0  ;;  %v4241_v21 = vcombine.high %v4233_v17, %v4233_v17  ;;  %5480 = vst.msk [vmem:[#allocation4 + $0x38] sm:$0x3] %vm13774_vm12, %v4233_v17  ;;  %v4206_v3 = vrot.slane %v4192_v1, %v11020_v6 }
 0x1f8   :  { %5479 = vst.msk [vmem:[#allocation4 + $0x36] sm:$0x3] %vm13774_vm12, %v4225_v44  ;;  %v4207_v46 = vcombine.high %v4199_v18, %v4199_v18  ;;  %5472 = vst.msk [vmem:[#allocation4 + $0x28] sm:$0x3] %vm13774_vm12, %v4199_v18  ;;  %v4242_v47 = vcombine.high %v4240_v16, %v4240_v16  ;;  %1787 = vrot.lane.b32.xlu1 %v11239_v19, %s9737_s25 }
 0x1f9   :  { %2710 = vst.msk [vmem:[#allocation3 + $0xa8] sm:$0xff] %vm13772_vm9, %v2539_v22  ;;  %2709 = vst.msk [vmem:[#allocation3 + $0xa0] sm:$0xff] %vm13772_vm9, %v2537_v23  ;;  %v4208_v29 = vcombine.high %v4206_v3, %v4206_v3 }
 0x1fa   :  { %5471 = vst.msk [vmem:[#allocation4 + $0x26] sm:$0x3] %vm13774_vm12, %v4191_v20  ;;  %5481 = vst.msk [vmem:[#allocation4 + $0x3a] sm:$0x3] %vm13774_vm12, %v4241_v21  ;;  %1785 = vrot.lane.b32.xlu0 %v11245_v24, %s9737_s25  ;;  %v5732_v25 = vld [vmem:[#allocation4 + $0x30] sm:$0x1]  ;;  %v2543_v26 = vpop.permute.xlu1 %2542  ;;  %v2541_v32 = vpop.permute.xlu0 %2540 }
 0x1fb   :  { %5482 = vst.msk [vmem:[#allocation4 + $0x3c] sm:$0x3] %vm13774_vm12, %v4240_v16  ;;  %5473 = vst.msk [vmem:[#allocation4 + $0x2a] sm:$0x3] %vm13774_vm12, %v4207_v46  ;;  %v5988_v35 = vld [vmem:[#allocation4 + $0x31] sm:$0x1] }
 0x1fc   :  { %5474 = vst.msk [vmem:[#allocation4 + $0x2c] sm:$0x3] %vm13774_vm12, %v4206_v3  ;;  %5483 = vst.msk [vmem:[#allocation4 + $0x3e] sm:$0x3] %vm13774_vm12, %v4242_v47  ;;  %v5724_v30 = vld [vmem:[#allocation4 + $0x20] sm:$0x1]  ;;  %2168 = vrot.lane.b32.xlu1 %v11167_v37, %s9738_s30  ;;  %v6244_v56 = vmax.f32 %v5732_v25, %v5988_v35 }
 0x1fd   :  { %v5980_v27 = vld [vmem:[#allocation4 + $0x21] sm:$0x1]  ;;  %5475 = vst.msk [vmem:[#allocation4 + $0x2e] sm:$0x3] %vm13774_vm12, %v4208_v29  ;;  %v5733_v36 = vld [vmem:[#allocation4 + $0x32] sm:$0x1] }
 0x1fe   :  { %2712 = vst.msk [vmem:[#allocation3 + $0xb8] sm:$0xff] %vm13772_vm9, %v2543_v26  ;;  %2711 = vst.msk [vmem:[#allocation3 + $0xb0] sm:$0xff] %vm13772_vm9, %v2541_v32  ;;  %v5734_v28 = vld [vmem:[#allocation4 + $0x34] sm:$0x1]  ;;  %v5989_v41 = vld [vmem:[#allocation4 + $0x33] sm:$0x1]  ;;  %2166 = vrot.lane.b32.xlu0 %v11169_v40, %s9738_s30  ;;  %v2924_v33 = vpop.permute.xlu1 %2923  ;;  %v2922_v54 = vpop.permute.xlu0 %2921  ;;  %v6236_v62 = vmax.f32 %v5724_v30, %v5980_v27 }
 0x1ff   :  { %v5990_v45 = vld [vmem:[#allocation4 + $0x35] sm:$0x1]  ;;  %v6245_v48 = vmax.f32 %v5733_v36, %v5989_v41  ;;  %v5725_v57 = vld [vmem:[#allocation4 + $0x22] sm:$0x1]  ;;  %v5726_v58 = vld [vmem:[#allocation4 + $0x24] sm:$0x1] }
 0x200   :  { %v5735_v34 = vld [vmem:[#allocation4 + $0x36] sm:$0x1]  ;;  %v5991_v59 = vld [vmem:[#allocation4 + $0x37] sm:$0x1]  ;;  %v6246_v49 = vmax.f32 %v5734_v28, %v5990_v45  ;;  %v5981_v51 = vld [vmem:[#allocation4 + $0x23] sm:$0x1]  ;;  %2172 = vrot.lane.b32.xlu1 %v11265_v39, %s9738_s30  ;;  %v6484_v17 = vmax.f32 %v6236_v62, %v6244_v56 }
 0x201   :  { %v6247_v38 = vmax.f32 %v5735_v34, %v5991_v59  ;;  %v5727_v60 = vld [vmem:[#allocation4 + $0x26] sm:$0x1]  ;;  %v5982_v61 = vld [vmem:[#allocation4 + $0x25] sm:$0x1]  ;;  %v5983_v37 = vld [vmem:[#allocation4 + $0x27] sm:$0x1]  ;;  %v6237_v63 = vmax.f32 %v5725_v57, %v5981_v51 }
 0x202   :  { %3095 = vst.msk [vmem:[#allocation3 + $0xa8] sm:$0xff] %vm13773_vm10, %v2924_v33  ;;  %3094 = vst.msk [vmem:[#allocation3 + $0xa0] sm:$0xff] %vm13773_vm10, %v2922_v54  ;;  %v6238_v8 = vmax.f32 %v5726_v58, %v5982_v61  ;;  %v6239_v52 = vmax.f32 %v5727_v60, %v5983_v37  ;;  %v5736_v40 = vld [vmem:[#allocation4 + $0x38] sm:$0x1]  ;;  %v5737_v4 = vld [vmem:[#allocation4 + $0x3a] sm:$0x1]  ;;  %2170 = vrot.lane.b32.xlu0 %v11269_v42, %s9738_s30  ;;  %v2928_v14 = vpop.permute.xlu1 %2927  ;;  %v2926_v15 = vpop.permute.xlu0 %2925 }
 0x203   :  { %v5738_v5 = vld [vmem:[#allocation4 + $0x3c] sm:$0x1]  ;;  %v6485_v7 = vmax.f32 %v6237_v63, %v6245_v48  ;;  %v5739_v53 = vld [vmem:[#allocation4 + $0x3e] sm:$0x1]  ;;  %v5992_v9 = vld [vmem:[#allocation4 + $0x39] sm:$0x1] }
 0x204   :  { %v5993_v10 = vld [vmem:[#allocation4 + $0x3b] sm:$0x1]  ;;  %v6486_v11 = vmax.f32 %v6238_v8, %v6246_v49  ;;  %v6487_v12 = vmax.f32 %v6239_v52, %v6247_v38  ;;  %v5994_v13 = vld [vmem:[#allocation4 + $0x3d] sm:$0x1]  ;;  %v5995_v43 = vld [vmem:[#allocation4 + $0x3f] sm:$0x1]  ;;  %v6248_v1 = vmax.f32 %v5736_v40, %v5992_v9  ;;  %2554 = vrot.lane.b32.xlu1 %v11202_v50, %s9739_s22 }
 0x205   :  { %v5728_v0 = vld [vmem:[#allocation4 + $0x28] sm:$0x1]  ;;  %v6797_v44 = vrot.slane %v6485_v7, 7  ;;  %v6249_v18 = vmax.f32 %v5737_v4, %v5993_v10  ;;  %v5729_v20 = vld [vmem:[#allocation4 + $0x2a] sm:$0x1]  ;;  %3097 = vst.msk [vmem:[#allocation3 + $0xb8] sm:$0xff] %vm13773_vm10, %v2928_v14  ;;  %v6250_v3 = vmax.f32 %v5738_v5, %v5994_v13  ;;  %v6251_v46 = vmax.f32 %v5739_v53, %v5995_v43 }
 0x206   :  { %v5730_v16 = vld [vmem:[#allocation4 + $0x2c] sm:$0x1]  ;;  %3096 = vst.msk [vmem:[#allocation3 + $0xb0] sm:$0xff] %vm13773_vm10, %v2926_v15  ;;  %v2399_v21 = vld [vmem:[#allocation2 + $0x1a0] sm:$0xff]  ;;  %v6799_v22 = vrot.slane %v6486_v11, 6  ;;  %v6801_v23 = vrot.slane %v6487_v12, 5  ;;  %2552 = vrot.lane.b32.xlu0 %v11205_v55, %s9739_s22  ;;  %v3309_v45 = vpop.permute.xlu1 %3308  ;;  %v3307_v48 = vpop.permute.xlu0 %3306 }
 0x207   :  { %v5731_v47 = vld [vmem:[#allocation4 + $0x2e] sm:$0x1]  ;;  %v5984_v29 = vld [vmem:[#allocation4 + $0x29] sm:$0x1]  ;;  %vm13785_vm9 = vcmask 1041409   ;;  %vm13786_vm10 = vcmask 1042434  }
 0x208   :  { %v6798_v25 = vsel %vm13785_vm9, %v6797_v44, %v6484_v17  ;;  %v5985_v26 = vld [vmem:[#allocation4 + $0x2b] sm:$0x1]  ;;  %v5986_v32 = vld [vmem:[#allocation4 + $0x2d] sm:$0x1]  ;;  %v5987_v35 = vld [vmem:[#allocation4 + $0x2f] sm:$0x1]  ;;  %v6240_v30 = vmax.f32 %v5728_v0, %v5984_v29  ;;  %2558 = vrot.lane.b32.xlu1 %v2399_v21, %s9739_s22 }
 0x209   :  { %v6800_v27 = vsel %vm13786_vm10, %v6799_v22, %v6798_v25  ;;  %v6241_v36 = vmax.f32 %v5729_v20, %v5985_v26  ;;  %v6242_v28 = vmax.f32 %v5730_v16, %v5986_v32  ;;  %v6243_v41 = vmax.f32 %v5731_v47, %v5987_v35  ;;  %v2398_v57 = vld [vmem:[#allocation2 + $0x198] sm:$0xff]  ;;  %3480 = vst.msk [vmem:[#allocation3 + $0xa8] sm:$0xff] %vm3458_vm11, %v3309_v45  ;;  %v161_v50 = vld [vmem:[%s13758_s0 + $0x140] sm:$0xff]  ;;  %v162_v55 = vld [vmem:[%s13758_s0 + $0x148] sm:$0xff] }
 0x20a   :  { %v6488_v58 = vmax.f32 %v6240_v30, %v6248_v1  ;;  %3479 = vst.msk [vmem:[#allocation3 + $0xa0] sm:$0xff] %vm3458_vm11, %v3307_v48  ;;  %v6802_v51 = vsel %vm6783_vm3, %v6801_v23, %v6800_v27  ;;  %2556 = vrot.lane.b32.xlu0 %v2398_v57, %s9739_s22  ;;  %v621_v56 = vpop.permute.xlu1 %620  ;;  %v619_v38 = vpop.permute.xlu0 %618  ;;  %v347_v60 = vld [vmem:[#allocation2 + $0x1b8] sm:$0xff]  ;;  %v346_v62 = vld [vmem:[#allocation2 + $0x1b0] sm:$0xff]  ;;  %v2784_v40 = vld [vmem:[#allocation2 + $0x1a1] sm:$0xff]  ;;  %vm13787_vm9 = vcmask 171152  }
 0x20b   :  { %v6489_v34 = vmax.f32 %v6241_v36, %v6249_v18  ;;  %v6490_v59 = vmax.f32 %v6242_v28, %v6250_v3  ;;  %v6491_v49 = vmax.f32 %v6243_v41, %v6251_v46  ;;  %225 = vst.msk [vmem:[#allocation2 + $0x229] sm:$0xff] %vm40_vm0, %v161_v50  ;;  %226 = vst.msk [vmem:[#allocation2 + $0x231] sm:$0xff] %vm40_vm0, %v162_v55  ;;  %v2783_v53 = vld [vmem:[#allocation2 + $0x199] sm:$0xff]  ;;  %v349_v12 = vld [vmem:[#allocation2 + $0x1d0] sm:$0xff] }
 0x20c   :  { %v6803_v33 = vrot.slane %v6488_v58, 4  ;;  %788 = vst.msk [vmem:[#allocation3 + $0xc8] sm:$0xff] %vm762_vm4, %v621_v56  ;;  %787 = vst.msk [vmem:[#allocation3 + $0xc0] sm:$0xff] %vm762_vm4, %v619_v38  ;;  %2939 = vrot.lane.b32.xlu1 %v11239_v19, %s9740_s29  ;;  %v348_v13 = vld [vmem:[#allocation2 + $0x1c8] sm:$0xff]  ;;  %v475_v43 = vld [vmem:[#allocation2 + $0x1b9] sm:$0xff] }
 0x20d   :  { %v6805_v54 = vrot.slane %v6489_v34, 3  ;;  %v6807_v37 = vrot.slane %v6490_v59, 2  ;;  %411 = vst.msk [vmem:[#allocation3 + $0x108] sm:$0xff] %vm40_vm0, %v347_v60  ;;  %v6809_v8 = vrot.slane %v6491_v49, 1  ;;  %410 = vst.msk [vmem:[#allocation3 + $0x100] sm:$0xff] %vm40_vm0, %v346_v62  ;;  %v474_v0 = vld [vmem:[#allocation2 + $0x1b1] sm:$0xff] }
 0x20e   :  { %v6804_v61 = vsel %vm6786_vm14, %v6803_v33, %v6802_v51  ;;  %2937 = vrot.lane.b32.xlu0 %v11245_v24, %s9740_s29  ;;  %v3313_v5 = vpop.permute.xlu1 %3312  ;;  %v3311_v7 = vpop.permute.xlu0 %3310  ;;  %413 = vst.msk [vmem:[#allocation3 + $0x118] sm:$0xff] %vm40_vm0, %v349_v12  ;;  %412 = vst.msk [vmem:[#allocation3 + $0x110] sm:$0xff] %vm40_vm0, %v348_v13  ;;  %v3168_v21 = vld [vmem:[#allocation2 + $0x19a] sm:$0xff]  ;;  %v11335_v22 = vld [vmem:[#allocation2 + $0x1d1] sm:$0xff] }
 0x20f   :  { %v6806_v63 = vsel %vm6789_vm15, %v6805_v54, %v6804_v61  ;;  %3482 = vst.msk [vmem:[#allocation3 + $0xb8] sm:$0xff] %vm3458_vm11, %v3313_v5  ;;  %3481 = vst.msk [vmem:[#allocation3 + $0xb0] sm:$0xff] %vm3458_vm11, %v3311_v7  ;;  %v11337_v46 = vld [vmem:[#allocation2 + $0x1c9] sm:$0xff]  ;;  %v860_v47 = vld [vmem:[#allocation2 + $0x1ba] sm:$0xff] }
 0x210   :  { %v6808_v52 = vsel %vm13783_vm2, %v6807_v37, %v6806_v63  ;;  %v3544_v10 = vld [vmem:[#allocation3 + $0xa8] sm:$0xff]  ;;  %2943 = vrot.lane.b32.xlu1 %v2784_v40, %s9740_s29  ;;  %v859_v26 = vld [vmem:[#allocation2 + $0x1b2] sm:$0xff]  ;;  %v11366_v57 = vld [vmem:[%s13760_s2] ss:$0 sm:$0xff] }
 0x211   :  { %v6810_v4 = vsel %vm13780_vm1, %v6809_v8, %v6808_v52  ;;  %v3543_v9 = vld [vmem:[#allocation3 + $0xa0] sm:$0xff]  ;;  %v11349_v32 = vld [vmem:[#allocation2 + $0x1d2] sm:$0xff]  ;;  %v11351_v30 = vld [vmem:[#allocation2 + $0x1ca] sm:$0xff] }
 0x212   :  { %7024 = vst.msk [vmem:[#allocation5 + $0x21] sm:$0xff] %vm13779_vm13, %v6810_v4  ;;  %v3597_v19 = vpack.c.bf16 %v3544_v10, %v3543_v9  ;;  %2941 = vrot.lane.b32.xlu0 %v2783_v53, %s9740_s29  ;;  %v625_v24 = vpop.permute.xlu1 %624  ;;  %v623_v11 = vpop.permute.xlu0 %622  ;;  %v1245_v36 = vld [vmem:[#allocation2 + $0x1d0] sm:$0xff]  ;;  %v1244_v41 = vld [vmem:[#allocation2 + $0x1c8] sm:$0xff]  ;;  %v11372_v51 = vld [vmem:[#allocation2 + $0x1e0] sm:$0xff] }
 0x213   :  { %790 = vst.msk [vmem:[#allocation3 + $0xd8] sm:$0xff] %vm762_vm4, %v625_v24  ;;  %789 = vst.msk [vmem:[#allocation3 + $0xd0] sm:$0xff] %vm762_vm4, %v623_v11  ;;  %v11369_v55 = vld [vmem:[#allocation2 + $0x1e8] sm:$0xff]  ;;  %v163_v33 = vld [vmem:[%s13758_s0 + $0x150] sm:$0xff] }
 0x214   :  { %9526 = vmatprep.mubr.bf16.mxu0 %v3597_v19  ;;  %3324 = vrot.lane.b32.xlu1 %v11265_v39, %s9741_s16  ;;  %v164_v54 = vld [vmem:[%s13758_s0 + $0x158] sm:$0xff]  ;;  %227 = vst.msk [vmem:[#allocation2 + $0x241] sm:$0xff] %vm40_vm0, %v163_v33  ;;  %vm13788_vm10 = vmmov %vm13787_vm9 }
 0x215   :  { %228 = vst.msk [vmem:[#allocation2 + $0x249] sm:$0xff] %vm40_vm0, %v164_v54 }
 0x216   :  { %3322 = vrot.lane.b32.xlu0 %v11269_v42, %s9741_s16  ;;  %v1006_v14 = vpop.permute.xlu1 %1005  ;;  %v1004_v15 = vpop.permute.xlu0 %1003  ;;  %v3545_v17 = vld [vmem:[#allocation3 + $0xb0] sm:$0xff]  ;;  %v3546_v44 = vld [vmem:[#allocation3 + $0xb8] sm:$0xff]  ;;  %v3169_v42 = vld [vmem:[#allocation2 + $0x1a2] sm:$0xff] }
 0x217   :  { %1173 = vst.msk [vmem:[#allocation3 + $0xc8] sm:$0xff] %vm13778_vm5, %v1006_v14  ;;  %1172 = vst.msk [vmem:[#allocation3 + $0xc0] sm:$0xff] %vm13778_vm5, %v1004_v15  ;;  %v3598_v18 = vpack.c.bf16 %v3546_v44, %v3545_v17  ;;  %v11408_v17 = vld [vmem:[#allocation2 + $0x1e9] sm:$0xff] }
 0x218   :  { %636 = vrot.lane.b32.xlu1 %v475_v43, %s9734_s18 }
 0x219   :  { %v7768_v1 = vld [vmem:[#allocation5 + $0x22] sm:$0xff]  ;;  %9527 = vmatmul.mubr.bf16.gmra.mrb[20].mxu0 %v3598_v18 }
 0x21a   :  { %7784 = vst.msk [vmem:[#allocation6 + $0x8] sm:$0xff] %vm13779_vm13, %v7768_v1  ;;  %v7058_v39 = vld [vmem:[#allocation5 + $0x20] sm:$0xff]  ;;  %634 = vrot.lane.b32.xlu0 %v474_v0, %s9734_s18  ;;  %v1010_v20 = vpop.permute.xlu1 %1009  ;;  %v1008_v16 = vpop.permute.xlu0 %1007 }
 0x21b   :  { %7074 = vst.msk [vmem:[#allocation6 + $0x20] sm:$0xff] %vm13779_vm13, %v7058_v39 }
 0x21c   :  { %1175 = vst.msk [vmem:[#allocation3 + $0xd8] sm:$0xff] %vm13778_vm5, %v1010_v20  ;;  %1174 = vst.msk [vmem:[#allocation3 + $0xd0] sm:$0xff] %vm13778_vm5, %v1008_v16  ;;  %3328 = vrot.lane.b32.xlu1 %v3169_v42, %s9741_s16  ;;  %v11414_v42 = vld [vmem:[#allocation2 + $0x1e1] sm:$0xff] }
 0x21e   :  { %3326 = vrot.lane.b32.xlu0 %v3168_v21, %s9741_s16  ;;  %v1391_v23 = vpop.permute.xlu1 %1390  ;;  %v1389_v3 = vpop.permute.xlu0 %1388 }
 0x21f   :  { %1558 = vst.msk [vmem:[#allocation3 + $0xc8] sm:$0xff] %vm13777_vm6, %v1391_v23  ;;  %1557 = vst.msk [vmem:[#allocation3 + $0xc0] sm:$0xff] %vm13777_vm6, %v1389_v3 }
 0x220   :  { %640 = vrot.lane.b32.xlu1 %v11335_v22, %s9734_s18 }
 0x222   :  { %638 = vrot.lane.b32.xlu0 %v11337_v46, %s9734_s18  ;;  %v1395_v29 = vpop.permute.xlu1 %1394  ;;  %v1393_v25 = vpop.permute.xlu0 %1392 }
 0x223   :  { %1560 = vst.msk [vmem:[#allocation3 + $0xd8] sm:$0xff] %vm13777_vm6, %v1395_v29  ;;  %1559 = vst.msk [vmem:[#allocation3 + $0xd0] sm:$0xff] %vm13777_vm6, %v1393_v25  ;;  %v11431_v25 = vld [vmem:[#allocation2 + $0x1ea] sm:$0xff] }
 0x224   :  { %1021 = vrot.lane.b32.xlu1 %v860_v47, %s9735_s19 }
 0x226   :  { %1019 = vrot.lane.b32.xlu0 %v859_v26, %s9735_s19  ;;  %v1776_v35 = vpop.permute.xlu1 %1775 }
 0x227   :  { %1943 = vst.msk [vmem:[#allocation3 + $0xc8] sm:$0xff] %vm13775_vm7, %v1776_v35  ;;  %v1774_v27 = vpop.permute.xlu0 %1773 }
 0x228   :  { %1942 = vst.msk [vmem:[#allocation3 + $0xc0] sm:$0xff] %vm13775_vm7, %v1774_v27  ;;  %1025 = vrot.lane.b32.xlu1 %v11349_v32, %s9735_s19 }
 0x22a   :  { %1023 = vrot.lane.b32.xlu0 %v11351_v30, %s9735_s19  ;;  %v1780_v28 = vpop.permute.xlu1 %1779 }
 0x22b   :  { %1945 = vst.msk [vmem:[#allocation3 + $0xd8] sm:$0xff] %vm13775_vm7, %v1780_v28  ;;  %v1778_v45 = vpop.permute.xlu0 %1777 }
 0x22c   :  { %1944 = vst.msk [vmem:[#allocation3 + $0xd0] sm:$0xff] %vm13775_vm7, %v1778_v45  ;;  %1406 = vrot.lane.b32.xlu1 %v1245_v36, %s9736_s24  ;;  %v9516_v48 = vpop.f32.mrb[8].mxu0  ;;  %v11436_v36 = vld [vmem:[#allocation2 + $0x1e2] sm:$0xff] }
 0x22d   :  { %v3765_v58 = vadd.f32 %v11366_v57, %v9516_v48  ;;  %v3756_v50 = vpop.f32.mrb[9].mxu0 }
 0x22e   :  { %1404 = vrot.lane.b32.xlu0 %v1244_v41, %s9736_s24  ;;  %v3757_v34 = vadd.f32 %v11366_v57, %v3756_v50  ;;  %v2161_v59 = vpop.permute.xlu1 %2160  ;;  %v9517_v49 = vpop.f32.mrb[10].mxu0 }
 0x22f   :  { %v3989_v56 = vmax.f32 %v3765_v58, 0.0  ;;  %2328 = vst.msk [vmem:[#allocation3 + $0xc8] sm:$0xff] %vm13776_vm8, %v2161_v59  ;;  %v2159_v38 = vpop.permute.xlu0 %2158  ;;  %v3768_v60 = vadd.f32 %v11366_v57, %v9517_v49  ;;  %v3759_v61 = vpop.f32.mrb[11].mxu0 }
 0x230   :  { %v3987_v37 = vmax.f32 %v3757_v34, 0.0  ;;  %2327 = vst.msk [vmem:[#allocation3 + $0xc0] sm:$0xff] %vm13776_vm8, %v2159_v38  ;;  %v3760_v62 = vadd.f32 %v11366_v57, %v3759_v61  ;;  %1410 = vrot.lane.b32.xlu1 %v11369_v55, %s9736_s24 }
 0x231   :  { %v4277_v63 = vcombine.high %v3989_v56, %v3989_v56  ;;  %v4284_v8 = vrot.slane %v3989_v56, %v11020_v6  ;;  %v3990_v52 = vmax.f32 %v3768_v60, 0.0 }
 0x232   :  { %1408 = vrot.lane.b32.xlu0 %v11372_v51, %s9736_s24  ;;  %v4243_v40 = vcombine.high %v3987_v37, %v3987_v37  ;;  %v4250_v4 = vrot.slane %v3987_v37, %v11020_v6  ;;  %v3988_v5 = vmax.f32 %v3760_v62, 0.0  ;;  %v2165_v7 = vpop.permute.xlu1 %2164 }
 0x233   :  { %v4291_v53 = vrot.slane %v4277_v63, %v11020_v6  ;;  %v4292_v9 = vcombine.high %v4284_v8, %v4284_v8  ;;  %5492 = vst.msk [vmem:[#allocation4 + $0x50] sm:$0x3] %vm13774_vm12, %v4284_v8  ;;  %v4294_v10 = vcombine.high %v3990_v52, %v3990_v52  ;;  %v4301_v19 = vrot.slane %v3990_v52, %v11020_v6  ;;  %v2163_v24 = vpop.permute.xlu0 %2162 }
 0x234   :  { %2330 = vst.msk [vmem:[#allocation3 + $0xd8] sm:$0xff] %vm13776_vm8, %v2165_v7  ;;  %v4257_v11 = vrot.slane %v4243_v40, %v11020_v6  ;;  %v4258_v12 = vcombine.high %v4250_v4, %v4250_v4  ;;  %v4260_v13 = vcombine.high %v3988_v5, %v3988_v5  ;;  %v4267_v43 = vrot.slane %v3988_v5, %v11020_v6 }
 0x235   :  { %5484 = vst.msk [vmem:[#allocation4 + $0x40] sm:$0x3] %vm13774_vm12, %v4250_v4  ;;  %1791 = vrot.lane.b32.xlu1 %v11335_v22, %s9737_s25  ;;  %v4293_v0 = vcombine.high %v4291_v53, %v4291_v53  ;;  %5493 = vst.msk [vmem:[#allocation4 + $0x52] sm:$0x3] %vm13774_vm12, %v4292_v9  ;;  %v4308_v14 = vrot.slane %v4294_v10, %v11020_v6  ;;  %v4309_v15 = vcombine.high %v4301_v19, %v4301_v19 }
 0x236   :  { %2329 = vst.msk [vmem:[#allocation3 + $0xd0] sm:$0xff] %vm13776_vm8, %v2163_v24  ;;  %1789 = vrot.lane.b32.xlu0 %v11337_v46, %s9737_s25  ;;  %v4259_v44 = vcombine.high %v4257_v11, %v4257_v11  ;;  %v4274_v1 = vrot.slane %v4260_v13, %v11020_v6  ;;  %v4275_v18 = vcombine.high %v4267_v43, %v4267_v43  ;;  %v2547_v39 = vpop.permute.xlu1 %2546 }
 0x237   :  { %5494 = vst.msk [vmem:[#allocation4 + $0x54] sm:$0x3] %vm13774_vm12, %v4291_v53  ;;  %5496 = vst.msk [vmem:[#allocation4 + $0x58] sm:$0x3] %vm13774_vm12, %v4301_v19  ;;  %v4310_v20 = vcombine.high %v4308_v14, %v4308_v14  ;;  %v2545_v16 = vpop.permute.xlu0 %2544 }
 0x238   :  { %5485 = vst.msk [vmem:[#allocation4 + $0x42] sm:$0x3] %vm13774_vm12, %v4258_v12  ;;  %5486 = vst.msk [vmem:[#allocation4 + $0x44] sm:$0x3] %vm13774_vm12, %v4257_v11  ;;  %v4276_v21 = vcombine.high %v4274_v1, %v4274_v1 }
 0x239   :  { %5488 = vst.msk [vmem:[#allocation4 + $0x48] sm:$0x3] %vm13774_vm12, %v4267_v43  ;;  %5495 = vst.msk [vmem:[#allocation4 + $0x56] sm:$0x3] %vm13774_vm12, %v4293_v0  ;;  %1795 = vrot.lane.b32.xlu1 %v11408_v17, %s9737_s25 }
 0x23a   :  { %5497 = vst.msk [vmem:[#allocation4 + $0x5a] sm:$0x3] %vm13774_vm12, %v4309_v15  ;;  %5498 = vst.msk [vmem:[#allocation4 + $0x5c] sm:$0x3] %vm13774_vm12, %v4308_v14  ;;  %1793 = vrot.lane.b32.xlu0 %v11414_v42, %s9737_s25  ;;  %v5748_v22 = vld [vmem:[#allocation4 + $0x50] sm:$0x1]  ;;  %v2551_v23 = vpop.permute.xlu1 %2550 }
 0x23b   :  { %2714 = vst.msk [vmem:[#allocation3 + $0xc8] sm:$0xff] %vm13787_vm9, %v2547_v39  ;;  %v6004_v3 = vld [vmem:[#allocation4 + $0x51] sm:$0x1]  ;;  %2716 = vst.msk [vmem:[#allocation3 + $0xd8] sm:$0xff] %vm13787_vm9, %v2551_v23 }
 0x23c   :  { %5487 = vst.msk [vmem:[#allocation4 + $0x46] sm:$0x3] %vm13774_vm12, %v4259_v44  ;;  %5489 = vst.msk [vmem:[#allocation4 + $0x4a] sm:$0x3] %vm13774_vm12, %v4275_v18  ;;  %v5740_v46 = vld [vmem:[#allocation4 + $0x40] sm:$0x1]  ;;  %v2549_v29 = vpop.permute.xlu0 %2548  ;;  %v6260_v33 = vmax.f32 %v5748_v22, %v6004_v3 }
 0x23d   :  { %5490 = vst.msk [vmem:[#allocation4 + $0x4c] sm:$0x3] %vm13774_vm12, %v4274_v1  ;;  %5499 = vst.msk [vmem:[#allocation4 + $0x5e] sm:$0x3] %vm13774_vm12, %v4310_v20  ;;  %v5996_v47 = vld [vmem:[#allocation4 + $0x41] sm:$0x1]  ;;  %2176 = vrot.lane.b32.xlu1 %v11349_v32, %s9738_s30 }
 0x23e   :  { %2713 = vst.msk [vmem:[#allocation3 + $0xc0] sm:$0xff] %vm13788_vm10, %v2545_v16  ;;  %v5749_v26 = vld [vmem:[#allocation4 + $0x52] sm:$0x1]  ;;  %v5750_v35 = vld [vmem:[#allocation4 + $0x54] sm:$0x1]  ;;  %vm13789_vm10 = vmmov %vm13787_vm9  ;;  %2174 = vrot.lane.b32.xlu0 %v11351_v30, %s9738_s30  ;;  %v2932_v49 = vpop.permute.xlu1 %2931  ;;  %v6252_v32 = vmax.f32 %v5740_v46, %v5996_v47  ;;  %vm13790_vm9 = vcmask 195752  }
 0x23f   :  { %5491 = vst.msk [vmem:[#allocation4 + $0x4e] sm:$0x3] %vm13774_vm12, %v4276_v21  ;;  %v6005_v27 = vld [vmem:[#allocation4 + $0x53] sm:$0x1]  ;;  %v6006_v28 = vld [vmem:[#allocation4 + $0x55] sm:$0x1] }
 0x240   :  { %2715 = vst.msk [vmem:[#allocation3 + $0xd0] sm:$0xff] %vm13789_vm10, %v2549_v29  ;;  %v6261_v41 = vmax.f32 %v5749_v26, %v6005_v27  ;;  %v5741_v45 = vld [vmem:[#allocation4 + $0x42] sm:$0x1]  ;;  %v5742_v48 = vld [vmem:[#allocation4 + $0x44] sm:$0x1]  ;;  %v6262_v34 = vmax.f32 %v5750_v35, %v6006_v28  ;;  %v2930_v37 = vpop.permute.xlu0 %2929  ;;  %vm13791_vm10 = vmmov %vm13790_vm9  ;;  %v6492_v12 = vmax.f32 %v6252_v32, %v6260_v33  ;;  %vm13793_vm12 = vcmask 1041409  }
 0x241   :  { %v5751_v58 = vld [vmem:[#allocation4 + $0x56] sm:$0x1]  ;;  %v6007_v50 = vld [vmem:[#allocation4 + $0x57] sm:$0x1]  ;;  %v5997_v59 = vld [vmem:[#allocation4 + $0x43] sm:$0x1]  ;;  %2180 = vrot.lane.b32.xlu1 %v11431_v25, %s9738_s30 }
 0x242   :  { %v6263_v54 = vmax.f32 %v5751_v58, %v6007_v50  ;;  %v5998_v38 = vld [vmem:[#allocation4 + $0x45] sm:$0x1]  ;;  %v6253_v61 = vmax.f32 %v5741_v45, %v5997_v59  ;;  %3099 = vst.msk [vmem:[#allocation3 + $0xc8] sm:$0xff] %vm13790_vm9, %v2932_v49  ;;  %v5752_v8 = vld [vmem:[#allocation4 + $0x58] sm:$0x1]  ;;  %2178 = vrot.lane.b32.xlu0 %v11436_v36, %s9738_s30  ;;  %v2936_v11 = vpop.permute.xlu1 %2935 }
 0x243   :  { %v5743_v56 = vld [vmem:[#allocation4 + $0x46] sm:$0x1]  ;;  %v5999_v60 = vld [vmem:[#allocation4 + $0x47] sm:$0x1]  ;;  %v6254_v62 = vmax.f32 %v5742_v48, %v5998_v38  ;;  %v5753_v52 = vld [vmem:[#allocation4 + $0x5a] sm:$0x1] }
 0x244   :  { %v6255_v63 = vmax.f32 %v5743_v56, %v5999_v60  ;;  %v5754_v30 = vld [vmem:[#allocation4 + $0x5c] sm:$0x1]  ;;  %3098 = vst.msk [vmem:[#allocation3 + $0xc0] sm:$0xff] %vm13791_vm10, %v2930_v37  ;;  %v6493_v40 = vmax.f32 %v6253_v61, %v6261_v41  ;;  %v5755_v4 = vld [vmem:[#allocation4 + $0x5e] sm:$0x1]  ;;  %v2934_v44 = vpop.permute.xlu0 %2933  ;;  %v11447_v1 = vld [vmem:[#allocation2 + $0x200] sm:$0xff] }
 0x245   :  { %v6008_v5 = vld [vmem:[#allocation4 + $0x59] sm:$0x1]  ;;  %v6009_v7 = vld [vmem:[#allocation4 + $0x5b] sm:$0x1]  ;;  %v6494_v53 = vmax.f32 %v6254_v62, %v6262_v34  ;;  %v6010_v10 = vld [vmem:[#allocation4 + $0x5d] sm:$0x1]  ;;  %2562 = vrot.lane.b32.xlu1 %v11369_v55, %s9739_s22 }
 0x246   :  { %v6495_v9 = vmax.f32 %v6255_v63, %v6263_v54  ;;  %v6011_v19 = vld [vmem:[#allocation4 + $0x5f] sm:$0x1]  ;;  %v5744_v24 = vld [vmem:[#allocation4 + $0x48] sm:$0x1]  ;;  %v6811_v13 = vrot.slane %v6493_v40, 7  ;;  %v6264_v43 = vmax.f32 %v5752_v8, %v6008_v5  ;;  %v6265_v0 = vmax.f32 %v5753_v52, %v6009_v7  ;;  %3101 = vst.msk [vmem:[#allocation3 + $0xd8] sm:$0xff] %vm13790_vm9, %v2936_v11  ;;  %vm13792_vm10 = vmmov %vm13790_vm9  ;;  %2560 = vrot.lane.b32.xlu0 %v11372_v51, %s9739_s22  ;;  %v3317_v41 = vpop.permute.xlu1 %3316 }
 0x247   :  { %v5745_v14 = vld [vmem:[#allocation4 + $0x4a] sm:$0x1]  ;;  %v5746_v15 = vld [vmem:[#allocation4 + $0x4c] sm:$0x1]  ;;  %v6813_v18 = vrot.slane %v6494_v53, 6  ;;  %v6266_v20 = vmax.f32 %v5754_v30, %v6010_v10  ;;  %v6267_v16 = vmax.f32 %v5755_v4, %v6011_v19  ;;  %3100 = vst.msk [vmem:[#allocation3 + $0xd0] sm:$0xff] %vm13792_vm10, %v2934_v44 }
 0x248   :  { %v6815_v39 = vrot.slane %v6495_v9, 5  ;;  %v5747_v21 = vld [vmem:[#allocation4 + $0x4e] sm:$0x1]  ;;  %v6000_v22 = vld [vmem:[#allocation4 + $0x49] sm:$0x1]  ;;  %v6812_v23 = vsel %vm13793_vm12, %v6811_v13, %v6492_v12  ;;  %vm13794_vm9 = vcmask 1042434   ;;  %v3315_v55 = vpop.permute.xlu0 %3314 }
 0x249   :  { %v6001_v3 = vld [vmem:[#allocation4 + $0x4b] sm:$0x1]  ;;  %v6002_v46 = vld [vmem:[#allocation4 + $0x4d] sm:$0x1]  ;;  %v6003_v47 = vld [vmem:[#allocation4 + $0x4f] sm:$0x1]  ;;  %v6256_v29 = vmax.f32 %v5744_v24, %v6000_v22  ;;  %v6814_v26 = vsel %vm13794_vm9, %v6813_v18, %v6812_v23  ;;  %2566 = vrot.lane.b32.xlu1 %v11447_v1, %s9739_s22 }
 0x24a   :  { %v6257_v35 = vmax.f32 %v5745_v14, %v6001_v3  ;;  %v6258_v27 = vmax.f32 %v5746_v15, %v6002_v46  ;;  %v6259_v28 = vmax.f32 %v5747_v21, %v6003_v47  ;;  %v11456_v45 = vld [vmem:[#allocation2 + $0x1f8] sm:$0xff]  ;;  %3484 = vst.msk [vmem:[#allocation3 + $0xc8] sm:$0xff] %vm3458_vm11, %v3317_v41  ;;  %v165_v58 = vld [vmem:[%s13758_s0 + $0x160] sm:$0xff]  ;;  %v166_v51 = vld [vmem:[%s13758_s0 + $0x168] sm:$0xff]  ;;  %v6816_v49 = vsel %vm6783_vm3, %v6815_v39, %v6814_v26  ;;  %v629_v56 = vpop.permute.xlu1 %628 }
 0x24b   :  { %v6496_v48 = vmax.f32 %v6256_v29, %v6264_v43  ;;  %3483 = vst.msk [vmem:[#allocation3 + $0xc0] sm:$0xff] %vm3458_vm11, %v3315_v55  ;;  %2564 = vrot.lane.b32.xlu0 %v11456_v45, %s9739_s22  ;;  %v351_v38 = vld [vmem:[#allocation2 + $0x1e8] sm:$0xff]  ;;  %v350_v37 = vld [vmem:[#allocation2 + $0x1e0] sm:$0xff]  ;;  %v352_v11 = vld [vmem:[#allocation2 + $0x1f8] sm:$0xff]  ;;  %vm13795_vm12 = vcmask 123904  }
 0x24c   :  { %v6497_v50 = vmax.f32 %v6257_v35, %v6265_v0  ;;  %v6498_v34 = vmax.f32 %v6258_v27, %v6266_v20  ;;  %v6499_v59 = vmax.f32 %v6259_v28, %v6267_v16  ;;  %229 = vst.msk [vmem:[#allocation2 + $0x259] sm:$0xff] %vm40_vm0, %v165_v58  ;;  %230 = vst.msk [vmem:[#allocation2 + $0x261] sm:$0xff] %vm40_vm0, %v166_v51  ;;  %v627_v61 = vpop.permute.xlu0 %626  ;;  %v11484_v52 = vld [vmem:[#allocation2 + $0x201] sm:$0xff]  ;;  %v11487_v4 = vld [vmem:[#allocation2 + $0x1f9] sm:$0xff] }
 0x24d   :  { %v6817_v33 = vrot.slane %v6496_v48, 4  ;;  %792 = vst.msk [vmem:[#allocation3 + $0xe8] sm:$0xff] %vm762_vm4, %v629_v56  ;;  %791 = vst.msk [vmem:[#allocation3 + $0xe0] sm:$0xff] %vm762_vm4, %v627_v61  ;;  %2947 = vrot.lane.b32.xlu1 %v11408_v17, %s9740_s29  ;;  %v353_v19 = vld [vmem:[#allocation2 + $0x200] sm:$0xff]  ;;  %v11547_v28 = vld [vmem:[#allocation2 + $0x218] sm:$0xff] }
 0x24e   :  { %v6819_v54 = vrot.slane %v6497_v50, 3  ;;  %v6821_v32 = vrot.slane %v6498_v34, 2  ;;  %415 = vst.msk [vmem:[#allocation3 + $0x128] sm:$0xff] %vm40_vm0, %v351_v38  ;;  %v6823_v63 = vrot.slane %v6499_v59, 1  ;;  %414 = vst.msk [vmem:[#allocation3 + $0x120] sm:$0xff] %vm40_vm0, %v350_v37  ;;  %v3321_v40 = vpop.permute.xlu1 %3320  ;;  %v11511_v18 = vld [vmem:[#allocation2 + $0x202] sm:$0xff] }
 0x24f   :  { %v6818_v60 = vsel %vm6786_vm14, %v6817_v33, %v6816_v49  ;;  %2945 = vrot.lane.b32.xlu0 %v11414_v42, %s9740_s29  ;;  %3486 = vst.msk [vmem:[#allocation3 + $0xd8] sm:$0xff] %vm3458_vm11, %v3321_v40  ;;  %v11514_v20 = vld [vmem:[#allocation2 + $0x1fa] sm:$0xff]  ;;  %v11550_v58 = vld [vmem:[#allocation2 + $0x210] sm:$0xff]  ;;  %vm13796_vm10 = vmmov %vm13795_vm12 }
 0x250   :  { %v6820_v62 = vsel %vm6789_vm15, %v6819_v54, %v6818_v60  ;;  %v3319_v7 = vpop.permute.xlu0 %3318  ;;  %417 = vst.msk [vmem:[#allocation3 + $0x138] sm:$0xff] %vm40_vm0, %v353_v19  ;;  %416 = vst.msk [vmem:[#allocation3 + $0x130] sm:$0xff] %vm40_vm0, %v352_v11  ;;  %v167_v51 = vld [vmem:[%s13758_s0 + $0x170] sm:$0xff] }
 0x251   :  { %v6822_v8 = vsel %vm13783_vm2, %v6821_v32, %v6820_v62  ;;  %v3548_v5 = vld [vmem:[#allocation3 + $0xc8] sm:$0xff]  ;;  %3485 = vst.msk [vmem:[#allocation3 + $0xd0] sm:$0xff] %vm3458_vm11, %v3319_v7  ;;  %2951 = vrot.lane.b32.xlu1 %v11484_v52, %s9740_s29  ;;  %vm13797_vm9 = vmmov %vm13796_vm10 }
 0x252   :  { %v6824_v30 = vsel %vm13780_vm1, %v6823_v63, %v6822_v8  ;;  %v3547_v53 = vld [vmem:[#allocation3 + $0xc0] sm:$0xff]  ;;  %v633_v10 = vpop.permute.xlu1 %632  ;;  %231 = vst.msk [vmem:[#allocation2 + $0x271] sm:$0xff] %vm40_vm0, %v167_v51 }
 0x253   :  { %7025 = vst.msk [vmem:[#allocation5 + $0x31] sm:$0xff] %vm13779_vm13, %v6824_v30  ;;  %v3599_v9 = vpack.c.bf16 %v3548_v5, %v3547_v53  ;;  %2949 = vrot.lane.b32.xlu0 %v11487_v4, %s9740_s29 }
 0x254   :  { %794 = vst.msk [vmem:[#allocation3 + $0xf8] sm:$0xff] %vm762_vm4, %v633_v10  ;;  %v631_v24 = vpop.permute.xlu0 %630 }
 0x255   :  { %9530 = vmatprep.mubr.bf16.mxu0 %v3599_v9  ;;  %793 = vst.msk [vmem:[#allocation3 + $0xf0] sm:$0xff] %vm762_vm4, %v631_v24  ;;  %3332 = vrot.lane.b32.xlu1 %v11431_v25, %s9741_s16  ;;  %v11586_v24 = vld [vmem:[#allocation2 + $0x219] sm:$0xff] }
 0x256   :  { %v1014_v12 = vpop.permute.xlu1 %1013  ;;  %v3550_v13 = vld [vmem:[#allocation3 + $0xd8] sm:$0xff] }
 0x257   :  { %3330 = vrot.lane.b32.xlu0 %v11436_v36, %s9741_s16  ;;  %1177 = vst.msk [vmem:[#allocation3 + $0xe8] sm:$0xff] %vm13778_vm5, %v1014_v12 }
 0x258   :  { %v1012_v0 = vpop.permute.xlu0 %1011  ;;  %v3549_v14 = vld [vmem:[#allocation3 + $0xd0] sm:$0xff] }
 0x259   :  { %1176 = vst.msk [vmem:[#allocation3 + $0xe0] sm:$0xff] %vm13778_vm5, %v1012_v0  ;;  %644 = vrot.lane.b32.xlu1 %v11408_v17, %s9734_s18  ;;  %v3600_v15 = vpack.c.bf16 %v3550_v13, %v3549_v14  ;;  %v7801_v17 = vld [vmem:[#allocation6 + $0x8] sm:$0xff] }
 0x25a   :  { %v7769_v43 = vld [vmem:[#allocation5 + $0x32] sm:$0xff]  ;;  %v1018_v39 = vpop.permute.xlu1 %1017 }
 0x25b   :  { %7785 = vst.msk [vmem:[#allocation6 + $0x18] sm:$0xff] %vm13779_vm13, %v7769_v43  ;;  %v7059_v44 = vld [vmem:[#allocation5 + $0x30] sm:$0xff]  ;;  %642 = vrot.lane.b32.xlu0 %v11414_v42, %s9734_s18  ;;  %9531 = vmatmul.mubr.bf16.gmra.mrb[24].mxu0 %v3600_v15 }
 0x25c   :  { %7075 = vst.msk [vmem:[#allocation6 + $0x30] sm:$0xff] %vm13779_vm13, %v7059_v44  ;;  %v1016_v16 = vpop.permute.xlu0 %1015  ;;  %v11592_v43 = vld [vmem:[#allocation2 + $0x211] sm:$0xff] }
 0x25d   :  { %1179 = vst.msk [vmem:[#allocation3 + $0xf8] sm:$0xff] %vm13778_vm5, %v1018_v39  ;;  %1178 = vst.msk [vmem:[#allocation3 + $0xf0] sm:$0xff] %vm13778_vm5, %v1016_v16  ;;  %3336 = vrot.lane.b32.xlu1 %v11511_v18, %s9741_s16  ;;  %vm13805_vm5 = vcmask 171152  }
 0x25e   :  { %v1399_v21 = vpop.permute.xlu1 %1398 }
 0x25f   :  { %3334 = vrot.lane.b32.xlu0 %v11514_v20, %s9741_s16  ;;  %1562 = vst.msk [vmem:[#allocation3 + $0xe8] sm:$0xff] %vm13777_vm6, %v1399_v21  ;;  %v11609_v21 = vld [vmem:[#allocation2 + $0x21a] sm:$0xff] }
 0x260   :  { %v1397_v23 = vpop.permute.xlu0 %1396 }
 0x261   :  { %1561 = vst.msk [vmem:[#allocation3 + $0xe0] sm:$0xff] %vm13777_vm6, %v1397_v23  ;;  %648 = vrot.lane.b32.xlu1 %v11484_v52, %s9734_s18 }
 0x262   :  { %v7803_v42 = vld [vmem:[#allocation6 + $0x18] sm:$0xff]  ;;  %v1403_v3 = vpop.permute.xlu1 %1402 }
 0x263   :  { %v7833_v22 = vpack.c.bf16 %v7803_v42, %v7801_v17  ;;  %646 = vrot.lane.b32.xlu0 %v11487_v4, %s9734_s18  ;;  %1564 = vst.msk [vmem:[#allocation3 + $0xf8] sm:$0xff] %vm13777_vm6, %v1403_v3 }
 0x264   :  { %v1401_v46 = vpop.permute.xlu0 %1400 }
 0x265   :  { %8015 = vmatprep.mubr.bf16.mxu1 %v7833_v22  ;;  %1563 = vst.msk [vmem:[#allocation3 + $0xf0] sm:$0xff] %vm13777_vm6, %v1401_v46  ;;  %1029 = vrot.lane.b32.xlu1 %v11431_v25, %s9735_s19  ;;  %v11614_v46 = vld [vmem:[#allocation2 + $0x212] sm:$0xff] }
 0x266   :  { %v1784_v47 = vpop.permute.xlu1 %1783 }
 0x267   :  { %1027 = vrot.lane.b32.xlu0 %v11436_v36, %s9735_s19  ;;  %1947 = vst.msk [vmem:[#allocation3 + $0xe8] sm:$0xff] %vm13775_vm7, %v1784_v47 }
 0x268   :  { %v1782_v29 = vpop.permute.xlu0 %1781 }
 0x269   :  { %1946 = vst.msk [vmem:[#allocation3 + $0xe0] sm:$0xff] %vm13775_vm7, %v1782_v29  ;;  %1033 = vrot.lane.b32.xlu1 %v11511_v18, %s9735_s19 }
 0x26a   :  { %v1788_v26 = vpop.permute.xlu1 %1787 }
 0x26b   :  { %1031 = vrot.lane.b32.xlu0 %v11514_v20, %s9735_s19  ;;  %1949 = vst.msk [vmem:[#allocation3 + $0xf8] sm:$0xff] %vm13775_vm7, %v1788_v26 }
 0x26c   :  { %v1786_v35 = vpop.permute.xlu0 %1785  ;;  %v9520_v25 = vpop.f32.mrb[12].mxu0 }
 0x26d   :  { %1948 = vst.msk [vmem:[#allocation3 + $0xf0] sm:$0xff] %vm13775_vm7, %v1786_v35  ;;  %1414 = vrot.lane.b32.xlu1 %v11447_v1, %s9736_s24  ;;  %v3781_v36 = vadd.f32 %v11366_v57, %v9520_v25  ;;  %v3772_v27 = vpop.f32.mrb[13].mxu0  ;;  %v168_v1 = vld [vmem:[%s13758_s0 + $0x178] sm:$0xff]  ;;  %vm13799_vm7 = vmmov %vm13797_vm9 }
 0x26e   :  { %v3773_v41 = vadd.f32 %v11366_v57, %v3772_v27  ;;  %v2169_v48 = vpop.permute.xlu1 %2168  ;;  %v9521_v55 = vpop.f32.mrb[14].mxu0  ;;  %232 = vst.msk [vmem:[#allocation2 + $0x279] sm:$0xff] %vm40_vm0, %v168_v1  ;;  %vm13804_vm6 = vmmov %vm13799_vm7 }
 0x26f   :  { %1412 = vrot.lane.b32.xlu0 %v11456_v45, %s9736_s24  ;;  %v3993_v45 = vmax.f32 %v3781_v36, 0.0  ;;  %2332 = vst.msk [vmem:[#allocation3 + $0xe8] sm:$0xff] %vm13776_vm8, %v2169_v48  ;;  %v3784_v34 = vadd.f32 %v11366_v57, %v9521_v55  ;;  %v3775_v59 = vpop.f32.mrb[15].mxu0  ;;  %vm13808_vm13 = vmmov %vm13804_vm6 }
 0x270   :  { %v2167_v50 = vpop.permute.xlu0 %2166  ;;  %v3991_v49 = vmax.f32 %v3773_v41, 0.0  ;;  %v3776_v33 = vadd.f32 %v11366_v57, %v3775_v59 }
 0x271   :  { %2331 = vst.msk [vmem:[#allocation3 + $0xe0] sm:$0xff] %vm13776_vm8, %v2167_v50  ;;  %1418 = vrot.lane.b32.xlu1 %v11547_v28, %s9736_s24  ;;  %v4345_v54 = vcombine.high %v3993_v45, %v3993_v45  ;;  %v4352_v56 = vrot.slane %v3993_v45, %v11020_v6  ;;  %v3994_v38 = vmax.f32 %v3784_v34, 0.0 }
 0x272   :  { %v4311_v60 = vcombine.high %v3991_v49, %v3991_v49  ;;  %v4318_v32 = vrot.slane %v3991_v49, %v11020_v6  ;;  %v3992_v61 = vmax.f32 %v3776_v33, 0.0  ;;  %v2173_v37 = vpop.permute.xlu1 %2172 }
 0x273   :  { %1416 = vrot.lane.b32.xlu0 %v11550_v58, %s9736_s24  ;;  %v4359_v62 = vrot.slane %v4345_v54, %v11020_v6  ;;  %v4360_v63 = vcombine.high %v4352_v56, %v4352_v56  ;;  %5508 = vst.msk [vmem:[#allocation4 + $0x70] sm:$0x3] %vm13795_vm12, %v4352_v56  ;;  %v4362_v57 = vcombine.high %v3994_v38, %v3994_v38  ;;  %vm13798_vm12 = vmmov %vm13797_vm9 }
 0x274   :  { %v4369_v8 = vrot.slane %v3994_v38, %v11020_v6  ;;  %2334 = vst.msk [vmem:[#allocation3 + $0xf8] sm:$0xff] %vm13776_vm8, %v2173_v37  ;;  %v2171_v30 = vpop.permute.xlu0 %2170  ;;  %v4325_v40 = vrot.slane %v4311_v60, %v11020_v6  ;;  %v4326_v5 = vcombine.high %v4318_v32, %v4318_v32  ;;  %v4328_v7 = vcombine.high %v3992_v61, %v3992_v61 }
 0x275   :  { %5500 = vst.msk [vmem:[#allocation4 + $0x60] sm:$0x3] %vm13796_vm10, %v4318_v32  ;;  %v4335_v53 = vrot.slane %v3992_v61, %v11020_v6  ;;  %1799 = vrot.lane.b32.xlu1 %v11484_v52, %s9737_s25  ;;  %v4361_v9 = vcombine.high %v4359_v62, %v4359_v62  ;;  %v4376_v10 = vrot.slane %v4362_v57, %v11020_v6  ;;  %vm13800_vm10 = vmmov %vm13799_vm7 }
 0x276   :  { %2333 = vst.msk [vmem:[#allocation3 + $0xf0] sm:$0xff] %vm13776_vm8, %v2171_v30  ;;  %v4377_v19 = vcombine.high %v4369_v8, %v4369_v8  ;;  %v4327_v11 = vcombine.high %v4325_v40, %v4325_v40  ;;  %vm13801_vm8 = vmmov %vm13799_vm7  ;;  %v4342_v52 = vrot.slane %v4328_v7, %v11020_v6  ;;  %v2555_v13 = vpop.permute.xlu1 %2554 }
 0x277   :  { %5509 = vst.msk [vmem:[#allocation4 + $0x72] sm:$0x3] %vm13797_vm9, %v4360_v63  ;;  %1797 = vrot.lane.b32.xlu0 %v11487_v4, %s9737_s25  ;;  %v4343_v12 = vcombine.high %v4335_v53, %v4335_v53  ;;  %vm13802_vm9 = vmmov %vm13799_vm7  ;;  %v4378_v0 = vcombine.high %v4376_v10, %v4376_v10 }
 0x278   :  { %5510 = vst.msk [vmem:[#allocation4 + $0x74] sm:$0x3] %vm13798_vm12, %v4359_v62  ;;  %vm13803_vm12 = vmmov %vm13799_vm7  ;;  %v2553_v4 = vpop.permute.xlu0 %2552  ;;  %v4344_v14 = vcombine.high %v4342_v52, %v4342_v52 }
 0x279   :  { %5512 = vst.msk [vmem:[#allocation4 + $0x78] sm:$0x3] %vm13799_vm7, %v4369_v8  ;;  %5513 = vst.msk [vmem:[#allocation4 + $0x7a] sm:$0x3] %vm13799_vm7, %v4377_v19  ;;  %1803 = vrot.lane.b32.xlu1 %v11586_v24, %s9737_s25  ;;  %vm13814_vm7 = vcmask 195752  }
 0x27a   :  { %5501 = vst.msk [vmem:[#allocation4 + $0x62] sm:$0x3] %vm13800_vm10, %v4326_v5  ;;  %vm13806_vm10 = vmmov %vm13804_vm6  ;;  %v5764_v15 = vld [vmem:[#allocation4 + $0x70] sm:$0x1]  ;;  %v2559_v44 = vpop.permute.xlu1 %2558  ;;  %v6020_v39 = vld [vmem:[#allocation4 + $0x71] sm:$0x1] }
 0x27b   :  { %5502 = vst.msk [vmem:[#allocation4 + $0x64] sm:$0x3] %vm13801_vm8, %v4325_v40  ;;  %vm13807_vm8 = vmmov %vm13804_vm6  ;;  %1801 = vrot.lane.b32.xlu0 %v11592_v43, %s9737_s25  ;;  %v6276_v55 = vmax.f32 %v5764_v15, %v6020_v39 }
 0x27c   :  { %5504 = vst.msk [vmem:[#allocation4 + $0x68] sm:$0x3] %vm13802_vm9, %v4335_v53  ;;  %vm13809_vm9 = vmmov %vm13805_vm5  ;;  %v5756_v16 = vld [vmem:[#allocation4 + $0x60] sm:$0x1]  ;;  %v6012_v17 = vld [vmem:[#allocation4 + $0x61] sm:$0x1]  ;;  %v2557_v42 = vpop.permute.xlu0 %2556 }
 0x27d   :  { %5511 = vst.msk [vmem:[#allocation4 + $0x76] sm:$0x3] %vm13803_vm12, %v4361_v9  ;;  %vm13810_vm12 = vmmov %vm13804_vm6  ;;  %2184 = vrot.lane.b32.xlu1 %v11511_v18, %s9738_s30  ;;  %v6268_v18 = vmax.f32 %v5756_v16, %v6012_v17 }
 0x27e   :  { %5514 = vst.msk [vmem:[#allocation4 + $0x7c] sm:$0x3] %vm13804_vm6, %v4376_v10  ;;  %v5765_v22 = vld [vmem:[#allocation4 + $0x72] sm:$0x1]  ;;  %v6021_v3 = vld [vmem:[#allocation4 + $0x73] sm:$0x1]  ;;  %v2940_v48 = vpop.permute.xlu1 %2939 }
 0x27f   :  { %2718 = vst.msk [vmem:[#allocation3 + $0xe8] sm:$0xff] %vm13805_vm5, %v2555_v13  ;;  %vm13811_vm5 = vmmov %vm13804_vm6  ;;  %v5766_v23 = vld [vmem:[#allocation4 + $0x74] sm:$0x1]  ;;  %v6022_v47 = vld [vmem:[#allocation4 + $0x75] sm:$0x1]  ;;  %v6277_v29 = vmax.f32 %v5765_v22, %v6021_v3  ;;  %2182 = vrot.lane.b32.xlu0 %v11514_v20, %s9738_s30  ;;  %v6500_v40 = vmax.f32 %v6268_v18, %v6276_v55 }
 0x280   :  { %5503 = vst.msk [vmem:[#allocation4 + $0x66] sm:$0x3] %vm13806_vm10, %v4327_v11  ;;  %vm13812_vm6 = vmmov %vm13809_vm9  ;;  %v6278_v27 = vmax.f32 %v5766_v23, %v6022_v47  ;;  %v2938_v59 = vpop.permute.xlu0 %2937  ;;  %v5768_v54 = vld [vmem:[#allocation4 + $0x78] sm:$0x1]  ;;  %v5769_v56 = vld [vmem:[#allocation4 + $0x7a] sm:$0x1] }
 0x281   :  { %5505 = vst.msk [vmem:[#allocation4 + $0x6a] sm:$0x3] %vm13807_vm8, %v4343_v12  ;;  %v5757_v26 = vld [vmem:[#allocation4 + $0x62] sm:$0x1]  ;;  %v6013_v41 = vld [vmem:[#allocation4 + $0x63] sm:$0x1]  ;;  %vm13815_vm10 = vmmov %vm13814_vm7  ;;  %2188 = vrot.lane.b32.xlu1 %v11609_v21, %s9738_s30 }
 0x282   :  { %5506 = vst.msk [vmem:[#allocation4 + $0x6c] sm:$0x3] %vm13808_vm13, %v4342_v52  ;;  %vm13813_vm13 = vmmov %vm13812_vm6  ;;  %v5758_v35 = vld [vmem:[#allocation4 + $0x64] sm:$0x1]  ;;  %v6014_v45 = vld [vmem:[#allocation4 + $0x65] sm:$0x1]  ;;  %v6269_v34 = vmax.f32 %v5757_v26, %v6013_v41  ;;  %v2944_v30 = vpop.permute.xlu1 %2943 }
 0x283   :  { %2717 = vst.msk [vmem:[#allocation3 + $0xe0] sm:$0xff] %vm13809_vm9, %v2553_v4  ;;  %v6270_v49 = vmax.f32 %v5758_v35, %v6014_v45  ;;  %v6024_v32 = vld [vmem:[#allocation4 + $0x79] sm:$0x1]  ;;  %v6025_v61 = vld [vmem:[#allocation4 + $0x7b] sm:$0x1]  ;;  %2186 = vrot.lane.b32.xlu0 %v11614_v46, %s9738_s30  ;;  %vm13816_vm8 = vmmov %vm13814_vm7 }
 0x284   :  { %5515 = vst.msk [vmem:[#allocation4 + $0x7e] sm:$0x3] %vm13810_vm12, %v4378_v0  ;;  %v5767_v25 = vld [vmem:[#allocation4 + $0x76] sm:$0x1]  ;;  %v6023_v36 = vld [vmem:[#allocation4 + $0x77] sm:$0x1]  ;;  %v6501_v38 = vmax.f32 %v6269_v34, %v6277_v29  ;;  %v6280_v7 = vmax.f32 %v5768_v54, %v6024_v32  ;;  %v6281_v53 = vmax.f32 %v5769_v56, %v6025_v61  ;;  %v2942_v19 = vpop.permute.xlu0 %2941  ;;  %vm13817_vm9 = vmmov %vm13814_vm7 }
 0x285   :  { %5507 = vst.msk [vmem:[#allocation4 + $0x6e] sm:$0x3] %vm13811_vm5, %v4344_v14  ;;  %v6279_v51 = vmax.f32 %v5767_v25, %v6023_v36  ;;  %v5770_v20 = vld [vmem:[#allocation4 + $0x7c] sm:$0x1]  ;;  %v6502_v37 = vmax.f32 %v6270_v49, %v6278_v27  ;;  %v6026_v63 = vld [vmem:[#allocation4 + $0x7d] sm:$0x1]  ;;  %2570 = vrot.lane.b32.xlu1 %v11547_v28, %s9739_s22 }
 0x286   :  { %2720 = vst.msk [vmem:[#allocation3 + $0xf8] sm:$0xff] %vm13812_vm6, %v2559_v44  ;;  %v5760_v8 = vld [vmem:[#allocation4 + $0x68] sm:$0x1]  ;;  %v6825_v5 = vrot.slane %v6501_v38, 7  ;;  %v11625_v11 = vld [vmem:[#allocation2 + $0x230] sm:$0xff]  ;;  %v6282_v13 = vmax.f32 %v5770_v20, %v6026_v63  ;;  %vm13818_vm12 = vcmask 1041409   ;;  %v3325_v47 = vpop.permute.xlu1 %3324 }
 0x287   :  { %2719 = vst.msk [vmem:[#allocation3 + $0xf0] sm:$0xff] %vm13813_vm13, %v2557_v42  ;;  %v5759_v1 = vld [vmem:[#allocation4 + $0x66] sm:$0x1]  ;;  %v6015_v50 = vld [vmem:[#allocation4 + $0x67] sm:$0x1]  ;;  %v6827_v52 = vrot.slane %v6502_v37, 6  ;;  %2568 = vrot.lane.b32.xlu0 %v11550_v58, %s9739_s22 }
 0x288   :  { %3103 = vst.msk [vmem:[#allocation3 + $0xe8] sm:$0xff] %vm13814_vm7, %v2940_v48  ;;  %v6271_v33 = vmax.f32 %v5759_v1, %v6015_v50  ;;  %v5761_v9 = vld [vmem:[#allocation4 + $0x6a] sm:$0x1]  ;;  %v6016_v14 = vld [vmem:[#allocation4 + $0x69] sm:$0x1]  ;;  %v6826_v15 = vsel %vm13818_vm12, %v6825_v5, %v6500_v40  ;;  %vm13819_vm5 = vcmask 1042434   ;;  %v3323_v28 = vpop.permute.xlu0 %3322 }
 0x289   :  { %3102 = vst.msk [vmem:[#allocation3 + $0xe0] sm:$0xff] %vm13815_vm10, %v2938_v59  ;;  %v5762_v10 = vld [vmem:[#allocation4 + $0x6c] sm:$0x1]  ;;  %v6017_v44 = vld [vmem:[#allocation4 + $0x6b] sm:$0x1]  ;;  %v6272_v17 = vmax.f32 %v5760_v8, %v6016_v14  ;;  %v6828_v42 = vsel %vm13819_vm5, %v6827_v52, %v6826_v15  ;;  %v169_v35 = vld [vmem:[%s13758_s0 + $0x180] sm:$0xff]  ;;  %2574 = vrot.lane.b32.xlu1 %v11625_v11, %s9739_s22 }
 0x28a   :  { %v6503_v62 = vmax.f32 %v6271_v33, %v6279_v51  ;;  %3105 = vst.msk [vmem:[#allocation3 + $0xf8] sm:$0xff] %vm13816_vm8, %v2944_v30  ;;  %v6018_v39 = vld [vmem:[#allocation4 + $0x6d] sm:$0x1]  ;;  %v6273_v22 = vmax.f32 %v5761_v9, %v6017_v44  ;;  %v637_v51 = vpop.permute.xlu1 %636  ;;  %v355_v1 = vld [vmem:[#allocation2 + $0x218] sm:$0xff]  ;;  %v354_v18 = vld [vmem:[#allocation2 + $0x210] sm:$0xff]  ;;  %vm13820_vm6 = vcmask 130048  }
 0x28b   :  { %v5771_v60 = vld [vmem:[#allocation4 + $0x7e] sm:$0x1]  ;;  %v6027_v57 = vld [vmem:[#allocation4 + $0x7f] sm:$0x1]  ;;  %3104 = vst.msk [vmem:[#allocation3 + $0xf0] sm:$0xff] %vm13817_vm9, %v2942_v19  ;;  %v6274_v23 = vmax.f32 %v5762_v10, %v6018_v39  ;;  %v11634_v29 = vld [vmem:[#allocation2 + $0x228] sm:$0xff]  ;;  %v6504_v26 = vmax.f32 %v6272_v17, %v6280_v7 }
 0x28c   :  { %v6829_v12 = vrot.slane %v6503_v62, 5  ;;  %v6283_v0 = vmax.f32 %v5771_v60, %v6027_v57  ;;  %v5763_v4 = vld [vmem:[#allocation4 + $0x6e] sm:$0x1]  ;;  %v6019_v16 = vld [vmem:[#allocation4 + $0x6f] sm:$0x1]  ;;  %3488 = vst.msk [vmem:[#allocation3 + $0xe8] sm:$0xff] %vm3458_vm11, %v3325_v47  ;;  %v6505_v25 = vmax.f32 %v6273_v22, %v6281_v53  ;;  %2572 = vrot.lane.b32.xlu0 %v11634_v29, %s9739_s22  ;;  %v635_v50 = vpop.permute.xlu0 %634  ;;  %vm13823_vm10 = vmmov %vm13820_vm6 }
 0x28d   :  { %v6275_v3 = vmax.f32 %v5763_v4, %v6019_v16  ;;  %v170_v58 = vld [vmem:[%s13758_s0 + $0x188] sm:$0xff]  ;;  %v6506_v36 = vmax.f32 %v6274_v23, %v6282_v13  ;;  %3487 = vst.msk [vmem:[#allocation3 + $0xe0] sm:$0xff] %vm3458_vm11, %v3323_v28  ;;  %v6831_v48 = vrot.slane %v6504_v26, 4  ;;  %2955 = vrot.lane.b32.xlu1 %v11586_v24, %s9740_s29  ;;  %v11661_v33 = vld [vmem:[#allocation2 + $0x231] sm:$0xff]  ;;  %vm13821_vm13 = vcmask 72752   ;;  %vm13824_vm8 = vmmov %vm13820_vm6 }
 0x28e   :  { %233 = vst.msk [vmem:[#allocation2 + $0x289] sm:$0xff] %vm40_vm0, %v169_v35  ;;  %234 = vst.msk [vmem:[#allocation2 + $0x291] sm:$0xff] %vm40_vm0, %v170_v58  ;;  %v6830_v41 = vsel %vm6783_vm3, %v6829_v12, %v6828_v42  ;;  %v6833_v55 = vrot.slane %v6505_v25, 3  ;;  %v3329_v56 = vpop.permute.xlu1 %3328  ;;  %v11664_v20 = vld [vmem:[#allocation2 + $0x229] sm:$0xff]  ;;  %v11689_v19 = vld [vmem:[#allocation2 + $0x232] sm:$0xff]  ;;  %vm13827_vm5 = vcmask 97352  }
 0x28f   :  { %v6507_v27 = vmax.f32 %v6275_v3, %v6283_v0  ;;  %v6835_v45 = vrot.slane %v6506_v36, 2  ;;  %796 = vst.msk [vmem:[#allocation3 + $0x108] sm:$0xff] %vm762_vm4, %v637_v51  ;;  %v6832_v34 = vsel %vm6786_vm14, %v6831_v48, %v6830_v41  ;;  %795 = vst.msk [vmem:[#allocation3 + $0x100] sm:$0xff] %vm762_vm4, %v635_v50  ;;  %v357_v63 = vld [vmem:[#allocation2 + $0x230] sm:$0xff]  ;;  %v356_v8 = vld [vmem:[#allocation2 + $0x228] sm:$0xff] }
 0x290   :  { %419 = vst.msk [vmem:[#allocation3 + $0x148] sm:$0xff] %vm40_vm0, %v355_v1  ;;  %418 = vst.msk [vmem:[#allocation3 + $0x140] sm:$0xff] %vm40_vm0, %v354_v18  ;;  %v6834_v59 = vsel %vm6789_vm15, %v6833_v55, %v6832_v34  ;;  %2953 = vrot.lane.b32.xlu0 %v11592_v43, %s9740_s29  ;;  %v3327_v32 = vpop.permute.xlu0 %3326  ;;  %v11692_v12 = vld [vmem:[#allocation2 + $0x22a] sm:$0xff]  ;;  %v11733_v47 = vld [vmem:[#allocation2 + $0x240] sm:$0xff] }
 0x291   :  { %v6837_v49 = vrot.slane %v6507_v27, 1  ;;  %v6836_v54 = vsel %vm13783_vm2, %v6835_v45, %v6834_v59  ;;  %3490 = vst.msk [vmem:[#allocation3 + $0xf8] sm:$0xff] %vm3458_vm11, %v3329_v56  ;;  %3489 = vst.msk [vmem:[#allocation3 + $0xf0] sm:$0xff] %vm3458_vm11, %v3327_v32  ;;  %2959 = vrot.lane.b32.xlu1 %v11661_v33, %s9740_s29  ;;  %v11730_v42 = vld [vmem:[#allocation2 + $0x248] sm:$0xff]  ;;  %v171_v35 = vld [vmem:[%s13758_s0 + $0x190] sm:$0xff] }
 0x292   :  { %v641_v62 = vpop.permute.xlu1 %640  ;;  %421 = vst.msk [vmem:[#allocation3 + $0x158] sm:$0xff] %vm40_vm0, %v357_v63  ;;  %420 = vst.msk [vmem:[#allocation3 + $0x150] sm:$0xff] %vm40_vm0, %v356_v8  ;;  %v172_v58 = vld [vmem:[%s13758_s0 + $0x198] sm:$0xff] }
 0x293   :  { %v3552_v38 = vld [vmem:[#allocation3 + $0xe8] sm:$0xff]  ;;  %v6838_v60 = vsel %vm13780_vm1, %v6837_v49, %v6836_v54  ;;  %798 = vst.msk [vmem:[#allocation3 + $0x118] sm:$0xff] %vm762_vm4, %v641_v62  ;;  %vm13822_vm7 = vmmov %vm13821_vm13 }
 0x294   :  { %v3551_v61 = vld [vmem:[#allocation3 + $0xe0] sm:$0xff]  ;;  %7026 = vst.msk [vmem:[#allocation5 + $0x41] sm:$0xff] %vm13820_vm6, %v6838_v60  ;;  %2957 = vrot.lane.b32.xlu0 %v11664_v20, %s9740_s29  ;;  %v639_v57 = vpop.permute.xlu0 %638  ;;  %vm13825_vm9 = vmmov %vm13822_vm7  ;;  %v11769_v62 = vld [vmem:[#allocation2 + $0x249] sm:$0xff] }
 0x295   :  { %v3601_v37 = vpack.c.bf16 %v3552_v38, %v3551_v61  ;;  %797 = vst.msk [vmem:[#allocation3 + $0x110] sm:$0xff] %vm762_vm4, %v639_v57  ;;  %3340 = vrot.lane.b32.xlu1 %v11609_v21, %s9741_s16  ;;  %vm13826_vm12 = vmmov %vm13822_vm7 }
 0x296   :  { %v1022_v30 = vpop.permute.xlu1 %1021  ;;  %vm13828_vm6 = vmmov %vm13827_vm5  ;;  %235 = vst.msk [vmem:[#allocation2 + $0x2a1] sm:$0xff] %vm40_vm0, %v171_v35 }
 0x297   :  { %9534 = vmatprep.mubr.bf16.mxu0 %v3601_v37  ;;  %1181 = vst.msk [vmem:[#allocation3 + $0x108] sm:$0xff] %vm13821_vm13, %v1022_v30  ;;  %vm13829_vm13 = vmmov %vm13827_vm5  ;;  %v11775_v30 = vld [vmem:[#allocation2 + $0x241] sm:$0xff] }
 0x298   :  { %3338 = vrot.lane.b32.xlu0 %v11614_v46, %s9741_s16  ;;  %v3554_v40 = vld [vmem:[#allocation3 + $0xf8] sm:$0xff]  ;;  %v1020_v5 = vpop.permute.xlu0 %1019  ;;  %v3553_v7 = vld [vmem:[#allocation3 + $0xf0] sm:$0xff]  ;;  %236 = vst.msk [vmem:[#allocation2 + $0x2a9] sm:$0xff] %vm40_vm0, %v172_v58 }
 0x299   :  { %1180 = vst.msk [vmem:[#allocation3 + $0x100] sm:$0xff] %vm13822_vm7, %v1020_v5  ;;  %652 = vrot.lane.b32.xlu1 %v11586_v24, %s9734_s18  ;;  %v3602_v9 = vpack.c.bf16 %v3554_v40, %v3553_v7  ;;  %vm13830_vm7 = vmmov %vm13827_vm5 }
 0x29a   :  { %v1026_v52 = vpop.permute.xlu1 %1025 }
 0x29b   :  { %v7770_v53 = vld [vmem:[#allocation5 + $0x42] sm:$0xff]  ;;  %9535 = vmatmul.mubr.bf16.gmra.mrb[28].mxu0 %v3602_v9  ;;  %1183 = vst.msk [vmem:[#allocation3 + $0x118] sm:$0xff] %vm13825_vm9, %v1026_v52 }
 0x29c   :  { %7786 = vst.msk [vmem:[#allocation6 + $0x28] sm:$0xff] %vm13823_vm10, %v7770_v53  ;;  %v7060_v10 = vld [vmem:[#allocation5 + $0x40] sm:$0xff]  ;;  %650 = vrot.lane.b32.xlu0 %v11592_v43, %s9734_s18  ;;  %v1024_v13 = vpop.permute.xlu0 %1023  ;;  %vm13831_vm10 = vcmask 121952  }
 0x29d   :  { %7076 = vst.msk [vmem:[#allocation6 + $0x40] sm:$0xff] %vm13824_vm8, %v7060_v10  ;;  %3344 = vrot.lane.b32.xlu1 %v11689_v19, %s9741_s16  ;;  %vm13832_vm8 = vmmov %vm13831_vm10 }
 0x29e   :  { %1182 = vst.msk [vmem:[#allocation3 + $0x110] sm:$0xff] %vm13826_vm12, %v1024_v13  ;;  %v1407_v24 = vpop.permute.xlu1 %1406  ;;  %vm13833_vm9 = vmmov %vm13832_vm8 }
 0x29f   :  { %1566 = vst.msk [vmem:[#allocation3 + $0x108] sm:$0xff] %vm13827_vm5, %v1407_v24  ;;  %vm13834_vm12 = vmmov %vm13832_vm8  ;;  %vm13835_vm5 = vcmask 146552   ;;  %v11792_v24 = vld [vmem:[#allocation2 + $0x24a] sm:$0xff] }
 0x2a0   :  { %3342 = vrot.lane.b32.xlu0 %v11692_v12, %s9741_s16  ;;  %v1405_v43 = vpop.permute.xlu0 %1404 }
 0x2a1   :  { %1565 = vst.msk [vmem:[#allocation3 + $0x100] sm:$0xff] %vm13828_vm6, %v1405_v43  ;;  %656 = vrot.lane.b32.xlu1 %v11661_v33, %s9734_s18  ;;  %vm13836_vm6 = vmmov %vm13835_vm5 }
 0x2a2   :  { %v1411_v0 = vpop.permute.xlu1 %1410 }
 0x2a3   :  { %1568 = vst.msk [vmem:[#allocation3 + $0x118] sm:$0xff] %vm13829_vm13, %v1411_v0  ;;  %vm13837_vm13 = vcmask 123904  }
 0x2a4   :  { %654 = vrot.lane.b32.xlu0 %v11664_v20, %s9734_s18  ;;  %v1409_v4 = vpop.permute.xlu0 %1408 }
 0x2a5   :  { %1567 = vst.msk [vmem:[#allocation3 + $0x110] sm:$0xff] %vm13830_vm7, %v1409_v4  ;;  %1037 = vrot.lane.b32.xlu1 %v11609_v21, %s9735_s19  ;;  %vm13838_vm7 = vmmov %vm13835_vm5 }
 0x2a7   :  { %v1792_v14 = vpop.permute.xlu1 %1791 }
 0x2a8   :  { %1035 = vrot.lane.b32.xlu0 %v11614_v46, %s9735_s19  ;;  %1951 = vst.msk [vmem:[#allocation3 + $0x108] sm:$0xff] %vm13831_vm10, %v1792_v14  ;;  %v1790_v15 = vpop.permute.xlu0 %1789  ;;  %v11727_v46 = vld [vmem:[%s13760_s2] ss:$0 sm:$0xff]  ;;  %vm13839_vm10 = vmmov %vm13837_vm13  ;;  %v11797_v14 = vld [vmem:[#allocation2 + $0x242] sm:$0xff] }
 0x2a9   :  { %1950 = vst.msk [vmem:[#allocation3 + $0x100] sm:$0xff] %vm13832_vm8, %v1790_v15  ;;  %1041 = vrot.lane.b32.xlu1 %v11689_v19, %s9735_s19  ;;  %vm13840_vm8 = vmmov %vm13835_vm5 }
 0x2ab   :  { %v1796_v44 = vpop.permute.xlu1 %1795 }
 0x2ac   :  { %1039 = vrot.lane.b32.xlu0 %v11692_v12, %s9735_s19  ;;  %1953 = vst.msk [vmem:[#allocation3 + $0x118] sm:$0xff] %vm13833_vm9, %v1796_v44  ;;  %v1794_v39 = vpop.permute.xlu0 %1793  ;;  %v9524_v21 = vpop.f32.mrb[16].mxu0  ;;  %vm13841_vm9 = vmmov %vm13839_vm10 }
 0x2ad   :  { %1952 = vst.msk [vmem:[#allocation3 + $0x110] sm:$0xff] %vm13834_vm12, %v1794_v39  ;;  %1422 = vrot.lane.b32.xlu1 %v11625_v11, %s9736_s24  ;;  %v3797_v16 = vadd.f32 %v11727_v46, %v9524_v21  ;;  %v3788_v17 = vpop.f32.mrb[17].mxu0  ;;  %vm13842_vm12 = vmmov %vm13841_vm9 }
 0x2ae   :  { %v3789_v22 = vadd.f32 %v11727_v46, %v3788_v17  ;;  %v9525_v3 = vpop.f32.mrb[18].mxu0 }
 0x2af   :  { %v2177_v23 = vpop.permute.xlu1 %2176  ;;  %v3997_v11 = vmax.f32 %v3797_v16, 0.0  ;;  %v3800_v26 = vadd.f32 %v11727_v46, %v9525_v3  ;;  %v3791_v28 = vpop.f32.mrb[19].mxu0 }
 0x2b0   :  { %1420 = vrot.lane.b32.xlu0 %v11634_v29, %s9736_s24  ;;  %2336 = vst.msk [vmem:[#allocation3 + $0x108] sm:$0xff] %vm13835_vm5, %v2177_v23  ;;  %v2175_v29 = vpop.permute.xlu0 %2174  ;;  %v3995_v25 = vmax.f32 %v3789_v22, 0.0  ;;  %v3792_v36 = vadd.f32 %v11727_v46, %v3791_v28  ;;  %vm13843_vm5 = vmmov %vm13841_vm9 }
 0x2b1   :  { %2335 = vst.msk [vmem:[#allocation3 + $0x100] sm:$0xff] %vm13836_vm6, %v2175_v29  ;;  %1426 = vrot.lane.b32.xlu1 %v11730_v42, %s9736_s24  ;;  %v4413_v27 = vcombine.high %v3997_v11, %v3997_v11  ;;  %v4420_v41 = vrot.slane %v3997_v11, %v11020_v6  ;;  %v3998_v48 = vmax.f32 %v3800_v26, 0.0  ;;  %vm13844_vm6 = vmmov %vm13843_vm5 }
 0x2b2   :  { %v4379_v55 = vcombine.high %v3995_v25, %v3995_v25  ;;  %v4386_v51 = vrot.slane %v3995_v25, %v11020_v6  ;;  %v3996_v1 = vmax.f32 %v3792_v36, 0.0 }
 0x2b3   :  { %v2181_v45 = vpop.permute.xlu1 %2180  ;;  %v4427_v50 = vrot.slane %v4413_v27, %v11020_v6  ;;  %v4428_v18 = vcombine.high %v4420_v41, %v4420_v41  ;;  %5524 = vst.msk [vmem:[#allocation4 + $0x90] sm:$0x3] %vm13837_vm13, %v4420_v41  ;;  %v4430_v34 = vcombine.high %v3998_v48, %v3998_v48  ;;  %v4437_v59 = vrot.slane %v3998_v48, %v11020_v6  ;;  %vm13845_vm13 = vmmov %vm13843_vm5 }
 0x2b4   :  { %1424 = vrot.lane.b32.xlu0 %v11733_v47, %s9736_s24  ;;  %2338 = vst.msk [vmem:[#allocation3 + $0x118] sm:$0xff] %vm13838_vm7, %v2181_v45  ;;  %v2179_v49 = vpop.permute.xlu0 %2178  ;;  %v4393_v54 = vrot.slane %v4379_v55, %v11020_v6  ;;  %v4394_v56 = vcombine.high %v4386_v51, %v4386_v51  ;;  %v4396_v38 = vcombine.high %v3996_v1, %v3996_v1  ;;  %vm13846_vm7 = vmmov %vm13843_vm5 }
 0x2b5   :  { %5516 = vst.msk [vmem:[#allocation4 + $0x80] sm:$0x3] %vm13839_vm10, %v4386_v51  ;;  %v4403_v60 = vrot.slane %v3996_v1, %v11020_v6  ;;  %1807 = vrot.lane.b32.xlu1 %v11661_v33, %s9737_s25  ;;  %v4429_v32 = vcombine.high %v4427_v50, %v4427_v50  ;;  %v4444_v61 = vrot.slane %v4430_v34, %v11020_v6  ;;  %vm13847_vm10 = vmmov %vm13843_vm5 }
 0x2b6   :  { %2337 = vst.msk [vmem:[#allocation3 + $0x110] sm:$0xff] %vm13840_vm8, %v2179_v49  ;;  %v4445_v37 = vcombine.high %v4437_v59, %v4437_v59  ;;  %v4395_v63 = vcombine.high %v4393_v54, %v4393_v54  ;;  %v4410_v33 = vrot.slane %v4396_v38, %v11020_v6  ;;  %vm13848_vm8 = vmmov %vm13843_vm5 }
 0x2b7   :  { %5525 = vst.msk [vmem:[#allocation4 + $0x92] sm:$0x3] %vm13841_vm9, %v4428_v18  ;;  %v4411_v57 = vcombine.high %v4403_v60, %v4403_v60  ;;  %v2563_v8 = vpop.permute.xlu1 %2562  ;;  %v4446_v40 = vcombine.high %v4444_v61, %v4444_v61  ;;  %vm13849_vm9 = vmmov %vm13843_vm5 }
 0x2b8   :  { %5526 = vst.msk [vmem:[#allocation4 + $0x94] sm:$0x3] %vm13842_vm12, %v4427_v50  ;;  %1805 = vrot.lane.b32.xlu0 %v11664_v20, %s9737_s25  ;;  %vm13850_vm12 = vcmask 171152   ;;  %v2561_v20 = vpop.permute.xlu0 %2560  ;;  %v4412_v5 = vcombine.high %v4410_v33, %v4410_v33 }
 0x2b9   :  { %5528 = vst.msk [vmem:[#allocation4 + $0x98] sm:$0x3] %vm13843_vm5, %v4437_v59  ;;  %5519 = vst.msk [vmem:[#allocation4 + $0x86] sm:$0x3] %vm13843_vm5, %v4395_v63  ;;  %1811 = vrot.lane.b32.xlu1 %v11769_v62, %s9737_s25 }
 0x2ba   :  { %5517 = vst.msk [vmem:[#allocation4 + $0x82] sm:$0x3] %vm13844_vm6, %v4394_v56  ;;  %vm13851_vm6 = vmmov %vm13843_vm5  ;;  %v5780_v7 = vld [vmem:[#allocation4 + $0x90] sm:$0x1]  ;;  %v6036_v9 = vld [vmem:[#allocation4 + $0x91] sm:$0x1] }
 0x2bb   :  { %5518 = vst.msk [vmem:[#allocation4 + $0x84] sm:$0x3] %vm13845_vm13, %v4393_v54  ;;  %vm13852_vm13 = vmmov %vm13843_vm5  ;;  %v2567_v53 = vpop.permute.xlu1 %2566  ;;  %v6292_v11 = vmax.f32 %v5780_v7, %v6036_v9 }
 0x2bc   :  { %5520 = vst.msk [vmem:[#allocation4 + $0x88] sm:$0x3] %vm13846_vm7, %v4403_v60  ;;  %vm13853_vm7 = vmmov %vm13850_vm12  ;;  %1809 = vrot.lane.b32.xlu0 %v11775_v30, %s9737_s25  ;;  %v5772_v10 = vld [vmem:[#allocation4 + $0x80] sm:$0x1]  ;;  %v6028_v52 = vld [vmem:[#allocation4 + $0x81] sm:$0x1] }
 0x2bd   :  { %5527 = vst.msk [vmem:[#allocation4 + $0x96] sm:$0x3] %vm13847_vm10, %v4429_v32  ;;  %vm13854_vm10 = vmmov %vm13843_vm5  ;;  %v2565_v13 = vpop.permute.xlu0 %2564  ;;  %2192 = vrot.lane.b32.xlu1 %v11689_v19, %s9738_s30  ;;  %v6284_v19 = vmax.f32 %v5772_v10, %v6028_v52 }
 0x2be   :  { %5529 = vst.msk [vmem:[#allocation4 + $0x9a] sm:$0x3] %vm13848_vm8, %v4445_v37  ;;  %vm13855_vm8 = vmmov %vm13843_vm5  ;;  %v5781_v43 = vld [vmem:[#allocation4 + $0x92] sm:$0x1]  ;;  %v6037_v4 = vld [vmem:[#allocation4 + $0x93] sm:$0x1] }
 0x2bf   :  { %5530 = vst.msk [vmem:[#allocation4 + $0x9c] sm:$0x3] %vm13849_vm9, %v4444_v61  ;;  %vm13856_vm9 = vmmov %vm13853_vm7  ;;  %v5782_v0 = vld [vmem:[#allocation4 + $0x94] sm:$0x1]  ;;  %v6038_v15 = vld [vmem:[#allocation4 + $0x95] sm:$0x1]  ;;  %v6293_v44 = vmax.f32 %v5781_v43, %v6037_v4  ;;  %v2948_v3 = vpop.permute.xlu1 %2947  ;;  %v6508_v56 = vmax.f32 %v6284_v19, %v6292_v11 }
 0x2c0   :  { %2722 = vst.msk [vmem:[#allocation3 + $0x108] sm:$0xff] %vm13850_vm12, %v2563_v8  ;;  %vm13857_vm12 = vmmov %vm13853_vm7  ;;  %2190 = vrot.lane.b32.xlu0 %v11692_v12, %s9738_s30  ;;  %v6294_v22 = vmax.f32 %v5782_v0, %v6038_v15  ;;  %v5775_v26 = vld [vmem:[#allocation4 + $0x86] sm:$0x1]  ;;  %v6031_v35 = vld [vmem:[#allocation4 + $0x87] sm:$0x1]  ;;  %vm13858_vm5 = vcmask 195752  }
 0x2c1   :  { %5521 = vst.msk [vmem:[#allocation4 + $0x8a] sm:$0x3] %vm13851_vm6, %v4411_v57  ;;  %v5773_v39 = vld [vmem:[#allocation4 + $0x82] sm:$0x1]  ;;  %v6029_v23 = vld [vmem:[#allocation4 + $0x83] sm:$0x1]  ;;  %v2946_v25 = vpop.permute.xlu0 %2945  ;;  %v6287_v27 = vmax.f32 %v5775_v26, %v6031_v35  ;;  %vm13859_vm6 = vmmov %vm13858_vm5  ;;  %2196 = vrot.lane.b32.xlu1 %v11792_v24, %s9738_s30 }
 0x2c2   :  { %5522 = vst.msk [vmem:[#allocation4 + $0x8c] sm:$0x3] %vm13852_vm13, %v4410_v33  ;;  %v5774_v21 = vld [vmem:[#allocation4 + $0x84] sm:$0x1]  ;;  %v6030_v28 = vld [vmem:[#allocation4 + $0x85] sm:$0x1]  ;;  %v6285_v58 = vmax.f32 %v5773_v39, %v6029_v23  ;;  %vm13860_vm13 = vmmov %vm13858_vm5 }
 0x2c3   :  { %2721 = vst.msk [vmem:[#allocation3 + $0x100] sm:$0xff] %vm13853_vm7, %v2561_v20  ;;  %v6286_v36 = vmax.f32 %v5774_v21, %v6030_v28  ;;  %v5784_v41 = vld [vmem:[#allocation4 + $0x98] sm:$0x1]  ;;  %v6040_v1 = vld [vmem:[#allocation4 + $0x99] sm:$0x1]  ;;  %v2952_v54 = vpop.permute.xlu1 %2951  ;;  %v11808_v33 = vld [vmem:[#allocation2 + $0x260] sm:$0xff] }
 0x2c4   :  { %5531 = vst.msk [vmem:[#allocation4 + $0x9e] sm:$0x3] %vm13854_vm10, %v4446_v40  ;;  %v5783_v16 = vld [vmem:[#allocation4 + $0x96] sm:$0x1]  ;;  %v6039_v17 = vld [vmem:[#allocation4 + $0x97] sm:$0x1]  ;;  %v6509_v55 = vmax.f32 %v6285_v58, %v6293_v44  ;;  %2194 = vrot.lane.b32.xlu0 %v11797_v14, %s9738_s30  ;;  %v6296_v60 = vmax.f32 %v5784_v41, %v6040_v1  ;;  %vm13861_vm7 = vmmov %vm13858_vm5 }
 0x2c5   :  { %5523 = vst.msk [vmem:[#allocation4 + $0x8e] sm:$0x3] %vm13855_vm8, %v4412_v5  ;;  %v6295_v29 = vmax.f32 %v5783_v16, %v6039_v17  ;;  %v5785_v48 = vld [vmem:[#allocation4 + $0x9a] sm:$0x1]  ;;  %v6041_v45 = vld [vmem:[#allocation4 + $0x9b] sm:$0x1]  ;;  %v6510_v50 = vmax.f32 %v6286_v36, %v6294_v22  ;;  %v2950_v63 = vpop.permute.xlu0 %2949  ;;  %2578 = vrot.lane.b32.xlu1 %v11730_v42, %s9739_s22 }
 0x2c6   :  { %2724 = vst.msk [vmem:[#allocation3 + $0x118] sm:$0xff] %vm13856_vm9, %v2567_v53  ;;  %v5786_v12 = vld [vmem:[#allocation4 + $0x9c] sm:$0x1]  ;;  %v6042_v34 = vld [vmem:[#allocation4 + $0x9d] sm:$0x1]  ;;  %v6839_v38 = vrot.slane %v6509_v55, 7  ;;  %v6297_v32 = vmax.f32 %v5785_v48, %v6041_v45 }
 0x2c7   :  { %2723 = vst.msk [vmem:[#allocation3 + $0x110] sm:$0xff] %vm13857_vm12, %v2565_v13  ;;  %v6511_v18 = vmax.f32 %v6287_v27, %v6295_v29  ;;  %v5776_v49 = vld [vmem:[#allocation4 + $0x88] sm:$0x1]  ;;  %v6841_v57 = vrot.slane %v6510_v50, 6  ;;  %v6298_v40 = vmax.f32 %v5786_v12, %v6042_v34  ;;  %v6032_v7 = vld [vmem:[#allocation4 + $0x89] sm:$0x1]  ;;  %v3333_v44 = vpop.permute.xlu1 %3332 }
 0x2c8   :  { %3107 = vst.msk [vmem:[#allocation3 + $0x108] sm:$0xff] %vm13858_vm5, %v2948_v3  ;;  %v5777_v61 = vld [vmem:[#allocation4 + $0x8a] sm:$0x1]  ;;  %vm13862_vm10 = vcmask 1041409   ;;  %v6033_v9 = vld [vmem:[#allocation4 + $0x8b] sm:$0x1]  ;;  %v6288_v13 = vmax.f32 %v5776_v49, %v6032_v7  ;;  %2576 = vrot.lane.b32.xlu0 %v11733_v47, %s9739_s22 }
 0x2c9   :  { %3106 = vst.msk [vmem:[#allocation3 + $0x100] sm:$0xff] %vm13859_vm6, %v2946_v25  ;;  %v5778_v37 = vld [vmem:[#allocation4 + $0x8c] sm:$0x1]  ;;  %v6843_v8 = vrot.slane %v6511_v18, 5  ;;  %v6840_v53 = vsel %vm13862_vm10, %v6839_v38, %v6508_v56  ;;  %v6034_v10 = vld [vmem:[#allocation4 + $0x8d] sm:$0x1]  ;;  %v6289_v0 = vmax.f32 %v5777_v61, %v6033_v9  ;;  %v3331_v42 = vpop.permute.xlu0 %3330  ;;  %2582 = vrot.lane.b32.xlu1 %v11808_v33, %s9739_s22 }
 0x2ca   :  { %3109 = vst.msk [vmem:[#allocation3 + $0x118] sm:$0xff] %vm13860_vm13, %v2952_v54  ;;  %vm13863_vm8 = vcmask 1042434   ;;  %v6290_v4 = vmax.f32 %v5778_v37, %v6034_v10  ;;  %v11817_v39 = vld [vmem:[#allocation2 + $0x258] sm:$0xff]  ;;  %v6512_v21 = vmax.f32 %v6288_v13, %v6296_v60  ;;  %v173_v16 = vld [vmem:[%s13758_s0 + $0x1a0] sm:$0xff]  ;;  %v174_v47 = vld [vmem:[%s13758_s0 + $0x1a8] sm:$0xff]  ;;  %vm13864_vm9 = vcmask 130048  }
 0x2cb   :  { %v5787_v51 = vld [vmem:[#allocation4 + $0x9e] sm:$0x1]  ;;  %v6043_v59 = vld [vmem:[#allocation4 + $0x9f] sm:$0x1]  ;;  %3108 = vst.msk [vmem:[#allocation3 + $0x110] sm:$0xff] %vm13861_vm7, %v2950_v63  ;;  %v6842_v43 = vsel %vm13863_vm8, %v6841_v57, %v6840_v53  ;;  %v6513_v17 = vmax.f32 %v6289_v0, %v6297_v32  ;;  %v645_v26 = vpop.permute.xlu1 %644  ;;  %v359_v19 = vld [vmem:[#allocation2 + $0x248] sm:$0xff] }
 0x2cc   :  { %v6299_v20 = vmax.f32 %v5787_v51, %v6043_v59  ;;  %v5779_v5 = vld [vmem:[#allocation4 + $0x8e] sm:$0x1]  ;;  %v6035_v52 = vld [vmem:[#allocation4 + $0x8f] sm:$0x1]  ;;  %3492 = vst.msk [vmem:[#allocation3 + $0x108] sm:$0xff] %vm3458_vm11, %v3333_v44  ;;  %v6514_v22 = vmax.f32 %v6290_v4, %v6298_v40  ;;  %3491 = vst.msk [vmem:[#allocation3 + $0x100] sm:$0xff] %vm3458_vm11, %v3331_v42  ;;  %v6844_v3 = vsel %vm6783_vm3, %v6843_v8, %v6842_v43  ;;  %2580 = vrot.lane.b32.xlu0 %v11817_v39, %s9739_s22 }
 0x2cd   :  { %v6291_v15 = vmax.f32 %v5779_v5, %v6035_v52  ;;  %237 = vst.msk [vmem:[#allocation2 + $0x2b9] sm:$0xff] %vm40_vm0, %v173_v16  ;;  %v6845_v11 = vrot.slane %v6512_v21, 4  ;;  %238 = vst.msk [vmem:[#allocation2 + $0x2c1] sm:$0xff] %vm40_vm0, %v174_v47  ;;  %v6847_v29 = vrot.slane %v6513_v17, 3  ;;  %v643_v35 = vpop.permute.xlu0 %642  ;;  %v358_v58 = vld [vmem:[#allocation2 + $0x240] sm:$0xff]  ;;  %2963 = vrot.lane.b32.xlu1 %v11769_v62, %s9740_s29  ;;  %v360_v54 = vld [vmem:[#allocation2 + $0x258] sm:$0xff] }
 0x2ce   :  { %v6849_v28 = vrot.slane %v6514_v22, 2  ;;  %800 = vst.msk [vmem:[#allocation3 + $0x128] sm:$0xff] %vm762_vm4, %v645_v26  ;;  %799 = vst.msk [vmem:[#allocation3 + $0x120] sm:$0xff] %vm762_vm4, %v643_v35  ;;  %v11844_v41 = vld [vmem:[#allocation2 + $0x261] sm:$0xff]  ;;  %v11847_v55 = vld [vmem:[#allocation2 + $0x259] sm:$0xff]  ;;  %vm13865_vm12 = vcmask 72752  }
 0x2cf   :  { %v6515_v23 = vmax.f32 %v6291_v15, %v6299_v20  ;;  %v6846_v25 = vsel %vm6786_vm14, %v6845_v11, %v6844_v3  ;;  %423 = vst.msk [vmem:[#allocation3 + $0x168] sm:$0xff] %vm40_vm0, %v359_v19  ;;  %422 = vst.msk [vmem:[#allocation3 + $0x160] sm:$0xff] %vm40_vm0, %v358_v58  ;;  %v3337_v12 = vpop.permute.xlu1 %3336  ;;  %v361_v59 = vld [vmem:[#allocation2 + $0x260] sm:$0xff]  ;;  %vm13871_vm8 = vcmask 97352   ;;  %v11908_v43 = vld [vmem:[#allocation2 + $0x278] sm:$0xff] }
 0x2d0   :  { %v6848_v36 = vsel %vm6789_vm15, %v6847_v29, %v6846_v25  ;;  %2961 = vrot.lane.b32.xlu0 %v11775_v30, %s9740_s29  ;;  %3494 = vst.msk [vmem:[#allocation3 + $0x118] sm:$0xff] %vm3458_vm11, %v3337_v12  ;;  %vm13866_vm5 = vmmov %vm13865_vm12  ;;  %v11872_v57 = vld [vmem:[#allocation2 + $0x262] sm:$0xff]  ;;  %v11875_v40 = vld [vmem:[#allocation2 + $0x25a] sm:$0xff] }
 0x2d1   :  { %v6851_v27 = vrot.slane %v6515_v23, 1  ;;  %v6850_v48 = vsel %vm13783_vm2, %v6849_v28, %v6848_v36  ;;  %v3335_v45 = vpop.permute.xlu0 %3334  ;;  %2967 = vrot.lane.b32.xlu1 %v11844_v41, %s9740_s29  ;;  %425 = vst.msk [vmem:[#allocation3 + $0x178] sm:$0xff] %vm40_vm0, %v361_v59  ;;  %424 = vst.msk [vmem:[#allocation3 + $0x170] sm:$0xff] %vm40_vm0, %v360_v54  ;;  %v11911_v44 = vld [vmem:[#allocation2 + $0x270] sm:$0xff]  ;;  %v176_v17 = vld [vmem:[%s13758_s0 + $0x1b8] sm:$0xff] }
 0x2d2   :  { %3493 = vst.msk [vmem:[#allocation3 + $0x110] sm:$0xff] %vm3458_vm11, %v3335_v45  ;;  %vm13867_vm6 = vmmov %vm13864_vm9  ;;  %v11953_v54 = vld [vmem:[#allocation2 + $0x271] sm:$0xff] }
 0x2d3   :  { %v3556_v51 = vld [vmem:[#allocation3 + $0x108] sm:$0xff]  ;;  %v6852_v1 = vsel %vm13780_vm1, %v6851_v27, %v6850_v48  ;;  %v3555_v50 = vld [vmem:[#allocation3 + $0x100] sm:$0xff]  ;;  %v649_v34 = vpop.permute.xlu1 %648  ;;  %vm13868_vm13 = vmmov %vm13867_vm6  ;;  %240 = vst.msk [vmem:[#allocation2 + $0x2d9] sm:$0xff] %vm40_vm0, %v176_v17 }
 0x2d4   :  { %7027 = vst.msk [vmem:[#allocation5 + $0x51] sm:$0xff] %vm13864_vm9, %v6852_v1  ;;  %v3603_v18 = vpack.c.bf16 %v3556_v51, %v3555_v50  ;;  %2965 = vrot.lane.b32.xlu0 %v11847_v55, %s9740_s29  ;;  %vm13869_vm7 = vmmov %vm13866_vm5 }
 0x2d5   :  { %802 = vst.msk [vmem:[#allocation3 + $0x138] sm:$0xff] %vm762_vm4, %v649_v34  ;;  %v647_v49 = vpop.permute.xlu0 %646  ;;  %3348 = vrot.lane.b32.xlu1 %v11792_v24, %s9741_s16  ;;  %vm13870_vm10 = vmmov %vm13866_vm5 }
 0x2d6   :  { %9538 = vmatprep.mubr.bf16.mxu0 %v3603_v18  ;;  %801 = vst.msk [vmem:[#allocation3 + $0x130] sm:$0xff] %vm762_vm4, %v647_v49  ;;  %vm13872_vm9 = vmmov %vm13871_vm8  ;;  %v11947_v18 = vld [vmem:[#allocation2 + $0x279] sm:$0xff] }
 0x2d7   :  { %v1030_v56 = vpop.permute.xlu1 %1029  ;;  %v3558_v38 = vld [vmem:[#allocation3 + $0x118] sm:$0xff] }
 0x2d8   :  { %3346 = vrot.lane.b32.xlu0 %v11797_v14, %s9741_s16  ;;  %1185 = vst.msk [vmem:[#allocation3 + $0x128] sm:$0xff] %vm13865_vm12, %v1030_v56  ;;  %vm13873_vm12 = vmmov %vm13871_vm8 }
 0x2d9   :  { %v1028_v60 = vpop.permute.xlu0 %1027  ;;  %v3557_v32 = vld [vmem:[#allocation3 + $0x110] sm:$0xff]  ;;  %660 = vrot.lane.b32.xlu1 %v11769_v62, %s9734_s18 }
 0x2da   :  { %1184 = vst.msk [vmem:[#allocation3 + $0x120] sm:$0xff] %vm13866_vm5, %v1028_v60  ;;  %v3604_v37 = vpack.c.bf16 %v3558_v38, %v3557_v32  ;;  %vm13874_vm5 = vmmov %vm13871_vm8 }
 0x2db   :  { %v7771_v61 = vld [vmem:[#allocation5 + $0x52] sm:$0xff]  ;;  %v1034_v8 = vpop.permute.xlu1 %1033 }
 0x2dc   :  { %7787 = vst.msk [vmem:[#allocation6 + $0x38] sm:$0xff] %vm13867_vm6, %v7771_v61  ;;  %v7061_v63 = vld [vmem:[#allocation5 + $0x50] sm:$0xff]  ;;  %658 = vrot.lane.b32.xlu0 %v11775_v30, %s9734_s18  ;;  %9539 = vmatmul.mubr.bf16.gmra.mrb[32].mxu0 %v3604_v37  ;;  %vm13875_vm6 = vcmask 121952  }
 0x2dd   :  { %7077 = vst.msk [vmem:[#allocation6 + $0x50] sm:$0xff] %vm13868_vm13, %v7061_v63  ;;  %v1032_v20 = vpop.permute.xlu0 %1031  ;;  %3352 = vrot.lane.b32.xlu1 %v11872_v57, %s9741_s16  ;;  %vm13876_vm13 = vmmov %vm13875_vm6 }
 0x2de   :  { %1187 = vst.msk [vmem:[#allocation3 + $0x138] sm:$0xff] %vm13869_vm7, %v1034_v8  ;;  %vm13877_vm7 = vmmov %vm13875_vm6 }
 0x2df   :  { %1186 = vst.msk [vmem:[#allocation3 + $0x130] sm:$0xff] %vm13870_vm10, %v1032_v20  ;;  %v1415_v62 = vpop.permute.xlu1 %1414  ;;  %vm13878_vm10 = vmmov %vm13875_vm6  ;;  %v11970_v20 = vld [vmem:[#allocation2 + $0x27a] sm:$0xff] }
 0x2e0   :  { %3350 = vrot.lane.b32.xlu0 %v11875_v40, %s9741_s16  ;;  %1570 = vst.msk [vmem:[#allocation3 + $0x128] sm:$0xff] %vm13871_vm8, %v1415_v62  ;;  %vm13879_vm8 = vcmask 146552  }
 0x2e1   :  { %v1413_v30 = vpop.permute.xlu0 %1412  ;;  %664 = vrot.lane.b32.xlu1 %v11844_v41, %s9734_s18 }
 0x2e2   :  { %1569 = vst.msk [vmem:[#allocation3 + $0x120] sm:$0xff] %vm13872_vm9, %v1413_v30  ;;  %vm13880_vm9 = vmmov %vm13879_vm8 }
 0x2e3   :  { %v1419_v5 = vpop.permute.xlu1 %1418 }
 0x2e4   :  { %662 = vrot.lane.b32.xlu0 %v11847_v55, %s9734_s18  ;;  %1572 = vst.msk [vmem:[#allocation3 + $0x138] sm:$0xff] %vm13873_vm12, %v1419_v5  ;;  %vm13881_vm12 = vcmask 123904  }
 0x2e5   :  { %v1417_v7 = vpop.permute.xlu0 %1416  ;;  %1045 = vrot.lane.b32.xlu1 %v11792_v24, %s9735_s19 }
 0x2e6   :  { %1571 = vst.msk [vmem:[#allocation3 + $0x130] sm:$0xff] %vm13874_vm5, %v1417_v7  ;;  %vm13882_vm5 = vmmov %vm13879_vm8  ;;  %v11975_v7 = vld [vmem:[#allocation2 + $0x272] sm:$0xff] }
 0x2e7   :  { %v1800_v53 = vpop.permute.xlu1 %1799 }
 0x2e8   :  { %1043 = vrot.lane.b32.xlu0 %v11797_v14, %s9735_s19  ;;  %1955 = vst.msk [vmem:[#allocation3 + $0x128] sm:$0xff] %vm13875_vm6, %v1800_v53  ;;  %vm13883_vm6 = vmmov %vm13881_vm12 }
 0x2e9   :  { %v1798_v9 = vpop.permute.xlu0 %1797  ;;  %1049 = vrot.lane.b32.xlu1 %v11872_v57, %s9735_s19 }
 0x2ea   :  { %1954 = vst.msk [vmem:[#allocation3 + $0x120] sm:$0xff] %vm13876_vm13, %v1798_v9  ;;  %vm13884_vm13 = vmmov %vm13882_vm5 }
 0x2eb   :  { %v1804_v10 = vpop.permute.xlu1 %1803 }
 0x2ec   :  { %1047 = vrot.lane.b32.xlu0 %v11875_v40, %s9735_s19  ;;  %1957 = vst.msk [vmem:[#allocation3 + $0x138] sm:$0xff] %vm13877_vm7, %v1804_v10  ;;  %v9528_v24 = vpop.f32.mrb[20].mxu0  ;;  %vm13885_vm7 = vmmov %vm13883_vm6 }
 0x2ed   :  { %v1802_v52 = vpop.permute.xlu0 %1801  ;;  %1430 = vrot.lane.b32.xlu1 %v11808_v33, %s9736_s24  ;;  %v3813_v14 = vadd.f32 %v11727_v46, %v9528_v24  ;;  %v3804_v13 = vpop.f32.mrb[21].mxu0 }
 0x2ee   :  { %1956 = vst.msk [vmem:[#allocation3 + $0x130] sm:$0xff] %vm13878_vm10, %v1802_v52  ;;  %v3805_v0 = vadd.f32 %v11727_v46, %v3804_v13  ;;  %v9529_v15 = vpop.f32.mrb[22].mxu0  ;;  %vm13886_vm10 = vmmov %vm13883_vm6 }
 0x2ef   :  { %v2185_v4 = vpop.permute.xlu1 %2184  ;;  %v4001_v21 = vmax.f32 %v3813_v14, 0.0  ;;  %v3816_v33 = vadd.f32 %v11727_v46, %v9529_v15  ;;  %v3807_v16 = vpop.f32.mrb[23].mxu0 }
 0x2f0   :  { %1428 = vrot.lane.b32.xlu0 %v11817_v39, %s9736_s24  ;;  %2340 = vst.msk [vmem:[#allocation3 + $0x128] sm:$0xff] %vm13879_vm8, %v2185_v4  ;;  %v175_v39 = vld [vmem:[%s13758_s0 + $0x1b0] sm:$0xff]  ;;  %v3999_v22 = vmax.f32 %v3805_v0, 0.0  ;;  %v3808_v47 = vadd.f32 %v11727_v46, %v3807_v16  ;;  %vm13887_vm8 = vmmov %vm13883_vm6 }
 0x2f1   :  { %v2183_v42 = vpop.permute.xlu0 %2182  ;;  %1434 = vrot.lane.b32.xlu1 %v11908_v43, %s9736_s24  ;;  %239 = vst.msk [vmem:[#allocation2 + $0x2d1] sm:$0xff] %vm40_vm0, %v175_v39  ;;  %v4481_v23 = vcombine.high %v4001_v21, %v4001_v21  ;;  %v4488_v3 = vrot.slane %v4001_v21, %v11020_v6  ;;  %v4002_v11 = vmax.f32 %v3816_v33, 0.0 }
 0x2f2   :  { %2339 = vst.msk [vmem:[#allocation3 + $0x120] sm:$0xff] %vm13880_vm9, %v2183_v42  ;;  %v4447_v29 = vcombine.high %v3999_v22, %v3999_v22  ;;  %v4454_v26 = vrot.slane %v3999_v22, %v11020_v6  ;;  %v4000_v28 = vmax.f32 %v3808_v47, 0.0  ;;  %vm13888_vm9 = vmmov %vm13883_vm6 }
 0x2f3   :  { %v2189_v35 = vpop.permute.xlu1 %2188  ;;  %v4495_v46 = vrot.slane %v4481_v23, %v11020_v6  ;;  %v4496_v19 = vcombine.high %v4488_v3, %v4488_v3  ;;  %5540 = vst.msk [vmem:[#allocation4 + $0xb0] sm:$0x3] %vm13881_vm12, %v4488_v3  ;;  %v4498_v58 = vcombine.high %v4002_v11, %v4002_v11  ;;  %v4505_v25 = vrot.slane %v4002_v11, %v11020_v6  ;;  %vm13889_vm12 = vmmov %vm13883_vm6 }
 0x2f4   :  { %1432 = vrot.lane.b32.xlu0 %v11911_v44, %s9736_s24  ;;  %2342 = vst.msk [vmem:[#allocation3 + $0x138] sm:$0xff] %vm13882_vm5, %v2189_v35  ;;  %v4461_v27 = vrot.slane %v4447_v29, %v11020_v6  ;;  %v4462_v48 = vcombine.high %v4454_v26, %v4454_v26  ;;  %v4464_v12 = vcombine.high %v4000_v28, %v4000_v28  ;;  %vm13890_vm5 = vmmov %vm13883_vm6 }
 0x2f5   :  { %v2187_v36 = vpop.permute.xlu0 %2186  ;;  %5532 = vst.msk [vmem:[#allocation4 + $0xa0] sm:$0x3] %vm13883_vm6, %v4454_v26  ;;  %v4471_v51 = vrot.slane %v4000_v28, %v11020_v6  ;;  %1815 = vrot.lane.b32.xlu1 %v11844_v41, %s9737_s25  ;;  %v4497_v1 = vcombine.high %v4495_v46, %v4495_v46  ;;  %v4512_v45 = vrot.slane %v4498_v58, %v11020_v6  ;;  %vm13891_vm6 = vmmov %vm13890_vm5 }
 0x2f6   :  { %2341 = vst.msk [vmem:[#allocation3 + $0x130] sm:$0xff] %vm13884_vm13, %v2187_v36  ;;  %v4513_v50 = vcombine.high %v4505_v25, %v4505_v25  ;;  %v4463_v34 = vcombine.high %v4461_v27, %v4461_v27  ;;  %v4478_v41 = vrot.slane %v4464_v12, %v11020_v6  ;;  %vm13892_vm13 = vmmov %vm13890_vm5 }
 0x2f7   :  { %5541 = vst.msk [vmem:[#allocation4 + $0xb2] sm:$0x3] %vm13885_vm7, %v4496_v19  ;;  %v4479_v59 = vcombine.high %v4471_v51, %v4471_v51  ;;  %v2571_v49 = vpop.permute.xlu1 %2570  ;;  %v4514_v56 = vcombine.high %v4512_v45, %v4512_v45  ;;  %vm13893_vm7 = vmmov %vm13890_vm5 }
 0x2f8   :  { %5542 = vst.msk [vmem:[#allocation4 + $0xb4] sm:$0x3] %vm13886_vm10, %v4495_v46  ;;  %1813 = vrot.lane.b32.xlu0 %v11847_v55, %s9737_s25  ;;  %vm13894_vm10 = vcmask 171152   ;;  %v4480_v38 = vcombine.high %v4478_v41, %v4478_v41 }
 0x2f9   :  { %5544 = vst.msk [vmem:[#allocation4 + $0xb8] sm:$0x3] %vm13887_vm8, %v4505_v25  ;;  %v2569_v55 = vpop.permute.xlu0 %2568  ;;  %vm13895_vm8 = vmmov %vm13890_vm5  ;;  %1819 = vrot.lane.b32.xlu1 %v11947_v18, %s9737_s25 }
 0x2fa   :  { %5533 = vst.msk [vmem:[#allocation4 + $0xa2] sm:$0x3] %vm13888_vm9, %v4462_v48  ;;  %vm13896_vm9 = vmmov %vm13890_vm5  ;;  %v5796_v60 = vld [vmem:[#allocation4 + $0xb0] sm:$0x1]  ;;  %v6052_v61 = vld [vmem:[#allocation4 + $0xb1] sm:$0x1] }
 0x2fb   :  { %5534 = vst.msk [vmem:[#allocation4 + $0xa4] sm:$0x3] %vm13889_vm12, %v4461_v27  ;;  %vm13897_vm12 = vmmov %vm13890_vm5  ;;  %v2575_v32 = vpop.permute.xlu1 %2574  ;;  %v6308_v15 = vmax.f32 %v5796_v60, %v6052_v61 }
 0x2fc   :  { %5536 = vst.msk [vmem:[#allocation4 + $0xa8] sm:$0x3] %vm13890_vm5, %v4471_v51  ;;  %vm13898_vm5 = vmmov %vm13894_vm10  ;;  %1817 = vrot.lane.b32.xlu0 %v11953_v54, %s9737_s25  ;;  %v5788_v37 = vld [vmem:[#allocation4 + $0xa0] sm:$0x1]  ;;  %v6044_v63 = vld [vmem:[#allocation4 + $0xa1] sm:$0x1] }
 0x2fd   :  { %5543 = vst.msk [vmem:[#allocation4 + $0xb6] sm:$0x3] %vm13891_vm6, %v4497_v1  ;;  %5547 = vst.msk [vmem:[#allocation4 + $0xbe] sm:$0x3] %vm13891_vm6, %v4514_v56  ;;  %2200 = vrot.lane.b32.xlu1 %v11872_v57, %s9738_s30  ;;  %v6300_v57 = vmax.f32 %v5788_v37, %v6044_v63 }
 0x2fe   :  { %5545 = vst.msk [vmem:[#allocation4 + $0xba] sm:$0x3] %vm13892_vm13, %v4513_v50  ;;  %vm13899_vm13 = vmmov %vm13891_vm6  ;;  %v2573_v8 = vpop.permute.xlu0 %2572  ;;  %v5797_v62 = vld [vmem:[#allocation4 + $0xb2] sm:$0x1]  ;;  %v6053_v5 = vld [vmem:[#allocation4 + $0xb3] sm:$0x1] }
 0x2ff   :  { %5546 = vst.msk [vmem:[#allocation4 + $0xbc] sm:$0x3] %vm13893_vm7, %v4512_v45  ;;  %vm13900_vm7 = vmmov %vm13898_vm5  ;;  %v5798_v30 = vld [vmem:[#allocation4 + $0xb4] sm:$0x1]  ;;  %v6054_v53 = vld [vmem:[#allocation4 + $0xb5] sm:$0x1]  ;;  %v6309_v9 = vmax.f32 %v5797_v62, %v6053_v5  ;;  %v2956_v4 = vpop.permute.xlu1 %2955  ;;  %v6516_v27 = vmax.f32 %v6300_v57, %v6308_v15 }
 0x300   :  { %2726 = vst.msk [vmem:[#allocation3 + $0x128] sm:$0xff] %vm13894_vm10, %v2571_v49  ;;  %vm13901_vm10 = vmmov %vm13898_vm5  ;;  %2198 = vrot.lane.b32.xlu0 %v11875_v40, %s9738_s30  ;;  %v6310_v13 = vmax.f32 %v5798_v30, %v6054_v53  ;;  %v5800_v23 = vld [vmem:[#allocation4 + $0xb8] sm:$0x1]  ;;  %v6056_v26 = vld [vmem:[#allocation4 + $0xb9] sm:$0x1]  ;;  %vm13906_vm6 = vcmask 1041409  }
 0x301   :  { %5535 = vst.msk [vmem:[#allocation4 + $0xa6] sm:$0x3] %vm13895_vm8, %v4463_v34  ;;  %v5789_v10 = vld [vmem:[#allocation4 + $0xa2] sm:$0x1]  ;;  %v6045_v0 = vld [vmem:[#allocation4 + $0xa3] sm:$0x1]  ;;  %2204 = vrot.lane.b32.xlu1 %v11970_v20, %s9738_s30  ;;  %v6312_v12 = vmax.f32 %v5800_v23, %v6056_v26 }
 0x302   :  { %5537 = vst.msk [vmem:[#allocation4 + $0xaa] sm:$0x3] %vm13896_vm9, %v4479_v59  ;;  %v5790_v52 = vld [vmem:[#allocation4 + $0xa4] sm:$0x1]  ;;  %v6046_v33 = vld [vmem:[#allocation4 + $0xa5] sm:$0x1]  ;;  %v6301_v39 = vmax.f32 %v5789_v10, %v6045_v0  ;;  %v2954_v17 = vpop.permute.xlu0 %2953 }
 0x303   :  { %5538 = vst.msk [vmem:[#allocation4 + $0xac] sm:$0x3] %vm13897_vm12, %v4478_v41  ;;  %vm13902_vm8 = vcmask 195752   ;;  %v6302_v22 = vmax.f32 %v5790_v52, %v6046_v33  ;;  %v5792_v25 = vld [vmem:[#allocation4 + $0xa8] sm:$0x1]  ;;  %v2960_v36 = vpop.permute.xlu1 %2959  ;;  %v11986_v34 = vld [vmem:[#allocation2 + $0x290] sm:$0xff] }
 0x304   :  { %2725 = vst.msk [vmem:[#allocation3 + $0x120] sm:$0xff] %vm13898_vm5, %v2569_v55  ;;  %v5799_v24 = vld [vmem:[#allocation4 + $0xb6] sm:$0x1]  ;;  %v6055_v14 = vld [vmem:[#allocation4 + $0xb7] sm:$0x1]  ;;  %vm13903_vm9 = vmmov %vm13902_vm8  ;;  %v6517_v11 = vmax.f32 %v6301_v39, %v6309_v9  ;;  %2202 = vrot.lane.b32.xlu0 %v11975_v7, %s9738_s30 }
 0x305   :  { %5539 = vst.msk [vmem:[#allocation4 + $0xae] sm:$0x3] %vm13899_vm13, %v4480_v38  ;;  %v6311_v21 = vmax.f32 %v5799_v24, %v6055_v14  ;;  %v5801_v3 = vld [vmem:[#allocation4 + $0xba] sm:$0x1]  ;;  %v5803_v29 = vld [vmem:[#allocation4 + $0xbe] sm:$0x1]  ;;  %v6518_v35 = vmax.f32 %v6302_v22, %v6310_v13  ;;  %vm13904_vm12 = vmmov %vm13902_vm8  ;;  %2586 = vrot.lane.b32.xlu1 %v11908_v43, %s9739_s22 }
 0x306   :  { %2728 = vst.msk [vmem:[#allocation3 + $0x138] sm:$0xff] %vm13900_vm7, %v2575_v32  ;;  %v5802_v40 = vld [vmem:[#allocation4 + $0xbc] sm:$0x1]  ;;  %v6057_v28 = vld [vmem:[#allocation4 + $0xbb] sm:$0x1]  ;;  %v6853_v48 = vrot.slane %v6517_v11, 7  ;;  %v2958_v50 = vpop.permute.xlu0 %2957  ;;  %vm13905_vm5 = vmmov %vm13902_vm8 }
 0x307   :  { %2727 = vst.msk [vmem:[#allocation3 + $0x130] sm:$0xff] %vm13901_vm10, %v2573_v8  ;;  %v6058_v19 = vld [vmem:[#allocation4 + $0xbd] sm:$0x1]  ;;  %v6059_v58 = vld [vmem:[#allocation4 + $0xbf] sm:$0x1]  ;;  %v6313_v51 = vmax.f32 %v5801_v3, %v6057_v28  ;;  %v6855_v41 = vrot.slane %v6518_v35, 6  ;;  %v3341_v53 = vpop.permute.xlu1 %3340 }
 0x308   :  { %v5791_v42 = vld [vmem:[#allocation4 + $0xa6] sm:$0x1]  ;;  %v6047_v16 = vld [vmem:[#allocation4 + $0xa7] sm:$0x1]  ;;  %3111 = vst.msk [vmem:[#allocation3 + $0x128] sm:$0xff] %vm13902_vm8, %v2956_v4  ;;  %v6314_v49 = vmax.f32 %v5802_v40, %v6058_v19  ;;  %v6315_v56 = vmax.f32 %v5803_v29, %v6059_v58  ;;  %v6854_v60 = vsel %vm13906_vm6, %v6853_v48, %v6516_v27  ;;  %2584 = vrot.lane.b32.xlu0 %v11911_v44, %s9739_s22  ;;  %vm13907_vm13 = vcmask 1042434  }
 0x309   :  { %v6303_v47 = vmax.f32 %v5791_v42, %v6047_v16  ;;  %3110 = vst.msk [vmem:[#allocation3 + $0x120] sm:$0xff] %vm13903_vm9, %v2954_v17  ;;  %v5793_v1 = vld [vmem:[#allocation4 + $0xaa] sm:$0x1]  ;;  %v6048_v38 = vld [vmem:[#allocation4 + $0xa9] sm:$0x1]  ;;  %v6856_v8 = vsel %vm13907_vm13, %v6855_v41, %v6854_v60  ;;  %v177_v52 = vld [vmem:[%s13758_s0 + $0x1c0] sm:$0xff]  ;;  %2590 = vrot.lane.b32.xlu1 %v11986_v34, %s9739_s22 }
 0x30a   :  { %v5794_v45 = vld [vmem:[#allocation4 + $0xac] sm:$0x1]  ;;  %3113 = vst.msk [vmem:[#allocation3 + $0x138] sm:$0xff] %vm13904_vm12, %v2960_v36  ;;  %v6049_v32 = vld [vmem:[#allocation4 + $0xab] sm:$0x1]  ;;  %v6304_v63 = vmax.f32 %v5792_v25, %v6048_v38  ;;  %v3339_v43 = vpop.permute.xlu0 %3338  ;;  %v363_v16 = vld [vmem:[#allocation2 + $0x278] sm:$0xff] }
 0x30b   :  { %v6519_v46 = vmax.f32 %v6303_v47, %v6311_v21  ;;  %3112 = vst.msk [vmem:[#allocation3 + $0x130] sm:$0xff] %vm13905_vm5, %v2958_v50  ;;  %v6050_v61 = vld [vmem:[#allocation4 + $0xad] sm:$0x1]  ;;  %v6305_v62 = vmax.f32 %v5793_v1, %v6049_v32  ;;  %v653_v21 = vpop.permute.xlu1 %652  ;;  %v362_v57 = vld [vmem:[#allocation2 + $0x270] sm:$0xff]  ;;  %vm13908_vm7 = vcmask 130048   ;;  %vm13909_vm10 = vcmask 72752  }
 0x30c   :  { %v5795_v55 = vld [vmem:[#allocation4 + $0xae] sm:$0x1]  ;;  %v6051_v37 = vld [vmem:[#allocation4 + $0xaf] sm:$0x1]  ;;  %v6306_v30 = vmax.f32 %v5794_v45, %v6050_v61  ;;  %v6520_v10 = vmax.f32 %v6304_v63, %v6312_v12  ;;  %3496 = vst.msk [vmem:[#allocation3 + $0x128] sm:$0xff] %vm3458_vm11, %v3341_v53  ;;  %3495 = vst.msk [vmem:[#allocation3 + $0x120] sm:$0xff] %vm3458_vm11, %v3339_v43 }
 0x30d   :  { %v6857_v59 = vrot.slane %v6519_v46, 5  ;;  %v6307_v5 = vmax.f32 %v5795_v55, %v6051_v37  ;;  %v11995_v9 = vld [vmem:[#allocation2 + $0x288] sm:$0xff]  ;;  %v6521_v24 = vmax.f32 %v6305_v62, %v6313_v51  ;;  %241 = vst.msk [vmem:[#allocation2 + $0x2e9] sm:$0xff] %vm40_vm0, %v177_v52  ;;  %2971 = vrot.lane.b32.xlu1 %v11947_v18, %s9740_s29  ;;  %427 = vst.msk [vmem:[#allocation3 + $0x188] sm:$0xff] %vm40_vm0, %v363_v16  ;;  %v12022_v47 = vld [vmem:[#allocation2 + $0x291] sm:$0xff] }
 0x30e   :  { %v6522_v14 = vmax.f32 %v6306_v30, %v6314_v49  ;;  %v178_v44 = vld [vmem:[%s13758_s0 + $0x1c8] sm:$0xff]  ;;  %v6859_v4 = vrot.slane %v6520_v10, 4  ;;  %2588 = vrot.lane.b32.xlu0 %v11995_v9, %s9739_s22  ;;  %804 = vst.msk [vmem:[#allocation3 + $0x148] sm:$0xff] %vm762_vm4, %v653_v21  ;;  %v651_v33 = vpop.permute.xlu0 %650  ;;  %v365_v19 = vld [vmem:[#allocation2 + $0x290] sm:$0xff]  ;;  %vm13910_vm8 = vmmov %vm13909_vm10 }
 0x30f   :  { %v6523_v13 = vmax.f32 %v6307_v5, %v6315_v56  ;;  %v6858_v0 = vsel %vm6783_vm3, %v6857_v59, %v6856_v8  ;;  %242 = vst.msk [vmem:[#allocation2 + $0x2f1] sm:$0xff] %vm40_vm0, %v178_v44  ;;  %v6861_v15 = vrot.slane %v6521_v24, 3  ;;  %426 = vst.msk [vmem:[#allocation3 + $0x180] sm:$0xff] %vm40_vm0, %v362_v57  ;;  %v3345_v3 = vpop.permute.xlu1 %3344  ;;  %v12025_v40 = vld [vmem:[#allocation2 + $0x289] sm:$0xff]  ;;  %v12050_v50 = vld [vmem:[#allocation2 + $0x292] sm:$0xff] }
 0x310   :  { %v6863_v42 = vrot.slane %v6522_v14, 2  ;;  %v6860_v39 = vsel %vm6786_vm14, %v6859_v4, %v6858_v0  ;;  %803 = vst.msk [vmem:[#allocation3 + $0x140] sm:$0xff] %vm762_vm4, %v651_v33  ;;  %v364_v25 = vld [vmem:[#allocation2 + $0x288] sm:$0xff]  ;;  %vm13911_vm9 = vmmov %vm13908_vm7  ;;  %v7775_v49 = vld [vmem:[#allocation5 + $0x92] sm:$0xff] }
 0x311   :  { %v6862_v17 = vsel %vm6789_vm15, %v6861_v15, %v6860_v39  ;;  %v6865_v22 = vrot.slane %v6523_v13, 1  ;;  %3498 = vst.msk [vmem:[#allocation3 + $0x138] sm:$0xff] %vm3458_vm11, %v3345_v3  ;;  %2975 = vrot.lane.b32.xlu1 %v12022_v47, %s9740_s29  ;;  %vm13912_vm12 = vmmov %vm13908_vm7  ;;  %v12053_v59 = vld [vmem:[#allocation2 + $0x28a] sm:$0xff]  ;;  %v12091_v63 = vld [vmem:[%s13760_s2] ss:$0 sm:$0xff] }
 0x312   :  { %2969 = vrot.lane.b32.xlu0 %v11953_v54, %s9740_s29  ;;  %v6864_v23 = vsel %vm13783_vm2, %v6863_v42, %v6862_v17  ;;  %v3343_v26 = vpop.permute.xlu0 %3342  ;;  %429 = vst.msk [vmem:[#allocation3 + $0x198] sm:$0xff] %vm40_vm0, %v365_v19  ;;  %428 = vst.msk [vmem:[#allocation3 + $0x190] sm:$0xff] %vm40_vm0, %v364_v25  ;;  %v12094_v5 = vld [vmem:[#allocation2 + $0x2a0] sm:$0xff]  ;;  %v179_v10 = vld [vmem:[%s13758_s0 + $0x1d0] sm:$0xff] }
 0x313   :  { %v3560_v11 = vld [vmem:[#allocation3 + $0x128] sm:$0xff]  ;;  %v6866_v29 = vsel %vm13780_vm1, %v6865_v22, %v6864_v23  ;;  %v3559_v28 = vld [vmem:[#allocation3 + $0x120] sm:$0xff]  ;;  %3497 = vst.msk [vmem:[#allocation3 + $0x130] sm:$0xff] %vm3458_vm11, %v3343_v26  ;;  %v657_v46 = vpop.permute.xlu1 %656  ;;  %vm13913_vm5 = vmmov %vm13910_vm8 }
 0x314   :  { %7028 = vst.msk [vmem:[#allocation5 + $0x61] sm:$0xff] %vm13908_vm7, %v6866_v29  ;;  %v3605_v35 = vpack.c.bf16 %v3560_v11, %v3559_v28  ;;  %vm13914_vm6 = vmmov %vm13908_vm7  ;;  %vm13916_vm7 = vcmask 97352   ;;  %v180_v43 = vld [vmem:[%s13758_s0 + $0x1d8] sm:$0xff]  ;;  %v12127_v28 = vld [vmem:[#allocation2 + $0x2a9] sm:$0xff] }
 0x315   :  { %806 = vst.msk [vmem:[#allocation3 + $0x158] sm:$0xff] %vm762_vm4, %v657_v46  ;;  %3356 = vrot.lane.b32.xlu1 %v11970_v20, %s9741_s16  ;;  %vm13915_vm13 = vmmov %vm13913_vm5 }
 0x316   :  { %2973 = vrot.lane.b32.xlu0 %v12025_v40, %s9740_s29  ;;  %9542 = vmatprep.mubr.bf16.mxu0 %v3605_v35  ;;  %v655_v58 = vpop.permute.xlu0 %654  ;;  %7791 = vst.msk [vmem:[#allocation6 + $0x78] sm:$0xff] %vm13914_vm6, %v7775_v49 }
 0x317   :  { %805 = vst.msk [vmem:[#allocation3 + $0x150] sm:$0xff] %vm762_vm4, %v655_v58  ;;  %v1038_v36 = vpop.permute.xlu1 %1037  ;;  %v12133_v58 = vld [vmem:[#allocation2 + $0x2a1] sm:$0xff] }
 0x318   :  { %v3562_v27 = vld [vmem:[#allocation3 + $0x138] sm:$0xff]  ;;  %1189 = vst.msk [vmem:[#allocation3 + $0x148] sm:$0xff] %vm13909_vm10, %v1038_v36  ;;  %vm13917_vm10 = vmmov %vm13916_vm7 }
 0x319   :  { %668 = vrot.lane.b32.xlu1 %v11947_v18, %s9734_s18  ;;  %243 = vst.msk [vmem:[#allocation2 + $0x301] sm:$0xff] %vm40_vm0, %v179_v10  ;;  %244 = vst.msk [vmem:[#allocation2 + $0x309] sm:$0xff] %vm40_vm0, %v180_v43 }
 0x31a   :  { %3354 = vrot.lane.b32.xlu0 %v11975_v7, %s9741_s16  ;;  %v1036_v48 = vpop.permute.xlu0 %1035  ;;  %v3561_v12 = vld [vmem:[#allocation3 + $0x130] sm:$0xff] }
 0x31b   :  { %v7772_v51 = vld [vmem:[#allocation5 + $0x62] sm:$0xff]  ;;  %1188 = vst.msk [vmem:[#allocation3 + $0x140] sm:$0xff] %vm13910_vm8, %v1036_v48  ;;  %v3606_v1 = vpack.c.bf16 %v3562_v27, %v3561_v12  ;;  %v1042_v41 = vpop.permute.xlu1 %1041  ;;  %vm13918_vm8 = vmmov %vm13916_vm7 }
 0x31c   :  { %7788 = vst.msk [vmem:[#allocation6 + $0x48] sm:$0xff] %vm13911_vm9, %v7772_v51  ;;  %v7062_v45 = vld [vmem:[#allocation5 + $0x60] sm:$0xff]  ;;  %vm13919_vm9 = vmmov %vm13916_vm7 }
 0x31d   :  { %7078 = vst.msk [vmem:[#allocation6 + $0x60] sm:$0xff] %vm13912_vm12, %v7062_v45  ;;  %9543 = vmatmul.mubr.bf16.gmra.mrb[36].mxu0 %v3606_v1  ;;  %3360 = vrot.lane.b32.xlu1 %v12050_v50, %s9741_s16  ;;  %vm13920_vm12 = vcmask 121952  }
 0x31e   :  { %666 = vrot.lane.b32.xlu0 %v11953_v54, %s9734_s18  ;;  %1191 = vst.msk [vmem:[#allocation3 + $0x158] sm:$0xff] %vm13913_vm5, %v1042_v41  ;;  %v1040_v56 = vpop.permute.xlu0 %1039  ;;  %vm13921_vm5 = vmmov %vm13920_vm12  ;;  %v12154_v41 = vld [vmem:[#allocation2 + $0x2aa] sm:$0xff] }
 0x31f   :  { %1190 = vst.msk [vmem:[#allocation3 + $0x150] sm:$0xff] %vm13915_vm13, %v1040_v56  ;;  %v1423_v18 = vpop.permute.xlu1 %1422  ;;  %vm13922_vm6 = vmmov %vm13921_vm5 }
 0x320   :  { %1574 = vst.msk [vmem:[#allocation3 + $0x148] sm:$0xff] %vm13916_vm7, %v1423_v18  ;;  %vm13923_vm13 = vmmov %vm13921_vm5  ;;  %vm13924_vm7 = vcmask 146552  }
 0x321   :  { %672 = vrot.lane.b32.xlu1 %v12022_v47, %s9734_s18 }
 0x322   :  { %3358 = vrot.lane.b32.xlu0 %v12053_v59, %s9741_s16  ;;  %v1421_v54 = vpop.permute.xlu0 %1420 }
 0x323   :  { %1573 = vst.msk [vmem:[#allocation3 + $0x140] sm:$0xff] %vm13917_vm10, %v1421_v54  ;;  %v1427_v55 = vpop.permute.xlu1 %1426  ;;  %vm13925_vm10 = vmmov %vm13924_vm7  ;;  %v12159_v54 = vld [vmem:[#allocation2 + $0x2a2] sm:$0xff] }
 0x324   :  { %1576 = vst.msk [vmem:[#allocation3 + $0x158] sm:$0xff] %vm13918_vm8, %v1427_v55  ;;  %vm13926_vm8 = vmmov %vm13924_vm7 }
 0x325   :  { %1053 = vrot.lane.b32.xlu1 %v11970_v20, %s9735_s19 }
 0x326   :  { %670 = vrot.lane.b32.xlu0 %v12025_v40, %s9734_s18  ;;  %v1425_v38 = vpop.permute.xlu0 %1424 }
 0x327   :  { %1575 = vst.msk [vmem:[#allocation3 + $0x150] sm:$0xff] %vm13919_vm9, %v1425_v38  ;;  %v1808_v60 = vpop.permute.xlu1 %1807  ;;  %vm13927_vm9 = vcmask 123904  }
 0x328   :  { %1959 = vst.msk [vmem:[#allocation3 + $0x148] sm:$0xff] %vm13920_vm12, %v1808_v60  ;;  %vm13928_vm12 = vmmov %vm13924_vm7 }
 0x329   :  { %1057 = vrot.lane.b32.xlu1 %v12050_v50, %s9735_s19 }
 0x32a   :  { %1051 = vrot.lane.b32.xlu0 %v11975_v7, %s9735_s19  ;;  %v1806_v32 = vpop.permute.xlu0 %1805  ;;  %v12086_v7 = vld [vmem:[#allocation2 + $0x2a8] sm:$0xff] }
 0x32b   :  { %1958 = vst.msk [vmem:[#allocation3 + $0x140] sm:$0xff] %vm13921_vm5, %v1806_v32  ;;  %v1812_v61 = vpop.permute.xlu1 %1811  ;;  %vm13929_vm5 = vmmov %vm13927_vm9 }
 0x32c   :  { %1961 = vst.msk [vmem:[#allocation3 + $0x158] sm:$0xff] %vm13922_vm6, %v1812_v61  ;;  %vm13930_vm6 = vmmov %vm13929_vm5 }
 0x32d   :  { %1438 = vrot.lane.b32.xlu1 %v11986_v34, %s9736_s24 }
 0x32e   :  { %1055 = vrot.lane.b32.xlu0 %v12053_v59, %s9735_s19  ;;  %v1810_v37 = vpop.permute.xlu0 %1809  ;;  %v9532_v20 = vpop.f32.mrb[24].mxu0 }
 0x32f   :  { %1960 = vst.msk [vmem:[#allocation3 + $0x150] sm:$0xff] %vm13923_vm13, %v1810_v37  ;;  %v3829_v8 = vadd.f32 %v12091_v63, %v9532_v20  ;;  %v3820_v62 = vpop.f32.mrb[25].mxu0  ;;  %v2193_v30 = vpop.permute.xlu1 %2192  ;;  %vm13931_vm13 = vmmov %vm13929_vm5 }
 0x330   :  { %v3821_v53 = vadd.f32 %v12091_v63, %v3820_v62  ;;  %2344 = vst.msk [vmem:[#allocation3 + $0x148] sm:$0xff] %vm13924_vm7, %v2193_v30  ;;  %vm13932_vm7 = vmmov %vm13929_vm5 }
 0x331   :  { %v4005_v52 = vmax.f32 %v3829_v8, 0.0  ;;  %1442 = vrot.lane.b32.xlu1 %v12086_v7, %s9736_s24 }
 0x332   :  { %1436 = vrot.lane.b32.xlu0 %v11995_v9, %s9736_s24  ;;  %v2191_v34 = vpop.permute.xlu0 %2190  ;;  %v9533_v9 = vpop.f32.mrb[26].mxu0  ;;  %v4003_v44 = vmax.f32 %v3821_v53, 0.0 }
 0x333   :  { %2343 = vst.msk [vmem:[#allocation3 + $0x140] sm:$0xff] %vm13925_vm10, %v2191_v34  ;;  %v3832_v24 = vadd.f32 %v12091_v63, %v9533_v9  ;;  %v3823_v14 = vpop.f32.mrb[27].mxu0  ;;  %v4549_v0 = vcombine.high %v4005_v52, %v4005_v52  ;;  %v4556_v4 = vrot.slane %v4005_v52, %v11020_v6  ;;  %v2197_v21 = vpop.permute.xlu1 %2196  ;;  %vm13933_vm10 = vmmov %vm13929_vm5 }
 0x334   :  { %v3824_v13 = vadd.f32 %v12091_v63, %v3823_v14  ;;  %v4515_v42 = vcombine.high %v4003_v44, %v4003_v44  ;;  %v4522_v33 = vrot.slane %v4003_v44, %v11020_v6  ;;  %2346 = vst.msk [vmem:[#allocation3 + $0x158] sm:$0xff] %vm13926_vm8, %v2197_v21  ;;  %vm13934_vm8 = vmmov %vm13929_vm5 }
 0x335   :  { %v4006_v15 = vmax.f32 %v3832_v24, 0.0  ;;  %v4563_v39 = vrot.slane %v4549_v0, %v11020_v6  ;;  %v4564_v17 = vcombine.high %v4556_v4, %v4556_v4  ;;  %5556 = vst.msk [vmem:[#allocation4 + $0xd0] sm:$0x3] %vm13927_vm9, %v4556_v4  ;;  %1823 = vrot.lane.b32.xlu1 %v12022_v47, %s9737_s25  ;;  %vm13935_vm9 = vmmov %vm13929_vm5 }
 0x336   :  { %1440 = vrot.lane.b32.xlu0 %v12094_v5, %s9736_s24  ;;  %v4004_v16 = vmax.f32 %v3824_v13, 0.0  ;;  %v2195_v57 = vpop.permute.xlu0 %2194  ;;  %v4529_v3 = vrot.slane %v4515_v42, %v11020_v6  ;;  %v4530_v11 = vcombine.high %v4522_v33, %v4522_v33  ;;  %5548 = vst.msk [vmem:[#allocation4 + $0xc0] sm:$0x3] %vm13929_vm5, %v4522_v33 }
 0x337   :  { %v4566_v22 = vcombine.high %v4006_v15, %v4006_v15  ;;  %v4573_v23 = vrot.slane %v4006_v15, %v11020_v6  ;;  %2345 = vst.msk [vmem:[#allocation3 + $0x150] sm:$0xff] %vm13928_vm12, %v2195_v57  ;;  %v4565_v35 = vcombine.high %v4563_v39, %v4563_v39  ;;  %v2579_v19 = vpop.permute.xlu1 %2578  ;;  %vm13936_vm12 = vcmask 171152  }
 0x338   :  { %v4532_v29 = vcombine.high %v4004_v16, %v4004_v16  ;;  %v4539_v26 = vrot.slane %v4004_v16, %v11020_v6  ;;  %5557 = vst.msk [vmem:[#allocation4 + $0xd2] sm:$0x3] %vm13930_vm6, %v4564_v17  ;;  %v4531_v25 = vcombine.high %v4529_v3, %v4529_v3  ;;  %vm13937_vm6 = vmmov %vm13929_vm5 }
 0x339   :  { %5558 = vst.msk [vmem:[#allocation4 + $0xd4] sm:$0x3] %vm13931_vm13, %v4563_v39  ;;  %v4580_v47 = vrot.slane %v4566_v22, %v11020_v6  ;;  %v4581_v46 = vcombine.high %v4573_v23, %v4573_v23  ;;  %vm13938_vm13 = vmmov %vm13929_vm5  ;;  %1827 = vrot.lane.b32.xlu1 %v12127_v28, %s9737_s25 }
 0x33a   :  { %1821 = vrot.lane.b32.xlu0 %v12025_v40, %s9737_s25  ;;  %5560 = vst.msk [vmem:[#allocation4 + $0xd8] sm:$0x3] %vm13932_vm7, %v4573_v23  ;;  %v4546_v40 = vrot.slane %v4532_v29, %v11020_v6  ;;  %v4547_v36 = vcombine.high %v4539_v26, %v4539_v26  ;;  %v2577_v27 = vpop.permute.xlu0 %2576  ;;  %vm13939_vm7 = vmmov %vm13936_vm12 }
 0x33b   :  { %5549 = vst.msk [vmem:[#allocation4 + $0xc2] sm:$0x3] %vm13933_vm10, %v4530_v11  ;;  %v4582_v48 = vcombine.high %v4580_v47, %v4580_v47  ;;  %vm13940_vm10 = vmmov %vm13929_vm5  ;;  %v2583_v51 = vpop.permute.xlu1 %2582 }
 0x33c   :  { %5550 = vst.msk [vmem:[#allocation4 + $0xc4] sm:$0x3] %vm13934_vm8, %v4529_v3  ;;  %v4548_v12 = vcombine.high %v4546_v40, %v4546_v40  ;;  %vm13941_vm8 = vmmov %vm13929_vm5  ;;  %v5812_v1 = vld [vmem:[#allocation4 + $0xd0] sm:$0x1]  ;;  %v6068_v49 = vld [vmem:[#allocation4 + $0xd1] sm:$0x1] }
 0x33d   :  { %5552 = vst.msk [vmem:[#allocation4 + $0xc8] sm:$0x3] %vm13935_vm9, %v4539_v26  ;;  %vm13942_vm9 = vmmov %vm13929_vm5  ;;  %v5804_v56 = vld [vmem:[#allocation4 + $0xc0] sm:$0x1]  ;;  %v6060_v18 = vld [vmem:[#allocation4 + $0xc1] sm:$0x1]  ;;  %2208 = vrot.lane.b32.xlu1 %v12050_v50, %s9738_s30  ;;  %v6324_v9 = vmax.f32 %v5812_v1, %v6068_v49 }
 0x33e   :  { %2730 = vst.msk [vmem:[#allocation3 + $0x148] sm:$0xff] %vm13936_vm12, %v2579_v19  ;;  %1825 = vrot.lane.b32.xlu0 %v12133_v58, %s9737_s25  ;;  %vm13943_vm12 = vmmov %vm13929_vm5  ;;  %v2581_v45 = vpop.permute.xlu0 %2580  ;;  %v6316_v14 = vmax.f32 %v5804_v56, %v6060_v18 }
 0x33f   :  { %5559 = vst.msk [vmem:[#allocation4 + $0xd6] sm:$0x3] %vm13929_vm5, %v4565_v35  ;;  %5555 = vst.msk [vmem:[#allocation4 + $0xce] sm:$0x3] %vm13929_vm5, %v4548_v12  ;;  %v5813_v55 = vld [vmem:[#allocation4 + $0xd2] sm:$0x1]  ;;  %v2964_v8 = vpop.permute.xlu1 %2963 }
 0x340   :  { %5561 = vst.msk [vmem:[#allocation4 + $0xda] sm:$0x3] %vm13937_vm6, %v4581_v46  ;;  %vm13944_vm6 = vmmov %vm13939_vm7  ;;  %v5814_v38 = vld [vmem:[#allocation4 + $0xd4] sm:$0x1]  ;;  %v6069_v60 = vld [vmem:[#allocation4 + $0xd3] sm:$0x1]  ;;  %v6524_v29 = vmax.f32 %v6316_v14, %v6324_v9 }
 0x341   :  { %5562 = vst.msk [vmem:[#allocation4 + $0xdc] sm:$0x3] %vm13938_vm13, %v4580_v47  ;;  %vm13945_vm13 = vmmov %vm13944_vm6  ;;  %v6070_v32 = vld [vmem:[#allocation4 + $0xd5] sm:$0x1]  ;;  %v6325_v61 = vmax.f32 %v5813_v55, %v6069_v60  ;;  %2212 = vrot.lane.b32.xlu1 %v12154_v41, %s9738_s30  ;;  %v5816_v0 = vld [vmem:[#allocation4 + $0xd8] sm:$0x1] }
 0x342   :  { %2729 = vst.msk [vmem:[#allocation3 + $0x140] sm:$0xff] %vm13939_vm7, %v2577_v27  ;;  %2206 = vrot.lane.b32.xlu0 %v12053_v59, %s9738_s30  ;;  %v5805_v37 = vld [vmem:[#allocation4 + $0xc2] sm:$0x1]  ;;  %v6326_v53 = vmax.f32 %v5814_v38, %v6070_v32  ;;  %v6061_v34 = vld [vmem:[#allocation4 + $0xc3] sm:$0x1]  ;;  %vm13946_vm7 = vcmask 195752   ;;  %v2962_v50 = vpop.permute.xlu0 %2961 }
 0x343   :  { %5551 = vst.msk [vmem:[#allocation4 + $0xc6] sm:$0x3] %vm13940_vm10, %v4531_v25  ;;  %v5806_v20 = vld [vmem:[#allocation4 + $0xc4] sm:$0x1]  ;;  %v6062_v52 = vld [vmem:[#allocation4 + $0xc5] sm:$0x1]  ;;  %v6317_v44 = vmax.f32 %v5805_v37, %v6061_v34  ;;  %vm13947_vm10 = vmmov %vm13946_vm7  ;;  %v2968_v57 = vpop.permute.xlu1 %2967 }
 0x344   :  { %5553 = vst.msk [vmem:[#allocation4 + $0xca] sm:$0x3] %vm13941_vm8, %v4547_v36  ;;  %v6318_v59 = vmax.f32 %v5806_v20, %v6062_v52  ;;  %v6072_v33 = vld [vmem:[#allocation4 + $0xd9] sm:$0x1]  ;;  %v5808_v3 = vld [vmem:[#allocation4 + $0xc8] sm:$0x1]  ;;  %vm13948_vm8 = vmmov %vm13946_vm7 }
 0x345   :  { %5554 = vst.msk [vmem:[#allocation4 + $0xcc] sm:$0x3] %vm13942_vm9, %v4546_v40  ;;  %v6525_v21 = vmax.f32 %v6317_v44, %v6325_v61  ;;  %v6328_v35 = vmax.f32 %v5816_v0, %v6072_v33  ;;  %vm13949_vm9 = vmmov %vm13946_vm7  ;;  %2594 = vrot.lane.b32.xlu1 %v12086_v7, %s9739_s22  ;;  %v12173_v25 = vld [vmem:[#allocation2 + $0x2c0] sm:$0xff]  ;;  %v12175_v40 = vld [vmem:[#allocation2 + $0x2b8] sm:$0xff]  ;;  %vm13951_vm5 = vcmask 1042434  }
 0x346   :  { %5563 = vst.msk [vmem:[#allocation4 + $0xde] sm:$0x3] %vm13943_vm12, %v4582_v48  ;;  %v5815_v62 = vld [vmem:[#allocation4 + $0xd6] sm:$0x1]  ;;  %v6071_v30 = vld [vmem:[#allocation4 + $0xd7] sm:$0x1]  ;;  %2210 = vrot.lane.b32.xlu0 %v12159_v54, %s9738_s30  ;;  %v6526_v39 = vmax.f32 %v6318_v59, %v6326_v53  ;;  %v2966_v11 = vpop.permute.xlu0 %2965 }
 0x347   :  { %2732 = vst.msk [vmem:[#allocation3 + $0x158] sm:$0xff] %vm13944_vm6, %v2583_v51  ;;  %v6327_v10 = vmax.f32 %v5815_v62, %v6071_v30  ;;  %v5817_v4 = vld [vmem:[#allocation4 + $0xda] sm:$0x1]  ;;  %v6073_v16 = vld [vmem:[#allocation4 + $0xdb] sm:$0x1]  ;;  %v6867_v26 = vrot.slane %v6525_v21, 7  ;;  %v3349_v7 = vpop.permute.xlu1 %3348 }
 0x348   :  { %2731 = vst.msk [vmem:[#allocation3 + $0x150] sm:$0xff] %vm13945_vm13, %v2581_v45  ;;  %v5818_v15 = vld [vmem:[#allocation4 + $0xdc] sm:$0x1]  ;;  %v6074_v22 = vld [vmem:[#allocation4 + $0xdd] sm:$0x1]  ;;  %v6329_v47 = vmax.f32 %v5817_v4, %v6073_v16  ;;  %v6869_v36 = vrot.slane %v6526_v39, 6 }
 0x349   :  { %3115 = vst.msk [vmem:[#allocation3 + $0x148] sm:$0xff] %vm13946_vm7, %v2964_v8  ;;  %v6330_v48 = vmax.f32 %v5818_v15, %v6074_v22  ;;  %v5811_v51 = vld [vmem:[#allocation4 + $0xce] sm:$0x1]  ;;  %v6064_v1 = vld [vmem:[#allocation4 + $0xc9] sm:$0x1]  ;;  %vm13950_vm12 = vcmask 1041409   ;;  %2598 = vrot.lane.b32.xlu1 %v12173_v25, %s9739_s22 }
 0x34a   :  { %v5807_v43 = vld [vmem:[#allocation4 + $0xc6] sm:$0x1]  ;;  %v6063_v24 = vld [vmem:[#allocation4 + $0xc7] sm:$0x1]  ;;  %3114 = vst.msk [vmem:[#allocation3 + $0x140] sm:$0xff] %vm13947_vm10, %v2962_v50  ;;  %2592 = vrot.lane.b32.xlu0 %v12094_v5, %s9739_s22  ;;  %v6868_v45 = vsel %vm13950_vm12, %v6867_v26, %v6524_v29  ;;  %v6320_v55 = vmax.f32 %v5808_v3, %v6064_v1  ;;  %v3347_v37 = vpop.permute.xlu0 %3346  ;;  %v182_v8 = vld [vmem:[%s13758_s0 + $0x1e8] sm:$0xff] }
 0x34b   :  { %v6319_v13 = vmax.f32 %v5807_v43, %v6063_v24  ;;  %3117 = vst.msk [vmem:[#allocation3 + $0x158] sm:$0xff] %vm13948_vm8, %v2968_v57  ;;  %v5809_v46 = vld [vmem:[#allocation4 + $0xca] sm:$0x1]  ;;  %v6065_v49 = vld [vmem:[#allocation4 + $0xcb] sm:$0x1]  ;;  %v6870_v38 = vsel %vm13951_vm5, %v6869_v36, %v6868_v45  ;;  %v181_v5 = vld [vmem:[%s13758_s0 + $0x1e0] sm:$0xff]  ;;  %v661_v9 = vpop.permute.xlu1 %660 }
 0x34c   :  { %v5810_v19 = vld [vmem:[#allocation4 + $0xcc] sm:$0x1]  ;;  %3116 = vst.msk [vmem:[#allocation3 + $0x150] sm:$0xff] %vm13949_vm9, %v2966_v11  ;;  %v6066_v56 = vld [vmem:[#allocation4 + $0xcd] sm:$0x1]  ;;  %v6321_v60 = vmax.f32 %v5809_v46, %v6065_v49  ;;  %v6528_v20 = vmax.f32 %v6320_v55, %v6328_v35  ;;  %v366_v24 = vld [vmem:[#allocation2 + $0x2a0] sm:$0xff] }
 0x34d   :  { %v5819_v42 = vld [vmem:[#allocation4 + $0xde] sm:$0x1]  ;;  %v6527_v17 = vmax.f32 %v6319_v13, %v6327_v10  ;;  %v6075_v23 = vld [vmem:[#allocation4 + $0xdf] sm:$0x1]  ;;  %v6067_v18 = vld [vmem:[#allocation4 + $0xcf] sm:$0x1]  ;;  %v6322_v32 = vmax.f32 %v5810_v19, %v6066_v56  ;;  %2979 = vrot.lane.b32.xlu1 %v12127_v28, %s9740_s29 }
 0x34e   :  { %v6331_v12 = vmax.f32 %v5819_v42, %v6075_v23  ;;  %v6323_v61 = vmax.f32 %v5811_v51, %v6067_v18  ;;  %3500 = vst.msk [vmem:[#allocation3 + $0x148] sm:$0xff] %vm3458_vm11, %v3349_v7  ;;  %3499 = vst.msk [vmem:[#allocation3 + $0x140] sm:$0xff] %vm3458_vm11, %v3347_v37  ;;  %v6529_v62 = vmax.f32 %v6321_v60, %v6329_v47  ;;  %2596 = vrot.lane.b32.xlu0 %v12175_v40, %s9739_s22  ;;  %v659_v43 = vpop.permute.xlu0 %658  ;;  %v367_v52 = vld [vmem:[#allocation2 + $0x2a8] sm:$0xff]  ;;  %v12208_v15 = vld [vmem:[#allocation2 + $0x2b9] sm:$0xff]  ;;  %vm13952_vm6 = vcmask 130048  }
 0x34f   :  { %v6871_v27 = vrot.slane %v6527_v17, 5  ;;  %v6530_v30 = vmax.f32 %v6322_v32, %v6330_v48  ;;  %245 = vst.msk [vmem:[#allocation2 + $0x319] sm:$0xff] %vm40_vm0, %v181_v5  ;;  %246 = vst.msk [vmem:[#allocation2 + $0x321] sm:$0xff] %vm40_vm0, %v182_v8  ;;  %v6873_v50 = vrot.slane %v6528_v20, 4  ;;  %v12205_v59 = vld [vmem:[#allocation2 + $0x2c1] sm:$0xff]  ;;  %v3353_v4 = vpop.permute.xlu1 %3352  ;;  %v368_v3 = vld [vmem:[#allocation2 + $0x2b8] sm:$0xff] }
 0x350   :  { %v6531_v53 = vmax.f32 %v6323_v61, %v6331_v12  ;;  %v6875_v10 = vrot.slane %v6529_v62, 3  ;;  %808 = vst.msk [vmem:[#allocation3 + $0x168] sm:$0xff] %vm762_vm4, %v661_v9  ;;  %807 = vst.msk [vmem:[#allocation3 + $0x160] sm:$0xff] %vm762_vm4, %v659_v43  ;;  %v369_v22 = vld [vmem:[#allocation2 + $0x2c0] sm:$0xff]  ;;  %vm13953_vm13 = vcmask 72752   ;;  %vm13959_vm5 = vcmask 97352  }
 0x351   :  { %v6872_v34 = vsel %vm6783_vm3, %v6871_v27, %v6870_v38  ;;  %v6877_v14 = vrot.slane %v6530_v30, 2  ;;  %431 = vst.msk [vmem:[#allocation3 + $0x1a8] sm:$0xff] %vm40_vm0, %v367_v52  ;;  %430 = vst.msk [vmem:[#allocation3 + $0x1a0] sm:$0xff] %vm40_vm0, %v366_v24  ;;  %2983 = vrot.lane.b32.xlu1 %v12205_v59, %s9740_s29  ;;  %v12235_v36 = vld [vmem:[#allocation2 + $0x2c2] sm:$0xff]  ;;  %v12240_v48 = vld [vmem:[#allocation2 + $0x2ba] sm:$0xff] }
 0x352   :  { %v6874_v44 = vsel %vm6786_vm14, %v6873_v50, %v6872_v34  ;;  %2977 = vrot.lane.b32.xlu0 %v12133_v58, %s9740_s29  ;;  %v6879_v0 = vrot.slane %v6531_v53, 1  ;;  %3502 = vst.msk [vmem:[#allocation3 + $0x158] sm:$0xff] %vm3458_vm11, %v3353_v4  ;;  %v3351_v33 = vpop.permute.xlu0 %3350  ;;  %vm13954_vm7 = vmmov %vm13953_vm13  ;;  %v12275_v60 = vld [vmem:[#allocation2 + $0x2d0] sm:$0xff] }
 0x353   :  { %v6876_v13 = vsel %vm6789_vm15, %v6875_v10, %v6874_v44  ;;  %3501 = vst.msk [vmem:[#allocation3 + $0x150] sm:$0xff] %vm3458_vm11, %v3351_v33  ;;  %v665_v17 = vpop.permute.xlu1 %664  ;;  %vm13955_vm10 = vmmov %vm13952_vm6 }
 0x354   :  { %v6878_v42 = vsel %vm13783_vm2, %v6877_v14, %v6876_v13  ;;  %810 = vst.msk [vmem:[#allocation3 + $0x178] sm:$0xff] %vm762_vm4, %v665_v17  ;;  %vm13956_vm8 = vmmov %vm13952_vm6 }
 0x355   :  { %v3564_v21 = vld [vmem:[#allocation3 + $0x148] sm:$0xff]  ;;  %v3563_v16 = vld [vmem:[#allocation3 + $0x140] sm:$0xff]  ;;  %v6880_v57 = vsel %vm13780_vm1, %v6879_v0, %v6878_v42  ;;  %433 = vst.msk [vmem:[#allocation3 + $0x1b8] sm:$0xff] %vm40_vm0, %v369_v22  ;;  %3364 = vrot.lane.b32.xlu1 %v12154_v41, %s9741_s16  ;;  %432 = vst.msk [vmem:[#allocation3 + $0x1b0] sm:$0xff] %vm40_vm0, %v368_v3 }
 0x356   :  { %v3607_v39 = vpack.c.bf16 %v3564_v21, %v3563_v16  ;;  %7029 = vst.msk [vmem:[#allocation5 + $0x71] sm:$0xff] %vm13952_vm6, %v6880_v57  ;;  %2981 = vrot.lane.b32.xlu0 %v12208_v15, %s9740_s29  ;;  %v663_v23 = vpop.permute.xlu0 %662  ;;  %vm13957_vm9 = vmmov %vm13954_vm7  ;;  %v12308_v16 = vld [vmem:[#allocation2 + $0x2d9] sm:$0xff]  ;;  %v12314_v22 = vld [vmem:[#allocation2 + $0x2d1] sm:$0xff] }
 0x357   :  { %809 = vst.msk [vmem:[#allocation3 + $0x170] sm:$0xff] %vm762_vm4, %v663_v23  ;;  %v1046_v11 = vpop.permute.xlu1 %1045  ;;  %vm13958_vm12 = vmmov %vm13954_vm7 }
 0x358   :  { %9546 = vmatprep.mubr.bf16.mxu0 %v3607_v39  ;;  %1193 = vst.msk [vmem:[#allocation3 + $0x168] sm:$0xff] %vm13953_vm13, %v1046_v11  ;;  %vm13960_vm6 = vmmov %vm13959_vm5 }
 0x359   :  { %v3566_v29 = vld [vmem:[#allocation3 + $0x158] sm:$0xff]  ;;  %676 = vrot.lane.b32.xlu1 %v12127_v28, %s9734_s18  ;;  %vm13961_vm13 = vmmov %vm13959_vm5 }
 0x35a   :  { %3362 = vrot.lane.b32.xlu0 %v12159_v54, %s9741_s16  ;;  %v1044_v26 = vpop.permute.xlu0 %1043  ;;  %v3565_v35 = vld [vmem:[#allocation3 + $0x150] sm:$0xff] }
 0x35b   :  { %1192 = vst.msk [vmem:[#allocation3 + $0x160] sm:$0xff] %vm13954_vm7, %v1044_v26  ;;  %v3608_v47 = vpack.c.bf16 %v3566_v29, %v3565_v35  ;;  %v1050_v27 = vpop.permute.xlu1 %1049  ;;  %vm13962_vm7 = vmmov %vm13959_vm5 }
 0x35c   :  { %1195 = vst.msk [vmem:[#allocation3 + $0x178] sm:$0xff] %vm13957_vm9, %v1050_v27  ;;  %v12335_v27 = vld [vmem:[#allocation2 + $0x2da] sm:$0xff] }
 0x35d   :  { %v12231_v46 = vld [vmem:[#allocation5 + $0x72] sm:$0xff]  ;;  %9547 = vmatmul.mubr.bf16.gmra.mrb[40].mxu0 %v3608_v47  ;;  %3368 = vrot.lane.b32.xlu1 %v12235_v36, %s9741_s16 }
 0x35e   :  { %v7063_v19 = vld [vmem:[#allocation5 + $0x70] sm:$0xff]  ;;  %674 = vrot.lane.b32.xlu0 %v12133_v58, %s9734_s18  ;;  %7789 = vst.msk [vmem:[#allocation6 + $0x58] sm:$0xff] %vm13955_vm10, %v12231_v46  ;;  %v1048_v28 = vpop.permute.xlu0 %1047  ;;  %vm13963_vm10 = vcmask 121952  }
 0x35f   :  { %7079 = vst.msk [vmem:[#allocation6 + $0x70] sm:$0xff] %vm13956_vm8, %v7063_v19  ;;  %v1431_v58 = vpop.permute.xlu1 %1430  ;;  %vm13964_vm8 = vmmov %vm13963_vm10 }
 0x360   :  { %1194 = vst.msk [vmem:[#allocation3 + $0x170] sm:$0xff] %vm13958_vm12, %v1048_v28  ;;  %vm13965_vm9 = vmmov %vm13964_vm8 }
 0x361   :  { %1578 = vst.msk [vmem:[#allocation3 + $0x168] sm:$0xff] %vm13959_vm5, %v1431_v58  ;;  %680 = vrot.lane.b32.xlu1 %v12205_v59, %s9734_s18  ;;  %vm13966_vm12 = vmmov %vm13964_vm8  ;;  %vm13967_vm5 = vcmask 146552  }
 0x362   :  { %3366 = vrot.lane.b32.xlu0 %v12240_v48, %s9741_s16  ;;  %v1429_v12 = vpop.permute.xlu0 %1428 }
 0x363   :  { %1577 = vst.msk [vmem:[#allocation3 + $0x160] sm:$0xff] %vm13960_vm6, %v1429_v12  ;;  %v1435_v51 = vpop.permute.xlu1 %1434  ;;  %vm13968_vm6 = vmmov %vm13967_vm5 }
 0x364   :  { %1580 = vst.msk [vmem:[#allocation3 + $0x178] sm:$0xff] %vm13961_vm13, %v1435_v51  ;;  %vm13969_vm13 = vmmov %vm13967_vm5  ;;  %v12340_v51 = vld [vmem:[#allocation2 + $0x2d2] sm:$0xff] }
 0x365   :  { %1061 = vrot.lane.b32.xlu1 %v12154_v41, %s9735_s19 }
 0x366   :  { %678 = vrot.lane.b32.xlu0 %v12208_v15, %s9734_s18  ;;  %v1433_v1 = vpop.permute.xlu0 %1432 }
 0x367   :  { %1579 = vst.msk [vmem:[#allocation3 + $0x170] sm:$0xff] %vm13962_vm7, %v1433_v1  ;;  %v1816_v45 = vpop.permute.xlu1 %1815  ;;  %vm13970_vm7 = vcmask 123904  }
 0x368   :  { %1963 = vst.msk [vmem:[#allocation3 + $0x168] sm:$0xff] %vm13963_vm10, %v1816_v45  ;;  %vm13971_vm10 = vmmov %vm13967_vm5 }
 0x369   :  { %1065 = vrot.lane.b32.xlu1 %v12235_v36, %s9735_s19 }
 0x36a   :  { %1059 = vrot.lane.b32.xlu0 %v12159_v54, %s9735_s19  ;;  %v1814_v49 = vpop.permute.xlu0 %1813  ;;  %v12272_v54 = vld [vmem:[#allocation2 + $0x2d8] sm:$0xff] }
 0x36b   :  { %1962 = vst.msk [vmem:[#allocation3 + $0x160] sm:$0xff] %vm13964_vm8, %v1814_v49  ;;  %v1820_v56 = vpop.permute.xlu1 %1819  ;;  %vm13972_vm8 = vmmov %vm13970_vm7 }
 0x36c   :  { %1965 = vst.msk [vmem:[#allocation3 + $0x178] sm:$0xff] %vm13965_vm9, %v1820_v56  ;;  %vm13973_vm9 = vmmov %vm13970_vm7 }
 0x36d   :  { %1446 = vrot.lane.b32.xlu1 %v12173_v25, %s9736_s24  ;;  %v183_v25 = vld [vmem:[%s13758_s0 + $0x1f0] sm:$0xff] }
 0x36e   :  { %1063 = vrot.lane.b32.xlu0 %v12240_v48, %s9735_s19  ;;  %v1818_v18 = vpop.permute.xlu0 %1817  ;;  %v9536_v41 = vpop.f32.mrb[28].mxu0  ;;  %247 = vst.msk [vmem:[#allocation2 + $0x331] sm:$0xff] %vm40_vm0, %v183_v25 }
 0x36f   :  { %1964 = vst.msk [vmem:[#allocation3 + $0x170] sm:$0xff] %vm13966_vm12, %v1818_v18  ;;  %v3845_v55 = vadd.f32 %v12091_v63, %v9536_v41  ;;  %v3836_v7 = vpop.f32.mrb[29].mxu0  ;;  %v2201_v38 = vpop.permute.xlu1 %2200  ;;  %vm13974_vm12 = vmmov %vm13970_vm7 }
 0x370   :  { %v3837_v32 = vadd.f32 %v12091_v63, %v3836_v7  ;;  %2348 = vst.msk [vmem:[#allocation3 + $0x168] sm:$0xff] %vm13967_vm5, %v2201_v38  ;;  %v9537_v37 = vpop.f32.mrb[30].mxu0  ;;  %vm13975_vm5 = vmmov %vm13970_vm7 }
 0x371   :  { %v4009_v20 = vmax.f32 %v3845_v55, 0.0  ;;  %v3848_v5 = vadd.f32 %v12091_v63, %v9537_v37  ;;  %v3839_v8 = vpop.f32.mrb[31].mxu0  ;;  %1450 = vrot.lane.b32.xlu1 %v12272_v54, %s9736_s24 }
 0x372   :  { %1444 = vrot.lane.b32.xlu0 %v12175_v40, %s9736_s24  ;;  %v2199_v61 = vpop.permute.xlu0 %2198  ;;  %v184_v40 = vld [vmem:[%s13758_s0 + $0x1f8] sm:$0xff]  ;;  %v4007_v62 = vmax.f32 %v3837_v32, 0.0  ;;  %v3840_v30 = vadd.f32 %v12091_v63, %v3839_v8  ;;  %s9749_s0 = smov 112  }
 0x373   :  { %2347 = vst.msk [vmem:[#allocation3 + $0x160] sm:$0xff] %vm13968_vm6, %v2199_v61  ;;  %v4617_v53 = vcombine.high %v4009_v20, %v4009_v20  ;;  %v4624_v34 = vrot.slane %v4009_v20, %v11020_v6  ;;  %v4010_v50 = vmax.f32 %v3848_v5, 0.0  ;;  %v2205_v9 = vpop.permute.xlu1 %2204  ;;  %vm13976_vm6 = vmmov %vm13975_vm5 }
 0x374   :  { %248 = vst.msk [vmem:[#allocation2 + $0x339] sm:$0xff] %vm40_vm0, %v184_v40  ;;  %v4583_v10 = vcombine.high %v4007_v62, %v4007_v62  ;;  %v4590_v43 = vrot.slane %v4007_v62, %v11020_v6  ;;  %v4008_v52 = vmax.f32 %v3840_v30, 0.0 }
 0x375   :  { %2350 = vst.msk [vmem:[#allocation3 + $0x178] sm:$0xff] %vm13969_vm13, %v2205_v9  ;;  %v4631_v14 = vrot.slane %v4617_v53, %v11020_v6  ;;  %v4632_v44 = vcombine.high %v4624_v34, %v4624_v34  ;;  %v4634_v13 = vcombine.high %v4010_v50, %v4010_v50  ;;  %v4641_v0 = vrot.slane %v4010_v50, %v11020_v6  ;;  %vm13977_vm13 = vmmov %vm13975_vm5 }
 0x376   :  { %1448 = vrot.lane.b32.xlu0 %v12275_v60, %s9736_s24  ;;  %v2203_v24 = vpop.permute.xlu0 %2202  ;;  %5572 = vst.msk [vmem:[#allocation4 + $0xf0] sm:$0x3] %vm13970_vm7, %v4624_v34  ;;  %1831 = vrot.lane.b32.xlu1 %v12205_v59, %s9737_s25  ;;  %v4597_v4 = vrot.slane %v4583_v10, %v11020_v6  ;;  %v4598_v21 = vcombine.high %v4590_v43, %v4590_v43  ;;  %vm13978_vm7 = vmmov %vm13975_vm5 }
 0x377   :  { %2349 = vst.msk [vmem:[#allocation3 + $0x170] sm:$0xff] %vm13971_vm10, %v2203_v24  ;;  %v4600_v42 = vcombine.high %v4008_v52, %v4008_v52  ;;  %v4607_v33 = vrot.slane %v4008_v52, %v11020_v6  ;;  %v4633_v57 = vcombine.high %v4631_v14, %v4631_v14  ;;  %v4648_v59 = vrot.slane %v4634_v13, %v11020_v6  ;;  %v2587_v17 = vpop.permute.xlu1 %2586 }
 0x378   :  { %5564 = vst.msk [vmem:[#allocation4 + $0xe0] sm:$0x3] %vm13972_vm8, %v4590_v43  ;;  %v4649_v39 = vcombine.high %v4641_v0, %v4641_v0  ;;  %v4599_v23 = vcombine.high %v4597_v4, %v4597_v4  ;;  %vm13979_vm10 = vcmask 171152   ;;  %vm13980_vm8 = vmmov %vm13975_vm5 }
 0x379   :  { %5573 = vst.msk [vmem:[#allocation4 + $0xf2] sm:$0x3] %vm13973_vm9, %v4632_v44  ;;  %v4615_v3 = vcombine.high %v4607_v33, %v4607_v33  ;;  %v4650_v29 = vcombine.high %v4648_v59, %v4648_v59  ;;  %vm13981_vm9 = vmmov %vm13975_vm5 }
 0x37a   :  { %1829 = vrot.lane.b32.xlu0 %v12208_v15, %s9737_s25  ;;  %5574 = vst.msk [vmem:[#allocation4 + $0xf4] sm:$0x3] %vm13974_vm12, %v4631_v14  ;;  %v4614_v15 = vrot.slane %v4600_v42, %v11020_v6  ;;  %v2585_v11 = vpop.permute.xlu0 %2584  ;;  %vm13982_vm12 = vmmov %vm13975_vm5  ;;  %1835 = vrot.lane.b32.xlu1 %v12308_v16, %s9737_s25 }
 0x37b   :  { %5576 = vst.msk [vmem:[#allocation4 + $0xf8] sm:$0x3] %vm13975_vm5, %v4641_v0  ;;  %vm13983_vm5 = vmmov %vm13979_vm10  ;;  %v2591_v35 = vpop.permute.xlu1 %2590 }
 0x37c   :  { %5565 = vst.msk [vmem:[#allocation4 + $0xe2] sm:$0x3] %vm13976_vm6, %v4598_v21  ;;  %5567 = vst.msk [vmem:[#allocation4 + $0xe6] sm:$0x3] %vm13976_vm6, %v4599_v23  ;;  %v4616_v26 = vcombine.high %v4614_v15, %v4614_v15 }
 0x37d   :  { %5566 = vst.msk [vmem:[#allocation4 + $0xe4] sm:$0x3] %vm13977_vm13, %v4597_v4  ;;  %vm13984_vm13 = vmmov %vm13976_vm6  ;;  %v5828_v47 = vld [vmem:[#allocation4 + $0xf0] sm:$0x1]  ;;  %v6084_v28 = vld [vmem:[#allocation4 + $0xf1] sm:$0x1] }
 0x37e   :  { %5568 = vst.msk [vmem:[#allocation4 + $0xe8] sm:$0x3] %vm13978_vm7, %v4607_v33  ;;  %vm13985_vm7 = vmmov %vm13976_vm6  ;;  %1833 = vrot.lane.b32.xlu0 %v12314_v22, %s9737_s25  ;;  %2216 = vrot.lane.b32.xlu1 %v12235_v36, %s9738_s30  ;;  %v6340_v25 = vmax.f32 %v5828_v47, %v6084_v28 }
 0x37f   :  { %2734 = vst.msk [vmem:[#allocation3 + $0x168] sm:$0xff] %vm13979_vm10, %v2587_v17  ;;  %vm13986_vm10 = vmmov %vm13976_vm6  ;;  %v5820_v58 = vld [vmem:[#allocation4 + $0xe0] sm:$0x1]  ;;  %v6076_v12 = vld [vmem:[#allocation4 + $0xe1] sm:$0x1]  ;;  %v2972_v7 = vpop.permute.xlu1 %2971 }
 0x380   :  { %5575 = vst.msk [vmem:[#allocation4 + $0xf6] sm:$0x3] %vm13980_vm8, %v4633_v57  ;;  %vm13987_vm8 = vmmov %vm13976_vm6  ;;  %v2589_v19 = vpop.permute.xlu0 %2588  ;;  %v5829_v1 = vld [vmem:[#allocation4 + $0xf2] sm:$0x1]  ;;  %v6085_v49 = vld [vmem:[#allocation4 + $0xf3] sm:$0x1]  ;;  %v6332_v62 = vmax.f32 %v5820_v58, %v6076_v12 }
 0x381   :  { %5577 = vst.msk [vmem:[#allocation4 + $0xfa] sm:$0x3] %vm13981_vm9, %v4649_v39  ;;  %vm13988_vm9 = vmmov %vm13983_vm5  ;;  %v5830_v45 = vld [vmem:[#allocation4 + $0xf4] sm:$0x1]  ;;  %v6086_v56 = vld [vmem:[#allocation4 + $0xf5] sm:$0x1]  ;;  %v6341_v18 = vmax.f32 %v5829_v1, %v6085_v49 }
 0x382   :  { %5578 = vst.msk [vmem:[#allocation4 + $0xfc] sm:$0x3] %vm13982_vm12, %v4648_v59  ;;  %vm13989_vm12 = vmmov %vm13983_vm5  ;;  %2214 = vrot.lane.b32.xlu0 %v12240_v48, %s9738_s30  ;;  %v6342_v61 = vmax.f32 %v5830_v45, %v6086_v56  ;;  %2220 = vrot.lane.b32.xlu1 %v12335_v27, %s9738_s30  ;;  %v5832_v34 = vld [vmem:[#allocation4 + $0xf8] sm:$0x1]  ;;  %v6088_v52 = vld [vmem:[#allocation4 + $0xf9] sm:$0x1]  ;;  %v6532_v33 = vmax.f32 %v6332_v62, %v6340_v25 }
 0x383   :  { %2733 = vst.msk [vmem:[#allocation3 + $0x160] sm:$0xff] %vm13983_vm5, %v2585_v11  ;;  %v5821_v41 = vld [vmem:[#allocation4 + $0xe2] sm:$0x1]  ;;  %v6077_v37 = vld [vmem:[#allocation4 + $0xe3] sm:$0x1]  ;;  %vm13990_vm5 = vcmask 195752   ;;  %v2976_v14 = vpop.permute.xlu1 %2975  ;;  %v6344_v59 = vmax.f32 %v5832_v34, %v6088_v52 }
 0x384   :  { %5569 = vst.msk [vmem:[#allocation4 + $0xea] sm:$0x3] %vm13984_vm13, %v4615_v3  ;;  %v5822_v55 = vld [vmem:[#allocation4 + $0xe4] sm:$0x1]  ;;  %v2970_v36 = vpop.permute.xlu0 %2969  ;;  %v5823_v20 = vld [vmem:[#allocation4 + $0xe6] sm:$0x1]  ;;  %v6333_v30 = vmax.f32 %v5821_v41, %v6077_v37  ;;  %vm13991_vm6 = vmmov %vm13990_vm5 }
 0x385   :  { %5570 = vst.msk [vmem:[#allocation4 + $0xec] sm:$0x3] %vm13985_vm7, %v4614_v15  ;;  %v6078_v5 = vld [vmem:[#allocation4 + $0xe5] sm:$0x1]  ;;  %v6079_v8 = vld [vmem:[#allocation4 + $0xe7] sm:$0x1]  ;;  %vm13992_vm13 = vmmov %vm13990_vm5 }
 0x386   :  { %5579 = vst.msk [vmem:[#allocation4 + $0xfe] sm:$0x3] %vm13986_vm10, %v4650_v29  ;;  %v6334_v48 = vmax.f32 %v5822_v55, %v6078_v5  ;;  %v6335_v53 = vmax.f32 %v5823_v20, %v6079_v8  ;;  %2218 = vrot.lane.b32.xlu0 %v12340_v51, %s9738_s30  ;;  %v6533_v10 = vmax.f32 %v6333_v30, %v6341_v18  ;;  %v5824_v21 = vld [vmem:[#allocation4 + $0xe8] sm:$0x1]  ;;  %vm13993_vm7 = vmmov %vm13990_vm5  ;;  %v12354_v15 = vld [vmem:[#allocation2 + $0x2f0] sm:$0xff]  ;;  %vm13994_vm10 = vcmask 1041409  }
 0x387   :  { %5571 = vst.msk [vmem:[#allocation4 + $0xee] sm:$0x3] %vm13987_vm8, %v4616_v26  ;;  %v5831_v38 = vld [vmem:[#allocation4 + $0xf6] sm:$0x1]  ;;  %v6087_v32 = vld [vmem:[#allocation4 + $0xf7] sm:$0x1]  ;;  %2602 = vrot.lane.b32.xlu1 %v12272_v54, %s9739_s22  ;;  %v3357_v54 = vpop.permute.xlu1 %3356 }
 0x388   :  { %2736 = vst.msk [vmem:[#allocation3 + $0x178] sm:$0xff] %vm13988_vm9, %v2591_v35  ;;  %v6343_v40 = vmax.f32 %v5831_v38, %v6087_v32  ;;  %v5833_v50 = vld [vmem:[#allocation4 + $0xfa] sm:$0x1]  ;;  %v6089_v24 = vld [vmem:[#allocation4 + $0xfb] sm:$0x1]  ;;  %v6534_v44 = vmax.f32 %v6334_v48, %v6342_v61  ;;  %v2974_v42 = vpop.permute.xlu0 %2973  ;;  %v6881_v57 = vrot.slane %v6533_v10, 7 }
 0x389   :  { %2735 = vst.msk [vmem:[#allocation3 + $0x170] sm:$0xff] %vm13989_vm12, %v2589_v19  ;;  %v5834_v9 = vld [vmem:[#allocation4 + $0xfc] sm:$0x1]  ;;  %v6090_v0 = vld [vmem:[#allocation4 + $0xfd] sm:$0x1]  ;;  %v6345_v39 = vmax.f32 %v5833_v50, %v6089_v24  ;;  %v12356_v3 = vld [vmem:[#allocation2 + $0x2e8] sm:$0xff] }
 0x38a   :  { %3119 = vst.msk [vmem:[#allocation3 + $0x168] sm:$0xff] %vm13990_vm5, %v2972_v7  ;;  %v6535_v13 = vmax.f32 %v6335_v53, %v6343_v40  ;;  %v6883_v11 = vrot.slane %v6534_v44, 6  ;;  %v6346_v26 = vmax.f32 %v5834_v9, %v6090_v0  ;;  %v6080_v19 = vld [vmem:[#allocation4 + $0xe9] sm:$0x1]  ;;  %2600 = vrot.lane.b32.xlu0 %v12275_v60, %s9739_s22  ;;  %v6882_v28 = vsel %vm13994_vm10, %v6881_v57, %v6532_v33  ;;  %v371_v20 = vld [vmem:[#allocation2 + $0x2d8] sm:$0xff]  ;;  %v370_v8 = vld [vmem:[#allocation2 + $0x2d0] sm:$0xff] }
 0x38b   :  { %3118 = vst.msk [vmem:[#allocation3 + $0x160] sm:$0xff] %vm13991_vm6, %v2970_v36  ;;  %v5825_v17 = vld [vmem:[#allocation4 + $0xea] sm:$0x1]  ;;  %v6081_v58 = vld [vmem:[#allocation4 + $0xeb] sm:$0x1]  ;;  %v6336_v45 = vmax.f32 %v5824_v21, %v6080_v19  ;;  %vm13995_vm8 = vcmask 1042434   ;;  %2606 = vrot.lane.b32.xlu1 %v12354_v15, %s9739_s22  ;;  %v669_v36 = vpop.permute.xlu1 %668 }
 0x38c   :  { %3121 = vst.msk [vmem:[#allocation3 + $0x178] sm:$0xff] %vm13992_vm13, %v2976_v14  ;;  %v5826_v23 = vld [vmem:[#allocation4 + $0xec] sm:$0x1]  ;;  %v6885_v29 = vrot.slane %v6535_v13, 5  ;;  %v6082_v12 = vld [vmem:[#allocation4 + $0xed] sm:$0x1]  ;;  %v6884_v49 = vsel %vm13995_vm8, %v6883_v11, %v6882_v28  ;;  %v6337_v56 = vmax.f32 %v5825_v17, %v6081_v58  ;;  %v3355_v55 = vpop.permute.xlu0 %3354 }
 0x38d   :  { %v5835_v43 = vld [vmem:[#allocation4 + $0xfe] sm:$0x1]  ;;  %v6091_v4 = vld [vmem:[#allocation4 + $0xff] sm:$0x1]  ;;  %3120 = vst.msk [vmem:[#allocation3 + $0x170] sm:$0xff] %vm13993_vm7, %v2974_v42  ;;  %v6338_v18 = vmax.f32 %v5826_v23, %v6082_v12  ;;  %v6536_v7 = vmax.f32 %v6336_v45, %v6344_v59  ;;  %v12377_v30 = vld [vmem:[#allocation2 + $0x2f1] sm:$0xff] }
 0x38e   :  { %v6347_v35 = vmax.f32 %v5835_v43, %v6091_v4  ;;  %v5827_v47 = vld [vmem:[#allocation4 + $0xee] sm:$0x1]  ;;  %v6083_v1 = vld [vmem:[#allocation4 + $0xef] sm:$0x1]  ;;  %3504 = vst.msk [vmem:[#allocation3 + $0x168] sm:$0xff] %vm3458_vm11, %v3357_v54  ;;  %3503 = vst.msk [vmem:[#allocation3 + $0x160] sm:$0xff] %vm3458_vm11, %v3355_v55  ;;  %v6537_v60 = vmax.f32 %v6337_v56, %v6345_v39  ;;  %2604 = vrot.lane.b32.xlu0 %v12356_v3, %s9739_s22  ;;  %v6886_v61 = vsel %vm6783_vm3, %v6885_v29, %v6884_v49 }
 0x38f   :  { %v6339_v41 = vmax.f32 %v5827_v47, %v6083_v1  ;;  %v6538_v38 = vmax.f32 %v6338_v18, %v6346_v26  ;;  %v6887_v37 = vrot.slane %v6536_v7, 4  ;;  %812 = vst.msk [vmem:[#allocation3 + $0x188] sm:$0xff] %vm762_vm4, %v669_v36  ;;  %2987 = vrot.lane.b32.xlu1 %v12308_v16, %s9740_s29  ;;  %v3361_v34 = vpop.permute.xlu1 %3360  ;;  %v12381_v50 = vld [vmem:[#allocation2 + $0x2e9] sm:$0xff]  ;;  %vm13996_vm9 = vcmask 130048   ;;  %v12408_v17 = vld [vmem:[#allocation2 + $0x2f2] sm:$0xff]  ;;  %v12447_v54 = vld [vmem:[#allocation2 + $0x300] sm:$0xff] }
 0x390   :  { %v6889_v25 = vrot.slane %v6537_v60, 3  ;;  %v667_v40 = vpop.permute.xlu0 %666  ;;  %435 = vst.msk [vmem:[#allocation3 + $0x1c8] sm:$0xff] %vm40_vm0, %v371_v20  ;;  %434 = vst.msk [vmem:[#allocation3 + $0x1c0] sm:$0xff] %vm40_vm0, %v370_v8  ;;  %v373_v13 = vld [vmem:[#allocation2 + $0x2f0] sm:$0xff]  ;;  %v372_v4 = vld [vmem:[#allocation2 + $0x2e8] sm:$0xff]  ;;  %vm13997_vm12 = vcmask 72752  }
 0x391   :  { %v6539_v32 = vmax.f32 %v6339_v41, %v6347_v35  ;;  %v6891_v5 = vrot.slane %v6538_v38, 2  ;;  %811 = vst.msk [vmem:[#allocation3 + $0x180] sm:$0xff] %vm762_vm4, %v667_v40  ;;  %v6888_v62 = vsel %vm6786_vm14, %v6887_v37, %v6886_v61  ;;  %vm13998_vm5 = vmmov %vm13997_vm12  ;;  %v12412_v11 = vld [vmem:[#allocation2 + $0x2ea] sm:$0xff]  ;;  %vm14002_vm10 = vcmask 97352  }
 0x392   :  { %2985 = vrot.lane.b32.xlu0 %v12314_v22, %s9740_s29  ;;  %v6890_v48 = vsel %vm6789_vm15, %v6889_v25, %v6888_v62  ;;  %3506 = vst.msk [vmem:[#allocation3 + $0x178] sm:$0xff] %vm3458_vm11, %v3361_v34  ;;  %vm13999_vm6 = vmmov %vm13996_vm9 }
 0x393   :  { %v6893_v53 = vrot.slane %v6539_v32, 1  ;;  %v6892_v10 = vsel %vm13783_vm2, %v6891_v5, %v6890_v48  ;;  %2991 = vrot.lane.b32.xlu1 %v12377_v30, %s9740_s29  ;;  %v673_v44 = vpop.permute.xlu1 %672  ;;  %437 = vst.msk [vmem:[#allocation3 + $0x1d8] sm:$0xff] %vm40_vm0, %v373_v13  ;;  %436 = vst.msk [vmem:[#allocation3 + $0x1d0] sm:$0xff] %vm40_vm0, %v372_v4 }
 0x394   :  { %v3359_v43 = vpop.permute.xlu0 %3358  ;;  %814 = vst.msk [vmem:[#allocation3 + $0x198] sm:$0xff] %vm762_vm4, %v673_v44  ;;  %vm14000_vm13 = vmmov %vm13998_vm5 }
 0x395   :  { %v3568_v9 = vld [vmem:[#allocation3 + $0x168] sm:$0xff]  ;;  %v3567_v52 = vld [vmem:[#allocation3 + $0x160] sm:$0xff]  ;;  %v6894_v24 = vsel %vm13780_vm1, %v6893_v53, %v6892_v10  ;;  %3505 = vst.msk [vmem:[#allocation3 + $0x170] sm:$0xff] %vm3458_vm11, %v3359_v43  ;;  %vm14001_vm7 = vmmov %vm13998_vm5 }
 0x396   :  { %v3609_v14 = vpack.c.bf16 %v3568_v9, %v3567_v52  ;;  %7030 = vst.msk [vmem:[#allocation5 + $0x81] sm:$0xff] %vm13996_vm9, %v6894_v24  ;;  %2989 = vrot.lane.b32.xlu0 %v12381_v50, %s9740_s29  ;;  %vm14003_vm8 = vmmov %vm14002_vm10  ;;  %v12477_v10 = vld [vmem:[#allocation2 + $0x309] sm:$0xff] }
 0x397   :  { %3372 = vrot.lane.b32.xlu1 %v12335_v27, %s9741_s16  ;;  %v1054_v21 = vpop.permute.xlu1 %1053  ;;  %vm14004_vm9 = vmmov %vm14003_vm8 }
 0x398   :  { %9550 = vmatprep.mubr.bf16.mxu0 %v3609_v14  ;;  %v671_v0 = vpop.permute.xlu0 %670  ;;  %1197 = vst.msk [vmem:[#allocation3 + $0x188] sm:$0xff] %vm13997_vm12, %v1054_v21  ;;  %vm14005_vm12 = vmmov %vm14003_vm8  ;;  %v12483_v14 = vld [vmem:[#allocation2 + $0x301] sm:$0xff] }
 0x399   :  { %813 = vst.msk [vmem:[#allocation3 + $0x190] sm:$0xff] %vm762_vm4, %v671_v0  ;;  %v3570_v42 = vld [vmem:[#allocation3 + $0x178] sm:$0xff] }
 0x39a   :  { %3370 = vrot.lane.b32.xlu0 %v12340_v51, %s9741_s16 }
 0x39b   :  { %684 = vrot.lane.b32.xlu1 %v12308_v16, %s9734_s18  ;;  %v1058_v23 = vpop.permute.xlu1 %1057 }
 0x39c   :  { %v1052_v33 = vpop.permute.xlu0 %1051  ;;  %v3569_v57 = vld [vmem:[#allocation3 + $0x170] sm:$0xff]  ;;  %1199 = vst.msk [vmem:[#allocation3 + $0x198] sm:$0xff] %vm14000_vm13, %v1058_v23 }
 0x39d   :  { %1196 = vst.msk [vmem:[#allocation3 + $0x180] sm:$0xff] %vm13998_vm5, %v1052_v33  ;;  %v3610_v59 = vpack.c.bf16 %v3570_v42, %v3569_v57  ;;  %v12404_v39 = vld [vmem:[#allocation5 + $0x82] sm:$0xff]  ;;  %vm14006_vm5 = vcmask 121952  }
 0x39e   :  { %682 = vrot.lane.b32.xlu0 %v12314_v22, %s9734_s18  ;;  %7790 = vst.msk [vmem:[#allocation6 + $0x68] sm:$0xff] %vm13999_vm6, %v12404_v39  ;;  %vm14007_vm6 = vmmov %vm14006_vm5 }
 0x39f   :  { %9551 = vmatmul.mubr.bf16.gmra.mrb[44].mxu0 %v3610_v59  ;;  %3376 = vrot.lane.b32.xlu1 %v12408_v17, %s9741_s16  ;;  %v1439_v16 = vpop.permute.xlu1 %1438  ;;  %vm14008_vm13 = vmmov %vm14006_vm5  ;;  %v12504_v59 = vld [vmem:[#allocation2 + $0x30a] sm:$0xff] }
 0x3a0   :  { %v1056_v29 = vpop.permute.xlu0 %1055  ;;  %1582 = vst.msk [vmem:[#allocation3 + $0x188] sm:$0xff] %vm14002_vm10, %v1439_v16  ;;  %vm14010_vm10 = vcmask 146552  }
 0x3a1   :  { %1198 = vst.msk [vmem:[#allocation3 + $0x190] sm:$0xff] %vm14001_vm7, %v1056_v29  ;;  %vm14009_vm7 = vmmov %vm14006_vm5 }
 0x3a2   :  { %3374 = vrot.lane.b32.xlu0 %v12412_v11, %s9741_s16 }
 0x3a3   :  { %688 = vrot.lane.b32.xlu1 %v12377_v30, %s9734_s18  ;;  %v1443_v26 = vpop.permute.xlu1 %1442 }
 0x3a4   :  { %v1437_v22 = vpop.permute.xlu0 %1436  ;;  %1584 = vst.msk [vmem:[#allocation3 + $0x198] sm:$0xff] %vm14004_vm9, %v1443_v26 }
 0x3a5   :  { %1581 = vst.msk [vmem:[#allocation3 + $0x180] sm:$0xff] %vm14003_vm8, %v1437_v22  ;;  %vm14011_vm8 = vmmov %vm14010_vm10  ;;  %v12509_v22 = vld [vmem:[#allocation2 + $0x302] sm:$0xff] }
 0x3a6   :  { %686 = vrot.lane.b32.xlu0 %v12381_v50, %s9734_s18  ;;  %vm14012_vm9 = vmmov %vm14011_vm8 }
 0x3a7   :  { %1069 = vrot.lane.b32.xlu1 %v12335_v27, %s9735_s19  ;;  %v1824_v47 = vpop.permute.xlu1 %1823 }
 0x3a8   :  { %v1441_v35 = vpop.permute.xlu0 %1440  ;;  %1967 = vst.msk [vmem:[#allocation3 + $0x188] sm:$0xff] %vm14006_vm5, %v1824_v47  ;;  %vm14014_vm5 = vmmov %vm14011_vm8 }
 0x3a9   :  { %1583 = vst.msk [vmem:[#allocation3 + $0x190] sm:$0xff] %vm14005_vm12, %v1441_v35  ;;  %vm14013_vm12 = vcmask 123904  }
 0x3aa   :  { %1067 = vrot.lane.b32.xlu0 %v12340_v51, %s9735_s19  ;;  %v12444_v51 = vld [vmem:[#allocation2 + $0x308] sm:$0xff] }
 0x3ab   :  { %1073 = vrot.lane.b32.xlu1 %v12408_v17, %s9735_s19  ;;  %v1828_v28 = vpop.permute.xlu1 %1827 }
 0x3ac   :  { %v1822_v19 = vpop.permute.xlu0 %1821  ;;  %1969 = vst.msk [vmem:[#allocation3 + $0x198] sm:$0xff] %vm14008_vm13, %v1828_v28 }
 0x3ad   :  { %1966 = vst.msk [vmem:[#allocation3 + $0x180] sm:$0xff] %vm14007_vm6, %v1822_v19  ;;  %vm14015_vm6 = vmmov %vm14013_vm12 }
 0x3ae   :  { %1071 = vrot.lane.b32.xlu0 %v12412_v11, %s9735_s19  ;;  %vm14016_vm13 = vmmov %vm14015_vm6 }
 0x3af   :  { %1454 = vrot.lane.b32.xlu1 %v12354_v15, %s9736_s24  ;;  %v9540_v27 = vpop.f32.mrb[32].mxu0  ;;  %v2209_v45 = vpop.permute.xlu1 %2208  ;;  %v12455_v15 = vld [vmem:[%s13760_s2] ss:$0 sm:$0xff] }
 0x3b0   :  { %v1826_v58 = vpop.permute.xlu0 %1825  ;;  %v3861_v12 = vadd.f32 %v12091_v63, %v9540_v27  ;;  %v3852_v1 = vpop.f32.mrb[33].mxu0  ;;  %2352 = vst.msk [vmem:[#allocation3 + $0x188] sm:$0xff] %vm14010_vm10, %v2209_v45  ;;  %vm14018_vm10 = vmmov %vm14015_vm6 }
 0x3b1   :  { %1968 = vst.msk [vmem:[#allocation3 + $0x190] sm:$0xff] %vm14009_vm7, %v1826_v58  ;;  %v3853_v49 = vadd.f32 %v12091_v63, %v3852_v1  ;;  %v9541_v18 = vpop.f32.mrb[34].mxu0  ;;  %vm14017_vm7 = vmmov %vm14015_vm6 }
 0x3b2   :  { %1452 = vrot.lane.b32.xlu0 %v12356_v3, %s9736_s24  ;;  %v4013_v41 = vmax.f32 %v3861_v12, 0.0  ;;  %v3864_v3 = vadd.f32 %v12455_v15, %v9541_v18  ;;  %v3855_v55 = vpop.f32.mrb[35].mxu0 }
 0x3b3   :  { %1458 = vrot.lane.b32.xlu1 %v12444_v51, %s9736_s24  ;;  %v4011_v7 = vmax.f32 %v3853_v49, 0.0  ;;  %v3856_v63 = vadd.f32 %v12455_v15, %v3855_v55  ;;  %v2213_v61 = vpop.permute.xlu1 %2212 }
 0x3b4   :  { %v2207_v56 = vpop.permute.xlu0 %2206  ;;  %v4685_v60 = vcombine.high %v4013_v41, %v4013_v41  ;;  %v4692_v38 = vrot.slane %v4013_v41, %v11020_v6  ;;  %v4014_v32 = vmax.f32 %v3864_v3, 0.0  ;;  %2354 = vst.msk [vmem:[#allocation3 + $0x198] sm:$0xff] %vm14012_vm9, %v2213_v61  ;;  %vm14020_vm9 = vmmov %vm14015_vm6 }
 0x3b5   :  { %2351 = vst.msk [vmem:[#allocation3 + $0x180] sm:$0xff] %vm14011_vm8, %v2207_v56  ;;  %v4651_v37 = vcombine.high %v4011_v7, %v4011_v7  ;;  %v4658_v36 = vrot.slane %v4011_v7, %v11020_v6  ;;  %v4012_v25 = vmax.f32 %v3856_v63, 0.0  ;;  %vm14019_vm8 = vmmov %vm14015_vm6 }
 0x3b6   :  { %1456 = vrot.lane.b32.xlu0 %v12447_v54, %s9736_s24  ;;  %v4699_v20 = vrot.slane %v4685_v60, %v11020_v6  ;;  %v4700_v5 = vcombine.high %v4692_v38, %v4692_v38  ;;  %5588 = vst.msk [vmem:[#allocation4 + $0x110] sm:$0x3] %vm14013_vm12, %v4692_v38  ;;  %v4702_v8 = vcombine.high %v4014_v32, %v4014_v32  ;;  %vm14021_vm12 = vmmov %vm14015_vm6 }
 0x3b7   :  { %v4709_v62 = vrot.slane %v4014_v32, %v11020_v6  ;;  %1839 = vrot.lane.b32.xlu1 %v12377_v30, %s9737_s25  ;;  %v4665_v48 = vrot.slane %v4651_v37, %v11020_v6  ;;  %v4666_v53 = vcombine.high %v4658_v36, %v4658_v36  ;;  %5580 = vst.msk [vmem:[#allocation4 + $0x100] sm:$0x3] %vm14015_vm6, %v4658_v36  ;;  %v2595_v24 = vpop.permute.xlu1 %2594 }
 0x3b8   :  { %v2211_v40 = vpop.permute.xlu0 %2210  ;;  %v4668_v34 = vcombine.high %v4012_v25, %v4012_v25  ;;  %v4675_v9 = vrot.slane %v4012_v25, %v11020_v6  ;;  %v4701_v43 = vcombine.high %v4699_v20, %v4699_v20  ;;  %5589 = vst.msk [vmem:[#allocation4 + $0x112] sm:$0x3] %vm14016_vm13, %v4700_v5  ;;  %v4716_v30 = vrot.slane %v4702_v8, %v11020_v6  ;;  %vm14023_vm13 = vmmov %vm14015_vm6 }
 0x3b9   :  { %2353 = vst.msk [vmem:[#allocation3 + $0x190] sm:$0xff] %vm14014_vm5, %v2211_v40  ;;  %v4717_v52 = vcombine.high %v4709_v62, %v4709_v62  ;;  %v4667_v44 = vcombine.high %v4665_v48, %v4665_v48  ;;  %vm14022_vm5 = vcmask 171152  }
 0x3ba   :  { %1837 = vrot.lane.b32.xlu0 %v12381_v50, %s9737_s25  ;;  %5590 = vst.msk [vmem:[#allocation4 + $0x114] sm:$0x3] %vm14017_vm7, %v4699_v20  ;;  %v4682_v50 = vrot.slane %v4668_v34, %v11020_v6  ;;  %v4683_v13 = vcombine.high %v4675_v9, %v4675_v9  ;;  %v4718_v4 = vcombine.high %v4716_v30, %v4716_v30  ;;  %vm14024_vm7 = vmmov %vm14015_vm6 }
 0x3bb   :  { %5592 = vst.msk [vmem:[#allocation4 + $0x118] sm:$0x3] %vm14018_vm10, %v4709_v62  ;;  %vm14025_vm10 = vmmov %vm14022_vm5  ;;  %1843 = vrot.lane.b32.xlu1 %v12477_v10, %s9737_s25  ;;  %v2599_v42 = vpop.permute.xlu1 %2598 }
 0x3bc   :  { %5581 = vst.msk [vmem:[#allocation4 + $0x102] sm:$0x3] %vm14019_vm8, %v4666_v53  ;;  %v2593_v0 = vpop.permute.xlu0 %2592  ;;  %vm14026_vm8 = vmmov %vm14015_vm6  ;;  %v4684_v21 = vcombine.high %v4682_v50, %v4682_v50 }
 0x3bd   :  { %5582 = vst.msk [vmem:[#allocation4 + $0x104] sm:$0x3] %vm14020_vm9, %v4665_v48  ;;  %vm14027_vm9 = vmmov %vm14015_vm6  ;;  %v5844_v33 = vld [vmem:[#allocation4 + $0x110] sm:$0x1]  ;;  %v6100_v23 = vld [vmem:[#allocation4 + $0x111] sm:$0x1] }
 0x3be   :  { %5584 = vst.msk [vmem:[#allocation4 + $0x108] sm:$0x3] %vm14021_vm12, %v4675_v9  ;;  %vm14028_vm12 = vmmov %vm14015_vm6  ;;  %1841 = vrot.lane.b32.xlu0 %v12483_v14, %s9737_s25  ;;  %v5836_v29 = vld [vmem:[#allocation4 + $0x100] sm:$0x1]  ;;  %v6092_v16 = vld [vmem:[#allocation4 + $0x101] sm:$0x1]  ;;  %v6356_v18 = vmax.f32 %v5844_v33, %v6100_v23 }
 0x3bf   :  { %2738 = vst.msk [vmem:[#allocation3 + $0x188] sm:$0xff] %vm14022_vm5, %v2595_v24  ;;  %vm14029_vm5 = vmmov %vm14015_vm6  ;;  %2224 = vrot.lane.b32.xlu1 %v12408_v17, %s9738_s30  ;;  %v5845_v26 = vld [vmem:[#allocation4 + $0x112] sm:$0x1]  ;;  %v6101_v47 = vld [vmem:[#allocation4 + $0x113] sm:$0x1]  ;;  %v2980_v12 = vpop.permute.xlu1 %2979  ;;  %v6348_v63 = vmax.f32 %v5836_v29, %v6092_v16 }
 0x3c0   :  { %5591 = vst.msk [vmem:[#allocation4 + $0x116] sm:$0x3] %vm14015_vm6, %v4701_v43  ;;  %vm14030_vm6 = vmmov %vm14029_vm5  ;;  %v2597_v57 = vpop.permute.xlu0 %2596  ;;  %v6357_v28 = vmax.f32 %v5845_v26, %v6101_v47  ;;  %v12520_v43 = vld [vmem:[#allocation2 + $0x320] sm:$0xff] }
 0x3c1   :  { %5593 = vst.msk [vmem:[#allocation4 + $0x11a] sm:$0x3] %vm14023_vm13, %v4717_v52  ;;  %vm14031_vm13 = vmmov %vm14025_vm10  ;;  %v5846_v35 = vld [vmem:[#allocation4 + $0x114] sm:$0x1]  ;;  %v6102_v19 = vld [vmem:[#allocation4 + $0x115] sm:$0x1] }
 0x3c2   :  { %5594 = vst.msk [vmem:[#allocation4 + $0x11c] sm:$0x3] %vm14024_vm7, %v4716_v30  ;;  %vm14032_vm7 = vmmov %vm14025_vm10  ;;  %2222 = vrot.lane.b32.xlu0 %v12412_v11, %s9738_s30  ;;  %v6358_v49 = vmax.f32 %v5846_v35, %v6102_v19  ;;  %v5848_v32 = vld [vmem:[#allocation4 + $0x118] sm:$0x1]  ;;  %v6104_v40 = vld [vmem:[#allocation4 + $0x119] sm:$0x1]  ;;  %v6540_v30 = vmax.f32 %v6348_v63, %v6356_v18 }
 0x3c3   :  { %2737 = vst.msk [vmem:[#allocation3 + $0x180] sm:$0xff] %vm14025_vm10, %v2593_v0  ;;  %v5837_v58 = vld [vmem:[#allocation4 + $0x102] sm:$0x1]  ;;  %v6093_v56 = vld [vmem:[#allocation4 + $0x103] sm:$0x1]  ;;  %vm14033_vm10 = vcmask 195752   ;;  %2228 = vrot.lane.b32.xlu1 %v12504_v59, %s9738_s30  ;;  %v2984_v5 = vpop.permute.xlu1 %2983  ;;  %v6360_v24 = vmax.f32 %v5848_v32, %v6104_v40 }
 0x3c4   :  { %5583 = vst.msk [vmem:[#allocation4 + $0x106] sm:$0x3] %vm14026_vm8, %v4667_v44  ;;  %v5838_v27 = vld [vmem:[#allocation4 + $0x104] sm:$0x1]  ;;  %v2978_v17 = vpop.permute.xlu0 %2977  ;;  %v6094_v55 = vld [vmem:[#allocation4 + $0x105] sm:$0x1]  ;;  %v6349_v60 = vmax.f32 %v5837_v58, %v6093_v56  ;;  %vm14034_vm8 = vmmov %vm14033_vm10 }
 0x3c5   :  { %5585 = vst.msk [vmem:[#allocation4 + $0x10a] sm:$0x3] %vm14027_vm9, %v4683_v13  ;;  %v6350_v11 = vmax.f32 %v5838_v27, %v6094_v55  ;;  %v5840_v34 = vld [vmem:[#allocation4 + $0x108] sm:$0x1]  ;;  %vm14035_vm9 = vmmov %vm14034_vm8  ;;  %v12525_v0 = vld [vmem:[#allocation2 + $0x318] sm:$0xff] }
 0x3c6   :  { %5586 = vst.msk [vmem:[#allocation4 + $0x10c] sm:$0x3] %vm14028_vm12, %v4682_v50  ;;  %2226 = vrot.lane.b32.xlu0 %v12509_v22, %s9738_s30  ;;  %v6541_v36 = vmax.f32 %v6349_v60, %v6357_v28  ;;  %vm14036_vm12 = vmmov %vm14034_vm8  ;;  %v6096_v23 = vld [vmem:[#allocation4 + $0x109] sm:$0x1] }
 0x3c7   :  { %5595 = vst.msk [vmem:[#allocation4 + $0x11e] sm:$0x3] %vm14029_vm5, %v4718_v4  ;;  %v5847_v1 = vld [vmem:[#allocation4 + $0x116] sm:$0x1]  ;;  %v6103_v45 = vld [vmem:[#allocation4 + $0x117] sm:$0x1]  ;;  %v6542_v8 = vmax.f32 %v6350_v11, %v6358_v49  ;;  %2610 = vrot.lane.b32.xlu1 %v12444_v51, %s9739_s22  ;;  %v6352_v47 = vmax.f32 %v5840_v34, %v6096_v23  ;;  %v3365_v19 = vpop.permute.xlu1 %3364 }
 0x3c8   :  { %5587 = vst.msk [vmem:[#allocation4 + $0x10e] sm:$0x3] %vm14030_vm6, %v4684_v21  ;;  %v6359_v41 = vmax.f32 %v5847_v1, %v6103_v45  ;;  %v5849_v61 = vld [vmem:[#allocation4 + $0x11a] sm:$0x1]  ;;  %v6105_v20 = vld [vmem:[#allocation4 + $0x11b] sm:$0x1]  ;;  %v2982_v9 = vpop.permute.xlu0 %2981 }
 0x3c9   :  { %2740 = vst.msk [vmem:[#allocation3 + $0x198] sm:$0xff] %vm14031_vm13, %v2599_v42  ;;  %v5850_v37 = vld [vmem:[#allocation4 + $0x11c] sm:$0x1]  ;;  %v6106_v48 = vld [vmem:[#allocation4 + $0x11d] sm:$0x1]  ;;  %v6895_v52 = vrot.slane %v6541_v36, 7  ;;  %v6361_v44 = vmax.f32 %v5849_v61, %v6105_v20  ;;  %v6544_v1 = vmax.f32 %v6352_v47, %v6360_v24 }
 0x3ca   :  { %2739 = vst.msk [vmem:[#allocation3 + $0x190] sm:$0xff] %vm14032_vm7, %v2597_v57  ;;  %v6897_v4 = vrot.slane %v6542_v8, 6  ;;  %v6362_v42 = vmax.f32 %v5850_v37, %v6106_v48  ;;  %2608 = vrot.lane.b32.xlu0 %v12447_v54, %s9739_s22  ;;  %vm14037_vm5 = vcmask 1041409   ;;  %vm14038_vm6 = vcmask 1042434   ;;  %v375_v55 = vld [vmem:[#allocation2 + $0x308] sm:$0xff]  ;;  %v12550_v37 = vld [vmem:[#allocation2 + $0x319] sm:$0xff] }
 0x3cb   :  { %3123 = vst.msk [vmem:[#allocation3 + $0x188] sm:$0xff] %vm14033_vm10, %v2980_v12  ;;  %v5839_v3 = vld [vmem:[#allocation4 + $0x106] sm:$0x1]  ;;  %v6095_v7 = vld [vmem:[#allocation4 + $0x107] sm:$0x1]  ;;  %v6896_v29 = vsel %vm14037_vm5, %v6895_v52, %v6540_v30  ;;  %2614 = vrot.lane.b32.xlu1 %v12520_v43, %s9739_s22  ;;  %v677_v18 = vpop.permute.xlu1 %676  ;;  %vm14039_vm13 = vcmask 130048  }
 0x3cc   :  { %3122 = vst.msk [vmem:[#allocation3 + $0x180] sm:$0xff] %vm14034_vm8, %v2978_v17  ;;  %v6351_v38 = vmax.f32 %v5839_v3, %v6095_v7  ;;  %v5841_v50 = vld [vmem:[#allocation4 + $0x10a] sm:$0x1]  ;;  %v6097_v16 = vld [vmem:[#allocation4 + $0x10b] sm:$0x1]  ;;  %v6898_v51 = vsel %vm14038_vm6, %v6897_v4, %v6896_v29  ;;  %v3363_v12 = vpop.permute.xlu0 %3362  ;;  %v6901_v17 = vrot.slane %v6544_v1, 4 }
 0x3cd   :  { %3125 = vst.msk [vmem:[#allocation3 + $0x198] sm:$0xff] %vm14035_vm9, %v2984_v5  ;;  %v5842_v13 = vld [vmem:[#allocation4 + $0x10c] sm:$0x1]  ;;  %v6098_v26 = vld [vmem:[#allocation4 + $0x10d] sm:$0x1]  ;;  %v6353_v28 = vmax.f32 %v5841_v50, %v6097_v16  ;;  %v374_v7 = vld [vmem:[#allocation2 + $0x300] sm:$0xff] }
 0x3ce   :  { %v5851_v25 = vld [vmem:[#allocation4 + $0x11e] sm:$0x1]  ;;  %v6543_v62 = vmax.f32 %v6351_v38, %v6359_v41  ;;  %v6107_v53 = vld [vmem:[#allocation4 + $0x11f] sm:$0x1]  ;;  %3124 = vst.msk [vmem:[#allocation3 + $0x190] sm:$0xff] %vm14036_vm12, %v2982_v9  ;;  %v6354_v58 = vmax.f32 %v5842_v13, %v6098_v26  ;;  %2612 = vrot.lane.b32.xlu0 %v12525_v0, %s9739_s22  ;;  %v12547_v11 = vld [vmem:[#allocation2 + $0x321] sm:$0xff] }
 0x3cf   :  { %v6363_v33 = vmax.f32 %v5851_v25, %v6107_v53  ;;  %v5843_v57 = vld [vmem:[#allocation4 + $0x10e] sm:$0x1]  ;;  %v6099_v35 = vld [vmem:[#allocation4 + $0x10f] sm:$0x1]  ;;  %3508 = vst.msk [vmem:[#allocation3 + $0x188] sm:$0xff] %vm3458_vm11, %v3365_v19  ;;  %3507 = vst.msk [vmem:[#allocation3 + $0x180] sm:$0xff] %vm3458_vm11, %v3363_v12  ;;  %v6545_v54 = vmax.f32 %v6353_v28, %v6361_v44  ;;  %2995 = vrot.lane.b32.xlu1 %v12477_v10, %s9740_s29  ;;  %v3369_v61 = vpop.permute.xlu1 %3368 }
 0x3d0   :  { %v6899_v21 = vrot.slane %v6543_v62, 5  ;;  %v6355_v27 = vmax.f32 %v5843_v57, %v6099_v35  ;;  %v6546_v45 = vmax.f32 %v6354_v58, %v6362_v42  ;;  %816 = vst.msk [vmem:[#allocation3 + $0x1a8] sm:$0xff] %vm762_vm4, %v677_v18  ;;  %v675_v3 = vpop.permute.xlu0 %674  ;;  %v377_v48 = vld [vmem:[#allocation2 + $0x320] sm:$0xff]  ;;  %v376_v34 = vld [vmem:[#allocation2 + $0x318] sm:$0xff]  ;;  %vm14040_vm7 = vcmask 72752  }
 0x3d1   :  { %v6903_v41 = vrot.slane %v6545_v54, 3  ;;  %815 = vst.msk [vmem:[#allocation3 + $0x1a0] sm:$0xff] %vm762_vm4, %v675_v3  ;;  %vm14041_vm10 = vmmov %vm14040_vm7  ;;  %v12575_v13 = vld [vmem:[#allocation2 + $0x322] sm:$0xff]  ;;  %vm14045_vm12 = vcmask 97352  }
 0x3d2   :  { %v6547_v49 = vmax.f32 %v6355_v27, %v6363_v33  ;;  %v6900_v56 = vsel %vm6783_vm3, %v6899_v21, %v6898_v51  ;;  %v6905_v63 = vrot.slane %v6546_v45, 2  ;;  %439 = vst.msk [vmem:[#allocation3 + $0x1e8] sm:$0xff] %vm40_vm0, %v375_v55  ;;  %438 = vst.msk [vmem:[#allocation3 + $0x1e0] sm:$0xff] %vm40_vm0, %v374_v7  ;;  %2993 = vrot.lane.b32.xlu0 %v12483_v14, %s9740_s29  ;;  %v12578_v21 = vld [vmem:[#allocation2 + $0x31a] sm:$0xff]  ;;  %v12613_v51 = vld [vmem:[#allocation2 + $0x330] sm:$0xff] }
 0x3d3   :  { %v6902_v60 = vsel %vm6786_vm14, %v6901_v17, %v6900_v56  ;;  %3510 = vst.msk [vmem:[#allocation3 + $0x198] sm:$0xff] %vm3458_vm11, %v3369_v61  ;;  %2999 = vrot.lane.b32.xlu1 %v12547_v11, %s9740_s29  ;;  %v681_v62 = vpop.permute.xlu1 %680  ;;  %vm14043_vm8 = vmmov %vm14040_vm7 }
 0x3d4   :  { %v6904_v38 = vsel %vm6789_vm15, %v6903_v41, %v6902_v60  ;;  %v6907_v32 = vrot.slane %v6547_v49, 1  ;;  %v3367_v40 = vpop.permute.xlu0 %3366  ;;  %818 = vst.msk [vmem:[#allocation3 + $0x1b8] sm:$0xff] %vm762_vm4, %v681_v62  ;;  %vm14044_vm9 = vmmov %vm14040_vm7 }
 0x3d5   :  { %v6906_v25 = vsel %vm13783_vm2, %v6905_v63, %v6904_v38  ;;  %3509 = vst.msk [vmem:[#allocation3 + $0x190] sm:$0xff] %vm3458_vm11, %v3367_v40  ;;  %vm14046_vm5 = vmmov %vm14045_vm12 }
 0x3d6   :  { %v3572_v36 = vld [vmem:[#allocation3 + $0x188] sm:$0xff]  ;;  %v3571_v20 = vld [vmem:[#allocation3 + $0x180] sm:$0xff]  ;;  %v6908_v5 = vsel %vm13780_vm1, %v6907_v32, %v6906_v25  ;;  %2997 = vrot.lane.b32.xlu0 %v12550_v37, %s9740_s29  ;;  %441 = vst.msk [vmem:[#allocation3 + $0x1f8] sm:$0xff] %vm40_vm0, %v377_v48  ;;  %440 = vst.msk [vmem:[#allocation3 + $0x1f0] sm:$0xff] %vm40_vm0, %v376_v34 }
 0x3d7   :  { %v3611_v8 = vpack.c.bf16 %v3572_v36, %v3571_v20  ;;  %7031 = vst.msk [vmem:[#allocation5 + $0xb1] sm:$0xff] %vm14039_vm13, %v6908_v5  ;;  %3380 = vrot.lane.b32.xlu1 %v12504_v59, %s9741_s16  ;;  %v1062_v9 = vpop.permute.xlu1 %1061  ;;  %vm14042_vm0 = vmmov %vm14039_vm13  ;;  %v12638_v25 = vld [vmem:[#allocation2 + $0x339] sm:$0xff] }
 0x3d8   :  { %v679_v53 = vpop.permute.xlu0 %678  ;;  %1201 = vst.msk [vmem:[#allocation3 + $0x1a8] sm:$0xff] %vm14040_vm7, %v1062_v9  ;;  %vm14047_vm6 = vmmov %vm14046_vm5  ;;  %vm14049_vm7 = vcmask 121952  }
 0x3d9   :  { %9554 = vmatprep.mubr.bf16.mxu0 %v3611_v8  ;;  %817 = vst.msk [vmem:[#allocation3 + $0x1b0] sm:$0xff] %vm762_vm4, %v679_v53  ;;  %vm14048_vm13 = vmmov %vm14046_vm5  ;;  %v12644_v8 = vld [vmem:[#allocation2 + $0x331] sm:$0xff] }
 0x3da   :  { %3378 = vrot.lane.b32.xlu0 %v12509_v22, %s9741_s16  ;;  %v3574_v30 = vld [vmem:[#allocation3 + $0x198] sm:$0xff] }
 0x3db   :  { %692 = vrot.lane.b32.xlu1 %v12477_v10, %s9734_s18  ;;  %v1066_v4 = vpop.permute.xlu1 %1065 }
 0x3dc   :  { %v1060_v52 = vpop.permute.xlu0 %1059  ;;  %v3573_v24 = vld [vmem:[#allocation3 + $0x190] sm:$0xff]  ;;  %1203 = vst.msk [vmem:[#allocation3 + $0x1b8] sm:$0xff] %vm14043_vm8, %v1066_v4 }
 0x3dd   :  { %1200 = vst.msk [vmem:[#allocation3 + $0x1a0] sm:$0xff] %vm14041_vm10, %v1060_v52  ;;  %v3612_v44 = vpack.c.bf16 %v3574_v30, %v3573_v24  ;;  %vm14050_vm10 = vmmov %vm14049_vm7 }
 0x3de   :  { %v7065_v50 = vld [vmem:[#allocation5 + $0xb0] sm:$0xff]  ;;  %690 = vrot.lane.b32.xlu0 %v12483_v14, %s9734_s18 }
 0x3df   :  { %7081 = vst.msk [vmem:[#allocation6 + $0x90] sm:$0xff] %vm14042_vm0, %v7065_v50  ;;  %9555 = vmatmul.mubr.bf16.gmra.mrb[48].mxu0 %v3612_v44  ;;  %3384 = vrot.lane.b32.xlu1 %v12575_v13, %s9741_s16  ;;  %v1447_v10 = vpop.permute.xlu1 %1446  ;;  %vm14051_vm0 = vmmov %vm14049_vm7  ;;  %v12665_v44 = vld [vmem:[#allocation2 + $0x33a] sm:$0xff] }
 0x3e0   :  { %v1064_v42 = vpop.permute.xlu0 %1063  ;;  %1586 = vst.msk [vmem:[#allocation3 + $0x1a8] sm:$0xff] %vm14045_vm12, %v1447_v10  ;;  %vm14052_vm8 = vmmov %vm14051_vm0  ;;  %v12670_v10 = vld [vmem:[#allocation2 + $0x332] sm:$0xff] }
 0x3e1   :  { %1202 = vst.msk [vmem:[#allocation3 + $0x1b0] sm:$0xff] %vm14044_vm9, %v1064_v42  ;;  %vm14053_vm9 = vcmask 146552  }
 0x3e2   :  { %3382 = vrot.lane.b32.xlu0 %v12578_v21, %s9741_s16  ;;  %vm14054_vm12 = vmmov %vm14053_vm9 }
 0x3e3   :  { %696 = vrot.lane.b32.xlu1 %v12547_v11, %s9734_s18  ;;  %v1451_v33 = vpop.permute.xlu1 %1450 }
 0x3e4   :  { %v1445_v14 = vpop.permute.xlu0 %1444  ;;  %1588 = vst.msk [vmem:[#allocation3 + $0x1b8] sm:$0xff] %vm14047_vm6, %v1451_v33  ;;  %vm14056_vm6 = vcmask 123904  }
 0x3e5   :  { %1585 = vst.msk [vmem:[#allocation3 + $0x1a0] sm:$0xff] %vm14046_vm5, %v1445_v14  ;;  %vm14055_vm5 = vmmov %vm14053_vm9 }
 0x3e6   :  { %694 = vrot.lane.b32.xlu0 %v12550_v37, %s9734_s18 }
 0x3e7   :  { %1077 = vrot.lane.b32.xlu1 %v12504_v59, %s9735_s19 }
 0x3e8   :  { %v1449_v57 = vpop.permute.xlu0 %1448  ;;  %v1832_v23 = vpop.permute.xlu1 %1831 }
 0x3e9   :  { %1587 = vst.msk [vmem:[#allocation3 + $0x1b0] sm:$0xff] %vm14048_vm13, %v1449_v57  ;;  %vm14057_vm13 = vmmov %vm14055_vm5 }
 0x3ea   :  { %1075 = vrot.lane.b32.xlu0 %v12509_v22, %s9735_s19  ;;  %1971 = vst.msk [vmem:[#allocation3 + $0x1a8] sm:$0xff] %vm14049_vm7, %v1832_v23  ;;  %v12610_v22 = vld [vmem:[#allocation2 + $0x338] sm:$0xff]  ;;  %vm14058_vm7 = vmmov %vm14056_vm6 }
 0x3eb   :  { %1081 = vrot.lane.b32.xlu1 %v12575_v13, %s9735_s19 }
 0x3ec   :  { %v1830_v29 = vpop.permute.xlu0 %1829  ;;  %v1836_v16 = vpop.permute.xlu1 %1835 }
 0x3ed   :  { %1970 = vst.msk [vmem:[#allocation3 + $0x1a0] sm:$0xff] %vm14050_vm10, %v1830_v29  ;;  %vm14059_vm10 = vmmov %vm14056_vm6 }
 0x3ee   :  { %1079 = vrot.lane.b32.xlu0 %v12578_v21, %s9735_s19  ;;  %1973 = vst.msk [vmem:[#allocation3 + $0x1b8] sm:$0xff] %vm14051_vm0, %v1836_v16  ;;  %vm14060_vm0 = vmmov %vm14056_vm6  ;;  %s9745_s19 = smov 48  }
 0x3ef   :  { %1462 = vrot.lane.b32.xlu1 %v12520_v43, %s9736_s24 }
 0x3f0   :  { %v1834_v26 = vpop.permute.xlu0 %1833  ;;  %v9544_v59 = vpop.f32.mrb[36].mxu0 }
 0x3f1   :  { %1972 = vst.msk [vmem:[#allocation3 + $0x1b0] sm:$0xff] %vm14052_vm8, %v1834_v26  ;;  %v3877_v35 = vadd.f32 %v12455_v15, %v9544_v59  ;;  %v3868_v47 = vpop.f32.mrb[37].mxu0  ;;  %v2217_v19 = vpop.permute.xlu1 %2216  ;;  %vm14061_vm8 = vmmov %vm14060_vm0 }
 0x3f2   :  { %1460 = vrot.lane.b32.xlu0 %v12525_v0, %s9736_s24  ;;  %v3869_v28 = vadd.f32 %v12455_v15, %v3868_v47  ;;  %2356 = vst.msk [vmem:[#allocation3 + $0x1a8] sm:$0xff] %vm14053_vm9, %v2217_v19  ;;  %v9545_v27 = vpop.f32.mrb[38].mxu0  ;;  %vm14062_vm9 = vmmov %vm14060_vm0 }
 0x3f3   :  { %v4017_v12 = vmax.f32 %v3877_v35, 0.0  ;;  %v3880_v43 = vadd.f32 %v12455_v15, %v9545_v27  ;;  %v3871_v0 = vpop.f32.mrb[39].mxu0  ;;  %1466 = vrot.lane.b32.xlu1 %v12610_v22, %s9736_s24 }
 0x3f4   :  { %v2215_v58 = vpop.permute.xlu0 %2214  ;;  %v4015_v1 = vmax.f32 %v3869_v28, 0.0  ;;  %v3872_v54 = vadd.f32 %v12455_v15, %v3871_v0 }
 0x3f5   :  { %2355 = vst.msk [vmem:[#allocation3 + $0x1a0] sm:$0xff] %vm14054_vm12, %v2215_v58  ;;  %v4753_v45 = vcombine.high %v4017_v12, %v4017_v12  ;;  %v4760_v49 = vrot.slane %v4017_v12, %v11020_v6  ;;  %v4018_v56 = vmax.f32 %v3880_v43, 0.0  ;;  %v2221_v17 = vpop.permute.xlu1 %2220  ;;  %vm14063_vm12 = vmmov %vm14060_vm0 }
 0x3f6   :  { %1464 = vrot.lane.b32.xlu0 %v12613_v51, %s9736_s24  ;;  %v4719_v18 = vcombine.high %v4015_v1, %v4015_v1  ;;  %v4726_v41 = vrot.slane %v4015_v1, %v11020_v6  ;;  %v4016_v3 = vmax.f32 %v3872_v54, 0.0  ;;  %2358 = vst.msk [vmem:[#allocation3 + $0x1b8] sm:$0xff] %vm14055_vm5, %v2221_v17  ;;  %vm14064_vm5 = vmmov %vm14060_vm0 }
 0x3f7   :  { %v4767_v7 = vrot.slane %v4753_v45, %v11020_v6  ;;  %v4768_v63 = vcombine.high %v4760_v49, %v4760_v49  ;;  %5604 = vst.msk [vmem:[#allocation4 + $0x130] sm:$0x3] %vm14056_vm6, %v4760_v49  ;;  %v4770_v15 = vcombine.high %v4018_v56, %v4018_v56  ;;  %v4777_v60 = vrot.slane %v4018_v56, %v11020_v6 }
 0x3f8   :  { %v2219_v55 = vpop.permute.xlu0 %2218  ;;  %1847 = vrot.lane.b32.xlu1 %v12547_v11, %s9737_s25  ;;  %v4733_v38 = vrot.slane %v4719_v18, %v11020_v6  ;;  %v4734_v32 = vcombine.high %v4726_v41, %v4726_v41  ;;  %5596 = vst.msk [vmem:[#allocation4 + $0x120] sm:$0x3] %vm14058_vm7, %v4726_v41  ;;  %v4736_v61 = vcombine.high %v4016_v3, %v4016_v3  ;;  %vm14065_vm6 = vcmask 171152   ;;  %vm14067_vm7 = vmmov %vm14060_vm0 }
 0x3f9   :  { %2357 = vst.msk [vmem:[#allocation3 + $0x1b0] sm:$0xff] %vm14057_vm13, %v2219_v55  ;;  %v4743_v36 = vrot.slane %v4016_v3, %v11020_v6  ;;  %v4769_v40 = vcombine.high %v4767_v7, %v4767_v7  ;;  %v4784_v11 = vrot.slane %v4770_v15, %v11020_v6  ;;  %v4785_v20 = vcombine.high %v4777_v60, %v4777_v60  ;;  %v2603_v5 = vpop.permute.xlu1 %2602  ;;  %vm14066_vm13 = vmmov %vm14060_vm0 }
 0x3fa   :  { %1845 = vrot.lane.b32.xlu0 %v12550_v37, %s9737_s25  ;;  %5605 = vst.msk [vmem:[#allocation4 + $0x132] sm:$0x3] %vm14059_vm10, %v4768_v63  ;;  %v4735_v62 = vcombine.high %v4733_v38, %v4733_v38  ;;  %v4750_v37 = vrot.slane %v4736_v61, %v11020_v6  ;;  %vm14068_vm10 = vmmov %vm14060_vm0 }
 0x3fb   :  { %5606 = vst.msk [vmem:[#allocation4 + $0x134] sm:$0x3] %vm14060_vm0, %v4767_v7  ;;  %v4751_v48 = vcombine.high %v4743_v36, %v4743_v36  ;;  %v4786_v34 = vcombine.high %v4784_v11, %v4784_v11  ;;  %vm14069_vm0 = vmmov %vm14065_vm6 }
 0x3fc   :  { %5608 = vst.msk [vmem:[#allocation4 + $0x138] sm:$0x3] %vm14061_vm8, %v4777_v60  ;;  %v2601_v53 = vpop.permute.xlu0 %2600  ;;  %1851 = vrot.lane.b32.xlu1 %v12638_v25, %s9737_s25  ;;  %vm14070_vm8 = vmmov %vm14064_vm5  ;;  %v4752_v9 = vcombine.high %v4750_v37, %v4750_v37 }
 0x3fd   :  { %5597 = vst.msk [vmem:[#allocation4 + $0x122] sm:$0x3] %vm14062_vm9, %v4734_v32  ;;  %vm14071_vm9 = vmmov %vm14064_vm5  ;;  %v2607_v30 = vpop.permute.xlu1 %2606 }
 0x3fe   :  { %5598 = vst.msk [vmem:[#allocation4 + $0x124] sm:$0x3] %vm14063_vm12, %v4733_v38  ;;  %vm14072_vm12 = vmmov %vm14064_vm5  ;;  %1849 = vrot.lane.b32.xlu0 %v12644_v8, %s9737_s25  ;;  %v5860_v52 = vld [vmem:[#allocation4 + $0x130] sm:$0x1]  ;;  %v6116_v50 = vld [vmem:[#allocation4 + $0x131] sm:$0x1] }
 0x3ff   :  { %5600 = vst.msk [vmem:[#allocation4 + $0x128] sm:$0x3] %vm14064_vm5, %v4743_v36  ;;  %5611 = vst.msk [vmem:[#allocation4 + $0x13e] sm:$0x3] %vm14064_vm5, %v4786_v34  ;;  %v5852_v4 = vld [vmem:[#allocation4 + $0x120] sm:$0x1]  ;;  %v6372_v58 = vmax.f32 %v5860_v52, %v6116_v50 }
 0x400   :  { %2742 = vst.msk [vmem:[#allocation3 + $0x1a8] sm:$0xff] %vm14065_vm6, %v2603_v5  ;;  %vm14073_vm6 = vmmov %vm14064_vm5  ;;  %v2605_v24 = vpop.permute.xlu0 %2604  ;;  %v6108_v42 = vld [vmem:[#allocation4 + $0x121] sm:$0x1]  ;;  %2232 = vrot.lane.b32.xlu1 %v12575_v13, %s9738_s30  ;;  %v2431_v36 = vld [vmem:[#allocation2 + $0x350] sm:$0xff]  ;;  %vm14081_vm5 = vcmask 1042434  }
 0x401   :  { %5607 = vst.msk [vmem:[#allocation4 + $0x136] sm:$0x3] %vm14066_vm13, %v4769_v40  ;;  %vm14074_vm13 = vmmov %vm14069_vm0  ;;  %v5861_v14 = vld [vmem:[#allocation4 + $0x132] sm:$0x1]  ;;  %v6117_v57 = vld [vmem:[#allocation4 + $0x133] sm:$0x1]  ;;  %v2988_v59 = vpop.permute.xlu1 %2987  ;;  %v6364_v1 = vmax.f32 %v5852_v4, %v6108_v42 }
 0x402   :  { %5609 = vst.msk [vmem:[#allocation4 + $0x13a] sm:$0x3] %vm14067_vm7, %v4785_v20  ;;  %vm14075_vm7 = vmmov %vm14069_vm0  ;;  %v5862_v33 = vld [vmem:[#allocation4 + $0x134] sm:$0x1]  ;;  %2230 = vrot.lane.b32.xlu0 %v12578_v21, %s9738_s30  ;;  %v6118_v23 = vld [vmem:[#allocation4 + $0x135] sm:$0x1]  ;;  %v6373_v29 = vmax.f32 %v5861_v14, %v6117_v57 }
 0x403   :  { %5610 = vst.msk [vmem:[#allocation4 + $0x13c] sm:$0x3] %vm14068_vm10, %v4784_v11  ;;  %v6374_v19 = vmax.f32 %v5862_v33, %v6118_v23  ;;  %vm14076_vm10 = vcmask 195752   ;;  %v5864_v49 = vld [vmem:[#allocation4 + $0x138] sm:$0x1]  ;;  %v6548_v40 = vmax.f32 %v6364_v1, %v6372_v58  ;;  %v7056_v1 = vld [vmem:[#allocation5] sm:$0xff] }
 0x404   :  { %2741 = vst.msk [vmem:[#allocation3 + $0x1a0] sm:$0xff] %vm14069_vm0, %v2601_v53  ;;  %v5853_v16 = vld [vmem:[#allocation4 + $0x122] sm:$0x1]  ;;  %v6109_v28 = vld [vmem:[#allocation4 + $0x123] sm:$0x1]  ;;  %v2986_v13 = vpop.permute.xlu0 %2985  ;;  %vm14077_vm0 = vmmov %vm14076_vm10  ;;  %2236 = vrot.lane.b32.xlu1 %v12665_v44, %s9738_s30 }
 0x405   :  { %5599 = vst.msk [vmem:[#allocation4 + $0x126] sm:$0x3] %vm14070_vm8, %v4735_v62  ;;  %v5854_v26 = vld [vmem:[#allocation4 + $0x124] sm:$0x1]  ;;  %v6110_v43 = vld [vmem:[#allocation4 + $0x125] sm:$0x1]  ;;  %v6365_v54 = vmax.f32 %v5853_v16, %v6109_v28  ;;  %v2992_v7 = vpop.permute.xlu1 %2991  ;;  %vm14078_vm8 = vmmov %vm14077_vm0 }
 0x406   :  { %5601 = vst.msk [vmem:[#allocation4 + $0x12a] sm:$0x3] %vm14071_vm9, %v4751_v48  ;;  %v6366_v21 = vmax.f32 %v5854_v26, %v6110_v43  ;;  %2234 = vrot.lane.b32.xlu0 %v12670_v10, %s9738_s30  ;;  %v5867_v41 = vld [vmem:[#allocation4 + $0x13e] sm:$0x1]  ;;  %v6120_v3 = vld [vmem:[#allocation4 + $0x139] sm:$0x1]  ;;  %vm14079_vm9 = vmmov %vm14077_vm0 }
 0x407   :  { %5602 = vst.msk [vmem:[#allocation4 + $0x12c] sm:$0x3] %vm14072_vm12, %v4750_v37  ;;  %v6549_v18 = vmax.f32 %v6365_v54, %v6373_v29  ;;  %v6123_v38 = vld [vmem:[#allocation4 + $0x13f] sm:$0x1]  ;;  %v5856_v32 = vld [vmem:[#allocation4 + $0x128] sm:$0x1]  ;;  %v6376_v20 = vmax.f32 %v5864_v49, %v6120_v3 }
 0x408   :  { %5603 = vst.msk [vmem:[#allocation4 + $0x12e] sm:$0x3] %vm14073_vm6, %v4752_v9  ;;  %v5863_v35 = vld [vmem:[#allocation4 + $0x136] sm:$0x1]  ;;  %v6119_v47 = vld [vmem:[#allocation4 + $0x137] sm:$0x1]  ;;  %v6550_v63 = vmax.f32 %v6366_v21, %v6374_v19  ;;  %v2990_v61 = vpop.permute.xlu0 %2989  ;;  %2618 = vrot.lane.b32.xlu1 %v12610_v22, %s9739_s22 }
 0x409   :  { %2744 = vst.msk [vmem:[#allocation3 + $0x1b8] sm:$0xff] %vm14074_vm13, %v2607_v30  ;;  %v6375_v27 = vmax.f32 %v5863_v35, %v6119_v47  ;;  %v5865_v56 = vld [vmem:[#allocation4 + $0x13a] sm:$0x1]  ;;  %v6121_v55 = vld [vmem:[#allocation4 + $0x13b] sm:$0x1]  ;;  %v6909_v11 = vrot.slane %v6549_v18, 7  ;;  %v6379_v30 = vmax.f32 %v5867_v41, %v6123_v38  ;;  %v3373_v57 = vpop.permute.xlu1 %3372 }
 0x40a   :  { %2743 = vst.msk [vmem:[#allocation3 + $0x1b0] sm:$0xff] %vm14075_vm7, %v2605_v24  ;;  %v5866_v17 = vld [vmem:[#allocation4 + $0x13c] sm:$0x1]  ;;  %v6122_v60 = vld [vmem:[#allocation4 + $0x13d] sm:$0x1]  ;;  %v6377_v5 = vmax.f32 %v5865_v56, %v6121_v55  ;;  %v2430_v48 = vld [vmem:[#allocation2 + $0x348] sm:$0xff]  ;;  %2616 = vrot.lane.b32.xlu0 %v12613_v51, %s9739_s22 }
 0x40b   :  { %3127 = vst.msk [vmem:[#allocation3 + $0x1a8] sm:$0xff] %vm14076_vm10, %v2988_v59  ;;  %v6911_v53 = vrot.slane %v6550_v63, 6  ;;  %v6378_v9 = vmax.f32 %v5866_v17, %v6122_v60  ;;  %v6112_v24 = vld [vmem:[#allocation4 + $0x129] sm:$0x1]  ;;  %vm14080_vm12 = vcmask 1041409   ;;  %vm14082_vm6 = vcmask 130048  }
 0x40c   :  { %v5855_v12 = vld [vmem:[#allocation4 + $0x126] sm:$0x1]  ;;  %v6111_v0 = vld [vmem:[#allocation4 + $0x127] sm:$0x1]  ;;  %3126 = vst.msk [vmem:[#allocation3 + $0x1a0] sm:$0xff] %vm14077_vm0, %v2986_v13  ;;  %v6910_v50 = vsel %vm14080_vm12, %v6909_v11, %v6548_v40  ;;  %v6368_v33 = vmax.f32 %v5856_v32, %v6112_v24  ;;  %v3371_v26 = vpop.permute.xlu0 %3370  ;;  %2622 = vrot.lane.b32.xlu1 %v2431_v36, %s9739_s22  ;;  %v2815_v49 = vld [vmem:[#allocation2 + $0x349] sm:$0xff] }
 0x40d   :  { %v6367_v45 = vmax.f32 %v5855_v12, %v6111_v0  ;;  %3129 = vst.msk [vmem:[#allocation3 + $0x1b8] sm:$0xff] %vm14078_vm8, %v2992_v7  ;;  %v5857_v62 = vld [vmem:[#allocation4 + $0x12a] sm:$0x1]  ;;  %v6113_v4 = vld [vmem:[#allocation4 + $0x12b] sm:$0x1]  ;;  %v6912_v23 = vsel %vm14081_vm5, %v6911_v53, %v6910_v50  ;;  %v685_v13 = vpop.permute.xlu1 %684  ;;  %v2816_v0 = vld [vmem:[#allocation2 + $0x351] sm:$0xff] }
 0x40e   :  { %v5858_v37 = vld [vmem:[#allocation4 + $0x12c] sm:$0x1]  ;;  %3128 = vst.msk [vmem:[#allocation3 + $0x1b0] sm:$0xff] %vm14079_vm9, %v2990_v61  ;;  %v6114_v42 = vld [vmem:[#allocation4 + $0x12d] sm:$0x1]  ;;  %v6369_v22 = vmax.f32 %v5857_v62, %v6113_v4  ;;  %v6552_v59 = vmax.f32 %v6368_v33, %v6376_v20  ;;  %2620 = vrot.lane.b32.xlu0 %v2430_v48, %s9739_s22  ;;  %vm14083_vm13 = vmmov %vm14082_vm6  ;;  %vm14084_vm7 = vcmask 72752  }
 0x40f   :  { %v6551_v15 = vmax.f32 %v6367_v45, %v6375_v27  ;;  %v5859_v52 = vld [vmem:[#allocation4 + $0x12e] sm:$0x1]  ;;  %v6115_v14 = vld [vmem:[#allocation4 + $0x12f] sm:$0x1]  ;;  %v6370_v29 = vmax.f32 %v5858_v37, %v6114_v42  ;;  %3512 = vst.msk [vmem:[#allocation3 + $0x1a8] sm:$0xff] %vm3458_vm11, %v3373_v57  ;;  %3511 = vst.msk [vmem:[#allocation3 + $0x1a0] sm:$0xff] %vm3458_vm11, %v3371_v26 }
 0x410   :  { %v6371_v16 = vmax.f32 %v5859_v52, %v6115_v14  ;;  %v6553_v51 = vmax.f32 %v6369_v22, %v6377_v5  ;;  %v6915_v28 = vrot.slane %v6552_v59, 4  ;;  %820 = vst.msk [vmem:[#allocation3 + $0x1c8] sm:$0xff] %vm762_vm4, %v685_v13  ;;  %v683_v27 = vpop.permute.xlu0 %682  ;;  %3003 = vrot.lane.b32.xlu1 %v12638_v25, %s9740_s29  ;;  %v9637_v55 = vld [vmem:[%s13761_s3 + $0x40] sm:$0xff]   ;;  %v3200_v60 = vld [vmem:[#allocation2 + $0x34a] sm:$0xff]  ;;  %vm14085_vm10 = vmmov %vm14084_vm7  ;;  %vm14090_vm5 = vcmask 97352  }
 0x411   :  { %v6913_v34 = vrot.slane %v6551_v15, 5  ;;  %v6554_v35 = vmax.f32 %v6370_v29, %v6378_v9  ;;  %819 = vst.msk [vmem:[#allocation3 + $0x1c0] sm:$0xff] %vm762_vm4, %v683_v27  ;;  %v3377_v45 = vpop.permute.xlu1 %3376  ;;  %v9638_v7 = vld [vmem:[%s13761_s3] sm:$0xff]   ;;  %9364 = vmatprep.subr.bf16.mxu1 %v9637_v55  ;;  %v3201_v15 = vld [vmem:[#allocation2 + $0x352] sm:$0xff]  ;;  %v9639_v61 = vld [vmem:[%s13761_s3 + $0x48] sm:$0xff]  }
 0x412   :  { %v6555_v47 = vmax.f32 %v6371_v16, %v6379_v30  ;;  %v6917_v58 = vrot.slane %v6553_v51, 3  ;;  %3001 = vrot.lane.b32.xlu0 %v12644_v8, %s9740_s29  ;;  %7072 = vst.msk [vmem:[#allocation6] sm:$0xff] %vm14082_vm6, %v7056_v1  ;;  %9365 = vmatpush3.bf16.msra.mxu1 %v9638_v7  ;;  %v9640_v36 = vld [vmem:[%s13761_s3 + $0x8] sm:$0xff]   ;;  %v9641_v5 = vld [vmem:[%s13761_s3 + $0x50] sm:$0xff]   ;;  %vm14086_vm0 = vmmov %vm14082_vm6 }
 0x413   :  { %v6914_v19 = vsel %vm6783_vm3, %v6913_v34, %v6912_v23  ;;  %v6919_v12 = vrot.slane %v6554_v35, 2  ;;  %3514 = vst.msk [vmem:[#allocation3 + $0x1b8] sm:$0xff] %vm3458_vm11, %v3377_v45  ;;  %9366 = vmatprep.subr.bf16.mxu1 %v9639_v61  ;;  %v9642_v62 = vld [vmem:[%s13761_s3 + $0x10] sm:$0xff]   ;;  %vm14087_vm8 = vmmov %vm14086_vm0  ;;  %v7088_v48 = vld [vmem:[#allocation5 + $0x1] sm:$0xff] }
 0x414   :  { %v6916_v43 = vsel %vm6786_vm14, %v6915_v28, %v6914_v19  ;;  %v6921_v21 = vrot.slane %v6555_v47, 1  ;;  %v3375_v25 = vpop.permute.xlu0 %3374  ;;  %3007 = vrot.lane.b32.xlu1 %v2816_v0, %s9740_s29  ;;  %vm14088_vm9 = vmmov %vm14084_vm7  ;;  %v7089_v34 = vld [vmem:[#allocation5 + $0x11] sm:$0xff]  ;;  %v7185_v24 = vld [vmem:[#allocation5 + $0x2] sm:$0xff] }
 0x415   :  { %v6918_v54 = vsel %vm6789_vm15, %v6917_v58, %v6916_v43  ;;  %3513 = vst.msk [vmem:[#allocation3 + $0x1b0] sm:$0xff] %vm3458_vm11, %v3375_v25  ;;  %v689_v3 = vpop.permute.xlu1 %688  ;;  %vm14089_vm12 = vmmov %vm14084_vm7  ;;  %v9643_v9 = vld [vmem:[%s13761_s3 + $0x58] sm:$0xff]   ;;  %v9645_v42 = vld [vmem:[%s13761_s3 + $0x60] sm:$0xff]  }
 0x416   :  { %v3576_v56 = vld [vmem:[#allocation3 + $0x1a8] sm:$0xff]  ;;  %v6920_v17 = vsel %vm13783_vm2, %v6919_v12, %v6918_v54  ;;  %v3575_v18 = vld [vmem:[#allocation3 + $0x1a0] sm:$0xff]  ;;  %3005 = vrot.lane.b32.xlu0 %v2815_v49, %s9740_s29  ;;  %822 = vst.msk [vmem:[#allocation3 + $0x1d8] sm:$0xff] %vm762_vm4, %v689_v3  ;;  %9367 = vmatpush3.bf16.msra.mxu1 %v9640_v36  ;;  %v9644_v30 = vld [vmem:[%s13761_s3 + $0x18] sm:$0xff]   ;;  %s9746_s29 = smov 64  }
 0x417   :  { %v6922_v41 = vsel %vm13780_vm1, %v6921_v21, %v6920_v17  ;;  %v3613_v8 = vpack.c.bf16 %v3576_v56, %v3575_v18  ;;  %9368 = vmatprep.subr.bf16.mxu1 %v9641_v5  ;;  %v7186_v4 = vld [vmem:[#allocation5 + $0x12] sm:$0xff]  ;;  %vm14091_vm6 = vmmov %vm14090_vm5  ;;  %v9646_v14 = vld [vmem:[%s13761_s3 + $0x20] sm:$0xff]  }
 0x418   :  { %7032 = vst.msk [vmem:[#allocation5 + $0xc1] sm:$0xff] %vm14083_vm13, %v6922_v41  ;;  %v687_v63 = vpop.permute.xlu0 %686  ;;  %3388 = vrot.lane.b32.xlu1 %v12665_v44, %s9741_s16  ;;  %vm14092_vm13 = vmmov %vm14090_vm5  ;;  %v7283_v23 = vld [vmem:[#allocation5 + $0x20] sm:$0xff]  ;;  %v9647_v22 = vld [vmem:[%s13761_s3 + $0x68] sm:$0xff]  }
 0x419   :  { %9558 = vmatprep.mubr.bf16.mxu0 %v3613_v8  ;;  %821 = vst.msk [vmem:[#allocation3 + $0x1d0] sm:$0xff] %vm762_vm4, %v687_v63  ;;  %v1070_v38 = vpop.permute.xlu1 %1069  ;;  %v9648_v29 = vld [vmem:[%s13761_s3 + $0x28] sm:$0xff]   ;;  %v9650_v51 = vld [vmem:[%s13761_s3 + $0x30] sm:$0xff]   ;;  %v12796_v13 = vld [vmem:[%s13760_s2] ss:$0 sm:$0xff] }
 0x41a   :  { %3386 = vrot.lane.b32.xlu0 %v12670_v10, %s9741_s16  ;;  %v3578_v32 = vld [vmem:[#allocation3 + $0x1b8] sm:$0xff]  ;;  %1205 = vst.msk [vmem:[#allocation3 + $0x1c8] sm:$0xff] %vm14084_vm7, %v1070_v38  ;;  %9369 = vmatpush3.bf16.msra.mxu1 %v9642_v62  ;;  %vm14093_vm7 = vmmov %vm14090_vm5  ;;  %v12774_v59 = vld [vmem:[#allocation5 + $0x21] sm:$0xff] }
 0x41b   :  { %9370 = vmatprep.subr.bf16.mxu1 %v9643_v9  ;;  %v12787_v19 = vld [vmem:[#allocation5 + $0x22] sm:$0xff]  ;;  %v12801_v54 = vld [vmem:[#allocation5 + $0x30] sm:$0xff] }
 0x41c   :  { %v1068_v44 = vpop.permute.xlu0 %1067  ;;  %v3577_v40 = vld [vmem:[#allocation3 + $0x1b0] sm:$0xff]  ;;  %3392 = vrot.lane.b32.xlu1 %v3201_v15, %s9741_s16 }
 0x41d   :  { %1204 = vst.msk [vmem:[#allocation3 + $0x1c0] sm:$0xff] %vm14085_vm10, %v1068_v44  ;;  %v3614_v10 = vpack.c.bf16 %v3578_v32, %v3577_v40  ;;  %v1074_v37 = vpop.permute.xlu1 %1073  ;;  %vm14094_vm10 = vcmask 121952   ;;  %v12812_v15 = vld [vmem:[#allocation5 + $0x31] sm:$0xff] }
 0x41e   :  { %3390 = vrot.lane.b32.xlu0 %v3200_v60, %s9741_s16  ;;  %1207 = vst.msk [vmem:[#allocation3 + $0x1d8] sm:$0xff] %vm14088_vm9, %v1074_v37  ;;  %s9743_s16 = smov 16   ;;  %9371 = vmatpush3.bf16.msra.mxu1 %v9644_v30  ;;  %v9651_v60 = vld [vmem:[%s13761_s3 + $0x78] sm:$0xff]  }
 0x41f   :  { %v12730_v11 = vld [vmem:[#allocation5 + $0xc2] sm:$0xff]  ;;  %9559 = vmatmul.mubr.bf16.gmra.mrb[52].mxu0 %v3614_v10  ;;  %9372 = vmatprep.subr.bf16.mxu1 %v9645_v42  ;;  %v9652_v44 = vld [vmem:[%s13761_s3 + $0x38] sm:$0xff]  }
 0x420   :  { %v7066_v20 = vld [vmem:[#allocation5 + $0xc0] sm:$0xff]  ;;  %7792 = vst.msk [vmem:[#allocation6 + $0x88] sm:$0xff] %vm14086_vm0, %v12730_v11  ;;  %v1072_v53 = vpop.permute.xlu0 %1071  ;;  %7122 = vrot.lane.b32.xlu1 %v7089_v34, %s9743_s16  ;;  %vm14095_vm0 = vmmov %vm14094_vm10 }
 0x421   :  { %7082 = vst.msk [vmem:[#allocation6 + $0xa0] sm:$0xff] %vm14087_vm8, %v7066_v20  ;;  %v1455_v52 = vpop.permute.xlu1 %1454  ;;  %vm14096_vm8 = vmmov %vm14095_vm0 }
 0x422   :  { %1206 = vst.msk [vmem:[#allocation3 + $0x1d0] sm:$0xff] %vm14089_vm12, %v1072_v53  ;;  %7120 = vrot.lane.b32.xlu0 %v7088_v48, %s9743_s16  ;;  %9373 = vmatpush3.bf16.msra.mxu1 %v9646_v14  ;;  %vm14097_vm9 = vmmov %vm14095_vm0  ;;  %vm14098_vm12 = vcmask 146552  }
 0x423   :  { %1590 = vst.msk [vmem:[#allocation3 + $0x1c8] sm:$0xff] %vm14090_vm5, %v1455_v52  ;;  %9374 = vmatprep.subr.bf16.mxu1 %v9647_v22  ;;  %vm14099_vm5 = vmmov %vm14098_vm12 }
 0x424   :  { %v1453_v50 = vpop.permute.xlu0 %1452  ;;  %7219 = vrot.lane.b32.xlu1 %v7186_v4, %s9744_s14 }
 0x425   :  { %1589 = vst.msk [vmem:[#allocation3 + $0x1c0] sm:$0xff] %vm14091_vm6, %v1453_v50  ;;  %v1459_v33 = vpop.permute.xlu1 %1458  ;;  %vm14100_vm6 = vmmov %vm14099_vm5 }
 0x426   :  { %7217 = vrot.lane.b32.xlu0 %v7185_v24, %s9744_s14  ;;  %1592 = vst.msk [vmem:[#allocation3 + $0x1d8] sm:$0xff] %vm14092_vm13, %v1459_v33  ;;  %9375 = vmatpush3.bf16.msra.mxu1 %v9648_v29  ;;  %vm14101_vm13 = vcmask 123904   ;;  %v12854_v33 = vld [vmem:[#allocation5 + $0x32] sm:$0xff] }
 0x428   :  { %v1457_v57 = vpop.permute.xlu0 %1456  ;;  %7316 = vrot.lane.b32.xlu1 %v7283_v23, %s9745_s19 }
 0x429   :  { %1591 = vst.msk [vmem:[#allocation3 + $0x1d0] sm:$0xff] %vm14093_vm7, %v1457_v57  ;;  %v1840_v16 = vpop.permute.xlu1 %1839  ;;  %vm14102_vm7 = vmmov %vm14099_vm5 }
 0x42a   :  { %7314 = vrot.lane.b32.xlu0 %v11159_v31, %s9745_s19  ;;  %1975 = vst.msk [vmem:[#allocation3 + $0x1c8] sm:$0xff] %vm14094_vm10, %v1840_v16  ;;  %v9649_v31 = vld [vmem:[%s13761_s3 + $0x70] sm:$0xff]   ;;  %vm14103_vm10 = vmmov %vm14101_vm13 }
 0x42b   :  { %9376 = vmatprep.subr.bf16.mxu1 %v9649_v31 }
 0x42c   :  { %v1838_v26 = vpop.permute.xlu0 %1837  ;;  %7413 = vrot.lane.b32.xlu1 %v12774_v59, %s9746_s29  ;;  %9377 = vmatpush3.bf16.msra.mxu1 %v9650_v51 }
 0x42d   :  { %1974 = vst.msk [vmem:[#allocation3 + $0x1c0] sm:$0xff] %vm14095_vm0, %v1838_v26  ;;  %v1844_v35 = vpop.permute.xlu1 %1843  ;;  %vm14104_vm0 = vmmov %vm14103_vm10  ;;  %9378 = vmatprep.subr.bf16.mxu1 %v9651_v60 }
 0x42e   :  { %7411 = vrot.lane.b32.xlu0 %v7089_v34, %s9746_s29  ;;  %1977 = vst.msk [vmem:[#allocation3 + $0x1d8] sm:$0xff] %vm14096_vm8, %v1844_v35  ;;  %vm14105_vm8 = vmmov %vm14104_vm0 }
 0x430   :  { %v1842_v47 = vpop.permute.xlu0 %1841  ;;  %7510 = vrot.lane.b32.xlu1 %v12787_v19, %s9747_s26  ;;  %v9548_v28 = vpop.f32.mrb[40].mxu0  ;;  %9379 = vmatpush3.bf16.msra.mxu1 %v9652_v44 }
 0x431   :  { %1976 = vst.msk [vmem:[#allocation3 + $0x1d0] sm:$0xff] %vm14097_vm9, %v1842_v47  ;;  %v3893_v58 = vadd.f32 %v12796_v13, %v9548_v28  ;;  %v3884_v27 = vpop.f32.mrb[41].mxu0  ;;  %v2225_v12 = vpop.permute.xlu1 %2224  ;;  %vm14106_vm9 = vmmov %vm14104_vm0 }
 0x432   :  { %7508 = vrot.lane.b32.xlu0 %v7186_v4, %s9747_s26  ;;  %v3885_v43 = vadd.f32 %v12796_v13, %v3884_v27  ;;  %2360 = vst.msk [vmem:[#allocation3 + $0x1c8] sm:$0xff] %vm14098_vm12, %v2225_v12  ;;  %v9549_v1 = vpop.f32.mrb[42].mxu0  ;;  %vm14107_vm12 = vmmov %vm14104_vm0 }
 0x433   :  { %v4021_v21 = vmax.f32 %v3893_v58, 0.0  ;;  %v3896_v45 = vadd.f32 %v12796_v13, %v9549_v1  ;;  %v3887_v49 = vpop.f32.mrb[43].mxu0 }
 0x434   :  { %v2223_v0 = vpop.permute.xlu0 %2222  ;;  %7608 = vrot.lane.b32.xlu1 %v12801_v54, %s9748_s12  ;;  %v4019_v56 = vmax.f32 %v3885_v43, 0.0  ;;  %v3888_v17 = vadd.f32 %v12796_v13, %v3887_v49 }
 0x435   :  { %2359 = vst.msk [vmem:[#allocation3 + $0x1c0] sm:$0xff] %vm14099_vm5, %v2223_v0  ;;  %v4821_v25 = vcombine.high %v4021_v21, %v4021_v21  ;;  %v4828_v18 = vrot.slane %v4021_v21, %v11020_v6  ;;  %v4022_v41 = vmax.f32 %v3896_v45, 0.0  ;;  %v2229_v8 = vpop.permute.xlu1 %2228  ;;  %vm14108_vm5 = vmmov %vm14104_vm0 }
 0x436   :  { %7606 = vrot.lane.b32.xlu0 %v7283_v23, %s9748_s12  ;;  %v4787_v3 = vcombine.high %v4019_v56, %v4019_v56  ;;  %v4794_v55 = vrot.slane %v4019_v56, %v11020_v6  ;;  %v4020_v7 = vmax.f32 %v3888_v17, 0.0  ;;  %2362 = vst.msk [vmem:[#allocation3 + $0x1d8] sm:$0xff] %vm14100_vm6, %v2229_v8  ;;  %vm14109_vm6 = vmmov %vm14104_vm0 }
 0x437   :  { %v4835_v38 = vrot.slane %v4821_v25, %v11020_v6  ;;  %v4836_v32 = vcombine.high %v4828_v18, %v4828_v18  ;;  %5620 = vst.msk [vmem:[#allocation4 + $0x150] sm:$0x3] %vm14101_vm13, %v4828_v18  ;;  %v4838_v61 = vcombine.high %v4022_v41, %v4022_v41  ;;  %v4845_v36 = vrot.slane %v4022_v41, %v11020_v6 }
 0x438   :  { %v2227_v63 = vpop.permute.xlu0 %2226  ;;  %7705 = vrot.lane.b32.xlu1 %v12812_v15, %s9749_s0  ;;  %v4801_v40 = vrot.slane %v4787_v3, %v11020_v6  ;;  %v4802_v10 = vcombine.high %v4794_v55, %v4794_v55  ;;  %5612 = vst.msk [vmem:[#allocation4 + $0x140] sm:$0x3] %vm14103_vm10, %v4794_v55  ;;  %v4804_v20 = vcombine.high %v4020_v7, %v4020_v7  ;;  %vm14110_vm13 = vcmask 171152   ;;  %vm14112_vm10 = vmmov %vm14104_vm0  ;;  %v12869_v55 = vld [vmem:[#allocation5 + $0x41] sm:$0xff] }
 0x439   :  { %2361 = vst.msk [vmem:[#allocation3 + $0x1d0] sm:$0xff] %vm14102_vm7, %v2227_v63  ;;  %v4811_v5 = vrot.slane %v4020_v7, %v11020_v6  ;;  %v4837_v62 = vcombine.high %v4835_v38, %v4835_v38  ;;  %v4852_v37 = vrot.slane %v4838_v61, %v11020_v6  ;;  %v4853_v48 = vcombine.high %v4845_v36, %v4845_v36  ;;  %v2611_v53 = vpop.permute.xlu1 %2610  ;;  %vm14111_vm7 = vmmov %vm14104_vm0 }
 0x43a   :  { %7703 = vrot.lane.b32.xlu0 %v12774_v59, %s9749_s0  ;;  %5621 = vst.msk [vmem:[#allocation4 + $0x152] sm:$0x3] %vm14104_vm0, %v4836_v32  ;;  %v4803_v34 = vcombine.high %v4801_v40, %v4801_v40  ;;  %v4818_v9 = vrot.slane %v4804_v20, %v11020_v6 }
 0x43b   :  { %5622 = vst.msk [vmem:[#allocation4 + $0x154] sm:$0x3] %vm14105_vm8, %v4835_v38  ;;  %v4819_v30 = vcombine.high %v4811_v5, %v4811_v5  ;;  %v4854_v24 = vcombine.high %v4852_v37, %v4852_v37  ;;  %vm14113_vm8 = vmmov %vm14110_vm13 }
 0x43c   :  { %5624 = vst.msk [vmem:[#allocation4 + $0x158] sm:$0x3] %vm14106_vm9, %v4845_v36  ;;  %v2609_v52 = vpop.permute.xlu0 %2608  ;;  %7126 = vrot.lane.b32.xlu1 %v12812_v15, %s9743_s16  ;;  %vm14114_vm9 = vmmov %vm14104_vm0  ;;  %v4820_v50 = vcombine.high %v4818_v9, %v4818_v9 }
 0x43d   :  { %5613 = vst.msk [vmem:[#allocation4 + $0x142] sm:$0x3] %vm14107_vm12, %v4802_v10  ;;  %vm14115_vm12 = vmmov %vm14104_vm0  ;;  %v2615_v4 = vpop.permute.xlu1 %2614 }
 0x43e   :  { %5614 = vst.msk [vmem:[#allocation4 + $0x144] sm:$0x3] %vm14108_vm5, %v4801_v40  ;;  %vm14116_vm5 = vmmov %vm14104_vm0  ;;  %7124 = vrot.lane.b32.xlu0 %v12774_v59, %s9743_s16  ;;  %v5876_v42 = vld [vmem:[#allocation4 + $0x150] sm:$0x1]  ;;  %v6132_v57 = vld [vmem:[#allocation4 + $0x151] sm:$0x1] }
 0x43f   :  { %5616 = vst.msk [vmem:[#allocation4 + $0x148] sm:$0x3] %vm14109_vm6, %v4811_v5  ;;  %vm14117_vm6 = vmmov %vm14104_vm0  ;;  %v5868_v23 = vld [vmem:[#allocation4 + $0x140] sm:$0x1]  ;;  %v6124_v22 = vld [vmem:[#allocation4 + $0x141] sm:$0x1]  ;;  %v6388_v1 = vmax.f32 %v5876_v42, %v6132_v57 }
 0x440   :  { %2746 = vst.msk [vmem:[#allocation3 + $0x1c8] sm:$0xff] %vm14110_vm13, %v2611_v53  ;;  %vm14118_vm13 = vmmov %vm14104_vm0  ;;  %v2613_v14 = vpop.permute.xlu0 %2612  ;;  %7223 = vrot.lane.b32.xlu1 %v12854_v33, %s9744_s14  ;;  %v12861_v59 = vld [vmem:[#allocation5 + $0x40] sm:$0xff] }
 0x441   :  { %5623 = vst.msk [vmem:[#allocation4 + $0x156] sm:$0x3] %vm14111_vm7, %v4837_v62  ;;  %vm14119_vm7 = vmmov %vm14113_vm8  ;;  %v5877_v29 = vld [vmem:[#allocation4 + $0x152] sm:$0x1]  ;;  %v6133_v26 = vld [vmem:[#allocation4 + $0x153] sm:$0x1]  ;;  %v2996_v28 = vpop.permute.xlu1 %2995 }
 0x442   :  { %5625 = vst.msk [vmem:[#allocation4 + $0x15a] sm:$0x3] %vm14112_vm10, %v4853_v48  ;;  %vm14120_vm10 = vmmov %vm14119_vm7  ;;  %v5878_v16 = vld [vmem:[#allocation4 + $0x154] sm:$0x1]  ;;  %7221 = vrot.lane.b32.xlu0 %v12787_v19, %s9744_s14  ;;  %v6134_v31 = vld [vmem:[#allocation4 + $0x155] sm:$0x1]  ;;  %v6389_v51 = vmax.f32 %v5877_v29, %v6133_v26  ;;  %v6380_v19 = vmax.f32 %v5868_v23, %v6124_v22 }
 0x443   :  { %5626 = vst.msk [vmem:[#allocation4 + $0x15c] sm:$0x3] %vm14104_vm0, %v4852_v37  ;;  %v6390_v12 = vmax.f32 %v5878_v16, %v6134_v31  ;;  %vm14121_vm0 = vcmask 195752   ;;  %v5880_v41 = vld [vmem:[#allocation4 + $0x158] sm:$0x1] }
 0x444   :  { %2745 = vst.msk [vmem:[#allocation3 + $0x1c0] sm:$0xff] %vm14113_vm8, %v2609_v52  ;;  %v5869_v35 = vld [vmem:[#allocation4 + $0x142] sm:$0x1]  ;;  %v6125_v43 = vld [vmem:[#allocation4 + $0x143] sm:$0x1]  ;;  %v2994_v0 = vpop.permute.xlu0 %2993  ;;  %vm14122_vm8 = vmmov %vm14121_vm0  ;;  %7320 = vrot.lane.b32.xlu1 %v12861_v59, %s9745_s19  ;;  %v6556_v5 = vmax.f32 %v6380_v19, %v6388_v1 }
 0x445   :  { %5615 = vst.msk [vmem:[#allocation4 + $0x146] sm:$0x3] %vm14114_vm9, %v4803_v34  ;;  %v5870_v47 = vld [vmem:[#allocation4 + $0x144] sm:$0x1]  ;;  %v6126_v49 = vld [vmem:[#allocation4 + $0x145] sm:$0x1]  ;;  %v6381_v17 = vmax.f32 %v5869_v35, %v6125_v43  ;;  %v3000_v32 = vpop.permute.xlu1 %2999  ;;  %vm14123_vm9 = vmmov %vm14121_vm0 }
 0x446   :  { %5617 = vst.msk [vmem:[#allocation4 + $0x14a] sm:$0x3] %vm14115_vm12, %v4819_v30  ;;  %v6382_v25 = vmax.f32 %v5870_v47, %v6126_v49  ;;  %7318 = vrot.lane.b32.xlu0 %v12801_v54, %s9745_s19  ;;  %v6136_v60 = vld [vmem:[#allocation4 + $0x159] sm:$0x1]  ;;  %v5872_v10 = vld [vmem:[#allocation4 + $0x148] sm:$0x1]  ;;  %vm14124_vm12 = vmmov %vm14121_vm0 }
 0x447   :  { %5618 = vst.msk [vmem:[#allocation4 + $0x14c] sm:$0x3] %vm14116_vm5, %v4818_v9  ;;  %v6557_v7 = vmax.f32 %v6381_v17, %v6389_v51  ;;  %v6392_v37 = vmax.f32 %v5880_v41, %v6136_v60  ;;  %vm14125_vm5 = vcmask 1041409   ;;  %v7479_v35 = vld [vmem:[#allocation5 + $0x42] sm:$0xff]  ;;  %v7674_v41 = vld [vmem:[#allocation5 + $0x51] sm:$0xff] }
 0x448   :  { %5627 = vst.msk [vmem:[#allocation4 + $0x15e] sm:$0x3] %vm14117_vm6, %v4854_v24  ;;  %v5879_v58 = vld [vmem:[#allocation4 + $0x156] sm:$0x1]  ;;  %v6135_v27 = vld [vmem:[#allocation4 + $0x157] sm:$0x1]  ;;  %v6558_v61 = vmax.f32 %v6382_v25, %v6390_v12  ;;  %v2998_v20 = vpop.permute.xlu0 %2997  ;;  %7417 = vrot.lane.b32.xlu1 %v12869_v55, %s9746_s29 }
 0x449   :  { %5619 = vst.msk [vmem:[#allocation4 + $0x14e] sm:$0x3] %vm14118_vm13, %v4820_v50  ;;  %v6391_v21 = vmax.f32 %v5879_v58, %v6135_v27  ;;  %v5881_v8 = vld [vmem:[#allocation4 + $0x15a] sm:$0x1]  ;;  %v6137_v38 = vld [vmem:[#allocation4 + $0x15b] sm:$0x1]  ;;  %v3381_v22 = vpop.permute.xlu1 %3380 }
 0x44a   :  { %2748 = vst.msk [vmem:[#allocation3 + $0x1d8] sm:$0xff] %vm14119_vm7, %v2615_v4  ;;  %v5882_v3 = vld [vmem:[#allocation4 + $0x15c] sm:$0x1]  ;;  %v6138_v44 = vld [vmem:[#allocation4 + $0x15d] sm:$0x1]  ;;  %v6923_v62 = vrot.slane %v6557_v7, 7  ;;  %v6393_v48 = vmax.f32 %v5881_v8, %v6137_v38  ;;  %7415 = vrot.lane.b32.xlu0 %v12812_v15, %s9746_s29 }
 0x44b   :  { %2747 = vst.msk [vmem:[#allocation3 + $0x1d0] sm:$0xff] %vm14120_vm10, %v2613_v14  ;;  %v6925_v34 = vrot.slane %v6558_v61, 6  ;;  %v6394_v30 = vmax.f32 %v5882_v3, %v6138_v44  ;;  %v6128_v50 = vld [vmem:[#allocation4 + $0x149] sm:$0x1]  ;;  %vm14126_vm6 = vcmask 1042434   ;;  %vm14127_vm13 = vcmask 130048  }
 0x44c   :  { %3131 = vst.msk [vmem:[#allocation3 + $0x1c8] sm:$0xff] %vm14121_vm0, %v2996_v28  ;;  %v5871_v45 = vld [vmem:[#allocation4 + $0x146] sm:$0x1]  ;;  %v6127_v56 = vld [vmem:[#allocation4 + $0x147] sm:$0x1]  ;;  %v6924_v4 = vsel %vm14125_vm5, %v6923_v62, %v6556_v5  ;;  %v6384_v23 = vmax.f32 %v5872_v10, %v6128_v50  ;;  %v3379_v51 = vpop.permute.xlu0 %3378  ;;  %7514 = vrot.lane.b32.xlu1 %v7479_v35, %s9747_s26  ;;  %vm14128_vm7 = vcmask 72752  }
 0x44d   :  { %3130 = vst.msk [vmem:[#allocation3 + $0x1c0] sm:$0xff] %vm14122_vm8, %v2994_v0  ;;  %v6383_v18 = vmax.f32 %v5871_v45, %v6127_v56  ;;  %v5873_v54 = vld [vmem:[#allocation4 + $0x14a] sm:$0x1]  ;;  %v6129_v42 = vld [vmem:[#allocation4 + $0x14b] sm:$0x1]  ;;  %v6926_v29 = vsel %vm14126_vm6, %v6925_v34, %v6924_v4  ;;  %v693_v43 = vpop.permute.xlu1 %692  ;;  %v7190_v61 = vld [vmem:[#allocation5 + $0x52] sm:$0xff] }
 0x44e   :  { %3133 = vst.msk [vmem:[#allocation3 + $0x1d8] sm:$0xff] %vm14123_vm9, %v3000_v32  ;;  %v5874_v53 = vld [vmem:[#allocation4 + $0x14c] sm:$0x1]  ;;  %v6130_v14 = vld [vmem:[#allocation4 + $0x14d] sm:$0x1]  ;;  %v6385_v16 = vmax.f32 %v5873_v54, %v6129_v42  ;;  %v6560_v47 = vmax.f32 %v6384_v23, %v6392_v37  ;;  %7512 = vrot.lane.b32.xlu0 %v12854_v33, %s9747_s26  ;;  %vm14129_vm10 = vmmov %vm14128_vm7 }
 0x44f   :  { %v5883_v63 = vld [vmem:[#allocation4 + $0x15e] sm:$0x1]  ;;  %v6559_v36 = vmax.f32 %v6383_v18, %v6391_v21  ;;  %v6139_v40 = vld [vmem:[#allocation4 + $0x15f] sm:$0x1]  ;;  %3132 = vst.msk [vmem:[#allocation3 + $0x1d0] sm:$0xff] %vm14124_vm12, %v2998_v20  ;;  %v6386_v26 = vmax.f32 %v5874_v53, %v6130_v14  ;;  %v7577_v21 = vld [vmem:[#allocation5 + $0x50] sm:$0xff] }
 0x450   :  { %v6395_v52 = vmax.f32 %v5883_v63, %v6139_v40  ;;  %v5875_v24 = vld [vmem:[#allocation4 + $0x14e] sm:$0x1]  ;;  %v6131_v57 = vld [vmem:[#allocation4 + $0x14f] sm:$0x1]  ;;  %3516 = vst.msk [vmem:[#allocation3 + $0x1c8] sm:$0xff] %vm3458_vm11, %v3381_v22  ;;  %3515 = vst.msk [vmem:[#allocation3 + $0x1c0] sm:$0xff] %vm3458_vm11, %v3379_v51  ;;  %v6561_v15 = vmax.f32 %v6385_v16, %v6393_v48  ;;  %v691_v1 = vpop.permute.xlu0 %690  ;;  %7612 = vrot.lane.b32.xlu1 %v7577_v21, %s9748_s12 }
 0x451   :  { %v6927_v9 = vrot.slane %v6559_v36, 5  ;;  %v6387_v31 = vmax.f32 %v5875_v24, %v6131_v57  ;;  %v6562_v28 = vmax.f32 %v6386_v26, %v6394_v30  ;;  %v6929_v12 = vrot.slane %v6560_v47, 4  ;;  %824 = vst.msk [vmem:[#allocation3 + $0x1e8] sm:$0xff] %vm762_vm4, %v693_v43  ;;  %823 = vst.msk [vmem:[#allocation3 + $0x1e0] sm:$0xff] %vm762_vm4, %v691_v1  ;;  %v3385_v19 = vpop.permute.xlu1 %3384  ;;  %v7287_v5 = vld [vmem:[#allocation5 + $0x60] sm:$0xff]  ;;  %v12934_v4 = vld [vmem:[#allocation5 + $0x71] sm:$0xff] }
 0x452   :  { %v6931_v0 = vrot.slane %v6561_v15, 3  ;;  %7610 = vrot.lane.b32.xlu0 %v12861_v59, %s9748_s12  ;;  %3518 = vst.msk [vmem:[#allocation3 + $0x1d8] sm:$0xff] %vm3458_vm11, %v3385_v19  ;;  %vm14132_vm8 = vmmov %vm14128_vm7  ;;  %vm14134_vm12 = vcmask 97352   ;;  %v7384_v48 = vld [vmem:[#allocation5 + $0x61] sm:$0xff] }
 0x453   :  { %v6563_v58 = vmax.f32 %v6387_v31, %v6395_v52  ;;  %v6928_v27 = vsel %vm6783_vm3, %v6927_v9, %v6926_v29  ;;  %v6933_v45 = vrot.slane %v6562_v28, 2  ;;  %vm14133_vm9 = vmmov %vm14128_vm7  ;;  %v7481_v34 = vld [vmem:[#allocation5 + $0x62] sm:$0xff]  ;;  %v12927_v52 = vld [vmem:[#allocation5 + $0x70] sm:$0xff] }
 0x454   :  { %v6930_v49 = vsel %vm6786_vm14, %v6929_v12, %v6928_v27  ;;  %v3383_v18 = vpop.permute.xlu0 %3382  ;;  %7709 = vrot.lane.b32.xlu1 %v7674_v41, %s9749_s0  ;;  %vm14135_vm5 = vmmov %vm14134_vm12 }
 0x455   :  { %v6932_v33 = vsel %vm6789_vm15, %v6931_v0, %v6930_v49  ;;  %v6935_v56 = vrot.slane %v6563_v58, 1  ;;  %3517 = vst.msk [vmem:[#allocation3 + $0x1d0] sm:$0xff] %vm3458_vm11, %v3383_v18  ;;  %v697_v59 = vpop.permute.xlu1 %696  ;;  %vm14136_vm6 = vmmov %vm14135_vm5 }
 0x456   :  { %v6934_v25 = vsel %vm13783_vm2, %v6933_v45, %v6932_v33  ;;  %7707 = vrot.lane.b32.xlu0 %v12869_v55, %s9749_s0  ;;  %826 = vst.msk [vmem:[#allocation3 + $0x1f8] sm:$0xff] %vm762_vm4, %v697_v59 }
 0x457   :  { %v3580_v17 = vld [vmem:[#allocation3 + $0x1c8] sm:$0xff]  ;;  %v3579_v8 = vld [vmem:[#allocation3 + $0x1c0] sm:$0xff]  ;;  %v6936_v3 = vsel %vm13780_vm1, %v6935_v56, %v6934_v25 }
 0x458   :  { %v3615_v7 = vpack.c.bf16 %v3580_v17, %v3579_v8  ;;  %7033 = vst.msk [vmem:[#allocation5 + $0xd1] sm:$0xff] %vm14127_vm13, %v6936_v3  ;;  %v695_v63 = vpop.permute.xlu0 %694  ;;  %7130 = vrot.lane.b32.xlu1 %v7674_v41, %s9743_s16 }
 0x459   :  { %825 = vst.msk [vmem:[#allocation3 + $0x1f0] sm:$0xff] %vm762_vm4, %v695_v63  ;;  %v1078_v60 = vpop.permute.xlu1 %1077  ;;  %v3582_v38 = vld [vmem:[#allocation3 + $0x1d8] sm:$0xff]  ;;  %vm14130_vm4 = vmmov %vm14127_vm13 }
 0x45a   :  { %9562 = vmatprep.mubr.bf16.mxu0 %v3615_v7  ;;  %7128 = vrot.lane.b32.xlu0 %v12869_v55, %s9743_s16  ;;  %1209 = vst.msk [vmem:[#allocation3 + $0x1e8] sm:$0xff] %vm14128_vm7, %v1078_v60  ;;  %vm14131_vm0 = vmmov %vm14130_vm4  ;;  %vm14138_vm7 = vcmask 121952  }
 0x45b   :  { %vm14137_vm13 = vmmov %vm14135_vm5 }
 0x45c   :  { %v1076_v32 = vpop.permute.xlu0 %1075  ;;  %v3581_v36 = vld [vmem:[#allocation3 + $0x1d0] sm:$0xff]  ;;  %7227 = vrot.lane.b32.xlu1 %v7190_v61, %s9744_s14 }
 0x45d   :  { %1208 = vst.msk [vmem:[#allocation3 + $0x1e0] sm:$0xff] %vm14129_vm10, %v1076_v32  ;;  %v3616_v44 = vpack.c.bf16 %v3582_v38, %v3581_v36  ;;  %v1082_v55 = vpop.permute.xlu1 %1081  ;;  %vm14139_vm10 = vmmov %vm14138_vm7  ;;  %v12971_v38 = vld [vmem:[#allocation5 + $0x80] sm:$0xff] }
 0x45e   :  { %7225 = vrot.lane.b32.xlu0 %v7479_v35, %s9744_s14  ;;  %1211 = vst.msk [vmem:[#allocation3 + $0x1f8] sm:$0xff] %vm14132_vm8, %v1082_v55  ;;  %vm14142_vm8 = vcmask 146552   ;;  %v12987_v55 = vld [vmem:[#allocation5 + $0x81] sm:$0xff] }
 0x45f   :  { %v12908_v40 = vld [vmem:[#allocation5 + $0xd2] sm:$0xff]  ;;  %9563 = vmatmul.mubr.bf16.gmra.mrb[56].mxu0 %v3616_v44 }
 0x460   :  { %v7067_v10 = vld [vmem:[#allocation5 + $0xd0] sm:$0xff]  ;;  %7793 = vst.msk [vmem:[#allocation6 + $0x98] sm:$0xff] %vm14130_vm4, %v12908_v40  ;;  %v1080_v20 = vpop.permute.xlu0 %1079  ;;  %7324 = vrot.lane.b32.xlu1 %v7287_v5, %s9745_s19  ;;  %vm14140_vm4 = vmmov %vm14138_vm7 }
 0x461   :  { %7083 = vst.msk [vmem:[#allocation6 + $0xb0] sm:$0xff] %vm14131_vm0, %v7067_v10  ;;  %v1463_v62 = vpop.permute.xlu1 %1462  ;;  %vm14141_vm0 = vmmov %vm14140_vm4 }
 0x462   :  { %1210 = vst.msk [vmem:[#allocation3 + $0x1f0] sm:$0xff] %vm14133_vm9, %v1080_v20  ;;  %7322 = vrot.lane.b32.xlu0 %v7577_v21, %s9745_s19  ;;  %vm14143_vm9 = vmmov %vm14142_vm8 }
 0x463   :  { %1594 = vst.msk [vmem:[#allocation3 + $0x1e8] sm:$0xff] %vm14134_vm12, %v1463_v62  ;;  %vm14144_vm12 = vmmov %vm14142_vm8 }
 0x464   :  { %v1461_v37 = vpop.permute.xlu0 %1460  ;;  %7421 = vrot.lane.b32.xlu1 %v7384_v48, %s9746_s29 }
 0x465   :  { %1593 = vst.msk [vmem:[#allocation3 + $0x1e0] sm:$0xff] %vm14135_vm5, %v1461_v37  ;;  %v1467_v54 = vpop.permute.xlu1 %1466  ;;  %vm14145_vm5 = vcmask 123904  }
 0x466   :  { %7419 = vrot.lane.b32.xlu0 %v7674_v41, %s9746_s29  ;;  %1596 = vst.msk [vmem:[#allocation3 + $0x1f8] sm:$0xff] %vm14136_vm6, %v1467_v54  ;;  %vm14146_vm6 = vmmov %vm14142_vm8 }
 0x468   :  { %v1465_v53 = vpop.permute.xlu0 %1464  ;;  %7518 = vrot.lane.b32.xlu1 %v7481_v34, %s9747_s26 }
 0x469   :  { %1595 = vst.msk [vmem:[#allocation3 + $0x1f0] sm:$0xff] %vm14137_vm13, %v1465_v53  ;;  %vm14147_vm13 = vmmov %vm14145_vm5 }
 0x46a   :  { %7516 = vrot.lane.b32.xlu0 %v7190_v61, %s9747_s26  ;;  %v1848_v9 = vpop.permute.xlu1 %1847 }
 0x46b   :  { %1979 = vst.msk [vmem:[#allocation3 + $0x1e8] sm:$0xff] %vm14138_vm7, %v1848_v9  ;;  %vm14148_vm7 = vmmov %vm14145_vm5 }
 0x46c   :  { %v1846_v30 = vpop.permute.xlu0 %1845  ;;  %7616 = vrot.lane.b32.xlu1 %v12927_v52, %s9748_s12 }
 0x46d   :  { %1978 = vst.msk [vmem:[#allocation3 + $0x1e0] sm:$0xff] %vm14139_vm10, %v1846_v30  ;;  %vm14149_vm10 = vmmov %vm14145_vm5 }
 0x46e   :  { %7614 = vrot.lane.b32.xlu0 %v7287_v5, %s9748_s12  ;;  %v1852_v24 = vpop.permute.xlu1 %1851 }
 0x46f   :  { %1981 = vst.msk [vmem:[#allocation3 + $0x1f8] sm:$0xff] %vm14140_vm4, %v1852_v24  ;;  %vm14150_vm4 = vmmov %vm14145_vm5 }
 0x470   :  { %v1850_v50 = vpop.permute.xlu0 %1849  ;;  %7713 = vrot.lane.b32.xlu1 %v12934_v4, %s9749_s0 }
 0x471   :  { %1980 = vst.msk [vmem:[#allocation3 + $0x1f0] sm:$0xff] %vm14141_vm0, %v1850_v50  ;;  %vm14151_vm0 = vmmov %vm14150_vm4 }
 0x472   :  { %v9552_v42 = vpop.f32.mrb[44].mxu0  ;;  %7711 = vrot.lane.b32.xlu0 %v7384_v48, %s9749_s0  ;;  %v2233_v23 = vpop.permute.xlu1 %2232 }
 0x473   :  { %v3909_v14 = vadd.f32 %v12796_v13, %v9552_v42  ;;  %v3900_v57 = vpop.f32.mrb[45].mxu0  ;;  %2364 = vst.msk [vmem:[#allocation3 + $0x1e8] sm:$0xff] %vm14142_vm8, %v2233_v23  ;;  %vm14152_vm8 = vmmov %vm14151_vm0  ;;  %v7581_v23 = vld [vmem:[#allocation5 + $0x90] sm:$0xff] }
 0x474   :  { %v3901_v22 = vadd.f32 %v12796_v13, %v3900_v57  ;;  %v2231_v29 = vpop.permute.xlu0 %2230  ;;  %v9553_v16 = vpop.f32.mrb[46].mxu0  ;;  %7134 = vrot.lane.b32.xlu1 %v12934_v4, %s9743_s16 }
 0x475   :  { %v4025_v26 = vmax.f32 %v3909_v14, 0.0  ;;  %2363 = vst.msk [vmem:[#allocation3 + $0x1e0] sm:$0xff] %vm14143_vm9, %v2231_v29  ;;  %v3912_v31 = vadd.f32 %v12796_v13, %v9553_v16  ;;  %v3903_v51 = vpop.f32.mrb[47].mxu0  ;;  %vm14153_vm9 = vmmov %vm14151_vm0 }
 0x476   :  { %v4023_v35 = vmax.f32 %v3901_v22, 0.0  ;;  %v3904_v47 = vadd.f32 %v12796_v13, %v3903_v51  ;;  %7132 = vrot.lane.b32.xlu0 %v7384_v48, %s9743_s16  ;;  %v2237_v27 = vpop.permute.xlu1 %2236 }
 0x477   :  { %v4889_v15 = vcombine.high %v4025_v26, %v4025_v26  ;;  %v4896_v28 = vrot.slane %v4025_v26, %v11020_v6  ;;  %v4026_v58 = vmax.f32 %v3912_v31, 0.0  ;;  %2366 = vst.msk [vmem:[#allocation3 + $0x1f8] sm:$0xff] %vm14144_vm12, %v2237_v27  ;;  %vm14154_vm12 = vcmask 171152  }
 0x478   :  { %v4855_v12 = vcombine.high %v4023_v35, %v4023_v35  ;;  %v4862_v43 = vrot.slane %v4023_v35, %v11020_v6  ;;  %v4024_v0 = vmax.f32 %v3904_v47, 0.0  ;;  %v2235_v1 = vpop.permute.xlu0 %2234  ;;  %7231 = vrot.lane.b32.xlu1 %v12231_v46, %s9744_s14 }
 0x479   :  { %v4903_v21 = vrot.slane %v4889_v15, %v11020_v6  ;;  %v4904_v45 = vcombine.high %v4896_v28, %v4896_v28  ;;  %5636 = vst.msk [vmem:[#allocation4 + $0x170] sm:$0x3] %vm14145_vm5, %v4896_v28  ;;  %v4906_v49 = vcombine.high %v4026_v58, %v4026_v58  ;;  %v4913_v33 = vrot.slane %v4026_v58, %v11020_v6  ;;  %vm14155_vm5 = vmmov %vm14151_vm0 }
 0x47a   :  { %2365 = vst.msk [vmem:[#allocation3 + $0x1f0] sm:$0xff] %vm14146_vm6, %v2235_v1  ;;  %v4869_v56 = vrot.slane %v4855_v12, %v11020_v6  ;;  %v4870_v19 = vcombine.high %v4862_v43, %v4862_v43  ;;  %v4872_v17 = vcombine.high %v4024_v0, %v4024_v0  ;;  %v4879_v25 = vrot.slane %v4024_v0, %v11020_v6  ;;  %v2619_v3 = vpop.permute.xlu1 %2618  ;;  %vm14156_vm6 = vmmov %vm14151_vm0 }
 0x47b   :  { %5628 = vst.msk [vmem:[#allocation4 + $0x160] sm:$0x3] %vm14147_vm13, %v4862_v43  ;;  %7229 = vrot.lane.b32.xlu0 %v7481_v34, %s9744_s14  ;;  %v4905_v18 = vcombine.high %v4903_v21, %v4903_v21  ;;  %v4920_v41 = vrot.slane %v4906_v49, %v11020_v6  ;;  %v4921_v8 = vcombine.high %v4913_v33, %v4913_v33  ;;  %vm14157_vm13 = vmmov %vm14151_vm0 }
 0x47c   :  { %5637 = vst.msk [vmem:[#allocation4 + $0x172] sm:$0x3] %vm14148_vm7, %v4904_v45  ;;  %v4871_v7 = vcombine.high %v4869_v56, %v4869_v56  ;;  %v4886_v59 = vrot.slane %v4872_v17, %v11020_v6  ;;  %v4887_v63 = vcombine.high %v4879_v25, %v4879_v25  ;;  %v2617_v60 = vpop.permute.xlu0 %2616  ;;  %vm14158_vm7 = vmmov %vm14154_vm12  ;;  %7328 = vrot.lane.b32.xlu1 %v12971_v38, %s9745_s19 }
 0x47d   :  { %5638 = vst.msk [vmem:[#allocation4 + $0x174] sm:$0x3] %vm14149_vm10, %v4903_v21  ;;  %v4922_v32 = vcombine.high %v4920_v41, %v4920_v41  ;;  %vm14159_vm10 = vmmov %vm14151_vm0 }
 0x47e   :  { %5640 = vst.msk [vmem:[#allocation4 + $0x178] sm:$0x3] %vm14150_vm4, %v4913_v33  ;;  %v4888_v61 = vcombine.high %v4886_v59, %v4886_v59  ;;  %vm14160_vm4 = vmmov %vm14151_vm0  ;;  %v2623_v36 = vpop.permute.xlu1 %2622 }
 0x47f   :  { %5629 = vst.msk [vmem:[#allocation4 + $0x162] sm:$0x3] %vm14151_vm0, %v4870_v19  ;;  %5634 = vst.msk [vmem:[#allocation4 + $0x16c] sm:$0x3] %vm14151_vm0, %v4886_v59  ;;  %7326 = vrot.lane.b32.xlu0 %v12927_v52, %s9745_s19 }
 0x480   :  { %5630 = vst.msk [vmem:[#allocation4 + $0x164] sm:$0x3] %vm14152_vm8, %v4869_v56  ;;  %vm14161_vm8 = vmmov %vm14151_vm0  ;;  %v5892_v44 = vld [vmem:[#allocation4 + $0x170] sm:$0x1]  ;;  %v2621_v10 = vpop.permute.xlu0 %2620  ;;  %v6148_v20 = vld [vmem:[#allocation4 + $0x171] sm:$0x1]  ;;  %7425 = vrot.lane.b32.xlu1 %v12987_v55, %s9746_s29 }
 0x481   :  { %5632 = vst.msk [vmem:[#allocation4 + $0x168] sm:$0x3] %vm14153_vm9, %v4879_v25  ;;  %vm14162_vm9 = vmmov %vm14151_vm0  ;;  %v6404_v22 = vmax.f32 %v5892_v44, %v6148_v20  ;;  %vm14170_vm0 = vcmask 1042434  }
 0x482   :  { %2750 = vst.msk [vmem:[#allocation3 + $0x1e8] sm:$0xff] %vm14154_vm12, %v2619_v3  ;;  %vm14163_vm12 = vmmov %vm14158_vm7  ;;  %v5884_v5 = vld [vmem:[#allocation4 + $0x160] sm:$0x1]  ;;  %v6140_v62 = vld [vmem:[#allocation4 + $0x161] sm:$0x1]  ;;  %v3004_v52 = vpop.permute.xlu1 %3003 }
 0x483   :  { %5639 = vst.msk [vmem:[#allocation4 + $0x176] sm:$0x3] %vm14155_vm5, %v4905_v18  ;;  %vm14164_vm5 = vmmov %vm14158_vm7  ;;  %v5893_v37 = vld [vmem:[#allocation4 + $0x172] sm:$0x1]  ;;  %v6149_v54 = vld [vmem:[#allocation4 + $0x173] sm:$0x1]  ;;  %7423 = vrot.lane.b32.xlu0 %v12934_v4, %s9746_s29  ;;  %v6396_v51 = vmax.f32 %v5884_v5, %v6140_v62 }
 0x484   :  { %5641 = vst.msk [vmem:[#allocation4 + $0x17a] sm:$0x3] %vm14156_vm6, %v4921_v8  ;;  %v5894_v48 = vld [vmem:[#allocation4 + $0x174] sm:$0x1]  ;;  %v6150_v53 = vld [vmem:[#allocation4 + $0x175] sm:$0x1]  ;;  %v6405_v34 = vmax.f32 %v5893_v37, %v6149_v54  ;;  %v3002_v57 = vpop.permute.xlu0 %3001  ;;  %7522 = vrot.lane.b32.xlu1 %v12404_v39, %s9747_s26 }
 0x485   :  { %5642 = vst.msk [vmem:[#allocation4 + $0x17c] sm:$0x3] %vm14157_vm13, %v4920_v41  ;;  %v6406_v42 = vmax.f32 %v5894_v48, %v6150_v53  ;;  %vm14165_vm6 = vcmask 195752   ;;  %v5896_v15 = vld [vmem:[#allocation4 + $0x178] sm:$0x1]  ;;  %v6564_v19 = vmax.f32 %v6396_v51, %v6404_v22  ;;  %v7064_v22 = vld [vmem:[#allocation5 + $0xa0] sm:$0xff] }
 0x486   :  { %2749 = vst.msk [vmem:[#allocation3 + $0x1e0] sm:$0xff] %vm14158_vm7, %v2617_v60  ;;  %v5885_v9 = vld [vmem:[#allocation4 + $0x162] sm:$0x1]  ;;  %v6141_v14 = vld [vmem:[#allocation4 + $0x163] sm:$0x1]  ;;  %vm14166_vm13 = vmmov %vm14165_vm6  ;;  %v3008_v1 = vpop.permute.xlu1 %3007 }
 0x487   :  { %5631 = vst.msk [vmem:[#allocation4 + $0x166] sm:$0x3] %vm14159_vm10, %v4871_v7  ;;  %v5886_v30 = vld [vmem:[#allocation4 + $0x164] sm:$0x1]  ;;  %v6142_v26 = vld [vmem:[#allocation4 + $0x165] sm:$0x1]  ;;  %v6397_v4 = vmax.f32 %v5885_v9, %v6141_v14  ;;  %7520 = vrot.lane.b32.xlu0 %v12231_v46, %s9747_s26  ;;  %vm14167_vm7 = vmmov %vm14165_vm6 }
 0x488   :  { %5633 = vst.msk [vmem:[#allocation4 + $0x16a] sm:$0x3] %vm14160_vm4, %v4887_v63  ;;  %v6398_v35 = vmax.f32 %v5886_v30, %v6142_v26  ;;  %v6152_v43 = vld [vmem:[#allocation4 + $0x179] sm:$0x1]  ;;  %v5888_v56 = vld [vmem:[#allocation4 + $0x168] sm:$0x1]  ;;  %v3006_v39 = vpop.permute.xlu0 %3005  ;;  %vm14168_vm10 = vmmov %vm14165_vm6  ;;  %7620 = vrot.lane.b32.xlu1 %v7581_v23, %s9748_s12 }
 0x489   :  { %5643 = vst.msk [vmem:[#allocation4 + $0x17e] sm:$0x3] %vm14161_vm8, %v4922_v32  ;;  %v6565_v27 = vmax.f32 %v6397_v4, %v6405_v34  ;;  %v6408_v25 = vmax.f32 %v5896_v15, %v6152_v43  ;;  %v5890_v8 = vld [vmem:[#allocation4 + $0x16c] sm:$0x1]  ;;  %v7678_v46 = vld [vmem:[#allocation5 + $0x91] sm:$0xff]  ;;  %vm14169_vm4 = vcmask 1041409  }
 0x48a   :  { %5635 = vst.msk [vmem:[#allocation4 + $0x16e] sm:$0x3] %vm14162_vm9, %v4888_v61  ;;  %v5895_v24 = vld [vmem:[#allocation4 + $0x176] sm:$0x1]  ;;  %v6151_v50 = vld [vmem:[#allocation4 + $0x177] sm:$0x1]  ;;  %v6566_v21 = vmax.f32 %v6398_v35, %v6406_v42  ;;  %v3389_v5 = vpop.permute.xlu1 %3388 }
 0x48b   :  { %2752 = vst.msk [vmem:[#allocation3 + $0x1f8] sm:$0xff] %vm14163_vm12, %v2623_v36  ;;  %v6407_v29 = vmax.f32 %v5895_v24, %v6151_v50  ;;  %v5897_v28 = vld [vmem:[#allocation4 + $0x17a] sm:$0x1]  ;;  %v6153_v0 = vld [vmem:[#allocation4 + $0x17b] sm:$0x1]  ;;  %v6937_v17 = vrot.slane %v6565_v27, 7  ;;  %7618 = vrot.lane.b32.xlu0 %v12971_v38, %s9748_s12 }
 0x48c   :  { %2751 = vst.msk [vmem:[#allocation3 + $0x1f0] sm:$0xff] %vm14164_vm5, %v2621_v10  ;;  %v5898_v58 = vld [vmem:[#allocation4 + $0x17c] sm:$0x1]  ;;  %v6154_v49 = vld [vmem:[#allocation4 + $0x17d] sm:$0x1]  ;;  %v6409_v18 = vmax.f32 %v5897_v28, %v6153_v0  ;;  %v6939_v3 = vrot.slane %v6566_v21, 6  ;;  %v3387_v53 = vpop.permute.xlu0 %3386  ;;  %7717 = vrot.lane.b32.xlu1 %v7678_v46, %s9749_s0 }
 0x48d   :  { %3135 = vst.msk [vmem:[#allocation3 + $0x1e8] sm:$0xff] %vm14165_vm6, %v3004_v52  ;;  %v6410_v59 = vmax.f32 %v5898_v58, %v6154_v49  ;;  %v6144_v32 = vld [vmem:[#allocation4 + $0x169] sm:$0x1]  ;;  %v6938_v61 = vsel %vm14169_vm4, %v6937_v17, %v6564_v19  ;;  %v6146_v44 = vld [vmem:[#allocation4 + $0x16d] sm:$0x1]  ;;  %v7096_v42 = vld [vmem:[#allocation5 + $0xa1] sm:$0xff] }
 0x48e   :  { %v5887_v16 = vld [vmem:[#allocation4 + $0x166] sm:$0x1]  ;;  %v6143_v31 = vld [vmem:[#allocation4 + $0x167] sm:$0x1]  ;;  %3134 = vst.msk [vmem:[#allocation3 + $0x1e0] sm:$0xff] %vm14166_vm13, %v3002_v57  ;;  %v6400_v20 = vmax.f32 %v5888_v56, %v6144_v32  ;;  %v6940_v62 = vsel %vm14170_vm0, %v6939_v3, %v6938_v61  ;;  %v6402_v48 = vmax.f32 %v5890_v8, %v6146_v44  ;;  %v3393_v50 = vpop.permute.xlu1 %3392  ;;  %v7097_v23 = vld [vmem:[#allocation5 + $0xb1] sm:$0xff] }
 0x48f   :  { %v6399_v47 = vmax.f32 %v5887_v16, %v6143_v31  ;;  %3137 = vst.msk [vmem:[#allocation3 + $0x1f8] sm:$0xff] %vm14167_vm7, %v3008_v1  ;;  %v5889_v41 = vld [vmem:[#allocation4 + $0x16a] sm:$0x1]  ;;  %v6145_v36 = vld [vmem:[#allocation4 + $0x16b] sm:$0x1]  ;;  %7715 = vrot.lane.b32.xlu0 %v12987_v55, %s9749_s0  ;;  %vm7168_vm8 = vcmask 261248  }
 0x490   :  { %v5899_v12 = vld [vmem:[#allocation4 + $0x17e] sm:$0x1]  ;;  %v6155_v33 = vld [vmem:[#allocation4 + $0x17f] sm:$0x1]  ;;  %3136 = vst.msk [vmem:[#allocation3 + $0x1f0] sm:$0xff] %vm14168_vm10, %v3006_v39  ;;  %v6401_v37 = vmax.f32 %v5889_v41, %v6145_v36  ;;  %v6568_v34 = vmax.f32 %v6400_v20, %v6408_v25  ;;  %v6570_v9 = vmax.f32 %v6402_v48, %v6410_v59  ;;  %v3391_v57 = vpop.permute.xlu0 %3390  ;;  %7138 = vrot.lane.b32.xlu1 %v7097_v23, %s9743_s16  ;;  %vm14171_vm9 = vcmask 130048  }
 0x491   :  { %v6567_v45 = vmax.f32 %v6399_v47, %v6407_v29  ;;  %v6411_v63 = vmax.f32 %v5899_v12, %v6155_v33  ;;  %v5891_v60 = vld [vmem:[#allocation4 + $0x16e] sm:$0x1]  ;;  %v6147_v10 = vld [vmem:[#allocation4 + $0x16f] sm:$0x1]  ;;  %3520 = vst.msk [vmem:[#allocation3 + $0x1e8] sm:$0xff] %vm3458_vm11, %v3389_v5  ;;  %3519 = vst.msk [vmem:[#allocation3 + $0x1e0] sm:$0xff] %vm3458_vm11, %v3387_v53 }
 0x492   :  { %v6403_v54 = vmax.f32 %v5891_v60, %v6147_v10  ;;  %v6569_v38 = vmax.f32 %v6401_v37, %v6409_v18  ;;  %v6943_v24 = vrot.slane %v6568_v34, 4  ;;  %3522 = vst.msk [vmem:[#allocation3 + $0x1f8] sm:$0xff] %vm3458_vm11, %v3393_v50  ;;  %v6947_v29 = vrot.slane %v6570_v9, 2  ;;  %3521 = vst.msk [vmem:[#allocation3 + $0x1f0] sm:$0xff] %vm3458_vm11, %v3391_v57  ;;  %v7123_v31 = vpop.permute.xlu1 %7122  ;;  %v7193_v51 = vld [vmem:[#allocation5 + $0xa2] sm:$0xff]  ;;  %v7194_v15 = vld [vmem:[#allocation5 + $0xb2] sm:$0xff] }
 0x493   :  { %v6941_v7 = vrot.slane %v6567_v45, 5  ;;  %7080 = vst.msk [vmem:[#allocation6 + $0x80] sm:$0xff] %vm14171_vm9, %v7064_v22  ;;  %7136 = vrot.lane.b32.xlu0 %v7096_v42, %s9743_s16  ;;  %vm13784_vm11 = vcmask 392448   ;;  %vm14172_vm12 = vmmov %vm14171_vm9  ;;  %v7291_v1 = vld [vmem:[#allocation5 + $0xc0] sm:$0xff]  ;;  %v7290_v45 = vld [vmem:[#allocation5 + $0xb0] sm:$0xff]  ;;  %vm13781_vm5 = vcmask 523648  }
 0x494   :  { %v6571_v30 = vmax.f32 %v6403_v54, %v6411_v63  ;;  %v6945_v14 = vrot.slane %v6569_v38, 3  ;;  %v7121_v47 = vpop.permute.xlu0 %7120  ;;  %7170 = vst.msk [vmem:[#allocation6 + $0x10] sm:$0xff] %vm7168_vm8, %v7123_v31  ;;  %7235 = vrot.lane.b32.xlu1 %v7194_v15, %s9744_s14  ;;  %v7388_v39 = vld [vmem:[#allocation5 + $0xc1] sm:$0xff]  ;;  %vm7459_vm6 = vcmask 654848   ;;  %vm14173_vm13 = vmmov %vm14171_vm9  ;;  %vm13782_vm10 = vcmask 786048   ;;  %v7583_v46 = vld [vmem:[#allocation5 + $0xd0] sm:$0xff] }
 0x495   :  { %v6942_v52 = vsel %vm6783_vm3, %v6941_v7, %v6940_v62  ;;  %7169 = vst.msk [vmem:[#allocation6] sm:$0xff] %vm7168_vm8, %v7121_v47  ;;  %vm14174_vm7 = vmmov %vm14171_vm9  ;;  %vm7654_vm4 = vcmask 917248   ;;  %v13053_v59 = vld [vmem:[#allocation5 + $0xd1] sm:$0xff]  ;;  %vm7751_vm0 = vcmask 1048448   ;;  %vm14175_vm9 = vcmask 123904  }
 0x496   :  { %v6944_v55 = vsel %vm6786_vm14, %v6943_v24, %v6942_v52  ;;  %v6949_v26 = vrot.slane %v6571_v30, 1  ;;  %v7220_v12 = vpop.permute.xlu1 %7219  ;;  %v7807_v62 = vld [vmem:[#allocation6 + $0x38] sm:$0xff]  ;;  %v7805_v30 = vld [vmem:[#allocation6 + $0x28] sm:$0xff]  ;;  %v13080_v24 = vld [vmem:[%s13760_s2] ss:$0 sm:$0xff] }
 0x497   :  { %v6946_v16 = vsel %vm6789_vm15, %v6945_v14, %v6944_v55  ;;  %7233 = vrot.lane.b32.xlu0 %v7193_v51, %s9744_s14  ;;  %7267 = vst.msk [vmem:[#allocation6 + $0x10] sm:$0xff] %vm13784_vm11, %v7220_v12  ;;  %v7835_v42 = vpack.c.bf16 %v7807_v62, %v7805_v30 }
 0x498   :  { %v3584_v4 = vld [vmem:[#allocation3 + $0x1e8] sm:$0xff]  ;;  %v6948_v35 = vsel %vm13783_vm2, %v6947_v29, %v6946_v16  ;;  %v3583_v28 = vld [vmem:[#allocation3 + $0x1e0] sm:$0xff]  ;;  %v7218_v0 = vpop.permute.xlu0 %7217  ;;  %7332 = vrot.lane.b32.xlu1 %v7291_v1, %s9745_s19 }
 0x499   :  { %v6950_v58 = vsel %vm13780_vm1, %v6949_v26, %v6948_v35  ;;  %v3617_v27 = vpack.c.bf16 %v3584_v4, %v3583_v28  ;;  %v3586_v43 = vld [vmem:[#allocation3 + $0x1f8] sm:$0xff]  ;;  %v3585_v21 = vld [vmem:[#allocation3 + $0x1f0] sm:$0xff]  ;;  %7266 = vst.msk [vmem:[#allocation6] sm:$0xff] %vm13784_vm11, %v7218_v0 }
 0x49a   :  { %7034 = vst.msk [vmem:[#allocation5 + $0xe1] sm:$0xff] %vm14172_vm12, %v6950_v58  ;;  %v3618_v49 = vpack.c.bf16 %v3586_v43, %v3585_v21  ;;  %v7317_v33 = vpop.permute.xlu1 %7316  ;;  %vm14176_vm12 = vmmov %vm14175_vm9 }
 0x49b   :  { %9566 = vmatprep.mubr.bf16.mxu0 %v3617_v27  ;;  %7330 = vrot.lane.b32.xlu0 %v7290_v45, %s9745_s19  ;;  %7364 = vst.msk [vmem:[#allocation6 + $0x10] sm:$0xff] %vm13781_vm5, %v7317_v33 }
 0x49c   :  { %9567 = vmatmul.mubr.bf16.gmra.mrb[60].mxu0 %v3618_v49  ;;  %v7315_v56 = vpop.permute.xlu0 %7314  ;;  %7429 = vrot.lane.b32.xlu1 %v7388_v39, %s9746_s29 }
 0x49d   :  { %7363 = vst.msk [vmem:[#allocation6] sm:$0xff] %vm13781_vm5, %v7315_v56 }
 0x49e   :  { %v7414_v25 = vpop.permute.xlu1 %7413 }
 0x49f   :  { %7427 = vrot.lane.b32.xlu0 %v7097_v23, %s9746_s29  ;;  %7461 = vst.msk [vmem:[#allocation6 + $0x10] sm:$0xff] %vm7459_vm6, %v7414_v25 }
 0x4a0   :  { %v7412_v18 = vpop.permute.xlu0 %7411  ;;  %7526 = vrot.lane.b32.xlu1 %v12730_v11, %s9747_s26 }
 0x4a1   :  { %v13032_v19 = vld [vmem:[#allocation5 + $0xe0] sm:$0xff]  ;;  %7460 = vst.msk [vmem:[#allocation6] sm:$0xff] %vm7459_vm6, %v7412_v18 }
 0x4a2   :  { %v13034_v17 = vld [vmem:[#allocation5 + $0xe2] sm:$0xff]  ;;  %7084 = vst.msk [vmem:[#allocation6 + $0xc0] sm:$0xff] %vm14174_vm7, %v13032_v19  ;;  %v7511_v41 = vpop.permute.xlu1 %7510  ;;  %vm14178_vm7 = vmmov %vm14175_vm9 }
 0x4a3   :  { %7794 = vst.msk [vmem:[#allocation6 + $0xa8] sm:$0xff] %vm14173_vm13, %v13034_v17  ;;  %7524 = vrot.lane.b32.xlu0 %v7194_v15, %s9747_s26  ;;  %v13087_v26 = vld [vmem:[#allocation5 + $0xe1] sm:$0xff]  ;;  %vm14177_vm13 = vmmov %vm14175_vm9 }
 0x4a4   :  { %v7509_v8 = vpop.permute.xlu0 %7508  ;;  %7558 = vst.msk [vmem:[#allocation6 + $0x10] sm:$0xff] %vm13782_vm10, %v7511_v41  ;;  %7624 = vrot.lane.b32.xlu1 %v7583_v46, %s9748_s12  ;;  %vm14180_vm1 = vmmov %vm14178_vm7 }
 0x4a5   :  { %7557 = vst.msk [vmem:[#allocation6] sm:$0xff] %vm13782_vm10, %v7509_v8 }
 0x4a6   :  { %v7609_v3 = vpop.permute.xlu1 %7608 }
 0x4a7   :  { %7622 = vrot.lane.b32.xlu0 %v7291_v1, %s9748_s12  ;;  %7656 = vst.msk [vmem:[#allocation6 + $0x10] sm:$0xff] %vm7654_vm4, %v7609_v3 }
 0x4a8   :  { %v7607_v7 = vpop.permute.xlu0 %7606  ;;  %7721 = vrot.lane.b32.xlu1 %v13053_v59, %s9749_s0 }
 0x4a9   :  { %7655 = vst.msk [vmem:[#allocation6] sm:$0xff] %vm7654_vm4, %v7607_v7 }
 0x4aa   :  { %v7706_v63 = vpop.permute.xlu1 %7705 }
 0x4ab   :  { %7719 = vrot.lane.b32.xlu0 %v7388_v39, %s9749_s0  ;;  %7753 = vst.msk [vmem:[#allocation6 + $0x10] sm:$0xff] %vm7751_vm0, %v7706_v63 }
 0x4ac   :  { %v7704_v60 = vpop.permute.xlu0 %7703  ;;  %7142 = vrot.lane.b32.xlu1 %v13053_v59, %s9743_s16 }
 0x4ad   :  { %7752 = vst.msk [vmem:[#allocation6] sm:$0xff] %vm7751_vm0, %v7704_v60 }
 0x4ae   :  { %v7127_v32 = vpop.permute.xlu1 %7126 }
 0x4af   :  { %7140 = vrot.lane.b32.xlu0 %v7388_v39, %s9743_s16  ;;  %7172 = vst.msk [vmem:[#allocation6 + $0x30] sm:$0xff] %vm7168_vm8, %v7127_v32 }
 0x4b0   :  { %v7125_v61 = vpop.permute.xlu0 %7124  ;;  %7239 = vrot.lane.b32.xlu1 %v12908_v40, %s9744_s14 }
 0x4b1   :  { %7171 = vst.msk [vmem:[#allocation6 + $0x20] sm:$0xff] %vm7168_vm8, %v7125_v61 }
 0x4b2   :  { %v9556_v36 = vpop.f32.mrb[48].mxu0  ;;  %v7224_v20 = vpop.permute.xlu1 %7223  ;;  %v7802_v5 = vld [vmem:[#allocation6 + $0x10] sm:$0xff] }
 0x4b3   :  { %7237 = vrot.lane.b32.xlu0 %v12730_v11, %s9744_s14  ;;  %v3925_v44 = vadd.f32 %v12796_v13, %v9556_v36  ;;  %v3916_v10 = vpop.f32.mrb[49].mxu0  ;;  %7269 = vst.msk [vmem:[#allocation6 + $0x30] sm:$0xff] %vm13784_vm11, %v7224_v20 }
 0x4b4   :  { %v3917_v37 = vadd.f32 %v12796_v13, %v3916_v10  ;;  %v9557_v48 = vpop.f32.mrb[50].mxu0  ;;  %v7222_v54 = vpop.permute.xlu0 %7221  ;;  %v7800_v53 = vld [vmem:[#allocation6] sm:$0xff]  ;;  %7336 = vrot.lane.b32.xlu1 %v13032_v19, %s9745_s19 }
 0x4b5   :  { %v4029_v34 = vmax.f32 %v3925_v44, 0.0  ;;  %v3928_v38 = vadd.f32 %v12796_v13, %v9557_v48  ;;  %7268 = vst.msk [vmem:[#allocation6 + $0x20] sm:$0xff] %vm13784_vm11, %v7222_v54  ;;  %v3919_v9 = vpop.f32.mrb[51].mxu0  ;;  %v7832_v11 = vpack.c.bf16 %v7802_v5, %v7800_v53 }
 0x4b6   :  { %v4027_v52 = vmax.f32 %v3917_v37, 0.0  ;;  %v3920_v50 = vadd.f32 %v13080_v24, %v3919_v9  ;;  %v7321_v23 = vpop.permute.xlu1 %7320 }
 0x4b7   :  { %7334 = vrot.lane.b32.xlu0 %v7583_v46, %s9745_s19  ;;  %v4957_v13 = vcombine.high %v4029_v34, %v4029_v34  ;;  %v4964_v14 = vrot.slane %v4029_v34, %v11020_v6  ;;  %v4030_v57 = vmax.f32 %v3928_v38, 0.0  ;;  %8016 = vmatmul.mubr.bf16.vlgmr.msra.gmra.mrb[0].mxu1 %v7832_v11  ;;  %7366 = vst.msk [vmem:[#allocation6 + $0x30] sm:$0xff] %vm13781_vm5, %v7321_v23 }
 0x4b8   :  { %v4923_v22 = vcombine.high %v4027_v52, %v4027_v52  ;;  %v4930_v29 = vrot.slane %v4027_v52, %v11020_v6  ;;  %v4028_v55 = vmax.f32 %v3920_v50, 0.0  ;;  %v7319_v16 = vpop.permute.xlu0 %7318  ;;  %8023 = vmatprep.mubr.bf16.mxu1 %v7835_v42  ;;  %7433 = vrot.lane.b32.xlu1 %v13087_v26, %s9746_s29 }
 0x4b9   :  { %v4971_v31 = vrot.slane %v4957_v13, %v11020_v6  ;;  %v4972_v51 = vcombine.high %v4964_v14, %v4964_v14  ;;  %5652 = vst.msk [vmem:[#allocation4 + $0x190] sm:$0x3] %vm14175_vm9, %v4964_v14  ;;  %v4974_v4 = vcombine.high %v4030_v57, %v4030_v57  ;;  %v4981_v35 = vrot.slane %v4030_v57, %v11020_v6  ;;  %vm14179_vm9 = vmmov %vm14178_vm7 }
 0x4ba   :  { %7365 = vst.msk [vmem:[#allocation6 + $0x20] sm:$0xff] %vm13781_vm5, %v7319_v16  ;;  %v4937_v47 = vrot.slane %v4923_v22, %v11020_v6  ;;  %v4938_v15 = vcombine.high %v4930_v29, %v4930_v29  ;;  %v4940_v28 = vcombine.high %v4028_v55, %v4028_v55  ;;  %v4947_v58 = vrot.slane %v4028_v55, %v11020_v6  ;;  %v7418_v0 = vpop.permute.xlu1 %7417  ;;  %vm14182_vm5 = vmmov %vm14180_vm1 }
 0x4bb   :  { %5644 = vst.msk [vmem:[#allocation4 + $0x180] sm:$0x3] %vm14176_vm12, %v4930_v29  ;;  %7431 = vrot.lane.b32.xlu0 %v13053_v59, %s9746_s29  ;;  %v4973_v27 = vcombine.high %v4971_v31, %v4971_v31  ;;  %v4988_v12 = vrot.slane %v4974_v4, %v11020_v6  ;;  %v4989_v43 = vcombine.high %v4981_v35, %v4981_v35  ;;  %vm14181_vm12 = vmmov %vm14180_vm1 }
 0x4bc   :  { %5653 = vst.msk [vmem:[#allocation4 + $0x192] sm:$0x3] %vm14177_vm13, %v4972_v51  ;;  %v4939_v1 = vcombine.high %v4937_v47, %v4937_v47  ;;  %v4954_v21 = vrot.slane %v4940_v28, %v11020_v6  ;;  %v4955_v45 = vcombine.high %v4947_v58, %v4947_v58  ;;  %v7416_v49 = vpop.permute.xlu0 %7415  ;;  %vm14183_vm13 = vmmov %vm14180_vm1  ;;  %7530 = vrot.lane.b32.xlu1 %v13034_v17, %s9747_s26 }
 0x4bd   :  { %5654 = vst.msk [vmem:[#allocation4 + $0x194] sm:$0x3] %vm14178_vm7, %v4971_v31  ;;  %v4990_v33 = vcombine.high %v4988_v12, %v4988_v12  ;;  %vm14184_vm7 = vmmov %vm14180_vm1 }
 0x4be   :  { %5656 = vst.msk [vmem:[#allocation4 + $0x198] sm:$0x3] %vm14179_vm9, %v4981_v35  ;;  %vm14185_vm9 = vmmov %vm14180_vm1  ;;  %v4956_v56 = vcombine.high %v4954_v21, %v4954_v21  ;;  %v7515_v39 = vpop.permute.xlu1 %7514 }
 0x4bf   :  { %5645 = vst.msk [vmem:[#allocation4 + $0x182] sm:$0x3] %vm14180_vm1, %v4938_v15  ;;  %5647 = vst.msk [vmem:[#allocation4 + $0x186] sm:$0x3] %vm14180_vm1, %v4939_v1  ;;  %7528 = vrot.lane.b32.xlu0 %v12908_v40, %s9747_s26 }
 0x4c0   :  { %5646 = vst.msk [vmem:[#allocation4 + $0x184] sm:$0x3] %vm14181_vm12, %v4937_v47  ;;  %vm14186_vm12 = vmmov %vm14180_vm1  ;;  %v5908_v25 = vld [vmem:[#allocation4 + $0x190] sm:$0x1]  ;;  %v7513_v18 = vpop.permute.xlu0 %7512  ;;  %v6164_v41 = vld [vmem:[#allocation4 + $0x191] sm:$0x1] }
 0x4c1   :  { %5648 = vst.msk [vmem:[#allocation4 + $0x188] sm:$0x3] %vm14182_vm5, %v4947_v58  ;;  %vm14187_vm5 = vmmov %vm14180_vm1  ;;  %v6420_v62 = vmax.f32 %v5908_v25, %v6164_v41 }
 0x4c2   :  { %7463 = vst.msk [vmem:[#allocation6 + $0x30] sm:$0xff] %vm7459_vm6, %v7418_v0  ;;  %7462 = vst.msk [vmem:[#allocation6 + $0x20] sm:$0xff] %vm7459_vm6, %v7416_v49  ;;  %v5900_v8 = vld [vmem:[#allocation4 + $0x180] sm:$0x1]  ;;  %v6156_v46 = vld [vmem:[#allocation4 + $0x181] sm:$0x1]  ;;  %v7613_v61 = vpop.permute.xlu1 %7612 }
 0x4c3   :  { %5655 = vst.msk [vmem:[#allocation4 + $0x196] sm:$0x3] %vm14183_vm13, %v4973_v27  ;;  %vm14188_vm13 = vmmov %vm14180_vm1  ;;  %v5909_v3 = vld [vmem:[#allocation4 + $0x192] sm:$0x1]  ;;  %v6165_v59 = vld [vmem:[#allocation4 + $0x193] sm:$0x1]  ;;  %7626 = vrot.lane.b32.xlu0 %v13032_v19, %s9748_s12  ;;  %v6412_v34 = vmax.f32 %v5900_v8, %v6156_v46 }
 0x4c4   :  { %5657 = vst.msk [vmem:[#allocation4 + $0x19a] sm:$0x3] %vm14184_vm7, %v4989_v43  ;;  %vm14189_vm7 = vmmov %vm14180_vm1  ;;  %v5910_v7 = vld [vmem:[#allocation4 + $0x194] sm:$0x1]  ;;  %v6166_v40 = vld [vmem:[#allocation4 + $0x195] sm:$0x1]  ;;  %v6421_v63 = vmax.f32 %v5909_v3, %v6165_v59  ;;  %v7611_v5 = vpop.permute.xlu0 %7610 }
 0x4c5   :  { %5658 = vst.msk [vmem:[#allocation4 + $0x19c] sm:$0x3] %vm14185_vm9, %v4988_v12  ;;  %v6422_v10 = vmax.f32 %v5910_v7, %v6166_v40  ;;  %v5912_v11 = vld [vmem:[#allocation4 + $0x198] sm:$0x1]  ;;  %v6168_v13 = vld [vmem:[#allocation4 + $0x199] sm:$0x1]  ;;  %v6572_v51 = vmax.f32 %v6412_v34, %v6420_v62 }
 0x4c6   :  { %5649 = vst.msk [vmem:[#allocation4 + $0x18a] sm:$0x3] %vm14186_vm12, %v4955_v45  ;;  %v5901_v60 = vld [vmem:[#allocation4 + $0x182] sm:$0x1]  ;;  %v6157_v20 = vld [vmem:[#allocation4 + $0x183] sm:$0x1]  ;;  %v7710_v57 = vpop.permute.xlu1 %7709  ;;  %v6424_v35 = vmax.f32 %v5912_v11, %v6168_v13 }
 0x4c7   :  { %5650 = vst.msk [vmem:[#allocation4 + $0x18c] sm:$0x3] %vm14187_vm5, %v4954_v21  ;;  %v5902_v32 = vld [vmem:[#allocation4 + $0x184] sm:$0x1]  ;;  %v5903_v48 = vld [vmem:[#allocation4 + $0x186] sm:$0x1]  ;;  %v6413_v38 = vmax.f32 %v5901_v60, %v6157_v20  ;;  %7723 = vrot.lane.b32.xlu0 %v13087_v26, %s9749_s0 }
 0x4c8   :  { %5659 = vst.msk [vmem:[#allocation4 + $0x19e] sm:$0x3] %vm14188_vm13, %v4990_v33  ;;  %v6158_v54 = vld [vmem:[#allocation4 + $0x185] sm:$0x1]  ;;  %v6159_v53 = vld [vmem:[#allocation4 + $0x187] sm:$0x1]  ;;  %v7708_v31 = vpop.permute.xlu0 %7707 }
 0x4c9   :  { %5651 = vst.msk [vmem:[#allocation4 + $0x18e] sm:$0x3] %vm14189_vm7, %v4956_v56  ;;  %v6414_v19 = vmax.f32 %v5902_v32, %v6158_v54  ;;  %v6415_v9 = vmax.f32 %v5903_v48, %v6159_v53  ;;  %v6573_v50 = vmax.f32 %v6413_v38, %v6421_v63  ;;  %v5904_v16 = vld [vmem:[#allocation4 + $0x188] sm:$0x1]  ;;  %v6160_v1 = vld [vmem:[#allocation4 + $0x189] sm:$0x1] }
 0x4ca   :  { %7560 = vst.msk [vmem:[#allocation6 + $0x30] sm:$0xff] %vm13782_vm10, %v7515_v39  ;;  %7559 = vst.msk [vmem:[#allocation6 + $0x20] sm:$0xff] %vm13782_vm10, %v7513_v18  ;;  %v5911_v36 = vld [vmem:[#allocation4 + $0x196] sm:$0x1]  ;;  %v6167_v44 = vld [vmem:[#allocation4 + $0x197] sm:$0x1]  ;;  %v6416_v56 = vmax.f32 %v5904_v16, %v6160_v1  ;;  %v7131_v39 = vpop.permute.xlu1 %7130 }
 0x4cb   :  { %7658 = vst.msk [vmem:[#allocation6 + $0x30] sm:$0xff] %vm7654_vm4, %v7613_v61  ;;  %v6423_v37 = vmax.f32 %v5911_v36, %v6167_v44  ;;  %7657 = vst.msk [vmem:[#allocation6 + $0x20] sm:$0xff] %vm7654_vm4, %v7611_v5  ;;  %v5913_v30 = vld [vmem:[#allocation4 + $0x19a] sm:$0x1]  ;;  %v6169_v14 = vld [vmem:[#allocation4 + $0x19b] sm:$0x1]  ;;  %v6574_v23 = vmax.f32 %v6414_v19, %v6422_v10  ;;  %7144 = vrot.lane.b32.xlu0 %v13087_v26, %s9743_s16 }
 0x4cc   :  { %v5914_v52 = vld [vmem:[#allocation4 + $0x19c] sm:$0x1]  ;;  %v6170_v29 = vld [vmem:[#allocation4 + $0x19d] sm:$0x1]  ;;  %7755 = vst.msk [vmem:[#allocation6 + $0x30] sm:$0xff] %vm7751_vm0, %v7710_v57  ;;  %v6951_v4 = vrot.slane %v6573_v50, 7  ;;  %v6425_v47 = vmax.f32 %v5913_v30, %v6169_v14  ;;  %v7129_v46 = vpop.permute.xlu0 %7128  ;;  %v6576_v3 = vmax.f32 %v6416_v56, %v6424_v35 }
 0x4cd   :  { %v6575_v22 = vmax.f32 %v6415_v9, %v6423_v37  ;;  %v5905_v15 = vld [vmem:[#allocation4 + $0x18a] sm:$0x1]  ;;  %7754 = vst.msk [vmem:[#allocation6 + $0x20] sm:$0xff] %vm7751_vm0, %v7708_v31  ;;  %v6953_v58 = vrot.slane %v6574_v23, 6  ;;  %v6426_v12 = vmax.f32 %v5914_v52, %v6170_v29  ;;  %vm14190_vm9 = vcmask 1041409   ;;  %v7811_v61 = vld [vmem:[#allocation6 + $0x58] sm:$0xff] }
 0x4ce   :  { %v5906_v28 = vld [vmem:[#allocation4 + $0x18c] sm:$0x1]  ;;  %v6952_v21 = vsel %vm14190_vm9, %v6951_v4, %v6572_v51  ;;  %v6161_v45 = vld [vmem:[#allocation4 + $0x18b] sm:$0x1]  ;;  %v6162_v49 = vld [vmem:[#allocation4 + $0x18d] sm:$0x1]  ;;  %v7228_v60 = vpop.permute.xlu1 %7227 }
 0x4cf   :  { %v5915_v42 = vld [vmem:[#allocation4 + $0x19e] sm:$0x1]  ;;  %v6171_v55 = vld [vmem:[#allocation4 + $0x19f] sm:$0x1]  ;;  %v6955_v27 = vrot.slane %v6575_v22, 5  ;;  %vm14191_vm1 = vcmask 1042434   ;;  %v6417_v18 = vmax.f32 %v5905_v15, %v6161_v45  ;;  %v6418_v41 = vmax.f32 %v5906_v28, %v6162_v49  ;;  %7241 = vrot.lane.b32.xlu0 %v13034_v17, %s9744_s14 }
 0x4d0   :  { %v6427_v43 = vmax.f32 %v5915_v42, %v6171_v55  ;;  %v5907_v0 = vld [vmem:[#allocation4 + $0x18e] sm:$0x1]  ;;  %v6163_v33 = vld [vmem:[#allocation4 + $0x18f] sm:$0x1]  ;;  %v6954_v25 = vsel %vm14191_vm1, %v6953_v58, %v6952_v21  ;;  %7174 = vst.msk [vmem:[#allocation6 + $0x50] sm:$0xff] %vm7168_vm8, %v7131_v39  ;;  %7173 = vst.msk [vmem:[#allocation6 + $0x40] sm:$0xff] %vm7168_vm8, %v7129_v46  ;;  %v7226_v44 = vpop.permute.xlu0 %7225 }
 0x4d1   :  { %v6419_v8 = vmax.f32 %v5907_v0, %v6163_v33  ;;  %v6577_v7 = vmax.f32 %v6417_v18, %v6425_v47  ;;  %v6578_v26 = vmax.f32 %v6418_v41, %v6426_v12  ;;  %v6956_v40 = vsel %vm6783_vm3, %v6955_v27, %v6954_v25  ;;  %7271 = vst.msk [vmem:[#allocation6 + $0x50] sm:$0xff] %vm13784_vm11, %v7228_v60  ;;  %v7809_v62 = vld [vmem:[#allocation6 + $0x48] sm:$0xff]  ;;  %v7815_v4 = vld [vmem:[#allocation6 + $0x78] sm:$0xff] }
 0x4d2   :  { %v6957_v63 = vrot.slane %v6576_v3, 4  ;;  %7270 = vst.msk [vmem:[#allocation6 + $0x40] sm:$0xff] %vm13784_vm11, %v7226_v44  ;;  %v7837_v17 = vpack.c.bf16 %v7811_v61, %v7809_v62  ;;  %v7325_v53 = vpop.permute.xlu1 %7324  ;;  %vm14192_vm12 = vcmask 523648   ;;  %vm14193_vm5 = vcmask 1047559   ;;  %v7813_v51 = vld [vmem:[#allocation6 + $0x68] sm:$0xff] }
 0x4d3   :  { %v6579_v59 = vmax.f32 %v6419_v8, %v6427_v43  ;;  %v7806_v32 = vld [vmem:[#allocation6 + $0x30] sm:$0xff]  ;;  %v6959_v36 = vrot.slane %v6577_v7, 3  ;;  %v6961_v20 = vrot.slane %v6578_v26, 2  ;;  %7368 = vst.msk [vmem:[#allocation6 + $0x50] sm:$0xff] %vm14192_vm12, %v7325_v53  ;;  %vm14194_vm13 = vmmov %vm14192_vm12  ;;  %vm14195_vm7 = vcmask 130048  }
 0x4d4   :  { %v7804_v10 = vld [vmem:[#allocation6 + $0x20] sm:$0xff]  ;;  %v6958_v37 = vsel %vm6786_vm14, %v6957_v63, %v6956_v40  ;;  %v7323_v38 = vpop.permute.xlu0 %7322  ;;  %vm14196_vm9 = vmmov %vm14195_vm7  ;;  %v7839_v28 = vpack.c.bf16 %v7815_v4, %v7813_v51 }
 0x4d5   :  { %v7834_v5 = vpack.c.bf16 %v7806_v32, %v7804_v10  ;;  %v6960_v48 = vsel %vm6789_vm15, %v6959_v36, %v6958_v37  ;;  %v6963_v54 = vrot.slane %v6579_v59, 1  ;;  %7367 = vst.msk [vmem:[#allocation6 + $0x40] sm:$0xff] %vm14194_vm13, %v7323_v38  ;;  %vm14197_vm1 = vmmov %vm14195_vm7  ;;  %vm14199_vm13 = vcmask 123904  }
 0x4d6   :  { %v6962_v34 = vsel %vm13783_vm2, %v6961_v20, %v6960_v48  ;;  %v7422_v9 = vpop.permute.xlu1 %7421 }
 0x4d7   :  { %8024 = vmatmul.mubr.bf16.gmra.mrb[4].mxu1 %v7834_v5  ;;  %v6964_v19 = vsel %vm14193_vm5, %v6963_v54, %v6962_v34  ;;  %7465 = vst.msk [vmem:[#allocation6 + $0x50] sm:$0xff] %vm7459_vm6, %v7422_v9  ;;  %vm14198_vm5 = vmmov %vm14192_vm12 }
 0x4d8   :  { %8031 = vmatprep.mubr.bf16.mxu1 %v7837_v17  ;;  %7035 = vst.msk [vmem:[#allocation5 + $0xf1] sm:$0xff] %vm14195_vm7, %v6964_v19  ;;  %v7420_v11 = vpop.permute.xlu0 %7419  ;;  %vm14200_vm7 = vmmov %vm14199_vm13 }
 0x4d9   :  { %7464 = vst.msk [vmem:[#allocation6 + $0x40] sm:$0xff] %vm7459_vm6, %v7420_v11 }
 0x4da   :  { %v7519_v30 = vpop.permute.xlu1 %7518 }
 0x4db   :  { %7562 = vst.msk [vmem:[#allocation6 + $0x50] sm:$0xff] %vm13782_vm10, %v7519_v30 }
 0x4dc   :  { %v7517_v50 = vpop.permute.xlu0 %7516 }
 0x4dd   :  { %7561 = vst.msk [vmem:[#allocation6 + $0x40] sm:$0xff] %vm13782_vm10, %v7517_v50 }
 0x4de   :  { %v7617_v13 = vpop.permute.xlu1 %7616 }
 0x4df   :  { %v7294_v52 = vld [vmem:[#allocation5 + $0xf0] sm:$0xff]  ;;  %7660 = vst.msk [vmem:[#allocation6 + $0x50] sm:$0xff] %vm7654_vm4, %v7617_v13 }
 0x4e0   :  { %v7488_v42 = vld [vmem:[#allocation5 + $0xf2] sm:$0xff]  ;;  %7338 = vrot.lane.b32.xlu0 %v7294_v52, %s9745_s19  ;;  %7628 = vrot.lane.b32.xlu1 %v7294_v52, %s9748_s12  ;;  %7085 = vst.msk [vmem:[#allocation6 + $0xd0] sm:$0xff] %vm14197_vm1, %v7294_v52  ;;  %v7615_v57 = vpop.permute.xlu0 %7614  ;;  %vm14202_vm1 = vmmov %vm14200_vm7 }
 0x4e1   :  { %7795 = vst.msk [vmem:[#allocation6 + $0xb8] sm:$0xff] %vm14196_vm9, %v7488_v42  ;;  %v7391_v14 = vld [vmem:[#allocation5 + $0xf1] sm:$0xff]  ;;  %vm14201_vm9 = vmmov %vm14200_vm7 }
 0x4e2   :  { %7659 = vst.msk [vmem:[#allocation6 + $0x40] sm:$0xff] %vm7654_vm4, %v7615_v57  ;;  %v7714_v23 = vpop.permute.xlu1 %7713  ;;  %vm14213_vm2 = vmmov %vm14202_vm1 }
 0x4e3   :  { %7757 = vst.msk [vmem:[#allocation6 + $0x50] sm:$0xff] %vm7751_vm0, %v7714_v23 }
 0x4e4   :  { %7435 = vrot.lane.b32.xlu0 %v7391_v14, %s9746_s29  ;;  %7725 = vrot.lane.b32.xlu1 %v7391_v14, %s9749_s0  ;;  %v7712_v22 = vpop.permute.xlu0 %7711 }
 0x4e5   :  { %7756 = vst.msk [vmem:[#allocation6 + $0x40] sm:$0xff] %vm7751_vm0, %v7712_v22 }
 0x4e6   :  { %v7135_v29 = vpop.permute.xlu1 %7134 }
 0x4e7   :  { %7176 = vst.msk [vmem:[#allocation6 + $0x70] sm:$0xff] %vm7168_vm8, %v7135_v29 }
 0x4e8   :  { %7532 = vrot.lane.b32.xlu0 %v7488_v42, %s9747_s26  ;;  %7146 = vrot.lane.b32.xlu1 %v7391_v14, %s9743_s16  ;;  %v7133_v55 = vpop.permute.xlu0 %7132 }
 0x4e9   :  { %7175 = vst.msk [vmem:[#allocation6 + $0x60] sm:$0xff] %vm7168_vm8, %v7133_v55 }
 0x4ea   :  { %v7232_v16 = vpop.permute.xlu1 %7231  ;;  %v7810_v31 = vld [vmem:[#allocation6 + $0x50] sm:$0xff] }
 0x4eb   :  { %7273 = vst.msk [vmem:[#allocation6 + $0x70] sm:$0xff] %vm13784_vm11, %v7232_v16 }
 0x4ec   :  { %7243 = vrot.lane.b32.xlu1 %v7488_v42, %s9744_s14  ;;  %v7808_v47 = vld [vmem:[#allocation6 + $0x40] sm:$0xff] }
 0x4ed   :  { %v7230_v35 = vpop.permute.xlu0 %7229  ;;  %v7836_v15 = vpack.c.bf16 %v7810_v31, %v7808_v47 }
 0x4ee   :  { %7272 = vst.msk [vmem:[#allocation6 + $0x60] sm:$0xff] %vm13784_vm11, %v7230_v35  ;;  %v7329_v58 = vpop.permute.xlu1 %7328 }
 0x4ef   :  { %8032 = vmatmul.mubr.bf16.gmra.mrb[8].mxu1 %v7836_v15  ;;  %7370 = vst.msk [vmem:[#allocation6 + $0x70] sm:$0xff] %vm14192_vm12, %v7329_v58  ;;  %vm14203_vm12 = vmmov %vm14202_vm1 }
 0x4f0   :  { %8039 = vmatprep.mubr.bf16.mxu1 %v7839_v28 }
 0x4f1   :  { %v7327_v27 = vpop.permute.xlu0 %7326 }
 0x4f2   :  { %7369 = vst.msk [vmem:[#allocation6 + $0x60] sm:$0xff] %vm14198_vm5, %v7327_v27  ;;  %v9560_v12 = vpop.f32.mrb[52].mxu0  ;;  %v7426_v1 = vpop.permute.xlu1 %7425  ;;  %vm14204_vm5 = vmmov %vm14202_vm1 }
 0x4f3   :  { %v3941_v43 = vadd.f32 %v13080_v24, %v9560_v12  ;;  %v3932_v0 = vpop.f32.mrb[53].mxu0  ;;  %7467 = vst.msk [vmem:[#allocation6 + $0x70] sm:$0xff] %vm7459_vm6, %v7426_v1 }
 0x4f4   :  { %v3933_v21 = vadd.f32 %v13080_v24, %v3932_v0  ;;  %v9561_v45 = vpop.f32.mrb[54].mxu0 }
 0x4f5   :  { %v7424_v49 = vpop.permute.xlu0 %7423  ;;  %v4033_v33 = vmax.f32 %v3941_v43, 0.0  ;;  %v3944_v56 = vadd.f32 %v13080_v24, %v9561_v45  ;;  %v3935_v39 = vpop.f32.mrb[55].mxu0 }
 0x4f6   :  { %7466 = vst.msk [vmem:[#allocation6 + $0x60] sm:$0xff] %vm7459_vm6, %v7424_v49  ;;  %v4031_v25 = vmax.f32 %v3933_v21, 0.0  ;;  %v3936_v18 = vadd.f32 %v13080_v24, %v3935_v39  ;;  %v7523_v3 = vpop.permute.xlu1 %7522 }
 0x4f7   :  { %v5025_v41 = vcombine.high %v4033_v33, %v4033_v33  ;;  %v5032_v8 = vrot.slane %v4033_v33, %v11020_v6  ;;  %v4034_v46 = vmax.f32 %v3944_v56, 0.0  ;;  %7564 = vst.msk [vmem:[#allocation6 + $0x70] sm:$0xff] %vm13782_vm10, %v7523_v3 }
 0x4f8   :  { %v4991_v7 = vcombine.high %v4031_v25, %v4031_v25  ;;  %v4998_v26 = vrot.slane %v4031_v25, %v11020_v6  ;;  %v4032_v59 = vmax.f32 %v3936_v18, 0.0 }
 0x4f9   :  { %v7521_v40 = vpop.permute.xlu0 %7520  ;;  %v5039_v63 = vrot.slane %v5025_v41, %v11020_v6  ;;  %v5040_v60 = vcombine.high %v5032_v8, %v5032_v8  ;;  %5668 = vst.msk [vmem:[#allocation4 + $0x1b0] sm:$0x3] %vm14199_vm13, %v5032_v8  ;;  %v5042_v32 = vcombine.high %v4034_v46, %v4034_v46  ;;  %v5049_v61 = vrot.slane %v4034_v46, %v11020_v6  ;;  %vm14205_vm13 = vmmov %vm14202_vm1 }
 0x4fa   :  { %7563 = vst.msk [vmem:[#allocation6 + $0x60] sm:$0xff] %vm13782_vm10, %v7521_v40  ;;  %v5005_v36 = vrot.slane %v4991_v7, %v11020_v6  ;;  %v5006_v44 = vcombine.high %v4998_v26, %v4998_v26  ;;  %v5008_v10 = vcombine.high %v4032_v59, %v4032_v59  ;;  %v5015_v20 = vrot.slane %v4032_v59, %v11020_v6  ;;  %v7621_v17 = vpop.permute.xlu1 %7620  ;;  %vm14211_vm10 = vmmov %vm14202_vm1  ;;  %v7819_v40 = vld [vmem:[#allocation6 + $0x98] sm:$0xff] }
 0x4fb   :  { %5660 = vst.msk [vmem:[#allocation4 + $0x1a0] sm:$0x3] %vm14200_vm7, %v4998_v26  ;;  %v5041_v5 = vcombine.high %v5039_v63, %v5039_v63  ;;  %v5056_v62 = vrot.slane %v5042_v32, %v11020_v6  ;;  %v5057_v37 = vcombine.high %v5049_v61, %v5049_v61  ;;  %vm14206_vm7 = vmmov %vm14202_vm1 }
 0x4fc   :  { %5669 = vst.msk [vmem:[#allocation4 + $0x1b2] sm:$0x3] %vm14201_vm9, %v5040_v60  ;;  %v5007_v48 = vcombine.high %v5005_v36, %v5005_v36  ;;  %v5022_v54 = vrot.slane %v5008_v10, %v11020_v6  ;;  %v5023_v53 = vcombine.high %v5015_v20, %v5015_v20  ;;  %vm14207_vm9 = vmmov %vm14202_vm1 }
 0x4fd   :  { %5670 = vst.msk [vmem:[#allocation4 + $0x1b4] sm:$0x3] %vm14202_vm1, %v5039_v63  ;;  %v7619_v34 = vpop.permute.xlu0 %7618  ;;  %v5058_v38 = vcombine.high %v5056_v62, %v5056_v62  ;;  %5673 = vst.msk [vmem:[#allocation4 + $0x1ba] sm:$0x3] %vm14202_vm1, %v5057_v37 }
 0x4fe   :  { %5672 = vst.msk [vmem:[#allocation4 + $0x1b8] sm:$0x3] %vm14203_vm12, %v5049_v61  ;;  %vm14208_vm12 = vmmov %vm14202_vm1  ;;  %v5024_v19 = vcombine.high %v5022_v54, %v5022_v54  ;;  %v7718_v9 = vpop.permute.xlu1 %7717 }
 0x4ff   :  { %5661 = vst.msk [vmem:[#allocation4 + $0x1a2] sm:$0x3] %vm14204_vm5, %v5006_v44  ;;  %vm14209_vm5 = vmmov %vm14202_vm1 }
 0x500   :  { %5662 = vst.msk [vmem:[#allocation4 + $0x1a4] sm:$0x3] %vm14205_vm13, %v5005_v36  ;;  %vm14210_vm13 = vmmov %vm14202_vm1  ;;  %v5924_v11 = vld [vmem:[#allocation4 + $0x1b0] sm:$0x1]  ;;  %v6180_v52 = vld [vmem:[#allocation4 + $0x1b1] sm:$0x1] }
 0x501   :  { %5664 = vst.msk [vmem:[#allocation4 + $0x1a8] sm:$0x3] %vm14206_vm7, %v5015_v20  ;;  %vm14212_vm7 = vmmov %vm14202_vm1  ;;  %v7716_v30 = vpop.permute.xlu0 %7715  ;;  %v6436_v15 = vmax.f32 %v5924_v11, %v6180_v52 }
 0x502   :  { %7662 = vst.msk [vmem:[#allocation6 + $0x70] sm:$0xff] %vm7654_vm4, %v7621_v17  ;;  %7661 = vst.msk [vmem:[#allocation6 + $0x60] sm:$0xff] %vm7654_vm4, %v7619_v34  ;;  %v5916_v50 = vld [vmem:[#allocation4 + $0x1a0] sm:$0x1]  ;;  %v6172_v42 = vld [vmem:[#allocation4 + $0x1a1] sm:$0x1]  ;;  %v7139_v16 = vpop.permute.xlu1 %7138 }
 0x503   :  { %5671 = vst.msk [vmem:[#allocation4 + $0x1b6] sm:$0x3] %vm14207_vm9, %v5041_v5  ;;  %v5925_v13 = vld [vmem:[#allocation4 + $0x1b2] sm:$0x1]  ;;  %v6181_v57 = vld [vmem:[#allocation4 + $0x1b3] sm:$0x1]  ;;  %v6428_v43 = vmax.f32 %v5916_v50, %v6172_v42 }
 0x504   :  { %5674 = vst.msk [vmem:[#allocation4 + $0x1bc] sm:$0x3] %vm14208_vm12, %v5056_v62  ;;  %v5926_v14 = vld [vmem:[#allocation4 + $0x1b4] sm:$0x1]  ;;  %v6182_v23 = vld [vmem:[#allocation4 + $0x1b5] sm:$0x1]  ;;  %v6437_v22 = vmax.f32 %v5925_v13, %v6181_v57 }
 0x505   :  { %5663 = vst.msk [vmem:[#allocation4 + $0x1a6] sm:$0x3] %vm14209_vm5, %v5007_v48  ;;  %v6438_v4 = vmax.f32 %v5926_v14, %v6182_v23  ;;  %v7137_v47 = vpop.permute.xlu0 %7136  ;;  %v5928_v45 = vld [vmem:[#allocation4 + $0x1b8] sm:$0x1]  ;;  %v5929_v49 = vld [vmem:[#allocation4 + $0x1ba] sm:$0x1]  ;;  %v6580_v63 = vmax.f32 %v6428_v43, %v6436_v15 }
 0x506   :  { %5665 = vst.msk [vmem:[#allocation4 + $0x1aa] sm:$0x3] %vm14210_vm13, %v5023_v53  ;;  %v5917_v29 = vld [vmem:[#allocation4 + $0x1a2] sm:$0x1]  ;;  %v6173_v35 = vld [vmem:[#allocation4 + $0x1a3] sm:$0x1]  ;;  %v7236_v41 = vpop.permute.xlu1 %7235 }
 0x507   :  { %5666 = vst.msk [vmem:[#allocation4 + $0x1ac] sm:$0x3] %vm14211_vm10, %v5022_v54  ;;  %v5918_v55 = vld [vmem:[#allocation4 + $0x1a4] sm:$0x1]  ;;  %v6174_v27 = vld [vmem:[#allocation4 + $0x1a5] sm:$0x1]  ;;  %v6429_v0 = vmax.f32 %v5917_v29, %v6173_v35 }
 0x508   :  { %5675 = vst.msk [vmem:[#allocation4 + $0x1be] sm:$0x3] %vm14212_vm7, %v5058_v38  ;;  %v6430_v1 = vmax.f32 %v5918_v55, %v6174_v27  ;;  %v6184_v25 = vld [vmem:[#allocation4 + $0x1b9] sm:$0x1]  ;;  %v6185_v18 = vld [vmem:[#allocation4 + $0x1bb] sm:$0x1] }
 0x509   :  { %5667 = vst.msk [vmem:[#allocation4 + $0x1ae] sm:$0x3] %vm14213_vm2, %v5024_v19  ;;  %v6581_v56 = vmax.f32 %v6429_v0, %v6437_v22  ;;  %v5920_v26 = vld [vmem:[#allocation4 + $0x1a8] sm:$0x1]  ;;  %v7234_v59 = vpop.permute.xlu0 %7233  ;;  %v6440_v32 = vmax.f32 %v5928_v45, %v6184_v25  ;;  %v6441_v61 = vmax.f32 %v5929_v49, %v6185_v18  ;;  %v6176_v48 = vld [vmem:[#allocation4 + $0x1a9] sm:$0x1] }
 0x50a   :  { %7759 = vst.msk [vmem:[#allocation6 + $0x70] sm:$0xff] %vm7751_vm0, %v7718_v9  ;;  %7758 = vst.msk [vmem:[#allocation6 + $0x60] sm:$0xff] %vm7751_vm0, %v7716_v30  ;;  %v5927_v31 = vld [vmem:[#allocation4 + $0x1b6] sm:$0x1]  ;;  %v6183_v51 = vld [vmem:[#allocation4 + $0x1b7] sm:$0x1]  ;;  %v6582_v8 = vmax.f32 %v6430_v1, %v6438_v4  ;;  %v6432_v19 = vmax.f32 %v5920_v26, %v6176_v48  ;;  %v7333_v9 = vpop.permute.xlu1 %7332 }
 0x50b   :  { %7178 = vst.msk [vmem:[#allocation6 + $0x90] sm:$0xff] %vm7168_vm8, %v7139_v16  ;;  %v6439_v28 = vmax.f32 %v5927_v31, %v6183_v51  ;;  %7177 = vst.msk [vmem:[#allocation6 + $0x80] sm:$0xff] %vm7168_vm8, %v7137_v47  ;;  %v5930_v33 = vld [vmem:[#allocation4 + $0x1bc] sm:$0x1]  ;;  %v6186_v3 = vld [vmem:[#allocation4 + $0x1bd] sm:$0x1] }
 0x50c   :  { %v5919_v58 = vld [vmem:[#allocation4 + $0x1a6] sm:$0x1]  ;;  %v6175_v12 = vld [vmem:[#allocation4 + $0x1a7] sm:$0x1]  ;;  %7275 = vst.msk [vmem:[#allocation6 + $0x90] sm:$0xff] %vm13784_vm11, %v7236_v41  ;;  %v6965_v60 = vrot.slane %v6581_v56, 7  ;;  %v6442_v62 = vmax.f32 %v5930_v33, %v6186_v3  ;;  %v6584_v57 = vmax.f32 %v6432_v19, %v6440_v32 }
 0x50d   :  { %v6431_v21 = vmax.f32 %v5919_v58, %v6175_v12  ;;  %v5921_v36 = vld [vmem:[#allocation4 + $0x1aa] sm:$0x1]  ;;  %7274 = vst.msk [vmem:[#allocation6 + $0x80] sm:$0xff] %vm13784_vm11, %v7234_v59  ;;  %v6967_v20 = vrot.slane %v6582_v8, 6  ;;  %vm14214_vm2 = vcmask 1041409   ;;  %vm14215_vm10 = vcmask 1042434   ;;  %v7331_v13 = vpop.permute.xlu0 %7330 }
 0x50e   :  { %v5922_v44 = vld [vmem:[#allocation4 + $0x1ac] sm:$0x1]  ;;  %v6966_v54 = vsel %vm14214_vm2, %v6965_v60, %v6580_v63  ;;  %v6177_v53 = vld [vmem:[#allocation4 + $0x1ab] sm:$0x1]  ;;  %v6178_v34 = vld [vmem:[#allocation4 + $0x1ad] sm:$0x1]  ;;  %v7430_v4 = vpop.permute.xlu1 %7429 }
 0x50f   :  { %v5931_v39 = vld [vmem:[#allocation4 + $0x1be] sm:$0x1]  ;;  %v6583_v46 = vmax.f32 %v6431_v21, %v6439_v28  ;;  %v6187_v7 = vld [vmem:[#allocation4 + $0x1bf] sm:$0x1]  ;;  %v6968_v11 = vsel %vm14215_vm10, %v6967_v20, %v6966_v54  ;;  %v6433_v30 = vmax.f32 %v5921_v36, %v6177_v53  ;;  %v6434_v52 = vmax.f32 %v5922_v44, %v6178_v34  ;;  %v7817_v14 = vld [vmem:[#allocation6 + $0x88] sm:$0xff] }
 0x510   :  { %v6443_v37 = vmax.f32 %v5931_v39, %v6187_v7  ;;  %v5923_v17 = vld [vmem:[#allocation4 + $0x1ae] sm:$0x1]  ;;  %v6179_v38 = vld [vmem:[#allocation4 + $0x1af] sm:$0x1]  ;;  %vm14216_vm9 = vcmask 523648   ;;  %v7841_v22 = vpack.c.bf16 %v7819_v40, %v7817_v14  ;;  %v6971_v51 = vrot.slane %v6584_v57, 4 }
 0x511   :  { %v7812_v10 = vld [vmem:[#allocation6 + $0x60] sm:$0xff]  ;;  %v6969_v5 = vrot.slane %v6583_v46, 5  ;;  %v6435_v50 = vmax.f32 %v5923_v17, %v6179_v38  ;;  %v7814_v42 = vld [vmem:[#allocation6 + $0x70] sm:$0xff]  ;;  %7372 = vst.msk [vmem:[#allocation6 + $0x90] sm:$0xff] %vm14216_vm9, %v7333_v9  ;;  %vm14217_vm1 = vmmov %vm14216_vm9  ;;  %v6585_v29 = vmax.f32 %v6433_v30, %v6441_v61  ;;  %v6586_v55 = vmax.f32 %v6434_v52, %v6442_v62  ;;  %v7428_v47 = vpop.permute.xlu0 %7427 }
 0x512   :  { %v7838_v23 = vpack.c.bf16 %v7814_v42, %v7812_v10  ;;  %7371 = vst.msk [vmem:[#allocation6 + $0x80] sm:$0xff] %vm14217_vm1, %v7331_v13  ;;  %v7527_v12 = vpop.permute.xlu1 %7526  ;;  %vm14218_vm12 = vcmask 1046534   ;;  %vm14219_vm5 = vcmask 786048   ;;  %vm14220_vm13 = vcmask 1047559   ;;  %v7783_v33 = vld [vmem:[#allocation5 + $0x132] sm:$0xff]  ;;  %v7821_v63 = vld [vmem:[#allocation6 + $0xa8] sm:$0xff] }
 0x513   :  { %v6587_v16 = vmax.f32 %v6435_v50, %v6443_v37  ;;  %v6970_v31 = vsel %vm6783_vm3, %v6969_v5, %v6968_v11  ;;  %v6973_v35 = vrot.slane %v6585_v29, 3  ;;  %7469 = vst.msk [vmem:[#allocation6 + $0x90] sm:$0xff] %vm7459_vm6, %v7430_v4  ;;  %v6975_v15 = vrot.slane %v6586_v55, 2  ;;  %7468 = vst.msk [vmem:[#allocation6 + $0x80] sm:$0xff] %vm7459_vm6, %v7428_v47  ;;  %v7823_v7 = vld [vmem:[#allocation6 + $0xb8] sm:$0xff] }
 0x514   :  { %8040 = vmatmul.mubr.bf16.gmra.mrb[12].mxu1 %v7838_v23  ;;  %v6972_v28 = vsel %vm6786_vm14, %v6971_v51, %v6970_v31  ;;  %7566 = vst.msk [vmem:[#allocation6 + $0x90] sm:$0xff] %vm14219_vm5, %v7527_v12  ;;  %vm14221_vm7 = vmmov %vm14219_vm5  ;;  %vm14222_vm2 = vcmask 130048   ;;  %v7843_v60 = vpack.c.bf16 %v7823_v7, %v7821_v63 }
 0x515   :  { %8047 = vmatprep.mubr.bf16.mxu1 %v7841_v22  ;;  %v6974_v58 = vsel %vm6789_vm15, %v6973_v35, %v6972_v28  ;;  %v6977_v27 = vrot.slane %v6587_v16, 1  ;;  %v7525_v0 = vpop.permute.xlu0 %7524  ;;  %vm14223_vm10 = vmmov %vm14222_vm2 }
 0x516   :  { %v6976_v43 = vsel %vm14218_vm12, %v6975_v15, %v6974_v58  ;;  %7565 = vst.msk [vmem:[#allocation6 + $0x80] sm:$0xff] %vm14221_vm7, %v7525_v0  ;;  %v7625_v21 = vpop.permute.xlu1 %7624  ;;  %vm14224_vm9 = vmmov %vm14222_vm2  ;;  %vm14226_vm12 = vcmask 523648  }
 0x517   :  { %v6978_v1 = vsel %vm14220_vm13, %v6977_v27, %v6976_v43  ;;  %7664 = vst.msk [vmem:[#allocation6 + $0x90] sm:$0xff] %vm7654_vm4, %v7625_v21  ;;  %vm14225_vm1 = vmmov %vm14222_vm2 }
 0x518   :  { %7036 = vst.msk [vmem:[#allocation5 + $0x101] sm:$0xff] %vm14222_vm2, %v6978_v1  ;;  %vm14227_vm5 = vmmov %vm14226_vm12  ;;  %vm14229_vm2 = vcmask 123904  }
 0x519   :  { %v7623_v45 = vpop.permute.xlu0 %7622  ;;  %7799 = vst.msk [vmem:[#allocation6 + $0xf8] sm:$0xff] %vm14223_vm10, %v7783_v33  ;;  %vm14228_vm13 = vmmov %vm14221_vm7 }
 0x51a   :  { %7663 = vst.msk [vmem:[#allocation6 + $0x80] sm:$0xff] %vm7654_vm4, %v7623_v45  ;;  %v7722_v49 = vpop.permute.xlu1 %7721  ;;  %vm14230_vm10 = vmmov %vm14229_vm2 }
 0x51b   :  { %7761 = vst.msk [vmem:[#allocation6 + $0x90] sm:$0xff] %vm7751_vm0, %v7722_v49 }
 0x51d   :  { %v7720_v39 = vpop.permute.xlu0 %7719 }
 0x51e   :  { %7760 = vst.msk [vmem:[#allocation6 + $0x80] sm:$0xff] %vm7751_vm0, %v7720_v39  ;;  %v7143_v18 = vpop.permute.xlu1 %7142 }
 0x51f   :  { %v7586_v56 = vld [vmem:[#allocation5 + $0x100] sm:$0xff]  ;;  %7180 = vst.msk [vmem:[#allocation6 + $0xb0] sm:$0xff] %vm7168_vm8, %v7143_v18 }
 0x520   :  { %v7489_v25 = vld [vmem:[#allocation5 + $0x102] sm:$0xff]  ;;  %7630 = vrot.lane.b32.xlu0 %v7586_v56, %s9748_s12  ;;  %7340 = vrot.lane.b32.xlu1 %v7586_v56, %s9745_s19  ;;  %7086 = vst.msk [vmem:[#allocation6 + $0xe0] sm:$0xff] %vm14225_vm1, %v7586_v56  ;;  %vm14232_vm1 = vmmov %vm14229_vm2 }
 0x521   :  { %7796 = vst.msk [vmem:[#allocation6 + $0xc8] sm:$0xff] %vm14224_vm9, %v7489_v25  ;;  %v7683_v41 = vld [vmem:[#allocation5 + $0x101] sm:$0xff]  ;;  %v7141_v8 = vpop.permute.xlu0 %7140  ;;  %vm14231_vm9 = vmmov %vm14229_vm2 }
 0x522   :  { %7179 = vst.msk [vmem:[#allocation6 + $0xa0] sm:$0xff] %vm7168_vm8, %v7141_v8  ;;  %v7240_v46 = vpop.permute.xlu1 %7239  ;;  %v7818_v3 = vld [vmem:[#allocation6 + $0x90] sm:$0xff] }
 0x523   :  { %7277 = vst.msk [vmem:[#allocation6 + $0xb0] sm:$0xff] %vm13784_vm11, %v7240_v46 }
 0x524   :  { %7727 = vrot.lane.b32.xlu0 %v7683_v41, %s9749_s0  ;;  %7437 = vrot.lane.b32.xlu1 %v7683_v41, %s9746_s29 }
 0x525   :  { %v7238_v26 = vpop.permute.xlu0 %7237  ;;  %v7816_v59 = vld [vmem:[#allocation6 + $0x80] sm:$0xff] }
 0x526   :  { %7276 = vst.msk [vmem:[#allocation6 + $0xa0] sm:$0xff] %vm13784_vm11, %v7238_v26  ;;  %v7840_v40 = vpack.c.bf16 %v7818_v3, %v7816_v59  ;;  %v7337_v32 = vpop.permute.xlu1 %7336 }
 0x527   :  { %7374 = vst.msk [vmem:[#allocation6 + $0xb0] sm:$0xff] %vm14226_vm12, %v7337_v32  ;;  %vm14233_vm12 = vmmov %vm14232_vm1 }
 0x528   :  { %7148 = vrot.lane.b32.xlu0 %v7683_v41, %s9743_s16  ;;  %7534 = vrot.lane.b32.xlu1 %v7489_v25, %s9747_s26 }
 0x529   :  { %8048 = vmatmul.mubr.bf16.gmra.mrb[16].mxu1 %v7840_v40  ;;  %v7335_v61 = vpop.permute.xlu0 %7334 }
 0x52a   :  { %8055 = vmatprep.mubr.bf16.mxu1 %v7843_v60  ;;  %7373 = vst.msk [vmem:[#allocation6 + $0xa0] sm:$0xff] %vm14227_vm5, %v7335_v61  ;;  %v7434_v36 = vpop.permute.xlu1 %7433  ;;  %vm14234_vm5 = vmmov %vm14232_vm1 }
 0x52b   :  { %7471 = vst.msk [vmem:[#allocation6 + $0xb0] sm:$0xff] %vm7459_vm6, %v7434_v36 }
 0x52c   :  { %7245 = vrot.lane.b32.xlu0 %v7489_v25, %s9744_s14 }
 0x52d   :  { %v7432_v44 = vpop.permute.xlu0 %7431 }
 0x52e   :  { %7470 = vst.msk [vmem:[#allocation6 + $0xa0] sm:$0xff] %vm7459_vm6, %v7432_v44  ;;  %v7531_v10 = vpop.permute.xlu1 %7530 }
 0x52f   :  { %7568 = vst.msk [vmem:[#allocation6 + $0xb0] sm:$0xff] %vm14228_vm13, %v7531_v10  ;;  %vm14235_vm13 = vmmov %vm14232_vm1 }
 0x531   :  { %v7529_v20 = vpop.permute.xlu0 %7528 }
 0x532   :  { %7567 = vst.msk [vmem:[#allocation6 + $0xa0] sm:$0xff] %vm14221_vm7, %v7529_v20  ;;  %v9564_v5 = vpop.f32.mrb[56].mxu0  ;;  %vm14236_vm7 = vmmov %vm14232_vm1 }
 0x533   :  { %v3957_v62 = vadd.f32 %v13080_v24, %v9564_v5  ;;  %v3948_v37 = vpop.f32.mrb[57].mxu0 }
 0x534   :  { %v3949_v17 = vadd.f32 %v13080_v24, %v3948_v37  ;;  %v9565_v48 = vpop.f32.mrb[58].mxu0 }
 0x535   :  { %v7627_v54 = vpop.permute.xlu0 %7626  ;;  %v4037_v53 = vmax.f32 %v3957_v62, 0.0  ;;  %v3960_v34 = vadd.f32 %v13080_v24, %v9565_v48  ;;  %v3951_v38 = vpop.f32.mrb[59].mxu0 }
 0x536   :  { %7665 = vst.msk [vmem:[#allocation6 + $0xa0] sm:$0xff] %vm7654_vm4, %v7627_v54  ;;  %v4035_v19 = vmax.f32 %v3949_v17, 0.0  ;;  %v3952_v9 = vadd.f32 %v13080_v24, %v3951_v38 }
 0x537   :  { %v5093_v11 = vcombine.high %v4037_v53, %v4037_v53  ;;  %v5100_v30 = vrot.slane %v4037_v53, %v11020_v6  ;;  %v4038_v52 = vmax.f32 %v3960_v34, 0.0 }
 0x538   :  { %v5059_v50 = vcombine.high %v4035_v19, %v4035_v19  ;;  %v5066_v42 = vrot.slane %v4035_v19, %v11020_v6  ;;  %v4036_v13 = vmax.f32 %v3952_v9, 0.0 }
 0x539   :  { %v7724_v14 = vpop.permute.xlu0 %7723  ;;  %v5107_v57 = vrot.slane %v5093_v11, %v11020_v6  ;;  %v5108_v23 = vcombine.high %v5100_v30, %v5100_v30  ;;  %5684 = vst.msk [vmem:[#allocation4 + $0x1d0] sm:$0x3] %vm14229_vm2, %v5100_v30  ;;  %v5110_v22 = vcombine.high %v4038_v52, %v4038_v52  ;;  %v5117_v29 = vrot.slane %v4038_v52, %v11020_v6  ;;  %vm14237_vm2 = vmmov %vm14232_vm1 }
 0x53a   :  { %7762 = vst.msk [vmem:[#allocation6 + $0xa0] sm:$0xff] %vm7751_vm0, %v7724_v14  ;;  %v5073_v24 = vrot.slane %v5059_v50, %v11020_v6  ;;  %v5074_v55 = vcombine.high %v5066_v42, %v5066_v42  ;;  %v5076_v16 = vcombine.high %v4036_v13, %v4036_v13  ;;  %v5083_v31 = vrot.slane %v4036_v13, %v11020_v6 }
 0x53b   :  { %5676 = vst.msk [vmem:[#allocation4 + $0x1c0] sm:$0x3] %vm14230_vm10, %v5066_v42  ;;  %v5109_v51 = vcombine.high %v5107_v57, %v5107_v57  ;;  %v5124_v4 = vrot.slane %v5110_v22, %v11020_v6  ;;  %v5125_v35 = vcombine.high %v5117_v29, %v5117_v29  ;;  %vm14238_vm10 = vmmov %vm14232_vm1 }
 0x53c   :  { %5685 = vst.msk [vmem:[#allocation4 + $0x1d2] sm:$0x3] %vm14231_vm9, %v5108_v23  ;;  %v5075_v47 = vcombine.high %v5073_v24, %v5073_v24  ;;  %v5090_v15 = vrot.slane %v5076_v16, %v11020_v6  ;;  %v5091_v28 = vcombine.high %v5083_v31, %v5083_v31  ;;  %vm14239_vm9 = vmmov %vm14232_vm1 }
 0x53d   :  { %5686 = vst.msk [vmem:[#allocation4 + $0x1d4] sm:$0x3] %vm14232_vm1, %v5107_v57  ;;  %v7145_v58 = vpop.permute.xlu0 %7144  ;;  %v5126_v27 = vcombine.high %v5124_v4, %v5124_v4 }
 0x53e   :  { %5688 = vst.msk [vmem:[#allocation4 + $0x1d8] sm:$0x3] %vm14233_vm12, %v5117_v29  ;;  %v5092_v12 = vcombine.high %v5090_v15, %v5090_v15  ;;  %vm14240_vm12 = vmmov %vm14232_vm1 }
 0x53f   :  { %5677 = vst.msk [vmem:[#allocation4 + $0x1c2] sm:$0x3] %vm14234_vm5, %v5074_v55  ;;  %vm14241_vm5 = vmmov %vm14232_vm1 }
 0x540   :  { %5678 = vst.msk [vmem:[#allocation4 + $0x1c4] sm:$0x3] %vm14235_vm13, %v5073_v24  ;;  %vm14242_vm13 = vmmov %vm14232_vm1  ;;  %v5940_v43 = vld [vmem:[#allocation4 + $0x1d0] sm:$0x1]  ;;  %v6196_v1 = vld [vmem:[#allocation4 + $0x1d1] sm:$0x1] }
 0x541   :  { %5680 = vst.msk [vmem:[#allocation4 + $0x1c8] sm:$0x3] %vm14236_vm7, %v5083_v31  ;;  %vm14243_vm7 = vmmov %vm14232_vm1  ;;  %v7242_v0 = vpop.permute.xlu0 %7241  ;;  %v6452_v26 = vmax.f32 %v5940_v43, %v6196_v1 }
 0x542   :  { %5687 = vst.msk [vmem:[#allocation4 + $0x1d6] sm:$0x3] %vm14237_vm2, %v5109_v51  ;;  %v5932_v21 = vld [vmem:[#allocation4 + $0x1c0] sm:$0x1]  ;;  %v6188_v45 = vld [vmem:[#allocation4 + $0x1c1] sm:$0x1] }
 0x543   :  { %5689 = vst.msk [vmem:[#allocation4 + $0x1da] sm:$0x3] %vm14238_vm10, %v5125_v35  ;;  %v5941_v49 = vld [vmem:[#allocation4 + $0x1d2] sm:$0x1]  ;;  %v6197_v56 = vld [vmem:[#allocation4 + $0x1d3] sm:$0x1]  ;;  %v6444_v32 = vmax.f32 %v5932_v21, %v6188_v45 }
 0x544   :  { %5690 = vst.msk [vmem:[#allocation4 + $0x1dc] sm:$0x3] %vm14239_vm9, %v5124_v4  ;;  %v5942_v33 = vld [vmem:[#allocation4 + $0x1d4] sm:$0x1]  ;;  %v6198_v39 = vld [vmem:[#allocation4 + $0x1d5] sm:$0x1]  ;;  %v6453_v25 = vmax.f32 %v5941_v49, %v6197_v56 }
 0x545   :  { %7181 = vst.msk [vmem:[#allocation6 + $0xc0] sm:$0xff] %vm7168_vm8, %v7145_v58  ;;  %v6454_v3 = vmax.f32 %v5942_v33, %v6198_v39  ;;  %v5944_v10 = vld [vmem:[#allocation4 + $0x1d8] sm:$0x1]  ;;  %v6200_v17 = vld [vmem:[#allocation4 + $0x1d9] sm:$0x1]  ;;  %v6588_v9 = vmax.f32 %v6444_v32, %v6452_v26  ;;  %vm14244_vm2 = vcmask 1041409  }
 0x546   :  { %5679 = vst.msk [vmem:[#allocation4 + $0x1c6] sm:$0x3] %vm14232_vm1, %v5075_v47  ;;  %v5933_v18 = vld [vmem:[#allocation4 + $0x1c2] sm:$0x1]  ;;  %v6189_v7 = vld [vmem:[#allocation4 + $0x1c3] sm:$0x1]  ;;  %v6456_v30 = vmax.f32 %v5944_v10, %v6200_v17 }
 0x547   :  { %5681 = vst.msk [vmem:[#allocation4 + $0x1ca] sm:$0x3] %vm14240_vm12, %v5091_v28  ;;  %v5934_v41 = vld [vmem:[#allocation4 + $0x1c4] sm:$0x1]  ;;  %v6190_v63 = vld [vmem:[#allocation4 + $0x1c5] sm:$0x1]  ;;  %v6445_v61 = vmax.f32 %v5933_v18, %v6189_v7 }
 0x548   :  { %5682 = vst.msk [vmem:[#allocation4 + $0x1cc] sm:$0x3] %vm14241_vm5, %v5090_v15  ;;  %v6446_v36 = vmax.f32 %v5934_v41, %v6190_v63  ;;  %v5936_v19 = vld [vmem:[#allocation4 + $0x1c8] sm:$0x1]  ;;  %v6192_v29 = vld [vmem:[#allocation4 + $0x1c9] sm:$0x1] }
 0x549   :  { %5691 = vst.msk [vmem:[#allocation4 + $0x1de] sm:$0x3] %vm14242_vm13, %v5126_v27  ;;  %v5943_v8 = vld [vmem:[#allocation4 + $0x1d6] sm:$0x1]  ;;  %v6199_v46 = vld [vmem:[#allocation4 + $0x1d7] sm:$0x1]  ;;  %v6589_v62 = vmax.f32 %v6445_v61, %v6453_v25  ;;  %v6448_v51 = vmax.f32 %v5936_v19, %v6192_v29 }
 0x54a   :  { %5683 = vst.msk [vmem:[#allocation4 + $0x1ce] sm:$0x3] %vm14243_vm7, %v5092_v12  ;;  %v6455_v59 = vmax.f32 %v5943_v8, %v6199_v46  ;;  %v5945_v20 = vld [vmem:[#allocation4 + $0x1da] sm:$0x1]  ;;  %v6201_v48 = vld [vmem:[#allocation4 + $0x1db] sm:$0x1]  ;;  %v6590_v54 = vmax.f32 %v6446_v36, %v6454_v3 }
 0x54b   :  { %7278 = vst.msk [vmem:[#allocation6 + $0xc0] sm:$0xff] %vm13784_vm11, %v7242_v0  ;;  %v5946_v5 = vld [vmem:[#allocation4 + $0x1dc] sm:$0x1]  ;;  %v6202_v34 = vld [vmem:[#allocation4 + $0x1dd] sm:$0x1]  ;;  %v6979_v11 = vrot.slane %v6589_v62, 7  ;;  %v6457_v52 = vmax.f32 %v5945_v20, %v6201_v48  ;;  %v6592_v28 = vmax.f32 %v6448_v51, %v6456_v30 }
 0x54c   :  { %v6981_v13 = vrot.slane %v6590_v54, 6  ;;  %v6458_v57 = vmax.f32 %v5946_v5, %v6202_v34  ;;  %vm14245_vm10 = vcmask 1042434   ;;  %vm14246_vm9 = vcmask 523648   ;;  %v7820_v26 = vld [vmem:[#allocation6 + $0xa0] sm:$0xff]  ;;  %v7825_v61 = vld [vmem:[#allocation6 + $0xc8] sm:$0xff] }
 0x54d   :  { %v5935_v40 = vld [vmem:[#allocation4 + $0x1c6] sm:$0x1]  ;;  %v6191_v60 = vld [vmem:[#allocation4 + $0x1c7] sm:$0x1]  ;;  %v6980_v24 = vsel %vm14244_vm2, %v6979_v11, %v6588_v9  ;;  %v6985_v0 = vrot.slane %v6592_v28, 4  ;;  %vm14247_vm1 = vcmask 1046534  }
 0x54e   :  { %v6447_v44 = vmax.f32 %v5935_v40, %v6191_v60  ;;  %v5937_v50 = vld [vmem:[#allocation4 + $0x1ca] sm:$0x1]  ;;  %v6193_v55 = vld [vmem:[#allocation4 + $0x1cb] sm:$0x1]  ;;  %v6982_v4 = vsel %vm14245_vm10, %v6981_v13, %v6980_v24  ;;  %vm14248_vm12 = vcmask 1047559   ;;  %vm14249_vm5 = vcmask 130048  }
 0x54f   :  { %v5938_v42 = vld [vmem:[#allocation4 + $0x1cc] sm:$0x1]  ;;  %v6194_v16 = vld [vmem:[#allocation4 + $0x1cd] sm:$0x1]  ;;  %v6449_v35 = vmax.f32 %v5937_v50, %v6193_v55  ;;  %vm14250_vm13 = vcmask 786048   ;;  %vm14251_vm7 = vmmov %vm14249_vm5  ;;  %vm14253_vm10 = vcmask 123904  }
 0x550   :  { %v5947_v37 = vld [vmem:[#allocation4 + $0x1de] sm:$0x1]  ;;  %v6591_v53 = vmax.f32 %v6447_v44, %v6455_v59  ;;  %v6203_v38 = vld [vmem:[#allocation4 + $0x1df] sm:$0x1]  ;;  %v6450_v47 = vmax.f32 %v5938_v42, %v6194_v16  ;;  %vm14252_vm2 = vmmov %vm14249_vm5 }
 0x551   :  { %v6459_v23 = vmax.f32 %v5947_v37, %v6203_v38  ;;  %v5939_v22 = vld [vmem:[#allocation4 + $0x1ce] sm:$0x1]  ;;  %v6195_v31 = vld [vmem:[#allocation4 + $0x1cf] sm:$0x1]  ;;  %v6593_v58 = vmax.f32 %v6449_v35, %v6457_v52  ;;  %v9708_v20 = vld [vmem:[%s13760_s2] ss:$0 sm:$0xff] }
 0x552   :  { %v6983_v14 = vrot.slane %v6591_v53, 5  ;;  %v6451_v15 = vmax.f32 %v5939_v22, %v6195_v31  ;;  %v6594_v27 = vmax.f32 %v6450_v47, %v6458_v57  ;;  %v7339_v1 = vpop.permute.xlu0 %7338  ;;  %v7629_v21 = vpop.permute.xlu1 %7628 }
 0x553   :  { %v6987_v45 = vrot.slane %v6593_v58, 3  ;;  %7375 = vst.msk [vmem:[#allocation6 + $0xc0] sm:$0xff] %vm14246_vm9, %v7339_v1  ;;  %vm14254_vm9 = vmmov %vm14253_vm10 }
 0x554   :  { %v6595_v12 = vmax.f32 %v6451_v15, %v6459_v23  ;;  %v6984_v43 = vsel %vm6783_vm3, %v6983_v14, %v6982_v4  ;;  %7666 = vst.msk [vmem:[#allocation6 + $0xb0] sm:$0xff] %vm7654_vm4, %v7629_v21  ;;  %v6989_v49 = vrot.slane %v6594_v27, 2 }
 0x555   :  { %v6986_v33 = vsel %vm6786_vm14, %v6985_v0, %v6984_v43 }
 0x556   :  { %v6988_v56 = vsel %vm6789_vm15, %v6987_v45, %v6986_v33  ;;  %v6991_v39 = vrot.slane %v6595_v12, 1  ;;  %v7436_v25 = vpop.permute.xlu0 %7435  ;;  %v7726_v18 = vpop.permute.xlu1 %7725 }
 0x557   :  { %v6990_v41 = vsel %vm14247_vm1, %v6989_v49, %v6988_v56  ;;  %7472 = vst.msk [vmem:[#allocation6 + $0xc0] sm:$0xff] %vm7459_vm6, %v7436_v25  ;;  %vm14255_vm1 = vmmov %vm14254_vm9 }
 0x558   :  { %7763 = vst.msk [vmem:[#allocation6 + $0xb0] sm:$0xff] %vm7751_vm0, %v7726_v18  ;;  %v6992_v8 = vsel %vm14248_vm12, %v6991_v39, %v6990_v41  ;;  %vm14256_vm12 = vmmov %vm14255_vm1 }
 0x559   :  { %7037 = vst.msk [vmem:[#allocation5 + $0x111] sm:$0xff] %vm14249_vm5, %v6992_v8  ;;  %vm14257_vm5 = vmmov %vm14255_vm1 }
 0x55a   :  { %v7533_v46 = vpop.permute.xlu0 %7532  ;;  %v7147_v3 = vpop.permute.xlu1 %7146 }
 0x55b   :  { %7569 = vst.msk [vmem:[#allocation6 + $0xc0] sm:$0xff] %vm14250_vm13, %v7533_v46  ;;  %vm14258_vm13 = vmmov %vm14255_vm1 }
 0x55c   :  { %7182 = vst.msk [vmem:[#allocation6 + $0xd0] sm:$0xff] %vm7168_vm8, %v7147_v3 }
 0x55e   :  { %v7244_v7 = vpop.permute.xlu1 %7243 }
 0x55f   :  { %v7822_v59 = vld [vmem:[#allocation6 + $0xb0] sm:$0xff]  ;;  %7279 = vst.msk [vmem:[#allocation6 + $0xd0] sm:$0xff] %vm13784_vm11, %v7244_v7  ;;  %vm14267_vm11 = vmmov %vm14255_vm1 }
 0x560   :  { %v7296_v40 = vld [vmem:[#allocation5 + $0x110] sm:$0xff]  ;;  %v7842_v63 = vpack.c.bf16 %v7822_v59, %v7820_v26 }
 0x561   :  { %v7490_v60 = vld [vmem:[#allocation5 + $0x112] sm:$0xff]  ;;  %7342 = vrot.lane.b32.xlu0 %v7296_v40, %s9745_s19  ;;  %7632 = vrot.lane.b32.xlu1 %v7296_v40, %s9748_s12  ;;  %7087 = vst.msk [vmem:[#allocation6 + $0xf0] sm:$0xff] %vm14252_vm2, %v7296_v40  ;;  %vm14260_vm2 = vmmov %vm14255_vm1 }
 0x562   :  { %7797 = vst.msk [vmem:[#allocation6 + $0xd8] sm:$0xff] %vm14251_vm7, %v7490_v60  ;;  %8056 = vmatmul.mubr.bf16.gmra.mrb[20].mxu1 %v7842_v63  ;;  %v7393_v32 = vld [vmem:[#allocation5 + $0x111] sm:$0xff]  ;;  %vm14259_vm7 = vmmov %vm14255_vm1 }
 0x565   :  { %7439 = vrot.lane.b32.xlu0 %v7393_v32, %s9746_s29  ;;  %7729 = vrot.lane.b32.xlu1 %v7393_v32, %s9749_s0 }
 0x569   :  { %v7827_v36 = vld [vmem:[#allocation6 + $0xd8] sm:$0xff]  ;;  %7536 = vrot.lane.b32.xlu0 %v7490_v60, %s9747_s26  ;;  %7150 = vrot.lane.b32.xlu1 %v7393_v32, %s9743_s16 }
 0x56a   :  { %v7845_v44 = vpack.c.bf16 %v7827_v36, %v7825_v61 }
 0x56c   :  { %8063 = vmatprep.mubr.bf16.mxu1 %v7845_v44 }
 0x56d   :  { %7247 = vrot.lane.b32.xlu1 %v7490_v60, %s9744_s14 }
 0x56f   :  { %v9568_v10 = vpop.f32.mrb[60].mxu0 }
 0x570   :  { %v3973_v5 = vadd.f32 %v9708_v20, %v9568_v10  ;;  %v3964_v62 = vpop.f32.mrb[61].mxu0 }
 0x571   :  { %v3965_v37 = vadd.f32 %v9708_v20, %v3964_v62  ;;  %v9569_v17 = vpop.f32.mrb[62].mxu0 }
 0x572   :  { %v4041_v48 = vmax.f32 %v3973_v5, 0.0  ;;  %v3976_v54 = vadd.f32 %v9708_v20, %v9569_v17  ;;  %v3967_v53 = vpop.f32.mrb[63].mxu0 }
 0x573   :  { %v4039_v34 = vmax.f32 %v3965_v37, 0.0  ;;  %v3968_v38 = vadd.f32 %v9708_v20, %v3967_v53 }
 0x574   :  { %v5161_v19 = vcombine.high %v4041_v48, %v4041_v48  ;;  %v5168_v9 = vrot.slane %v4041_v48, %v11020_v6  ;;  %v4042_v11 = vmax.f32 %v3976_v54, 0.0 }
 0x575   :  { %v5127_v30 = vcombine.high %v4039_v34, %v4039_v34  ;;  %v5134_v52 = vrot.slane %v4039_v34, %v11020_v6  ;;  %v4040_v50 = vmax.f32 %v3968_v38, 0.0 }
 0x576   :  { %v5175_v42 = vrot.slane %v5161_v19, %v11020_v6  ;;  %v5176_v13 = vcombine.high %v5168_v9, %v5168_v9  ;;  %5700 = vst.msk [vmem:[#allocation4 + $0x1f0] sm:$0x3] %vm14253_vm10, %v5168_v9  ;;  %v5178_v14 = vcombine.high %v4042_v11, %v4042_v11  ;;  %v5185_v57 = vrot.slane %v4042_v11, %v11020_v6  ;;  %vm14261_vm10 = vmmov %vm14255_vm1 }
 0x577   :  { %v5141_v23 = vrot.slane %v5127_v30, %v11020_v6  ;;  %v5142_v22 = vcombine.high %v5134_v52, %v5134_v52  ;;  %5692 = vst.msk [vmem:[#allocation4 + $0x1e0] sm:$0x3] %vm14254_vm9, %v5134_v52  ;;  %v5144_v29 = vcombine.high %v4040_v50, %v4040_v50  ;;  %v5151_v24 = vrot.slane %v4040_v50, %v11020_v6  ;;  %vm14262_vm9 = vmmov %vm14255_vm1 }
 0x578   :  { %v5177_v55 = vcombine.high %v5175_v42, %v5175_v42  ;;  %5701 = vst.msk [vmem:[#allocation4 + $0x1f2] sm:$0x3] %vm14255_vm1, %v5176_v13  ;;  %v5192_v16 = vrot.slane %v5178_v14, %v11020_v6  ;;  %v5193_v31 = vcombine.high %v5185_v57, %v5185_v57 }
 0x579   :  { %5702 = vst.msk [vmem:[#allocation4 + $0x1f4] sm:$0x3] %vm14256_vm12, %v5175_v42  ;;  %v5143_v51 = vcombine.high %v5141_v23, %v5141_v23  ;;  %v5158_v4 = vrot.slane %v5144_v29, %v11020_v6  ;;  %v5159_v35 = vcombine.high %v5151_v24, %v5151_v24  ;;  %vm14263_vm12 = vmmov %vm14255_vm1 }
 0x57a   :  { %5704 = vst.msk [vmem:[#allocation4 + $0x1f8] sm:$0x3] %vm14257_vm5, %v5185_v57  ;;  %v5194_v47 = vcombine.high %v5192_v16, %v5192_v16  ;;  %vm14264_vm5 = vmmov %vm14255_vm1 }
 0x57b   :  { %5693 = vst.msk [vmem:[#allocation4 + $0x1e2] sm:$0x3] %vm14258_vm13, %v5142_v22  ;;  %v5160_v15 = vcombine.high %v5158_v4, %v5158_v4  ;;  %vm14265_vm13 = vmmov %vm14255_vm1 }
 0x57c   :  { %5694 = vst.msk [vmem:[#allocation4 + $0x1e4] sm:$0x3] %vm14259_vm7, %v5141_v23  ;;  %vm14266_vm7 = vmmov %vm14255_vm1 }
 0x57d   :  { %5696 = vst.msk [vmem:[#allocation4 + $0x1e8] sm:$0x3] %vm14260_vm2, %v5151_v24  ;;  %v5956_v28 = vld [vmem:[#allocation4 + $0x1f0] sm:$0x1]  ;;  %v6212_v58 = vld [vmem:[#allocation4 + $0x1f1] sm:$0x1] }
 0x57e   :  { %5703 = vst.msk [vmem:[#allocation4 + $0x1f6] sm:$0x3] %vm14261_vm10, %v5177_v55  ;;  %v5948_v27 = vld [vmem:[#allocation4 + $0x1e0] sm:$0x1]  ;;  %v6204_v12 = vld [vmem:[#allocation4 + $0x1e1] sm:$0x1]  ;;  %v6468_v41 = vmax.f32 %v5956_v28, %v6212_v58 }
 0x57f   :  { %5705 = vst.msk [vmem:[#allocation4 + $0x1fa] sm:$0x3] %vm14262_vm9, %v5193_v31  ;;  %v5957_v43 = vld [vmem:[#allocation4 + $0x1f2] sm:$0x1]  ;;  %v6213_v1 = vld [vmem:[#allocation4 + $0x1f3] sm:$0x1]  ;;  %v6460_v26 = vmax.f32 %v5948_v27, %v6204_v12 }
 0x580   :  { %5706 = vst.msk [vmem:[#allocation4 + $0x1fc] sm:$0x3] %vm14255_vm1, %v5192_v16  ;;  %v5958_v0 = vld [vmem:[#allocation4 + $0x1f4] sm:$0x1]  ;;  %v6214_v21 = vld [vmem:[#allocation4 + $0x1f5] sm:$0x1]  ;;  %v6469_v45 = vmax.f32 %v5957_v43, %v6213_v1 }
 0x581   :  { %5695 = vst.msk [vmem:[#allocation4 + $0x1e6] sm:$0x3] %vm14263_vm12, %v5143_v51  ;;  %v6470_v25 = vmax.f32 %v5958_v0, %v6214_v21  ;;  %v5960_v60 = vld [vmem:[#allocation4 + $0x1f8] sm:$0x1]  ;;  %v6216_v10 = vld [vmem:[#allocation4 + $0x1f9] sm:$0x1]  ;;  %v6596_v54 = vmax.f32 %v6460_v26, %v6468_v41 }
 0x582   :  { %5697 = vst.msk [vmem:[#allocation4 + $0x1ea] sm:$0x3] %vm14264_vm5, %v5159_v35  ;;  %v5949_v49 = vld [vmem:[#allocation4 + $0x1e2] sm:$0x1]  ;;  %v6205_v18 = vld [vmem:[#allocation4 + $0x1e3] sm:$0x1]  ;;  %v6472_v34 = vmax.f32 %v5960_v60, %v6216_v10 }
 0x583   :  { %5698 = vst.msk [vmem:[#allocation4 + $0x1ec] sm:$0x3] %vm14265_vm13, %v5158_v4  ;;  %v5950_v33 = vld [vmem:[#allocation4 + $0x1e4] sm:$0x1]  ;;  %v6206_v3 = vld [vmem:[#allocation4 + $0x1e5] sm:$0x1]  ;;  %v6461_v59 = vmax.f32 %v5949_v49, %v6205_v18 }
 0x584   :  { %5707 = vst.msk [vmem:[#allocation4 + $0x1fe] sm:$0x3] %vm14266_vm7, %v5194_v47  ;;  %v6462_v40 = vmax.f32 %v5950_v33, %v6206_v3  ;;  %v5952_v48 = vld [vmem:[#allocation4 + $0x1e8] sm:$0x1]  ;;  %v6208_v13 = vld [vmem:[#allocation4 + $0x1e9] sm:$0x1] }
 0x585   :  { %5699 = vst.msk [vmem:[#allocation4 + $0x1ee] sm:$0x3] %vm14267_vm11, %v5160_v15  ;;  %v5959_v56 = vld [vmem:[#allocation4 + $0x1f6] sm:$0x1]  ;;  %v6215_v39 = vld [vmem:[#allocation4 + $0x1f7] sm:$0x1]  ;;  %v6597_v36 = vmax.f32 %v6461_v59, %v6469_v45  ;;  %v6464_v29 = vmax.f32 %v5952_v48, %v6208_v13 }
 0x586   :  { %v6471_v8 = vmax.f32 %v5959_v56, %v6215_v39  ;;  %v5961_v32 = vld [vmem:[#allocation4 + $0x1fa] sm:$0x1]  ;;  %v6217_v20 = vld [vmem:[#allocation4 + $0x1fb] sm:$0x1]  ;;  %v6598_v5 = vmax.f32 %v6462_v40, %v6470_v25  ;;  %vm14268_vm11 = vcmask 1041409   ;;  %vm14269_vm2 = vcmask 1042434  }
 0x587   :  { %v5962_v61 = vld [vmem:[#allocation4 + $0x1fc] sm:$0x1]  ;;  %v6218_v37 = vld [vmem:[#allocation4 + $0x1fd] sm:$0x1]  ;;  %v6993_v53 = vrot.slane %v6597_v36, 7  ;;  %v6473_v38 = vmax.f32 %v5961_v32, %v6217_v20  ;;  %v6600_v51 = vmax.f32 %v6464_v29, %v6472_v34  ;;  %vm8096_vm10 = vcmask 261120  }
 0x588   :  { %v5951_v46 = vld [vmem:[#allocation4 + $0x1e6] sm:$0x1]  ;;  %v6207_v7 = vld [vmem:[#allocation4 + $0x1e7] sm:$0x1]  ;;  %v6995_v11 = vrot.slane %v6598_v5, 6  ;;  %v6474_v52 = vmax.f32 %v5962_v61, %v6218_v37  ;;  %vm14270_vm9 = vcmask 1046534  }
 0x589   :  { %v6463_v63 = vmax.f32 %v5951_v46, %v6207_v7  ;;  %v5953_v19 = vld [vmem:[#allocation4 + $0x1ea] sm:$0x1]  ;;  %v6994_v14 = vsel %vm14268_vm11, %v6993_v53, %v6596_v54  ;;  %v6209_v57 = vld [vmem:[#allocation4 + $0x1eb] sm:$0x1]  ;;  %v6999_v58 = vrot.slane %v6600_v51, 4  ;;  %vm14271_vm1 = vcmask 523648  }
 0x58a   :  { %v5954_v9 = vld [vmem:[#allocation4 + $0x1ec] sm:$0x1]  ;;  %v6210_v23 = vld [vmem:[#allocation4 + $0x1ed] sm:$0x1]  ;;  %v6996_v24 = vsel %vm14269_vm2, %v6995_v11, %v6994_v14  ;;  %v6465_v55 = vmax.f32 %v5953_v19, %v6209_v57  ;;  %v9380_v47 = vpop.f32.mrb[0].mxu1  ;;  %vm14272_vm12 = vcmask 1047559   ;;  %vm14277_vm2 = vmmov %vm14271_vm1 }
 0x58b   :  { %v5963_v44 = vld [vmem:[#allocation4 + $0x1fe] sm:$0x1]  ;;  %v6599_v62 = vmax.f32 %v6463_v63, %v6471_v8  ;;  %v6219_v17 = vld [vmem:[#allocation4 + $0x1ff] sm:$0x1]  ;;  %v6466_v16 = vmax.f32 %v5954_v9, %v6210_v23  ;;  %v13340_v27 = vld [vmem:[%s13762_s4] ss:$0 sm:$0xff] }
 0x58c   :  { %v6475_v50 = vmax.f32 %v5963_v44, %v6219_v17  ;;  %v5955_v42 = vld [vmem:[#allocation4 + $0x1ee] sm:$0x1]  ;;  %v6211_v22 = vld [vmem:[#allocation4 + $0x1ef] sm:$0x1]  ;;  %v6601_v4 = vmax.f32 %v6465_v55, %v6473_v38  ;;  %v9381_v12 = vpop.f32.mrb[1].mxu1  ;;  %vm14273_vm5 = vcmask 130048  }
 0x58d   :  { %v6997_v30 = vrot.slane %v6599_v62, 5  ;;  %v6467_v31 = vmax.f32 %v5955_v42, %v6211_v22  ;;  %v6602_v35 = vmax.f32 %v6466_v16, %v6474_v52  ;;  %v9382_v0 = vadd.f32 %v9381_v12, %v9380_v47  ;;  %v9383_v1 = vpop.f32.mrb[2].mxu1  ;;  %vm14275_vm7 = vmmov %vm14273_vm5  ;;  %v7589_v10 = vld [vmem:[#allocation5 + $0x130] sm:$0xff] }
 0x58e   :  { %v7001_v43 = vrot.slane %v6601_v4, 3  ;;  %v9384_v45 = vpop.f32.mrb[3].mxu1  ;;  %vm14274_vm13 = vcmask 786048   ;;  %vm14276_vm11 = vcmask 392448   ;;  %v7686_v20 = vld [vmem:[#allocation5 + $0x131] sm:$0xff] }
 0x58f   :  { %v6603_v15 = vmax.f32 %v6467_v31, %v6475_v50  ;;  %v6998_v28 = vsel %vm6783_vm3, %v6997_v30, %v6996_v24  ;;  %v7003_v21 = vrot.slane %v6602_v35, 2  ;;  %v8018_v33 = vadd.f32 %v9382_v0, %v13340_v27  ;;  %v7831_v4 = vld [vmem:[#allocation6 + $0xf8] sm:$0xff] }
 0x590   :  { %v7000_v49 = vsel %vm6786_vm14, %v6999_v58, %v6998_v28  ;;  %v9385_v56 = vadd.f32 %v9384_v45, %v9383_v1 }
 0x591   :  { %v7002_v39 = vsel %vm6789_vm15, %v7001_v43, %v7000_v49  ;;  %v7005_v25 = vrot.slane %v6603_v15, 1  ;;  %v8080_v46 = vmax.f32 %v8018_v33, 0.0 }
 0x592   :  { %v7631_v18 = vpop.permute.xlu0 %7630  ;;  %v7341_v41 = vpop.permute.xlu1 %7340  ;;  %v7004_v8 = vsel %vm14270_vm9, %v7003_v21, %v7002_v39  ;;  %v8021_v3 = vadd.f32 %v9385_v56, %v13340_v27  ;;  %vm14278_vm9 = vmmov %vm14274_vm13 }
 0x593   :  { %7667 = vst.msk [vmem:[#allocation6 + $0xc0] sm:$0xff] %vm7654_vm4, %v7631_v18  ;;  %v7006_v7 = vsel %vm14272_vm12, %v7005_v25, %v7004_v8  ;;  %vm14281_vm12 = vcmask 1042434  }
 0x594   :  { %7376 = vst.msk [vmem:[#allocation6 + $0xd0] sm:$0xff] %vm14271_vm1, %v7341_v41  ;;  %v8081_v26 = vmax.f32 %v8021_v3, 0.0  ;;  %vm14279_vm1 = vmmov %vm14276_vm11 }
 0x595   :  { %7038 = vst.msk [vmem:[#allocation5 + $0x121] sm:$0xff] %vm14273_vm5, %v7006_v7  ;;  %vm14282_vm5 = vcmask 1046534  }
 0x596   :  { %8097 = vst.msk [vmem:[#allocation7] sm:$0xff] %vm8096_vm10, %v8080_v46  ;;  %v7728_v59 = vpop.permute.xlu0 %7727  ;;  %v7438_v40 = vpop.permute.xlu1 %7437  ;;  %8098 = vst.msk [vmem:[#allocation7 + $0x8] sm:$0xff] %vm8096_vm10, %v8081_v26 }
 0x597   :  { %7764 = vst.msk [vmem:[#allocation6 + $0xc0] sm:$0xff] %vm7751_vm0, %v7728_v59 }
 0x598   :  { %7473 = vst.msk [vmem:[#allocation6 + $0xd0] sm:$0xff] %vm7459_vm6, %v7438_v40 }
 0x59a   :  { %v7149_v63 = vpop.permute.xlu0 %7148  ;;  %v7535_v60 = vpop.permute.xlu1 %7534 }
 0x59b   :  { %7183 = vst.msk [vmem:[#allocation6 + $0xe0] sm:$0xff] %vm7168_vm8, %v7149_v63 }
 0x59c   :  { %7570 = vst.msk [vmem:[#allocation6 + $0xd0] sm:$0xff] %vm14274_vm13, %v7535_v60  ;;  %v7588_v32 = vld [vmem:[#allocation5 + $0x120] sm:$0xff]  ;;  %vm14283_vm13 = vcmask 1047559  }
 0x59d   :  { %v7491_v61 = vld [vmem:[#allocation5 + $0x122] sm:$0xff]  ;;  %7634 = vrot.lane.b32.xlu0 %v7588_v32, %s9748_s12  ;;  %7344 = vrot.lane.b32.xlu1 %v7588_v32, %s9745_s19  ;;  %v8113_v63 = vld [vmem:[#allocation7] sm:$0x1]  ;;  %v8129_v60 = vld [vmem:[#allocation7 + $0x1] sm:$0x1] }
 0x59e   :  { %7798 = vst.msk [vmem:[#allocation6 + $0xe8] sm:$0xff] %vm14275_vm7, %v7491_v61  ;;  %v7246_v36 = vpop.permute.xlu0 %7245  ;;  %v7685_v44 = vld [vmem:[#allocation5 + $0x121] sm:$0xff]  ;;  %v8130_v56 = vld [vmem:[#allocation7 + $0x9] sm:$0x1]  ;;  %vm14284_vm7 = vmmov %vm14277_vm2 }
 0x59f   :  { %7280 = vst.msk [vmem:[#allocation6 + $0xe0] sm:$0xff] %vm14276_vm11, %v7246_v36  ;;  %v7824_v47 = vld [vmem:[#allocation6 + $0xc0] sm:$0xff]  ;;  %v8114_v33 = vld [vmem:[#allocation7 + $0x8] sm:$0x1]  ;;  %vm14285_vm11 = vmmov %vm14278_vm9 }
 0x5a0   :  { %v8146_v46 = vmax.f32 %v8114_v33, %v8130_v56 }
 0x5a1   :  { %7731 = vrot.lane.b32.xlu0 %v7685_v44, %s9749_s0  ;;  %7441 = vrot.lane.b32.xlu1 %v7685_v44, %s9746_s29 }
 0x5a5   :  { %7538 = vrot.lane.b32.xlu1 %v7491_v61, %s9747_s26  ;;  %v7829_v51 = vld [vmem:[#allocation6 + $0xe8] sm:$0xff]  ;;  %v8177_v61 = vrot.slane %v8146_v46, 7 }
 0x5a6   :  { %v7847_v58 = vpack.c.bf16 %v7831_v4, %v7829_v51 }
 0x5a9   :  { %7636 = vrot.lane.b32.xlu1 %v7589_v10, %s9748_s12 }
 0x5aa   :  { %v9386_v5 = vpop.f32.mrb[4].mxu1 }
 0x5ab   :  { %v9387_v62 = vpop.f32.mrb[5].mxu1 }
 0x5ac   :  { %v9388_v37 = vadd.f32 %v9387_v62, %v9386_v5  ;;  %v9389_v17 = vpop.f32.mrb[6].mxu1  ;;  %v8145_v5 = vmax.f32 %v8113_v63, %v8129_v60  ;;  %v9656_v63 = vld [vmem:[%s13763_s5 + $0x8] sm:$0xff]   ;;  %v9657_v60 = vld [vmem:[%s13763_s5 + $0x50] sm:$0xff]  }
 0x5ad   :  { %7733 = vrot.lane.b32.xlu1 %v7686_v20, %s9749_s0  ;;  %v9390_v48 = vpop.f32.mrb[7].mxu1 }
 0x5ae   :  { %v8026_v54 = vadd.f32 %v9388_v37, %v13340_v27  ;;  %v9391_v53 = vadd.f32 %v9390_v48, %v9389_v17 }
 0x5b0   :  { %v8082_v34 = vmax.f32 %v8026_v54, 0.0  ;;  %v8029_v38 = vadd.f32 %v9391_v53, %v13340_v27 }
 0x5b2   :  { %8099 = vst.msk [vmem:[#allocation7 + $0x10] sm:$0xff] %vm8096_vm10, %v8082_v34  ;;  %v8083_v19 = vmax.f32 %v8029_v38, 0.0 }
 0x5b4   :  { %8100 = vst.msk [vmem:[#allocation7 + $0x18] sm:$0xff] %vm8096_vm10, %v8083_v19 }
 0x5b9   :  { %v8115_v18 = vld [vmem:[#allocation7 + $0x10] sm:$0x1]  ;;  %v8131_v41 = vld [vmem:[#allocation7 + $0x11] sm:$0x1] }
 0x5ba   :  { %v8147_v26 = vmax.f32 %v8115_v18, %v8131_v41 }
 0x5bb   :  { %v8116_v3 = vld [vmem:[#allocation7 + $0x18] sm:$0x1]  ;;  %v8132_v7 = vld [vmem:[#allocation7 + $0x19] sm:$0x1] }
 0x5bc   :  { %v8148_v32 = vmax.f32 %v8116_v3, %v8132_v7  ;;  %v8179_v20 = vrot.slane %v8147_v26, 6  ;;  %v9653_v26 = vld [vmem:[%s13763_s5 + $0x40] sm:$0xff]  }
 0x5bd   :  { %9428 = vmatprep.subr.bf16.mxu1 %v9653_v26 }
 0x5be   :  { %v8181_v37 = vrot.slane %v8148_v32, 5  ;;  %v9658_v32 = vld [vmem:[%s13763_s5 + $0x10] sm:$0xff]  }
 0x5c2   :  { %v9392_v9 = vpop.f32.mrb[8].mxu1 }
 0x5c3   :  { %v9393_v11 = vpop.f32.mrb[9].mxu1 }
 0x5c4   :  { %v9394_v30 = vadd.f32 %v9393_v11, %v9392_v9  ;;  %v9395_v52 = vpop.f32.mrb[10].mxu1 }
 0x5c5   :  { %v9396_v50 = vpop.f32.mrb[11].mxu1 }
 0x5c6   :  { %v8034_v42 = vadd.f32 %v9394_v30, %v13340_v27  ;;  %v9397_v13 = vadd.f32 %v9396_v50, %v9395_v52 }
 0x5c8   :  { %v8084_v14 = vmax.f32 %v8034_v42, 0.0  ;;  %v8037_v57 = vadd.f32 %v9397_v13, %v13340_v27 }
 0x5ca   :  { %8101 = vst.msk [vmem:[#allocation7 + $0x20] sm:$0xff] %vm8096_vm10, %v8084_v14  ;;  %v8085_v23 = vmax.f32 %v8037_v57, 0.0 }
 0x5cc   :  { %8102 = vst.msk [vmem:[#allocation7 + $0x28] sm:$0xff] %vm8096_vm10, %v8085_v23 }
 0x5d1   :  { %v8117_v59 = vld [vmem:[#allocation7 + $0x20] sm:$0x1]  ;;  %v8133_v40 = vld [vmem:[#allocation7 + $0x21] sm:$0x1] }
 0x5d2   :  { %v8149_v10 = vmax.f32 %v8117_v59, %v8133_v40  ;;  %v9654_v59 = vld [vmem:[%s13763_s5] sm:$0xff]   ;;  %v9655_v40 = vld [vmem:[%s13763_s5 + $0x48] sm:$0xff]  }
 0x5d3   :  { %v7343_v22 = vpop.permute.xlu0 %7342  ;;  %v7633_v29 = vpop.permute.xlu1 %7632  ;;  %v8118_v36 = vld [vmem:[#allocation7 + $0x28] sm:$0x1]  ;;  %v8134_v44 = vld [vmem:[#allocation7 + $0x29] sm:$0x1]  ;;  %9429 = vmatpush3.bf16.msra.mxu1 %v9654_v59  ;;  %v8416_v26 = vld [vmem:[#allocation7 + $0x2e] sm:$0x1] }
 0x5d4   :  { %7377 = vst.msk [vmem:[#allocation6 + $0xe0] sm:$0xff] %vm14277_vm2, %v7343_v22  ;;  %v8150_v62 = vmax.f32 %v8118_v36, %v8134_v44  ;;  %v8183_v48 = vrot.slane %v8149_v10, 4  ;;  %9430 = vmatprep.subr.bf16.mxu1 %v9655_v40  ;;  %v8432_v59 = vld [vmem:[#allocation7 + $0x2f] sm:$0x1]  ;;  %vm14289_vm2 = vmmov %vm14281_vm12 }
 0x5d5   :  { %7668 = vst.msk [vmem:[#allocation6 + $0xd0] sm:$0xff] %vm7654_vm4, %v7633_v29 }
 0x5d6   :  { %v8185_v19 = vrot.slane %v8150_v62, 3 }
 0x5d7   :  { %v7440_v24 = vpop.permute.xlu0 %7439  ;;  %v7730_v55 = vpop.permute.xlu1 %7729  ;;  %9431 = vmatpush3.bf16.msra.mxu1 %v9656_v63 }
 0x5d8   :  { %7474 = vst.msk [vmem:[#allocation6 + $0xe0] sm:$0xff] %vm7459_vm6, %v7440_v24  ;;  %9432 = vmatprep.subr.bf16.mxu1 %v9657_v60 }
 0x5d9   :  { %7765 = vst.msk [vmem:[#allocation6 + $0xd0] sm:$0xff] %vm7751_vm0, %v7730_v55 }
 0x5db   :  { %v7537_v16 = vpop.permute.xlu0 %7536  ;;  %v7151_v31 = vpop.permute.xlu1 %7150  ;;  %9433 = vmatpush3.bf16.msra.mxu1 %v9658_v32  ;;  %v8315_v32 = vld [vmem:[#allocation7 + $0x2c] sm:$0x1] }
 0x5dc   :  { %7571 = vst.msk [vmem:[#allocation6 + $0xe0] sm:$0xff] %vm14278_vm9, %v7537_v16  ;;  %vm14290_vm9 = vmmov %vm14289_vm2 }
 0x5dd   :  { %7184 = vst.msk [vmem:[#allocation6 + $0xf0] sm:$0xff] %vm7168_vm8, %v7151_v31  ;;  %vm14280_vm8 = vcmask 1041409  }
 0x5de   :  { %v8178_v17 = vsel %vm14280_vm8, %v8177_v61, %v8145_v5  ;;  %v9659_v61 = vld [vmem:[%s13763_s5 + $0x58] sm:$0xff]  }
 0x5df   :  { %v7248_v35 = vpop.permute.xlu1 %7247  ;;  %v8180_v54 = vsel %vm14281_vm12, %v8179_v20, %v8178_v17  ;;  %9434 = vmatprep.subr.bf16.mxu1 %v9659_v61  ;;  %v8331_v61 = vld [vmem:[#allocation7 + $0x2d] sm:$0x1] }
 0x5e0   :  { %v7826_v15 = vld [vmem:[#allocation6 + $0xd0] sm:$0xff]  ;;  %7281 = vst.msk [vmem:[#allocation6 + $0xf0] sm:$0xff] %vm14279_vm1, %v7248_v35  ;;  %v8182_v9 = vsel %vm6783_vm3, %v8181_v37, %v8180_v54  ;;  %vm14291_vm1 = vmmov %vm14289_vm2 }
 0x5e1   :  { %v7844_v28 = vpack.c.bf16 %v7826_v15, %v7824_v47  ;;  %v8184_v52 = vsel %vm6786_vm14, %v8183_v48, %v8182_v9  ;;  %v8311_v9 = vld [vmem:[#allocation7 + $0xc] sm:$0x1]  ;;  %vm14293_vm12 = vmmov %vm14291_vm1 }
 0x5e2   :  { %v8186_v57 = vsel %vm6789_vm15, %v8185_v19, %v8184_v52  ;;  %v8428_v19 = vld [vmem:[#allocation7 + $0xf] sm:$0x1]  ;;  %v8227_v52 = vld [vmem:[#allocation7 + $0x13] sm:$0x1] }
 0x5e3   :  { %8064 = vmatmul.mubr.bf16.gmra.mrb[24].mxu1 %v7844_v28 }
 0x5e4   :  { %8071 = vmatprep.mubr.bf16.mxu1 %v7847_v58 }
 0x5e7   :  { %v9398_v12 = vpop.f32.mrb[12].mxu1 }
 0x5e8   :  { %v9399_v43 = vpop.f32.mrb[13].mxu1 }
 0x5e9   :  { %v9400_v0 = vadd.f32 %v9399_v43, %v9398_v12  ;;  %v9401_v1 = vpop.f32.mrb[14].mxu1 }
 0x5ea   :  { %v9402_v21 = vpop.f32.mrb[15].mxu1 }
 0x5eb   :  { %v8042_v45 = vadd.f32 %v9400_v0, %v13340_v27  ;;  %v9403_v49 = vadd.f32 %v9402_v21, %v9401_v1 }
 0x5ed   :  { %v8086_v39 = vmax.f32 %v8042_v45, 0.0  ;;  %v8045_v25 = vadd.f32 %v9403_v49, %v13340_v27 }
 0x5ef   :  { %8103 = vst.msk [vmem:[#allocation7 + $0x30] sm:$0xff] %vm8096_vm10, %v8086_v39  ;;  %v8087_v8 = vmax.f32 %v8045_v25, 0.0 }
 0x5f1   :  { %8104 = vst.msk [vmem:[#allocation7 + $0x38] sm:$0xff] %vm8096_vm10, %v8087_v8 }
 0x5f6   :  { %v8119_v53 = vld [vmem:[#allocation7 + $0x30] sm:$0x1]  ;;  %v8135_v38 = vld [vmem:[#allocation7 + $0x31] sm:$0x1]  ;;  %v8215_v40 = vld [vmem:[#allocation7 + $0x32] sm:$0x1] }
 0x5f7   :  { %v8151_v30 = vmax.f32 %v8119_v53, %v8135_v38  ;;  %v8210_v53 = vld [vmem:[#allocation7 + $0xa] sm:$0x1]  ;;  %v8412_v38 = vld [vmem:[#allocation7 + $0xe] sm:$0x1] }
 0x5f8   :  { %v8120_v34 = vld [vmem:[#allocation7 + $0x38] sm:$0x1]  ;;  %v8136_v11 = vld [vmem:[#allocation7 + $0x39] sm:$0x1] }
 0x5f9   :  { %v8152_v50 = vmax.f32 %v8120_v34, %v8136_v11  ;;  %v8187_v42 = vrot.slane %v8151_v30, 2  ;;  %v8226_v34 = vld [vmem:[#allocation7 + $0xb] sm:$0x1]  ;;  %v8327_v11 = vld [vmem:[#allocation7 + $0xd] sm:$0x1] }
 0x5fa   :  { %v8211_v30 = vld [vmem:[#allocation7 + $0x12] sm:$0x1] }
 0x5fb   :  { %v8189_v14 = vrot.slane %v8152_v50, 1  ;;  %v8188_v22 = vsel %vm14282_vm5, %v8187_v42, %v8186_v57  ;;  %v8413_v50 = vld [vmem:[#allocation7 + $0x16] sm:$0x1]  ;;  %v8429_v42 = vld [vmem:[#allocation7 + $0x17] sm:$0x1]  ;;  %v8242_v57 = vmax.f32 %v8210_v53, %v8226_v34 }
 0x5fc   :  { %v9404_v13 = vpop.f32.mrb[16].mxu1 }
 0x5fd   :  { %v9405_v23 = vpop.f32.mrb[17].mxu1  ;;  %v8190_v55 = vsel %vm14283_vm13, %v8189_v14, %v8188_v22  ;;  %v8328_v14 = vld [vmem:[#allocation7 + $0x15] sm:$0x1]  ;;  %v8243_v22 = vmax.f32 %v8211_v30, %v8227_v52 }
 0x5fe   :  { %v9406_v29 = vadd.f32 %v9405_v23, %v9404_v13  ;;  %v9407_v24 = vpop.f32.mrb[18].mxu1  ;;  %8207 = vst.msk [vmem:[#allocation8] sm:$0xff] %vm8096_vm10, %v8190_v55  ;;  %v8312_v13 = vld [vmem:[#allocation7 + $0x14] sm:$0x1]  ;;  %v8444_v23 = vmax.f32 %v8412_v38, %v8428_v19 }
 0x5ff   :  { %v9408_v16 = vpop.f32.mrb[19].mxu1  ;;  %v8344_v55 = vmax.f32 %v8312_v13, %v8328_v14 }
 0x600   :  { %v8050_v31 = vadd.f32 %v9406_v29, %v13340_v27  ;;  %v9409_v51 = vadd.f32 %v9408_v16, %v9407_v24  ;;  %v8343_v29 = vmax.f32 %v8311_v9, %v8327_v11  ;;  %v8445_v24 = vmax.f32 %v8413_v50, %v8429_v42  ;;  %v8209_v16 = vld [vmem:[#allocation7 + $0x2] sm:$0x1] }
 0x602   :  { %v8088_v4 = vmax.f32 %v8050_v31, 0.0  ;;  %v8053_v35 = vadd.f32 %v9409_v51, %v13340_v27  ;;  %v8212_v31 = vld [vmem:[#allocation7 + $0x1a] sm:$0x1]  ;;  %v8225_v51 = vld [vmem:[#allocation7 + $0x3] sm:$0x1] }
 0x603   :  { %v8241_v63 = vmax.f32 %v8209_v16, %v8225_v51 }
 0x604   :  { %8105 = vst.msk [vmem:[#allocation7 + $0x40] sm:$0xff] %vm8096_vm10, %v8088_v4  ;;  %v8089_v47 = vmax.f32 %v8053_v35, 0.0  ;;  %v8228_v4 = vld [vmem:[#allocation7 + $0x1b] sm:$0x1]  ;;  %v8273_v35 = vrot.slane %v8242_v57, 7 }
 0x605   :  { %v8244_v60 = vmax.f32 %v8212_v31, %v8228_v4 }
 0x606   :  { %8106 = vst.msk [vmem:[#allocation7 + $0x48] sm:$0xff] %vm8096_vm10, %v8089_v47  ;;  %v8475_v47 = vrot.slane %v8444_v23, 7  ;;  %v8448_v23 = vmax.f32 %v8416_v26, %v8432_v59 }
 0x607   :  { %v8277_v57 = vrot.slane %v8244_v60, 5 }
 0x60d   :  { %v8335_v38 = vld [vmem:[#allocation7 + $0x4d] sm:$0x1]  ;;  %v8218_v19 = vld [vmem:[#allocation7 + $0x4a] sm:$0x1]  ;;  %v8234_v9 = vld [vmem:[#allocation7 + $0x4b] sm:$0x1] }
 0x60e   :  { %v8420_v42 = vld [vmem:[#allocation7 + $0x4e] sm:$0x1]  ;;  %v8436_v13 = vld [vmem:[#allocation7 + $0x4f] sm:$0x1]  ;;  %v8122_v31 = vld [vmem:[#allocation7 + $0x48] sm:$0x1] }
 0x60f   :  { %v7635_v15 = vpop.permute.xlu0 %7634  ;;  %v7345_v28 = vpop.permute.xlu1 %7344  ;;  %v8138_v51 = vld [vmem:[#allocation7 + $0x49] sm:$0x1] }
 0x610   :  { %7669 = vst.msk [vmem:[#allocation6 + $0xe0] sm:$0xff] %vm7654_vm4, %v7635_v15  ;;  %v13433_v15 = vrot.slane %v8243_v22, 6  ;;  %v8347_v22 = vmax.f32 %v8315_v32, %v8331_v61  ;;  %v8318_v61 = vld [vmem:[#allocation7 + $0x44] sm:$0x1] }
 0x611   :  { %7378 = vst.msk [vmem:[#allocation6 + $0xf0] sm:$0xff] %vm14284_vm7, %v7345_v28  ;;  %v8411_v28 = vld [vmem:[#allocation7 + $0x6] sm:$0x1] }
 0x613   :  { %v7732_v58 = vpop.permute.xlu0 %7731  ;;  %v7442_v12 = vpop.permute.xlu1 %7441 }
 0x614   :  { %7766 = vst.msk [vmem:[#allocation6 + $0xe0] sm:$0xff] %vm7751_vm0, %v7732_v58  ;;  %v8414_v58 = vld [vmem:[#allocation7 + $0x1e] sm:$0x1] }
 0x615   :  { %7475 = vst.msk [vmem:[#allocation6 + $0xf0] sm:$0xff] %vm7459_vm6, %v7442_v12  ;;  %v8427_v12 = vld [vmem:[#allocation7 + $0x7] sm:$0x1]  ;;  %vm14286_vm6 = vmmov %vm14280_vm8 }
 0x616   :  { %v8274_v53 = vsel %vm14286_vm6, %v8273_v35, %v8241_v63 }
 0x617   :  { %v7539_v43 = vpop.permute.xlu1 %7538 }
 0x618   :  { %7572 = vst.msk [vmem:[#allocation6 + $0xf0] sm:$0xff] %vm14285_vm11, %v7539_v43  ;;  %v8430_v43 = vld [vmem:[#allocation7 + $0x1f] sm:$0x1]  ;;  %vm14297_vm11 = vmmov %vm14291_vm1 }
 0x61b   :  { %v7637_v0 = vpop.permute.xlu1 %7636  ;;  %v7828_v21 = vld [vmem:[#allocation6 + $0xe0] sm:$0xff] }
 0x61c   :  { %7670 = vst.msk [vmem:[#allocation6 + $0xf0] sm:$0xff] %vm7654_vm4, %v7637_v0  ;;  %v8310_v0 = vld [vmem:[#allocation7 + $0x4] sm:$0x1]  ;;  %vm14287_vm4 = vmmov %vm14286_vm6 }
 0x61d   :  { %vm14298_vm6 = vmmov %vm14291_vm1 }
 0x61f   :  { %v7734_v1 = vpop.permute.xlu1 %7733 }
 0x620   :  { %7767 = vst.msk [vmem:[#allocation6 + $0xf0] sm:$0xff] %vm7751_vm0, %v7734_v1  ;;  %v8326_v1 = vld [vmem:[#allocation7 + $0x5] sm:$0x1]  ;;  %vm14288_vm0 = vmmov %vm14287_vm4 }
 0x621   :  { %vm14292_vm8 = vmmov %vm14288_vm0 }
 0x622   :  { %vm14294_vm5 = vmmov %vm14288_vm0 }
 0x623   :  { %vm14295_vm13 = vmmov %vm14288_vm0 }
 0x624   :  { %vm14296_vm7 = vmmov %vm14288_vm0 }
 0x627   :  { %v7830_v45 = vld [vmem:[#allocation6 + $0xf0] sm:$0xff] }
 0x628   :  { %v7846_v49 = vpack.c.bf16 %v7830_v45, %v7828_v21  ;;  %v8374_v21 = vrot.slane %v8343_v29, 7  ;;  %v8213_v45 = vld [vmem:[#allocation7 + $0x22] sm:$0x1] }
 0x62a   :  { %8072 = vmatmul.mubr.bf16.gmra.mrb[28].mxu1 %v7846_v49  ;;  %v8229_v49 = vld [vmem:[#allocation7 + $0x23] sm:$0x1] }
 0x635   :  { %v9410_v33 = vpop.f32.mrb[20].mxu1 }
 0x636   :  { %v9411_v56 = vpop.f32.mrb[21].mxu1 }
 0x637   :  { %v9412_v39 = vadd.f32 %v9411_v56, %v9410_v33  ;;  %v9413_v25 = vpop.f32.mrb[22].mxu1  ;;  %v13435_v33 = vrot.slane %v8445_v24, 6  ;;  %v8313_v56 = vld [vmem:[#allocation7 + $0x1c] sm:$0x1] }
 0x638   :  { %v9414_v18 = vpop.f32.mrb[23].mxu1 }
 0x639   :  { %v8058_v41 = vadd.f32 %v9412_v39, %v13340_v27  ;;  %v9415_v8 = vadd.f32 %v9414_v18, %v9413_v25  ;;  %v8329_v39 = vld [vmem:[#allocation7 + $0x1d] sm:$0x1]  ;;  %v13437_v25 = vrot.slane %v8344_v55, 6  ;;  %v8415_v18 = vld [vmem:[#allocation7 + $0x26] sm:$0x1] }
 0x63a   :  { %v8345_v34 = vmax.f32 %v8313_v56, %v8329_v39  ;;  %v13444_v39 = vrot.slane %v8448_v23, 3 }
 0x63b   :  { %v8090_v46 = vmax.f32 %v8058_v41, 0.0  ;;  %v8061_v3 = vadd.f32 %v9415_v8, %v13340_v27  ;;  %v8431_v41 = vld [vmem:[#allocation7 + $0x27] sm:$0x1]  ;;  %v8314_v8 = vld [vmem:[#allocation7 + $0x24] sm:$0x1] }
 0x63c   :  { %v8447_v11 = vmax.f32 %v8415_v18, %v8431_v41  ;;  %v13446_v18 = vrot.slane %v8347_v22, 3  ;;  %v8154_v41 = vmax.f32 %v8122_v31, %v8138_v51 }
 0x63d   :  { %8107 = vst.msk [vmem:[#allocation7 + $0x50] sm:$0xff] %vm8096_vm10, %v8090_v46  ;;  %v8091_v7 = vmax.f32 %v8061_v3, 0.0  ;;  %v8330_v46 = vld [vmem:[#allocation7 + $0x25] sm:$0x1]  ;;  %v8214_v3 = vld [vmem:[#allocation7 + $0x2a] sm:$0x1] }
 0x63e   :  { %v8346_v52 = vmax.f32 %v8314_v8, %v8330_v46 }
 0x63f   :  { %8108 = vst.msk [vmem:[#allocation7 + $0x58] sm:$0xff] %vm8096_vm10, %v8091_v7  ;;  %v8230_v7 = vld [vmem:[#allocation7 + $0x2b] sm:$0x1] }
 0x640   :  { %v8246_v14 = vmax.f32 %v8214_v3, %v8230_v7 }
 0x642   :  { %v8281_v56 = vrot.slane %v8246_v14, 3  ;;  %v8137_v14 = vld [vmem:[#allocation7 + $0x41] sm:$0x1] }
 0x644   :  { %v8320_v4 = vld [vmem:[#allocation7 + $0x54] sm:$0x1]  ;;  %v8336_v35 = vld [vmem:[#allocation7 + $0x55] sm:$0x1]  ;;  %v8437_v63 = vld [vmem:[#allocation7 + $0x57] sm:$0x1] }
 0x645   :  { %v8352_v8 = vmax.f32 %v8320_v4, %v8336_v35 }
 0x6b6   :  { %v9416_v36 = vpop.f32.mrb[24].mxu1 }
 0x6b7   :  { %v9417_v44 = vpop.f32.mrb[25].mxu1 }
 0x6b8   :  { %v9418_v10 = vadd.f32 %v9417_v44, %v9416_v36  ;;  %v9419_v20 = vpop.f32.mrb[26].mxu1  ;;  %v8231_v36 = vld [vmem:[#allocation7 + $0x33] sm:$0x1]  ;;  %v8417_v44 = vld [vmem:[#allocation7 + $0x36] sm:$0x1] }
 0x6b9   :  { %v9420_v5 = vpop.f32.mrb[27].mxu1  ;;  %v8247_v29 = vmax.f32 %v8215_v40, %v8231_v36  ;;  %v13460_v36 = vld [vmem:[#allocation7 + $0x5c] sm:$0x1] }
 0x6ba   :  { %v8066_v62 = vadd.f32 %v9418_v10, %v13340_v27  ;;  %v9421_v37 = vadd.f32 %v9420_v5, %v9419_v20  ;;  %v8433_v10 = vld [vmem:[#allocation7 + $0x37] sm:$0x1]  ;;  %v8443_v20 = vmax.f32 %v8411_v28, %v8427_v12  ;;  %v8446_v5 = vmax.f32 %v8414_v58, %v8430_v43  ;;  %v8219_v43 = vld [vmem:[#allocation7 + $0x52] sm:$0x1] }
 0x6bb   :  { %v8449_v55 = vmax.f32 %v8417_v44, %v8433_v10  ;;  %v8250_v58 = vmax.f32 %v8218_v19, %v8234_v9  ;;  %v8378_v12 = vrot.slane %v8345_v34, 5  ;;  %v13448_v46 = vrot.slane %v8247_v29, 2  ;;  %v8334_v44 = vld [vmem:[#allocation7 + $0x45] sm:$0x1]  ;;  %v13462_v10 = vld [vmem:[#allocation7 + $0x5d] sm:$0x1] }
 0x6bc   :  { %v8092_v17 = vmax.f32 %v8066_v62, 0.0  ;;  %v8069_v48 = vadd.f32 %v9421_v37, %v13340_v27  ;;  %v8342_v62 = vmax.f32 %v8310_v0, %v8326_v1  ;;  %v8319_v37 = vld [vmem:[#allocation7 + $0x4c] sm:$0x1]  ;;  %v8476_v30 = vsel %vm14287_vm4, %v8475_v47, %v8443_v20  ;;  %v8235_v0 = vld [vmem:[#allocation7 + $0x53] sm:$0x1]  ;;  %vm14299_vm4 = vmmov %vm14291_vm1 }
 0x6bd   :  { %v8479_v16 = vrot.slane %v8446_v5, 5  ;;  %v8351_v28 = vmax.f32 %v8319_v37, %v8335_v38  ;;  %v8452_v1 = vmax.f32 %v8420_v42, %v8436_v13  ;;  %v13452_v7 = vrot.slane %v8449_v55, 2  ;;  %v13464_v20 = vld [vmem:[#allocation7 + $0x42] sm:$0x1]  ;;  %v13466_v5 = vld [vmem:[#allocation7 + $0x43] sm:$0x1] }
 0x6be   :  { %8109 = vst.msk [vmem:[#allocation7 + $0x60] sm:$0xff] %vm8096_vm10, %v8092_v17  ;;  %v8093_v54 = vmax.f32 %v8069_v48, 0.0  ;;  %v8216_v17 = vld [vmem:[#allocation7 + $0x3a] sm:$0x1]  ;;  %v8232_v48 = vld [vmem:[#allocation7 + $0x3b] sm:$0x1]  ;;  %v8375_v50 = vsel %vm14288_vm0, %v8374_v21, %v8342_v62  ;;  %v8276_v21 = vsel %vm14289_vm2, %v13433_v15, %v8274_v53  ;;  %v8251_v59 = vmax.f32 %v8219_v43, %v8235_v0 }
 0x6bf   :  { %v8248_v24 = vmax.f32 %v8216_v17, %v8232_v48  ;;  %v13454_v26 = vrot.slane %v8351_v28, 7  ;;  %v13456_v40 = vrot.slane %v8250_v58, 7  ;;  %v8421_v15 = vld [vmem:[#allocation7 + $0x56] sm:$0x1]  ;;  %v8478_v60 = vsel %vm14290_vm9, %v13435_v33, %v8476_v30  ;;  %v13473_v33 = vld [vmem:[#allocation7 + $0x5a] sm:$0x1] }
 0x6c0   :  { %8110 = vst.msk [vmem:[#allocation7 + $0x68] sm:$0xff] %vm8096_vm10, %v8093_v54  ;;  %v8245_v54 = vmax.f32 %v8213_v45, %v8229_v49  ;;  %v8481_v45 = vrot.slane %v8447_v11, 4  ;;  %v8380_v49 = vrot.slane %v8346_v52, 4  ;;  %v13468_v62 = vrot.slane %v8452_v1, 7  ;;  %v13478_v11 = vld [vmem:[#allocation7 + $0x46] sm:$0x1] }
 0x6c1   :  { %v13450_v3 = vrot.slane %v8248_v24, 1  ;;  %v8278_v37 = vsel %vm6783_vm3, %v8277_v57, %v8276_v21  ;;  %v8377_v17 = vsel %vm14291_vm1, %v13437_v25, %v8375_v50  ;;  %v13476_v34 = vrot.slane %v8154_v41, 7  ;;  %v13480_v30 = vld [vmem:[#allocation7 + $0x47] sm:$0x1]  ;;  %v8123_v13 = vld [vmem:[#allocation7 + $0x50] sm:$0x1] }
 0x6c2   :  { %v8279_v47 = vrot.slane %v8245_v54, 4  ;;  %v8236_v54 = vld [vmem:[#allocation7 + $0x5b] sm:$0x1]  ;;  %v8390_v9 = vrot.slane %v8352_v8, 6  ;;  %v8453_v52 = vmax.f32 %v8421_v15, %v8437_v63  ;;  %v8480_v42 = vsel %vm6783_vm3, %v8479_v16, %v8478_v60  ;;  %v8139_v25 = vld [vmem:[#allocation7 + $0x51] sm:$0x1] }
 0x6c3   :  { %v8121_v50 = vld [vmem:[#allocation7 + $0x40] sm:$0x1]  ;;  %v8289_v22 = vrot.slane %v8251_v59, 6  ;;  %v8422_v29 = vld [vmem:[#allocation7 + $0x5e] sm:$0x1]  ;;  %v13484_v55 = vsel %vm6786_vm14, %v8481_v45, %v8480_v42  ;;  %v8379_v31 = vsel %vm6783_vm3, %v8378_v12, %v8377_v17  ;;  %v8350_v21 = vmax.f32 %v8318_v61, %v8334_v44 }
 0x6c4   :  { %v8280_v53 = vsel %vm6786_vm14, %v8279_v47, %v8278_v37  ;;  %v8438_v24 = vld [vmem:[#allocation7 + $0x5f] sm:$0x1]  ;;  %v13492_v47 = vsel %vm6786_vm14, %v8380_v49, %v8379_v31  ;;  %v8124_v43 = vld [vmem:[#allocation7 + $0x58] sm:$0x1]  ;;  %v8140_v0 = vld [vmem:[#allocation7 + $0x59] sm:$0x1]  ;;  %v8353_v45 = vmax.f32 %v13460_v36, %v13462_v10  ;;  %v8249_v12 = vmax.f32 %v13464_v20, %v13466_v5 }
 0x6c5   :  { %v8322_v23 = vld [vmem:[#allocation7 + $0x64] sm:$0x1]  ;;  %v8338_v35 = vld [vmem:[#allocation7 + $0x65] sm:$0x1]  ;;  %v8221_v28 = vld [vmem:[#allocation7 + $0x62] sm:$0x1]  ;;  %v13489_v58 = vsel %vm6789_vm15, %v8281_v56, %v8280_v53  ;;  %v8155_v59 = vmax.f32 %v8123_v13, %v8139_v25  ;;  %v8252_v49 = vmax.f32 %v13473_v33, %v8236_v54  ;;  %v8389_v61 = vsel %vm14292_vm8, %v13454_v26, %v8350_v21 }
 0x6c6   :  { %v8237_v16 = vld [vmem:[#allocation7 + $0x63] sm:$0x1]  ;;  %v8423_v41 = vld [vmem:[#allocation7 + $0x66] sm:$0x1]  ;;  %v8439_v8 = vld [vmem:[#allocation7 + $0x67] sm:$0x1]  ;;  %v8354_v37 = vmax.f32 %v8322_v23, %v8338_v35  ;;  %v8451_v36 = vmax.f32 %v13478_v11, %v13480_v30  ;;  %v8153_v5 = vmax.f32 %v8121_v50, %v8137_v14  ;;  %v8454_v53 = vmax.f32 %v8422_v29, %v8438_v24 }
 0x6c7   :  { %v8323_v1 = vld [vmem:[#allocation7 + $0x6c] sm:$0x1]  ;;  %v8339_v63 = vld [vmem:[#allocation7 + $0x6d] sm:$0x1]  ;;  %v8222_v60 = vld [vmem:[#allocation7 + $0x6a] sm:$0x1]  ;;  %v8455_v54 = vmax.f32 %v8423_v41, %v8439_v8 }
 0x6c8   :  { %v8238_v44 = vld [vmem:[#allocation7 + $0x6b] sm:$0x1]  ;;  %v8125_v10 = vld [vmem:[#allocation7 + $0x60] sm:$0x1]  ;;  %v8141_v20 = vld [vmem:[#allocation7 + $0x61] sm:$0x1]  ;;  %v8355_v26 = vmax.f32 %v8323_v1, %v8339_v63  ;;  %v8192_v23 = vsel %vm14296_vm7, %v13476_v34, %v8153_v5 }
 0x6c9   :  { %v8392_v33 = vrot.slane %v8353_v45, 5  ;;  %v8291_v42 = vrot.slane %v8252_v49, 5  ;;  %v13507_v11 = vld [vmem:[#allocation7 + $0x34] sm:$0x1]  ;;  %v13509_v30 = vld [vmem:[#allocation7 + $0x35] sm:$0x1]  ;;  %v8157_v13 = vmax.f32 %v8125_v10, %v8141_v20 }
 0x6ca   :  { %v8394_v25 = vrot.slane %v8354_v37, 4  ;;  %v8424_v50 = vld [vmem:[#allocation7 + $0x6e] sm:$0x1]  ;;  %v8440_v14 = vld [vmem:[#allocation7 + $0x6f] sm:$0x1]  ;;  %v9660_v29 = vld [vmem:[%s13763_s5 + $0x18] sm:$0xff]   ;;  %v8348_v63 = vmax.f32 %v13507_v11, %v13509_v30 }
 0x6cb   :  { %v13522_v35 = vld [vmem:[#allocation7 + $0x3e] sm:$0x1]  ;;  %9435 = vmatpush3.bf16.msra.mxu1 %v9660_v29  ;;  %v8396_v1 = vrot.slane %v8355_v26, 3  ;;  %v8197_v45 = vrot.slane %v8157_v13, 4  ;;  %v8333_v11 = vld [vmem:[#allocation7 + $0x3d] sm:$0x1] }
 0x6cc   :  { %vm14300_vm0 = vcmask 1046534   ;;  %vm14302_vm9 = vcmask 1047559  }
 0x6cd   :  { %vm14301_vm2 = vmmov %vm14300_vm0 }
 0x6ce   :  { %vm14303_vm1 = vmmov %vm14302_vm9 }
 0x6cf   :  { %vm14304_vm8 = vmmov %vm14300_vm0 }
 0x6d0   :  { %vm14309_vm7 = vmmov %vm14303_vm1 }
 0x6fd   :  { %v9422_v32 = vpop.f32.mrb[28].mxu1 }
 0x6fe   :  { %v9423_v48 = vpop.f32.mrb[29].mxu1 }
 0x6ff   :  { %v9424_v38 = vadd.f32 %v9423_v48, %v9422_v32  ;;  %v9425_v19 = vpop.f32.mrb[30].mxu1  ;;  %v8491_v32 = vrot.slane %v8453_v52, 6  ;;  %v8253_v48 = vmax.f32 %v8221_v28, %v8237_v16  ;;  %v8254_v52 = vmax.f32 %v8222_v60, %v8238_v44  ;;  %v8126_v16 = vld [vmem:[#allocation7 + $0x68] sm:$0x1] }
 0x700   :  { %v9426_v57 = vpop.f32.mrb[31].mxu1 }
 0x701   :  { %v8074_v51 = vadd.f32 %v9424_v38, %v13340_v27  ;;  %v9427_v4 = vadd.f32 %v9426_v57, %v9425_v19  ;;  %v8156_v38 = vmax.f32 %v8124_v43, %v8140_v0  ;;  %v8193_v19 = vrot.slane %v8155_v59, 6  ;;  %v8142_v43 = vld [vmem:[#allocation7 + $0x69] sm:$0x1] }
 0x702   :  { %v8490_v57 = vsel %vm14295_vm13, %v13468_v62, %v8451_v36  ;;  %v8293_v31 = vrot.slane %v8253_v48, 4  ;;  %v8495_v62 = vrot.slane %v8455_v54, 4  ;;  %v8295_v21 = vrot.slane %v8254_v52, 3  ;;  %vm14308_vm13 = vmmov %vm14303_vm1 }
 0x703   :  { %v8094_v15 = vmax.f32 %v8074_v51, 0.0  ;;  %v8077_v56 = vadd.f32 %v9427_v4, %v13340_v27  ;;  %v8391_v27 = vsel %vm14293_vm12, %v8390_v9, %v8389_v61  ;;  %v8288_v9 = vsel %vm14294_vm5, %v13456_v40, %v8249_v12  ;;  %v13524_v40 = vld [vmem:[#allocation7 + $0x3f] sm:$0x1]  ;;  %vm14305_vm12 = vmmov %vm14300_vm0 }
 0x704   :  { %v8290_v24 = vsel %vm14297_vm11, %v8289_v22, %v8288_v9  ;;  %v8492_v51 = vsel %vm14298_vm6, %v8491_v32, %v8490_v57  ;;  %v8493_v4 = vrot.slane %v8454_v53, 5  ;;  %v8393_v28 = vsel %vm6783_vm3, %v8392_v33, %v8391_v27  ;;  %vm14307_vm5 = vmmov %vm14303_vm1 }
 0x705   :  { %8111 = vst.msk [vmem:[#allocation7 + $0x70] sm:$0xff] %vm8096_vm10, %v8094_v15  ;;  %v8095_v17 = vmax.f32 %v8077_v56, 0.0  ;;  %v8195_v34 = vrot.slane %v8156_v38, 5  ;;  %v8194_v0 = vsel %vm14299_vm4, %v8193_v19, %v8192_v23  ;;  %v8456_v22 = vmax.f32 %v8424_v50, %v8440_v14  ;;  %vm14310_vm11 = vmmov %vm14300_vm0 }
 0x706   :  { %v8395_v8 = vsel %vm6786_vm14, %v8394_v25, %v8393_v28  ;;  %v8292_v15 = vsel %vm6783_vm3, %v8291_v42, %v8290_v24  ;;  %v8450_v56 = vmax.f32 %v13522_v35, %v13524_v40  ;;  %v8494_v44 = vsel %vm6783_vm3, %v8493_v4, %v8492_v51  ;;  %v8317_v42 = vld [vmem:[#allocation7 + $0x3c] sm:$0x1]  ;;  %vm14311_vm6 = vmmov %vm14300_vm0 }
 0x707   :  { %8112 = vst.msk [vmem:[#allocation7 + $0x78] sm:$0xff] %vm8096_vm10, %v8095_v17  ;;  %v8294_v32 = vsel %vm6786_vm14, %v8293_v31, %v8292_v15  ;;  %v8158_v36 = vmax.f32 %v8126_v16, %v8142_v43  ;;  %v8496_v48 = vsel %vm6786_vm14, %v8495_v62, %v8494_v44  ;;  %v8196_v53 = vsel %vm6783_vm3, %v8195_v34, %v8194_v0  ;;  %vm14312_vm4 = vmmov %vm14303_vm1  ;;  %v9665_v44 = vld [vmem:[%s13763_s5 + $0x70] sm:$0xff]  }
 0x708   :  { %v8397_v54 = vsel %vm6789_vm15, %v8396_v1, %v8395_v8  ;;  %v8497_v52 = vrot.slane %v8456_v22, 3  ;;  %v8296_v13 = vsel %vm6789_vm15, %v8295_v21, %v8294_v32  ;;  %v8198_v62 = vsel %vm6786_vm14, %v8197_v45, %v8196_v53  ;;  %vm14306_vm14 = vmmov %vm14300_vm0  ;;  %v9689_v53 = vld [vmem:[%s13765_s7 + $0x18] sm:$0xff]  }
 0x709   :  { %v8199_v51 = vrot.slane %v8158_v36, 3  ;;  %v8349_v22 = vmax.f32 %v8317_v42, %v8333_v11  ;;  %v8284_v45 = vsel %vm14305_vm12, %v13448_v46, %v13489_v58  ;;  %v8487_v32 = vrot.slane %v8450_v56, 1  ;;  %v9664_v56 = vld [vmem:[%s13763_s5 + $0x28] sm:$0xff]   ;;  %v9666_v36 = vld [vmem:[%s13763_s5 + $0x30] sm:$0xff]  }
 0x70a   :  { %v8498_v43 = vsel %vm6789_vm15, %v8497_v52, %v8496_v48  ;;  %v8286_v46 = vsel %vm14309_vm7, %v13450_v3, %v8284_v45  ;;  %v9688_v48 = vld [vmem:[%s13765_s7 + $0x10] sm:$0xff]  }
 0x70c   :  { %v8324_v12 = vld [vmem:[#allocation7 + $0x74] sm:$0x1]  ;;  %v8340_v41 = vld [vmem:[#allocation7 + $0x75] sm:$0x1]  ;;  %v8223_v59 = vld [vmem:[#allocation7 + $0x72] sm:$0x1] }
 0x70d   :  { %v8356_v60 = vmax.f32 %v8324_v12, %v8340_v41  ;;  %v8239_v49 = vld [vmem:[#allocation7 + $0x73] sm:$0x1]  ;;  %v8425_v37 = vld [vmem:[#allocation7 + $0x76] sm:$0x1]  ;;  %v8441_v61 = vld [vmem:[#allocation7 + $0x77] sm:$0x1] }
 0x70e   :  { %v8325_v10 = vld [vmem:[#allocation7 + $0x7c] sm:$0x1]  ;;  %v8341_v20 = vld [vmem:[#allocation7 + $0x7d] sm:$0x1]  ;;  %v8224_v5 = vld [vmem:[#allocation7 + $0x7a] sm:$0x1]  ;;  %v8255_v17 = vmax.f32 %v8223_v59, %v8239_v49  ;;  %v8457_v27 = vmax.f32 %v8425_v37, %v8441_v61  ;;  %v8200_v59 = vsel %vm6789_vm15, %v8199_v51, %v8198_v62  ;;  %v8484_v49 = vsel %vm6789_vm15, %v13444_v39, %v13484_v55 }
 0x70f   :  { %v8357_v33 = vmax.f32 %v8325_v10, %v8341_v20  ;;  %v8398_v38 = vrot.slane %v8356_v60, 2  ;;  %v8240_v19 = vld [vmem:[#allocation7 + $0x7b] sm:$0x1]  ;;  %v8426_v26 = vld [vmem:[#allocation7 + $0x7e] sm:$0x1]  ;;  %v8384_v41 = vrot.slane %v8348_v63, 2  ;;  %v8486_v58 = vsel %vm14310_vm11, %v13452_v7, %v8484_v49 }
 0x710   :  { %v8256_v30 = vmax.f32 %v8224_v5, %v8240_v19  ;;  %v8297_v25 = vrot.slane %v8255_v17, 2  ;;  %v8442_v9 = vld [vmem:[#allocation7 + $0x7f] sm:$0x1]  ;;  %v8499_v50 = vrot.slane %v8457_v27, 2  ;;  %v8127_v14 = vld [vmem:[#allocation7 + $0x70] sm:$0x1]  ;;  %v8383_v63 = vsel %vm6789_vm15, %v13446_v18, %v13492_v47 }
 0x711   :  { %v8399_v57 = vsel %vm14300_vm0, %v8398_v38, %v8397_v54  ;;  %v8400_v23 = vrot.slane %v8357_v33, 1  ;;  %v8458_v29 = vmax.f32 %v8426_v26, %v8442_v9  ;;  %v8128_v24 = vld [vmem:[#allocation7 + $0x78] sm:$0x1]  ;;  %v8143_v31 = vld [vmem:[#allocation7 + $0x71] sm:$0x1]  ;;  %v8386_v61 = vrot.slane %v8349_v22, 1  ;;  %vm14313_vm0 = vmmov %vm14303_vm1 }
 0x712   :  { %v8298_v4 = vsel %vm14301_vm2, %v8297_v25, %v8296_v13  ;;  %v8299_v35 = vrot.slane %v8256_v30, 1  ;;  %v8144_v40 = vld [vmem:[#allocation7 + $0x79] sm:$0x1]  ;;  %v8159_v28 = vmax.f32 %v8127_v14, %v8143_v31  ;;  %v8500_v21 = vsel %vm14304_vm8, %v8499_v50, %v8498_v43  ;;  %v9661_v55 = vld [vmem:[%s13763_s5 + $0x60] sm:$0xff]   ;;  %v9663_v47 = vld [vmem:[%s13763_s5 + $0x68] sm:$0xff]  }
 0x713   :  { %v8401_v16 = vsel %vm14302_vm9, %v8400_v23, %v8399_v57  ;;  %v8501_v34 = vrot.slane %v8458_v29, 1  ;;  %v8160_v0 = vmax.f32 %v8128_v24, %v8144_v40  ;;  %v8385_v39 = vsel %vm14311_vm6, %v8384_v41, %v8383_v63  ;;  %9436 = vmatprep.subr.bf16.mxu1 %v9661_v55  ;;  %v9662_v18 = vld [vmem:[%s13763_s5 + $0x20] sm:$0xff]   ;;  %v9667_v10 = vld [vmem:[%s13763_s5 + $0x78] sm:$0xff]   ;;  %v9687_v27 = vld [vmem:[%s13765_s7 + $0x8] sm:$0xff]  }
 0x714   :  { %8404 = vrot.lane.b32.xlu1 %v8401_v16, %s9746_s29  ;;  %v8300_v1 = vsel %vm14303_vm1, %v8299_v35, %v8298_v4  ;;  %v8201_v12 = vrot.slane %v8159_v28, 2  ;;  %v8488_v3 = vsel %vm14312_vm4, %v8487_v32, %v8486_v58  ;;  %v8387_v7 = vsel %vm14313_vm0, %v8386_v61, %v8385_v39  ;;  %9437 = vmatpush3.bf16.msra.mxu1 %v9662_v18  ;;  %v9668_v20 = vld [vmem:[%s13763_s5 + $0x38] sm:$0xff]   ;;  %v9669_v5 = vld [vmem:[%s13763_s5 + $0xc0] sm:$0xff]   ;;  %v9691_v54 = vld [vmem:[%s13765_s7 + $0x28] sm:$0xff]  }
 0x715   :  { %8303 = vrot.lane.b32.xlu0 %v8300_v1, %s9744_s14  ;;  %v8203_v8 = vrot.slane %v8160_v0, 1  ;;  %v8502_v60 = vsel %vm14307_vm5, %v8501_v34, %v8500_v21  ;;  %9438 = vmatprep.subr.bf16.mxu1 %v9663_v47  ;;  %v9686_v17 = vld [vmem:[%s13765_s7] sm:$0xff]   ;;  %vm8408_vm2 = vcmask 785920   ;;  %vm8509_vm9 = vcmask 1048320   ;;  %vm14318_vm5 = vmmov %vm14313_vm0 }
 0x716   :  { %v8202_v15 = vsel %vm14306_vm14, %v8201_v12, %v8200_v59  ;;  %9571 = vmatpush3.bf16.msra.mxu0 %v9686_v17  ;;  %v9690_v33 = vld [vmem:[%s13765_s7 + $0x20] sm:$0xff]   ;;  %vm14314_vm1 = vcmask 1041409   ;;  %vm14320_vm7 = vmmov %vm14313_vm0 }
 0x717   :  { %v8204_v37 = vsel %vm14308_vm13, %v8203_v8, %v8202_v15  ;;  %9572 = vmatprep.subr.bf16.mxu0 %v9733_v2  ;;  %vm14315_vm8 = vmmov %vm14314_vm1 }
 0x718   :  { %8505 = vrot.lane.b32.xlu1 %v8502_v60, %s9748_s12  ;;  %8208 = vst.msk [vmem:[#allocation8 + $0x8] sm:$0xff] %vm8096_vm10, %v8204_v37  ;;  %9439 = vmatpush3.bf16.msra.mxu1 %v9664_v56  ;;  %vm8307_vm10 = vcmask 523520   ;;  %vm14316_vm12 = vmmov %vm14314_vm1 }
 0x719   :  { %8301 = vrot.lane.b32.xlu0 %v8286_v46, %s9744_s14  ;;  %9440 = vmatprep.subr.bf16.mxu1 %v9665_v44  ;;  %vm14317_vm14 = vmmov %vm14314_vm1 }
 0x71a   :  { %9573 = vmatpush3.bf16.msra.mxu0 %v9687_v27  ;;  %vm14319_vm13 = vmmov %vm14313_vm0 }
 0x71b   :  { %9574 = vmatprep.subr.bf16.mxu0 %v9733_v2  ;;  %vm14321_vm11 = vmmov %vm14313_vm0 }
 0x71c   :  { %8503 = vrot.lane.b32.xlu1 %v8488_v3, %s9748_s12  ;;  %9441 = vmatpush3.bf16.msra.mxu1 %v9666_v36 }
 0x71d   :  { %8402 = vrot.lane.b32.xlu0 %v8387_v7, %s9746_s29  ;;  %9442 = vmatprep.subr.bf16.mxu1 %v9667_v10 }
 0x71e   :  { %9575 = vmatpush3.bf16.msra.mxu0 %v9688_v48 }
 0x71f   :  { %9576 = vmatprep.subr.bf16.mxu0 %v9733_v2 }
 0x720   :  { %9443 = vmatpush3.bf16.msra.mxu1 %v9668_v20 }
 0x721   :  { %9450 = vmatprep.subr.bf16.mxu1 %v9669_v5 }
 0x722   :  { %9577 = vmatpush3.bf16.msra.mxu0 %v9689_v53 }
 0x723   :  { %9578 = vmatprep.subr.bf16.mxu0 %v9733_v2 }
 0x726   :  { %9579 = vmatpush3.bf16.msra.mxu0 %v9690_v33 }
 0x727   :  { %9580 = vmatprep.subr.bf16.mxu0 %v9733_v2 }
 0x72a   :  { %9581 = vmatpush3.bf16.msra.mxu0 %v9691_v54 }
 0x72b   :  { %9582 = vmatprep.subr.bf16.mxu0 %v9733_v2 }
 0x786   :  { %v8405_v38 = vpop.permute.xlu1 %8404 }
 0x787   :  { %v8304_v19 = vpop.permute.xlu0 %8303 }
 0x788   :  { %8309 = vst.msk [vmem:[#allocation8 + $0x8] sm:$0xff] %vm8307_vm10, %v8304_v19 }
 0x789   :  { %8410 = vst.msk [vmem:[#allocation8 + $0x8] sm:$0xff] %vm8408_vm2, %v8405_v38 }
 0x78a   :  { %v8506_v26 = vpop.permute.xlu1 %8505 }
 0x78b   :  { %8511 = vst.msk [vmem:[#allocation8 + $0x8] sm:$0xff] %vm8509_vm9, %v8506_v26  ;;  %v8302_v52 = vpop.permute.xlu0 %8301  ;;  %v9670_v26 = vld [vmem:[%s13763_s5 + $0x80] sm:$0xff]  }
 0x78c   :  { %8308 = vst.msk [vmem:[#allocation8] sm:$0xff] %vm8307_vm10, %v8302_v52 }
 0x78e   :  { %v8504_v42 = vpop.permute.xlu1 %8503 }
 0x78f   :  { %v8403_v11 = vpop.permute.xlu0 %8402 }
 0x790   :  { %8409 = vst.msk [vmem:[#allocation8] sm:$0xff] %vm8408_vm2, %v8403_v11  ;;  %v9672_v11 = vld [vmem:[%s13763_s5 + $0xc8] sm:$0xff]  }
 0x791   :  { %8510 = vst.msk [vmem:[#allocation8] sm:$0xff] %vm8509_vm9, %v8504_v42 }
 0x792   :  { %v8513_v30 = vld [vmem:[#allocation8 + $0x8] sm:$0x1]  ;;  %v8515_v13 = vld [vmem:[#allocation8 + $0x9] sm:$0x1]  ;;  %v8544_v25 = vld [vmem:[#allocation8 + $0xa] sm:$0x1] }
 0x793   :  { %v8517_v9 = vmax.f32 %v8513_v30, %v8515_v13  ;;  %v8546_v50 = vld [vmem:[#allocation8 + $0xb] sm:$0x1]  ;;  %v8575_v14 = vld [vmem:[#allocation8 + $0xc] sm:$0x1]  ;;  %v8577_v57 = vld [vmem:[#allocation8 + $0xd] sm:$0x1] }
 0x794   :  { %v8548_v23 = vmax.f32 %v8544_v25, %v8546_v50  ;;  %v8606_v29 = vld [vmem:[#allocation8 + $0xe] sm:$0x1]  ;;  %v8608_v24 = vld [vmem:[#allocation8 + $0xf] sm:$0x1]  ;;  %v8579_v31 = vmax.f32 %v8575_v14, %v8577_v57  ;;  %v9674_v13 = vld [vmem:[%s13763_s5 + $0xd0] sm:$0xff]  }
 0x795   :  { %v8610_v51 = vmax.f32 %v8606_v29, %v8608_v24  ;;  %v8533_v4 = vrot.slane %v8517_v9, %v11020_v6  ;;  %v9675_v25 = vld [vmem:[%s13763_s5 + $0x90] sm:$0xff]   ;;  %v9676_v9 = vld [vmem:[%s13763_s5 + $0xd8] sm:$0xff]   ;;  %v9678_v14 = vld [vmem:[%s13763_s5 + $0xe0] sm:$0xff]  }
 0x796   :  { %v8564_v35 = vrot.slane %v8548_v23, %v11020_v6  ;;  %v8595_v62 = vrot.slane %v8579_v31, %v11020_v6  ;;  %v9677_v50 = vld [vmem:[%s13763_s5 + $0x98] sm:$0xff]   ;;  %v9679_v57 = vld [vmem:[%s13763_s5 + $0xa0] sm:$0xff]   ;;  %v9680_v23 = vld [vmem:[%s13763_s5 + $0xe8] sm:$0xff]  }
 0x797   :  { %v8626_v0 = vrot.slane %v8610_v51, %v11020_v6  ;;  %v8536_v45 = vrot.slane %v8533_v4, 7  ;;  %v9681_v29 = vld [vmem:[%s13763_s5 + $0xa8] sm:$0xff]   ;;  %v9682_v24 = vld [vmem:[%s13763_s5 + $0xf0] sm:$0xff]   ;;  %v9684_v51 = vld [vmem:[%s13763_s5 + $0xf8] sm:$0xff]  }
 0x798   :  { %v8512_v40 = vld [vmem:[#allocation8] sm:$0x1]  ;;  %v8514_v28 = vld [vmem:[#allocation8 + $0x1] sm:$0x1]  ;;  %v8543_v43 = vld [vmem:[#allocation8 + $0x2] sm:$0x1] }
 0x799   :  { %v8516_v16 = vmax.f32 %v8512_v40, %v8514_v28  ;;  %v8545_v34 = vld [vmem:[#allocation8 + $0x3] sm:$0x1]  ;;  %v8574_v21 = vld [vmem:[#allocation8 + $0x4] sm:$0x1]  ;;  %v8576_v22 = vld [vmem:[#allocation8 + $0x5] sm:$0x1] }
 0x79a   :  { %v8547_v1 = vmax.f32 %v8543_v43, %v8545_v34  ;;  %v8605_v12 = vld [vmem:[#allocation8 + $0x6] sm:$0x1]  ;;  %v8578_v8 = vmax.f32 %v8574_v21, %v8576_v22  ;;  %v8607_v59 = vld [vmem:[#allocation8 + $0x7] sm:$0x1]  ;;  %v8567_v15 = vrot.slane %v8564_v35, 7  ;;  %v8598_v32 = vrot.slane %v8595_v62, 7 }
 0x79b   :  { %v8526_v41 = vrot.slane %v8516_v16, %v11020_v6  ;;  %v8609_v49 = vmax.f32 %v8605_v12, %v8607_v59  ;;  %v8629_v58 = vrot.slane %v8626_v0, 7  ;;  %v9683_v31 = vld [vmem:[%s13763_s5 + $0xb0] sm:$0xff]   ;;  %v9685_v4 = vld [vmem:[%s13763_s5 + $0xb8] sm:$0xff]   ;;  %v9694_v62 = vld [vmem:[%s13767_s9] sm:$0xff]  }
 0x79c   :  { %v8557_v60 = vrot.slane %v8547_v1, %v11020_v6  ;;  %v8588_v46 = vrot.slane %v8578_v8, %v11020_v6  ;;  %v9692_v40 = vld [vmem:[%s13765_s7 + $0x30] sm:$0xff]   ;;  %v9693_v28 = vld [vmem:[%s13765_s7 + $0x38] sm:$0xff]   ;;  %v9695_v16 = vld [vmem:[%s13767_s9 + $0x8] sm:$0xff]  }
 0x79d   :  { %v8537_v37 = vsel %vm14314_vm1, %v8536_v45, %v8526_v41  ;;  %v8619_v61 = vrot.slane %v8609_v49, %v11020_v6  ;;  %9583 = vmatpush3.bf16.msra.mxu0 %v9692_v40  ;;  %v9696_v43 = vld [vmem:[%s13767_s9 + $0x10] sm:$0xff]   ;;  %v9697_v34 = vld [vmem:[%s13767_s9 + $0x18] sm:$0xff]   ;;  %v9698_v0 = vld [vmem:[%s13767_s9 + $0x20] sm:$0xff]  }
 0x79e   :  { %v8568_v63 = vsel %vm14315_vm8, %v8567_v15, %v8557_v60  ;;  %v8538_v39 = vsel %vm6783_vm3, %v8536_v45, %v8537_v37  ;;  %v8599_v55 = vsel %vm14316_vm12, %v8598_v32, %v8588_v46  ;;  %9584 = vmatprep.subr.bf16.mxu0 %v9733_v2  ;;  %v9699_v1 = vld [vmem:[%s13767_s9 + $0x28] sm:$0xff]   ;;  %v9273_v8 = vld [vmem:[%s13764_s6] ss:$0 sm:$0xff] }
 0x79f   :  { %v8539_v3 = vsel %vm6789_vm15, %v8536_v45, %v8538_v39  ;;  %v8569_v7 = vsel %vm6783_vm3, %v8567_v15, %v8568_v63  ;;  %v8630_v18 = vsel %vm14317_vm14, %v8629_v58, %v8619_v61  ;;  %v8600_v44 = vsel %vm6783_vm3, %v8598_v32, %v8599_v55  ;;  %v9700_v61 = vld [vmem:[%s13767_s9 + $0x30] sm:$0xff]   ;;  %v9701_v39 = vld [vmem:[%s13767_s9 + $0x38] sm:$0xff]   ;;  %v9306_v55 = vld [vmem:[%s13766_s8] ss:$0 sm:$0xff]  ;;  %s9709_s8 = scalar_lea.vmem %s9240_s20, 32 }
 0x7a0   :  { %v8540_v47 = vsel %vm14318_vm5, %v8536_v45, %v8539_v3  ;;  %v8570_v56 = vsel %vm6789_vm15, %v8567_v15, %v8569_v7  ;;  %v8601_v10 = vsel %vm6789_vm15, %v8598_v32, %v8600_v44  ;;  %v8631_v20 = vsel %vm6783_vm3, %v8629_v58, %v8630_v18  ;;  %p9710_p0 = scmp.ne.s32.totalorder %s9240_s20, %s9709_s8  ;;  %p9715_p2 = scmp.lt.s32.totalorder %s9709_s8, %s9709_s8 }
 0x7a1   :  { %8542 = vst [vmem:[#allocation9] sm:$0x3] %v8540_v47  ;;  %v8571_v36 = vsel %vm14319_vm13, %v8567_v15, %v8570_v56  ;;  %v8602_v5 = vsel %vm14320_vm7, %v8598_v32, %v8601_v10  ;;  %v8632_v17 = vsel %vm6789_vm15, %v8629_v58, %v8631_v20  ;;  %9585 = vmatpush3.bf16.msra.mxu0 %v9693_v28  ;;  %vm9750_vm3 = vmmov 0  }
 0x7a2   :  { %8573 = vst [vmem:[#allocation9 + $0x2] sm:$0x3] %v8571_v36  ;;  %8604 = vst [vmem:[#allocation9 + $0x4] sm:$0x3] %v8602_v5  ;;  %v8633_v27 = vsel %vm14321_vm11, %v8629_v58, %v8632_v17  ;;  %9586 = vmatprep.mubr.msk.bf16.mxu0 %vm9750_vm3, %v9733_v2  ;;  %p9716_p3 = por %p9715_p2, %p9714_p1 }
 0x7a3   :  { %8635 = vst [vmem:[#allocation9 + $0x6] sm:$0x3] %v8633_v27 }
 0x7a4   :  { %p9717_p4 = pnand %p9716_p3, %p9710_p0 }
 0x7aa   :  { %v8636_v48 = vld [vmem:[#allocation9] sm:$0xff] }
 0x7ab   :  { %v8645_v53 = vrot.slane %v8636_v48, %v11020_v6  ;;  %v8638_v33 = vcombine.high %v8636_v48, %v8636_v48 }
 0x7ad   :  { %v8653_v54 = vcombine.high %v8645_v53, %v8645_v53  ;;  %v8652_v38 = vrot.slane %v8638_v33, %v11020_v6  ;;  %v8659_v42 = vpack.c.bf16 %v8645_v53, %v8645_v53  ;;  %v9673_v6 = vld [vmem:[%s13763_s5 + $0x88] sm:$0xff]  }
 0x7af   :  { %v8660_v19 = vpack.c.bf16 %v8653_v54, %v8653_v54  ;;  %v8654_v52 = vcombine.high %v8652_v38, %v8652_v38  ;;  %v8661_v35 = vpack.c.bf16 %v8652_v38, %v8652_v38 }
 0x7b1   :  { %8958 = vmatprep.mubr.bf16.mxu1 %v8660_v19  ;;  %v8662_v30 = vpack.c.bf16 %v8654_v52, %v8654_v52 }
 0x7b2   :  { %8959 = vmatmul.mubr.bf16.vlgmr.msra.gmra.mrb[32].mxu1 %v8659_v42 }
 0x7b3   :  { %9451 = vmatpush3.bf16.msra.mxu1 %v9670_v26  ;;  %8998 = vmatprep.mubr.bf16.mxu1 %v8662_v30 }
 0x7b4   :  { %9452 = vmatprep.subr.bf16.mxu1 %v9672_v11 }
 0x7b7   :  { %9453 = vmatpush3.bf16.msra.mxu1 %v9673_v6 }
 0x7b8   :  { %9454 = vmatprep.subr.bf16.mxu1 %v9674_v13 }
 0x7bb   :  { %9455 = vmatpush3.bf16.msra.mxu1 %v9675_v25 }
 0x7bc   :  { %9456 = vmatprep.subr.bf16.mxu1 %v9676_v9 }
 0x7bf   :  { %9457 = vmatpush3.bf16.msra.mxu1 %v9677_v50 }
 0x7c0   :  { %9458 = vmatprep.subr.bf16.mxu1 %v9678_v14 }
 0x7c3   :  { %9459 = vmatpush3.bf16.msra.mxu1 %v9679_v57 }
 0x7c4   :  { %9460 = vmatprep.subr.bf16.mxu1 %v9680_v23 }
 0x7c7   :  { %9461 = vmatpush3.bf16.msra.mxu1 %v9681_v29 }
 0x7c8   :  { %9462 = vmatprep.subr.bf16.mxu1 %v9682_v24 }
 0x7cb   :  { %9463 = vmatpush3.bf16.msra.mxu1 %v9683_v31 }
 0x7cc   :  { %9464 = vmatprep.subr.bf16.mxu1 %v9684_v51 }
 0x7cf   :  { %9465 = vmatpush3.bf16.msra.mxu1 %v9685_v4 }
 0x7d0   :  { %9590 = vmatprep.subr.bf16.mxu1 %v9733_v2 }
 0x7d2   :  { %8999 = vmatmul.mubr.bf16.vlgmr.msra.gmra.mrb[36].mxu1 %v8661_v35 }
 0x7d3   :  { %9606 = vmatprep.mubr.msk.bf16.mxu1 %vm9750_vm3, %v9733_v2  ;;  %9591 = vmatpush3.bf16.msra.mxu1 %v9694_v62 }
 0x7d4   :  { %9592 = vmatprep.subr.bf16.mxu1 %v9733_v2 }
 0x7d7   :  { %9593 = vmatpush3.bf16.msra.mxu1 %v9695_v16 }
 0x7d8   :  { %9594 = vmatprep.subr.bf16.mxu1 %v9733_v2 }
 0x7db   :  { %9595 = vmatpush3.bf16.msra.mxu1 %v9696_v43 }
 0x7dc   :  { %9596 = vmatprep.subr.bf16.mxu1 %v9733_v2 }
 0x7df   :  { %9597 = vmatpush3.bf16.msra.mxu1 %v9697_v34 }
 0x7e0   :  { %9598 = vmatprep.subr.bf16.mxu1 %v9733_v2 }
 0x7e3   :  { %9599 = vmatpush3.bf16.msra.mxu1 %v9698_v0 }
 0x7e4   :  { %9600 = vmatprep.subr.bf16.mxu1 %v9733_v2 }
 0x7e7   :  { %9601 = vmatpush3.bf16.msra.mxu1 %v9699_v1 }
 0x7e8   :  { %9602 = vmatprep.subr.bf16.mxu1 %v9733_v2 }
 0x7eb   :  { %9603 = vmatpush3.bf16.msra.mxu1 %v9700_v61 }
 0x7ec   :  { %9604 = vmatprep.subr.bf16.mxu1 %v9733_v2  ;;  %v9315_v2 = vld [vmem:[%s13768_s10] ss:$0 sm:$0xff] }
 0x7ef   :  { %9605 = vmatpush3.bf16.msra.mxu1 %v9701_v39 }
 0x885   :  { %v9444_v21 = vpop.f32.mrb[32].mxu1 }
 0x886   :  { %v9445_v22 = vpop.f32.mrb[33].mxu1 }
 0x887   :  { %v9446_v12 = vadd.f32 %v9445_v22, %v9444_v21  ;;  %v9447_v45 = vpop.f32.mrb[34].mxu1 }
 0x888   :  { %v9448_v41 = vpop.f32.mrb[35].mxu1 }
 0x889   :  { %v8961_v60 = vadd.f32 %v9446_v12, %v9273_v8 }
 0x8a5   :  { %v9466_v59 = vpop.f32.mrb[36].mxu1 }
 0x8a6   :  { %v9467_v15 = vpop.f32.mrb[37].mxu1 }
 0x8a7   :  { %v9468_v49 = vadd.f32 %v9467_v15, %v9466_v59  ;;  %v9469_v32 = vpop.f32.mrb[38].mxu1 }
 0x8a8   :  { %v9470_v37 = vpop.f32.mrb[39].mxu1 }
 0x8a9   :  { %v9001_v46 = vadd.f32 %v9468_v49, %v8961_v60 }
 0x8ab   :  { %v9006_v58 = vmax.f32 %v9001_v46, 0.0 }
 0x8ad   :  { %v9007_v63 = vpack.c.bf16 %v9006_v58, %v9006_v58 }
 0x8af   :  { %9587 = vmatmul.mubr.bf16.vlgmr.msra.gmra.mrb[64].mxu0 %v9007_v63 }
 0x982   :  { %v9113_v3 = vpop.f32.mrb[64].mxu0 }
 0x983   :  { %v9114_v7 = vadd.f32 %v9306_v55, %v9113_v3  ;;  %v9588_v18 = vpop.f32.mrb[65].mxu0 }
 0x984   :  { %v9116_v47 = vpop.f32.mrb[66].mxu0 }
 0x985   :  { %v9119_v56 = vmax.f32 %v9114_v7, 0.0  ;;  %v9589_v44 = vpop.f32.mrb[67].mxu0 }
 0x987   :  { %v9120_v36 = vpack.c.bf16 %v9119_v56, %v9119_v56 }
 0x989   :  { %9607 = vmatmul.mubr.bf16.vlgmr.msra.gmra.mrb[40].mxu1 %v9120_v36 }
 0xa5c   :  { %v9226_v10 = vpop.f32.mrb[40].mxu1 }
 0xa5d   :  { %v9227_v20 = vadd.f32 %v9315_v2, %v9226_v10  ;;  %v9608_v5 = vpop.f32.mrb[41].mxu1 }
 0xa5e   :  { %v9229_v17 = vpop.f32.mrb[42].mxu1 }
 0xa5f   :  { %9232 = vst [vmem:[#allocation10] sm:$0x3] %v9227_v20  ;;  %v9609_v27 = vpop.f32.mrb[43].mxu1 }
 0xa60   :  { %9720 = shalt.err (!%p9717_p4)
}
 0xa61   :  { %s9721_s10 = scalar_lea.hbm %s13769_s11, 32 }
 0xa62   :  { %p9722_p5 = scmp.ne.s32.totalorder %s13769_s11, %s9721_s10  ;;  %p9725_p6 = scmp.lt.u32.totalorder %s9721_s10, %s13769_s11 }
 0xa64   :  { %p9727_p7 = pnand %p9725_p6, %p9722_p5 }
 0xa66   :  { %9730 = shalt.err (!%p9727_p7)
}
 0xa67   :  { %9242 = dma.vmem_to_hbm [thread:$0]  %s9240_s20, 32, %s13769_s11, [#allocation11]  }
 0xa68   :  { %9731 = dma.done.wait [#allocation11], 32  }
 0xa69   :  { %9732 = vsyncadd [#allocation11], 4294967264 }
 0xa6a   :  { %9246 = vsyncpa [#allocation11], 1 }

</bundles_post_ra>
